<compile_context>
chip_gen: v7x
topology: tpu7x:2x2x1
jax: 0.10.0
libtpu: 0.0.40
codegen_flags: <defaults>
</compile_context>

<pallas_src>
import jax
import jax.numpy as jnp
from jax import lax
from jax.experimental import pallas as pl
from jax.experimental.pallas import tpu as pltpu

DIM = 2048          # transformer dim
N_TOK = 18          # (h//size)*(w//size) must equal 18 (pos_embedding / view(...,6,3))
DIM_HEAD = 32       # heads=1, dim_head=32 -> inner_dim=32
MLP = 16
OUT_H, OUT_W = 18, 9
IN_H, IN_W = 6, 3
OUT_HW = OUT_H * OUT_W      # 162
IN_HW = IN_H * IN_W         # 18
EPS = 1e-5
INV_SQRT2 = 0.7071067811865476

MAX_B_BLK = 16      # 16*18 = 288 token rows / grid step (v6e/v7x MXU height;
                    # v5e simply takes 2-3 passes of its 128-tall MXU)
M2_TILE = 2048      # interp-matmul rows per grid step


def _layernorm(x, w, b):
    # single-pass stats: one elementwise pass + two cheap reductions
    mu = jnp.mean(x, axis=-1, keepdims=True)
    ms = jnp.mean(x * x, axis=-1, keepdims=True)
    var = ms - mu * mu
    return (x - mu) * lax.rsqrt(var + EPS) * w + b


def _gelu_exact(x):
    return 0.5 * x * (1.0 + lax.erf(x * INV_SQRT2))


def sam_transformer_kernel(
    patches_ref, patch_w_ref, patch_b_ref, pos_ref,
    ln1_w_ref, ln1_b_ref, qkv_w_ref, attn_bias_ref, out_w_ref, out_b_ref,
    ln2_w_ref, ln2_b_ref, ff1_w_ref, ff1_b_ref, ff2_w_ref, ff2_b_ref,
    o_ref,
):
    scale = DIM ** -0.5   # matches the PyTorch module: self.scale = dim ** (-0.5)

    # --- patch embedding (stride==kernel conv as matmul) + positional embedding ---
    tokens = jnp.dot(patches_ref[...], patch_w_ref[...],
                     preferred_element_type=jnp.float32)               # (rows, 2048)
    tokens = tokens + patch_b_ref[...] + pos_ref[...]

    # --- PreNorm + Attention (no residual), fused QKV projection ---
    h = _layernorm(tokens, ln1_w_ref[...], ln1_b_ref[...])
    qkv = jnp.dot(h, qkv_w_ref[...], preferred_element_type=jnp.float32)  # (rows, 96)
    q = qkv[:, :DIM_HEAD]
    k = qkv[:, DIM_HEAD:2 * DIM_HEAD]
    v = qkv[:, 2 * DIM_HEAD:]
    dots = lax.dot_general(q, k, (((1,), (1,)), ((), ())),
                           preferred_element_type=jnp.float32) * scale    # (rows, rows)
    # block-diagonal bias: tokens only attend within their own batch element
    dots = dots + attn_bias_ref[...]
    dots = dots - jnp.max(dots, axis=-1, keepdims=True)
    e = jnp.exp(dots)
    attn = e * (1.0 / jnp.sum(e, axis=-1, keepdims=True))
    av = jnp.dot(attn, v, preferred_element_type=jnp.float32)             # (rows, 32)
    attn_out = (jnp.dot(av, out_w_ref[...], preferred_element_type=jnp.float32)
                + out_b_ref[...])                                         # (rows, 2048)

    # --- PreNorm + FeedForward (no residual) ---
    h2 = _layernorm(attn_out, ln2_w_ref[...], ln2_b_ref[...])
    f1 = _gelu_exact(jnp.dot(h2, ff1_w_ref[...], preferred_element_type=jnp.float32)
                     + ff1_b_ref[...])                                    # (rows, 16)
    o_ref[...] = (jnp.dot(f1, ff2_w_ref[...], preferred_element_type=jnp.float32)
                  + ff2_b_ref[...])                                       # (rows, 2048)


def interp_kernel(x_ref, w_ref, o_ref):
    # x: (M_tile, 18)  w: (18, 162)  o: (M_tile, 162)
    o_ref[...] = jnp.dot(x_ref[...], w_ref[...], preferred_element_type=jnp.float32)


def _interp_matrix(in_size, out_size):
    """Row-interpolation matrix W (out, in) for bilinear, align_corners=True."""
    src = jnp.linspace(0.0, float(in_size - 1), out_size)
    i0 = jnp.clip(jnp.floor(src).astype(jnp.int32), 0, in_size - 2)
    frac = src - i0.astype(jnp.float32)
    return ((1.0 - frac)[:, None] * jax.nn.one_hot(i0, in_size, dtype=jnp.float32)
            + frac[:, None] * jax.nn.one_hot(i0 + 1, in_size, dtype=jnp.float32))


def sam_forward(x, params, size):
    b, c, h, w = x.shape
    hp, wp = h // size, w // size
    assert hp * wp == N_TOK, "SAM forward requires (h//size)*(w//size) == 18"
    P = c * size * size

    # --- glue: patch extraction (matches PyTorch Conv2d OIHW contraction order) ---
    patches = (x.reshape(b, c, hp, size, wp, size)
                .transpose(0, 2, 4, 1, 3, 5)
                .reshape(b, N_TOK, P)).astype(jnp.float32)

    # stack whole batch elements into the matmul M dimension
    b_blk = b if b <= MAX_B_BLK else MAX_B_BLK
    b_pad = ((b + b_blk - 1) // b_blk) * b_blk
    if b_pad != b:
        patches = jnp.concatenate(
            [patches, jnp.zeros((b_pad - b, N_TOK, P), jnp.float32)], axis=0)
    rows_blk = b_blk * N_TOK
    rows_pad = b_pad * N_TOK
    n_steps = rows_pad // rows_blk
    patches2 = patches.reshape(rows_pad, P)

    patch_w = params["conv_w"].reshape(DIM, P).T                          # (P, 2048)
    pos_tiled = jnp.tile(params["pos"][0], (b_blk, 1))                    # (rows_blk, 2048)
    gid = jnp.repeat(jnp.arange(b_blk, dtype=jnp.int32), N_TOK)
    attn_bias = jnp.where(gid[:, None] == gid[None, :], 0.0, -1e30
                          ).astype(jnp.float32)                           # (rows_blk, rows_blk)

    row2 = lambda a: a.reshape(1, -1)
    full2 = lambda shape: pl.BlockSpec(shape, lambda i: (0, 0))

    flops1 = int(2 * rows_pad * DIM * (P + 4 * DIM_HEAD + 2 * MLP)
                 + 4 * n_steps * rows_blk * rows_blk * DIM_HEAD)
    trans1 = int(n_steps * rows_blk * rows_blk + rows_pad * (MLP + 4))
    bytes1 = int(4 * (rows_pad * (P + DIM) + rows_blk * (DIM + rows_blk)
                      + P * DIM + 4 * DIM_HEAD * DIM
                      + 2 * DIM * MLP + 7 * DIM + 2 * MLP))

    tokens_out = pl.pallas_call(
        sam_transformer_kernel,
        out_shape=jax.ShapeDtypeStruct((rows_pad, DIM), jnp.float32),
        grid=(n_steps,),
        in_specs=[
            pl.BlockSpec((rows_blk, P), lambda i: (i, 0)),
            full2((P, DIM)),
            full2((1, DIM)),
            full2((rows_blk, DIM)),
            full2((1, DIM)), full2((1, DIM)),
            full2((DIM, 3 * DIM_HEAD)),
            full2((rows_blk, rows_blk)),
            full2((DIM_HEAD, DIM)), full2((1, DIM)),
            full2((1, DIM)), full2((1, DIM)),
            full2((DIM, MLP)), full2((1, MLP)),
            full2((MLP, DIM)), full2((1, DIM)),
        ],
        out_specs=pl.BlockSpec((rows_blk, DIM), lambda i: (i, 0)),
        compiler_params=pltpu.CompilerParams(
            dimension_semantics=("parallel",),
            vmem_limit_bytes=48 * 1024 * 1024),
        cost_estimate=pl.CostEstimate(flops=flops1, transcendentals=trans1,
                                      bytes_accessed=bytes1),
    )(patches2, patch_w, row2(params["conv_b"]), pos_tiled,
      row2(params["ln1_w"]), row2(params["ln1_b"]),
      params["qkv_w"], attn_bias, params["out_w"], row2(params["out_b"]),
      row2(params["ln2_w"]), row2(params["ln2_b"]),
      params["ff1_w"], row2(params["ff1_b"]),
      params["ff2_w"], row2(params["ff2_b"]))

    if b_pad != b:
        tokens_out = tokens_out[:b * N_TOK]

    # --- torch `.view(b, 2048, 6, 3)` is a raw row-major reshape of (b, 18, 2048) ---
    img_rows = tokens_out.reshape(b * DIM, IN_HW)                         # free reshape

    # --- bilinear(align_corners=True) as a matmul: out = img_rows @ W2^T ---
    Wh = _interp_matrix(IN_H, OUT_H)                                      # (18, 6)
    Ww = _interp_matrix(IN_W, OUT_W)                                      # (9, 3)
    W2 = jnp.einsum("Ii,Jj->IJij", Wh, Ww).reshape(OUT_HW, IN_HW)
    interp_w = W2.T                                                       # (18, 162)

    M2 = b * DIM
    m2_tile = min(M2_TILE, M2)          # M2 is a multiple of 2048 -> always divides
    n2 = M2 // m2_tile
    flops2 = int(2 * M2 * IN_HW * OUT_HW)
    bytes2 = int(4 * (M2 * (IN_HW + OUT_HW) + IN_HW * OUT_HW))

    out_flat = pl.pallas_call(
        interp_kernel,
        out_shape=jax.ShapeDtypeStruct((M2, OUT_HW), jnp.float32),
        grid=(n2,),
        in_specs=[
            pl.BlockSpec((m2_tile, IN_HW), lambda i: (i, 0)),
            pl.BlockSpec((IN_HW, OUT_HW), lambda i: (0, 0)),
        ],
        out_specs=pl.BlockSpec((m2_tile, OUT_HW), lambda i: (i, 0)),
        compiler_params=pltpu.CompilerParams(
            dimension_semantics=("parallel",),
            vmem_limit_bytes=16 * 1024 * 1024),
        cost_estimate=pl.CostEstimate(flops=flops2, transcendentals=0,
                                      bytes_accessed=bytes2),
    )(img_rows, interp_w)

    return out_flat.reshape(b, DIM, OUT_H, OUT_W)


# ----------------------------- pure-JAX reference -----------------------------
def _bilinear_ac_ref(img, oh, ow):
    b, c, ih, iw = img.shape
    ys = jnp.linspace(0.0, ih - 1, oh)
    xs = jnp.linspace(0.0, iw - 1, ow)
    y0 = jnp.clip(jnp.floor(ys).astype(jnp.int32), 0, ih - 2)
    x0 = jnp.clip(jnp.floor(xs).astype(jnp.int32), 0, iw - 2)
    wy = (ys - y0)[None, None, :, None]
    wx = (xs - x0)[None, None, None, :]
    g = lambda yi, xi: img[:, :, yi, :][:, :, :, xi]
    top = g(y0, x0) * (1 - wx) + g(y0, x0 + 1) * wx
    bot = g(y0 + 1, x0) * (1 - wx) + g(y0 + 1, x0 + 1) * wx
    return top * (1 - wy) + bot * wy


def sam_forward_ref(x, params, size):
    b = x.shape[0]
    conv = lax.conv_general_dilated(x, params["conv_w"], (size, size), "VALID",
                                    dimension_numbers=("NCHW", "OIHW", "NCHW"))
    conv = conv + params["conv_b"][None, :, None, None]
    tokens = conv.reshape(b, DIM, -1).transpose(0, 2, 1) + params["pos"]

    def ln(t, w, bi):
        mu = t.mean(-1, keepdims=True)
        var = ((t - mu) ** 2).mean(-1, keepdims=True)
        return (t - mu) / jnp.sqrt(var + EPS) * w + bi

    h = ln(tokens, params["ln1_w"], params["ln1_b"])
    qkv = h @ params["qkv_w"]
    q, k, v = jnp.split(qkv, 3, axis=-1)
    dots = jnp.einsum("bid,bjd->bij", q, k) * (DIM ** -0.5)
    attn = jax.nn.softmax(dots, axis=-1)
    av = jnp.einsum("bij,bjd->bid", attn, v)
    ao = av @ params["out_w"] + params["out_b"]
    h2 = ln(ao, params["ln2_w"], params["ln2_b"])
    f1 = jax.nn.gelu(h2 @ params["ff1_w"] + params["ff1_b"], approximate=False)
    y = f1 @ params["ff2_w"] + params["ff2_b"]
    img = y.reshape(b, DIM, IN_H, IN_W)
    return _bilinear_ac_ref(img, OUT_H, OUT_W)


# --------------------------------- main ---------------------------------------
if __name__ == "__main__":
    channels, size = 4, 2
    b, h, w = 2, IN_H * size, IN_W * size          # (2, 4, 12, 6): 6x3 = 18 patches

    key = jax.random.PRNGKey(0)
    ks = jax.random.split(key, 20)
    nrm = lambda k, s, sc: sc * jax.random.normal(k, s, dtype=jnp.float32)

    params = {
        "conv_w": nrm(ks[0], (DIM, channels, size, size), 0.05),
        "conv_b": nrm(ks[1], (DIM,), 0.05),
        "pos":    nrm(ks[2], (1, N_TOK, DIM), 1.0),
        "ln1_w":  1.0 + nrm(ks[3], (DIM,), 0.1),
        "ln1_b":  nrm(ks[4], (DIM,), 0.1),
        "qkv_w":  nrm(ks[5], (DIM, 3 * DIM_HEAD), 0.02),
        "out_w":  nrm(ks[6], (DIM_HEAD, DIM), 0.05),
        "out_b":  nrm(ks[7], (DIM,), 0.02),
        "ln2_w":  1.0 + nrm(ks[8], (DIM,), 0.1),
        "ln2_b":  nrm(ks[9], (DIM,), 0.1),
        "ff1_w":  nrm(ks[10], (DIM, MLP), 0.02),
        "ff1_b":  nrm(ks[11], (MLP,), 0.02),
        "ff2_w":  nrm(ks[12], (MLP, DIM), 0.1),
        "ff2_b":  nrm(ks[13], (DIM,), 0.02),
    }

    x = jax.random.normal(ks[14], (b, channels, h, w), dtype=jnp.float32)

    out = sam_forward(x, params, size)
    out = jax.block_until_ready(out)
    assert out.shape == (b, DIM, OUT_H, OUT_W), out.shape

    ref = jax.block_until_ready(sam_forward_ref(x, params, size))
    assert jnp.allclose(out, ref, atol=2e-3, rtol=2e-3), \
        f"max abs err {jnp.max(jnp.abs(out - ref))}"

    print("KERNEL_OK")
</pallas_src>

<mosaic_0001>
module attributes {stable_mosaic.version = 11 : i64} {
  func.func @sam_transformer_kernel(%arg0: i32, %arg1: memref<36x16xf32, #tpu.memory_space<vmem>>, %arg2: memref<16x2048xf32, #tpu.memory_space<vmem>>, %arg3: memref<1x2048xf32, #tpu.memory_space<vmem>>, %arg4: memref<36x2048xf32, #tpu.memory_space<vmem>>, %arg5: memref<1x2048xf32, #tpu.memory_space<vmem>>, %arg6: memref<1x2048xf32, #tpu.memory_space<vmem>>, %arg7: memref<2048x96xf32, #tpu.memory_space<vmem>>, %arg8: memref<36x36xf32, #tpu.memory_space<vmem>>, %arg9: memref<32x2048xf32, #tpu.memory_space<vmem>>, %arg10: memref<1x2048xf32, #tpu.memory_space<vmem>>, %arg11: memref<1x2048xf32, #tpu.memory_space<vmem>>, %arg12: memref<1x2048xf32, #tpu.memory_space<vmem>>, %arg13: memref<2048x16xf32, #tpu.memory_space<vmem>>, %arg14: memref<1x16xf32, #tpu.memory_space<vmem>>, %arg15: memref<16x2048xf32, #tpu.memory_space<vmem>>, %arg16: memref<1x2048xf32, #tpu.memory_space<vmem>>, %arg17: memref<36x2048xf32, #tpu.memory_space<vmem>>) attributes {dimension_semantics = [#tpu.dimension_semantics<parallel>], iteration_bounds = array<i64: 1>, scalar_prefetch = 0 : i64, scratch_operands = 0 : i64, tpu.core_type = #tpu.core_type<tc>, window_params = [{transform_indices = @transform_0, window_bounds = array<i64: 36, 16>}, {pipeline_mode = #tpu.pipeline_mode<synchronous>, transform_indices = @transform_1, window_bounds = array<i64: 16, 2048>}, {pipeline_mode = #tpu.pipeline_mode<synchronous>, transform_indices = @transform_2, window_bounds = array<i64: 1, 2048>}, {pipeline_mode = #tpu.pipeline_mode<synchronous>, transform_indices = @transform_3, window_bounds = array<i64: 36, 2048>}, {pipeline_mode = #tpu.pipeline_mode<synchronous>, transform_indices = @transform_4, window_bounds = array<i64: 1, 2048>}, {pipeline_mode = #tpu.pipeline_mode<synchronous>, transform_indices = @transform_5, window_bounds = array<i64: 1, 2048>}, {pipeline_mode = #tpu.pipeline_mode<synchronous>, transform_indices = @transform_6, window_bounds = array<i64: 2048, 96>}, {pipeline_mode = #tpu.pipeline_mode<synchronous>, transform_indices = @transform_7, window_bounds = array<i64: 36, 36>}, {pipeline_mode = #tpu.pipeline_mode<synchronous>, transform_indices = @transform_8, window_bounds = array<i64: 32, 2048>}, {pipeline_mode = #tpu.pipeline_mode<synchronous>, transform_indices = @transform_9, window_bounds = array<i64: 1, 2048>}, {pipeline_mode = #tpu.pipeline_mode<synchronous>, transform_indices = @transform_10, window_bounds = array<i64: 1, 2048>}, {pipeline_mode = #tpu.pipeline_mode<synchronous>, transform_indices = @transform_11, window_bounds = array<i64: 1, 2048>}, {pipeline_mode = #tpu.pipeline_mode<synchronous>, transform_indices = @transform_12, window_bounds = array<i64: 2048, 16>}, {pipeline_mode = #tpu.pipeline_mode<synchronous>, transform_indices = @transform_13, window_bounds = array<i64: 1, 16>}, {pipeline_mode = #tpu.pipeline_mode<synchronous>, transform_indices = @transform_14, window_bounds = array<i64: 16, 2048>}, {pipeline_mode = #tpu.pipeline_mode<synchronous>, transform_indices = @transform_15, window_bounds = array<i64: 1, 2048>}, {transform_indices = @transform_16, window_bounds = array<i64: 36, 2048>}]} {
    %c0 = arith.constant 0 : index
    %c0_0 = arith.constant 0 : index
    %0 = vector.load %arg1[%c0, %c0_0] : memref<36x16xf32, #tpu.memory_space<vmem>>, vector<36x16xf32>
    %c0_1 = arith.constant 0 : index
    %c0_2 = arith.constant 0 : index
    %1 = vector.load %arg2[%c0_1, %c0_2] : memref<16x2048xf32, #tpu.memory_space<vmem>>, vector<16x2048xf32>
    %cst = arith.constant dense<0.000000e+00> : vector<36x2048xf32>
    %2 = tpu.matmul %0, %1, %cst {dimension_numbers = #tpu.dot_dimension_numbers<[1], [0], [0], [1], [0, 0, 1, 1], [], []>} : vector<36x16xf32>, vector<16x2048xf32>, vector<36x2048xf32> -> vector<36x2048xf32>
    %c0_3 = arith.constant 0 : index
    %c0_4 = arith.constant 0 : index
    %3 = vector.load %arg3[%c0_3, %c0_4] : memref<1x2048xf32, #tpu.memory_space<vmem>>, vector<1x2048xf32>
    %4 = vector.broadcast %3 : vector<1x2048xf32> to vector<36x2048xf32>
    %5 = arith.addf %2, %4 : vector<36x2048xf32>
    %c0_5 = arith.constant 0 : index
    %c0_6 = arith.constant 0 : index
    %6 = vector.load %arg4[%c0_5, %c0_6] : memref<36x2048xf32, #tpu.memory_space<vmem>>, vector<36x2048xf32>
    %7 = arith.addf %5, %6 : vector<36x2048xf32>
    %c0_7 = arith.constant 0 : index
    %c0_8 = arith.constant 0 : index
    %8 = vector.load %arg5[%c0_7, %c0_8] : memref<1x2048xf32, #tpu.memory_space<vmem>>, vector<1x2048xf32>
    %c0_9 = arith.constant 0 : index
    %c0_10 = arith.constant 0 : index
    %9 = vector.load %arg6[%c0_9, %c0_10] : memref<1x2048xf32, #tpu.memory_space<vmem>>, vector<1x2048xf32>
    %cst_11 = arith.constant dense<0.000000e+00> : vector<36xf32>
    %10 = vector.multi_reduction <add>, %7, %cst_11 [1] : vector<36x2048xf32> to vector<36xf32>
    %11 = vector.shape_cast %10 : vector<36xf32> to vector<36x1xf32>
    %cst_12 = arith.constant 2.048000e+03 : f32
    %12 = vector.broadcast %cst_12 : f32 to vector<36x1xf32>
    %13 = arith.divf %11, %12 : vector<36x1xf32>
    %14 = arith.mulf %7, %7 : vector<36x2048xf32>
    %cst_13 = arith.constant dense<0.000000e+00> : vector<36xf32>
    %15 = vector.multi_reduction <add>, %14, %cst_13 [1] : vector<36x2048xf32> to vector<36xf32>
    %16 = vector.shape_cast %15 : vector<36xf32> to vector<36x1xf32>
    %cst_14 = arith.constant 2.048000e+03 : f32
    %17 = vector.broadcast %cst_14 : f32 to vector<36x1xf32>
    %18 = arith.divf %16, %17 : vector<36x1xf32>
    %19 = arith.mulf %13, %13 : vector<36x1xf32>
    %20 = arith.subf %18, %19 : vector<36x1xf32>
    %21 = vector.broadcast %13 : vector<36x1xf32> to vector<36x2048xf32>
    %22 = arith.subf %7, %21 : vector<36x2048xf32>
    %cst_15 = arith.constant 9.99999974E-6 : f32
    %23 = vector.broadcast %cst_15 : f32 to vector<36x1xf32>
    %24 = arith.addf %20, %23 : vector<36x1xf32>
    %25 = math.rsqrt %24 : vector<36x1xf32>
    %26 = vector.broadcast %25 : vector<36x1xf32> to vector<36x2048xf32>
    %27 = arith.mulf %22, %26 : vector<36x2048xf32>
    %28 = vector.broadcast %8 : vector<1x2048xf32> to vector<36x2048xf32>
    %29 = arith.mulf %27, %28 : vector<36x2048xf32>
    %30 = vector.broadcast %9 : vector<1x2048xf32> to vector<36x2048xf32>
    %31 = arith.addf %29, %30 : vector<36x2048xf32>
    %c0_16 = arith.constant 0 : index
    %c0_17 = arith.constant 0 : index
    %32 = vector.load %arg7[%c0_16, %c0_17] : memref<2048x96xf32, #tpu.memory_space<vmem>>, vector<2048x96xf32>
    %cst_18 = arith.constant dense<0.000000e+00> : vector<36x96xf32>
    %33 = tpu.matmul %31, %32, %cst_18 {dimension_numbers = #tpu.dot_dimension_numbers<[1], [0], [0], [1], [0, 0, 1, 1], [], []>} : vector<36x2048xf32>, vector<2048x96xf32>, vector<36x96xf32> -> vector<36x96xf32>
    %34 = vector.extract_strided_slice %33 {offsets = [0, 0], sizes = [36, 32], strides = [1, 1]} : vector<36x96xf32> to vector<36x32xf32>
    %35 = vector.extract_strided_slice %33 {offsets = [0, 32], sizes = [36, 32], strides = [1, 1]} : vector<36x96xf32> to vector<36x32xf32>
    %36 = vector.extract_strided_slice %33 {offsets = [0, 64], sizes = [36, 32], strides = [1, 1]} : vector<36x96xf32> to vector<36x32xf32>
    %cst_19 = arith.constant dense<0.000000e+00> : vector<36x36xf32>
    %37 = tpu.matmul %34, %35, %cst_19 {dimension_numbers = #tpu.dot_dimension_numbers<[1], [1], [0], [0], [0, 0, 1, 0], [], []>} : vector<36x32xf32>, vector<36x32xf32>, vector<36x36xf32> -> vector<36x36xf32>
    %cst_20 = arith.constant 0.0220970865 : f32
    %38 = vector.broadcast %cst_20 : f32 to vector<36x36xf32>
    %39 = arith.mulf %37, %38 : vector<36x36xf32>
    %c0_21 = arith.constant 0 : index
    %c0_22 = arith.constant 0 : index
    %40 = vector.load %arg8[%c0_21, %c0_22] : memref<36x36xf32, #tpu.memory_space<vmem>>, vector<36x36xf32>
    %41 = arith.addf %39, %40 : vector<36x36xf32>
    %cst_23 = arith.constant dense<0xFF800000> : vector<36xf32>
    %42 = vector.multi_reduction <maximumf>, %41, %cst_23 [1] : vector<36x36xf32> to vector<36xf32>
    %43 = vector.shape_cast %42 : vector<36xf32> to vector<36x1xf32>
    %44 = vector.broadcast %43 : vector<36x1xf32> to vector<36x36xf32>
    %45 = arith.subf %41, %44 : vector<36x36xf32>
    %46 = math.exp %45 : vector<36x36xf32>
    %cst_24 = arith.constant dense<0.000000e+00> : vector<36xf32>
    %47 = vector.multi_reduction <add>, %46, %cst_24 [1] : vector<36x36xf32> to vector<36xf32>
    %48 = vector.shape_cast %47 : vector<36xf32> to vector<36x1xf32>
    %cst_25 = arith.constant 1.000000e+00 : f32
    %49 = vector.broadcast %cst_25 : f32 to vector<36x1xf32>
    %50 = arith.divf %49, %48 : vector<36x1xf32>
    %51 = vector.broadcast %50 : vector<36x1xf32> to vector<36x36xf32>
    %52 = arith.mulf %46, %51 : vector<36x36xf32>
    %cst_26 = arith.constant dense<0.000000e+00> : vector<36x32xf32>
    %53 = tpu.matmul %52, %36, %cst_26 {dimension_numbers = #tpu.dot_dimension_numbers<[1], [0], [0], [1], [0, 0, 1, 1], [], []>} : vector<36x36xf32>, vector<36x32xf32>, vector<36x32xf32> -> vector<36x32xf32>
    %c0_27 = arith.constant 0 : index
    %c0_28 = arith.constant 0 : index
    %54 = vector.load %arg9[%c0_27, %c0_28] : memref<32x2048xf32, #tpu.memory_space<vmem>>, vector<32x2048xf32>
    %cst_29 = arith.constant dense<0.000000e+00> : vector<36x2048xf32>
    %55 = tpu.matmul %53, %54, %cst_29 {dimension_numbers = #tpu.dot_dimension_numbers<[1], [0], [0], [1], [0, 0, 1, 1], [], []>} : vector<36x32xf32>, vector<32x2048xf32>, vector<36x2048xf32> -> vector<36x2048xf32>
    %c0_30 = arith.constant 0 : index
    %c0_31 = arith.constant 0 : index
    %56 = vector.load %arg10[%c0_30, %c0_31] : memref<1x2048xf32, #tpu.memory_space<vmem>>, vector<1x2048xf32>
    %57 = vector.broadcast %56 : vector<1x2048xf32> to vector<36x2048xf32>
    %58 = arith.addf %55, %57 : vector<36x2048xf32>
    %c0_32 = arith.constant 0 : index
    %c0_33 = arith.constant 0 : index
    %59 = vector.load %arg11[%c0_32, %c0_33] : memref<1x2048xf32, #tpu.memory_space<vmem>>, vector<1x2048xf32>
    %c0_34 = arith.constant 0 : index
    %c0_35 = arith.constant 0 : index
    %60 = vector.load %arg12[%c0_34, %c0_35] : memref<1x2048xf32, #tpu.memory_space<vmem>>, vector<1x2048xf32>
    %cst_36 = arith.constant dense<0.000000e+00> : vector<36xf32>
    %61 = vector.multi_reduction <add>, %58, %cst_36 [1] : vector<36x2048xf32> to vector<36xf32>
    %62 = vector.shape_cast %61 : vector<36xf32> to vector<36x1xf32>
    %cst_37 = arith.constant 2.048000e+03 : f32
    %63 = vector.broadcast %cst_37 : f32 to vector<36x1xf32>
    %64 = arith.divf %62, %63 : vector<36x1xf32>
    %65 = arith.mulf %58, %58 : vector<36x2048xf32>
    %cst_38 = arith.constant dense<0.000000e+00> : vector<36xf32>
    %66 = vector.multi_reduction <add>, %65, %cst_38 [1] : vector<36x2048xf32> to vector<36xf32>
    %67 = vector.shape_cast %66 : vector<36xf32> to vector<36x1xf32>
    %cst_39 = arith.constant 2.048000e+03 : f32
    %68 = vector.broadcast %cst_39 : f32 to vector<36x1xf32>
    %69 = arith.divf %67, %68 : vector<36x1xf32>
    %70 = arith.mulf %64, %64 : vector<36x1xf32>
    %71 = arith.subf %69, %70 : vector<36x1xf32>
    %72 = vector.broadcast %64 : vector<36x1xf32> to vector<36x2048xf32>
    %73 = arith.subf %58, %72 : vector<36x2048xf32>
    %cst_40 = arith.constant 9.99999974E-6 : f32
    %74 = vector.broadcast %cst_40 : f32 to vector<36x1xf32>
    %75 = arith.addf %71, %74 : vector<36x1xf32>
    %76 = math.rsqrt %75 : vector<36x1xf32>
    %77 = vector.broadcast %76 : vector<36x1xf32> to vector<36x2048xf32>
    %78 = arith.mulf %73, %77 : vector<36x2048xf32>
    %79 = vector.broadcast %59 : vector<1x2048xf32> to vector<36x2048xf32>
    %80 = arith.mulf %78, %79 : vector<36x2048xf32>
    %81 = vector.broadcast %60 : vector<1x2048xf32> to vector<36x2048xf32>
    %82 = arith.addf %80, %81 : vector<36x2048xf32>
    %c0_41 = arith.constant 0 : index
    %c0_42 = arith.constant 0 : index
    %83 = vector.load %arg13[%c0_41, %c0_42] : memref<2048x16xf32, #tpu.memory_space<vmem>>, vector<2048x16xf32>
    %cst_43 = arith.constant dense<0.000000e+00> : vector<36x16xf32>
    %84 = tpu.matmul %82, %83, %cst_43 {dimension_numbers = #tpu.dot_dimension_numbers<[1], [0], [0], [1], [0, 0, 1, 1], [], []>} : vector<36x2048xf32>, vector<2048x16xf32>, vector<36x16xf32> -> vector<36x16xf32>
    %c0_44 = arith.constant 0 : index
    %c0_45 = arith.constant 0 : index
    %85 = vector.load %arg14[%c0_44, %c0_45] : memref<1x16xf32, #tpu.memory_space<vmem>>, vector<1x16xf32>
    %86 = vector.broadcast %85 : vector<1x16xf32> to vector<36x16xf32>
    %87 = arith.addf %84, %86 : vector<36x16xf32>
    %cst_46 = arith.constant 5.000000e-01 : f32
    %88 = vector.broadcast %cst_46 : f32 to vector<36x16xf32>
    %89 = arith.mulf %88, %87 : vector<36x16xf32>
    %cst_47 = arith.constant 0.707106769 : f32
    %90 = vector.broadcast %cst_47 : f32 to vector<36x16xf32>
    %91 = arith.mulf %87, %90 : vector<36x16xf32>
    %92 = math.erf %91 : vector<36x16xf32>
    %cst_48 = arith.constant 1.000000e+00 : f32
    %93 = vector.broadcast %cst_48 : f32 to vector<36x16xf32>
    %94 = arith.addf %93, %92 : vector<36x16xf32>
    %95 = arith.mulf %89, %94 : vector<36x16xf32>
    %c0_49 = arith.constant 0 : index
    %c0_50 = arith.constant 0 : index
    %96 = vector.load %arg15[%c0_49, %c0_50] : memref<16x2048xf32, #tpu.memory_space<vmem>>, vector<16x2048xf32>
    %cst_51 = arith.constant dense<0.000000e+00> : vector<36x2048xf32>
    %97 = tpu.matmul %95, %96, %cst_51 {dimension_numbers = #tpu.dot_dimension_numbers<[1], [0], [0], [1], [0, 0, 1, 1], [], []>} : vector<36x16xf32>, vector<16x2048xf32>, vector<36x2048xf32> -> vector<36x2048xf32>
    %c0_52 = arith.constant 0 : index
    %c0_53 = arith.constant 0 : index
    %98 = vector.load %arg16[%c0_52, %c0_53] : memref<1x2048xf32, #tpu.memory_space<vmem>>, vector<1x2048xf32>
    %99 = vector.broadcast %98 : vector<1x2048xf32> to vector<36x2048xf32>
    %100 = arith.addf %97, %99 : vector<36x2048xf32>
    %c0_54 = arith.constant 0 : index
    %c0_55 = arith.constant 0 : index
    %101 = vector.load %arg17[%c0_54, %c0_55] : memref<36x2048xf32, #tpu.memory_space<vmem>>, vector<36x2048xf32>
    tpu.vector_store %arg17[%c0_54, %c0_55], %100 {strides = array<i32>} : memref<36x2048xf32, #tpu.memory_space<vmem>>, vector<36x2048xf32>,
    return
  }
  func.func @transform_0(%arg0: i32) -> (i32, i32) {
    %c0_i32 = arith.constant 0 : i32
    %c0_i32_0 = arith.constant 0 : i32
    return %arg0, %c0_i32 : i32, i32
  }
  func.func @transform_1(%arg0: i32) -> (i32, i32) {
    %c0_i32 = arith.constant 0 : i32
    %c0_i32_0 = arith.constant 0 : i32
    %c0_i32_1 = arith.constant 0 : i32
    return %c0_i32, %c0_i32_0 : i32, i32
  }
  func.func @transform_2(%arg0: i32) -> (i32, i32) {
    %c0_i32 = arith.constant 0 : i32
    %c0_i32_0 = arith.constant 0 : i32
    %c0_i32_1 = arith.constant 0 : i32
    return %c0_i32, %c0_i32_0 : i32, i32
  }
  func.func @transform_3(%arg0: i32) -> (i32, i32) {
    %c0_i32 = arith.constant 0 : i32
    %c0_i32_0 = arith.constant 0 : i32
    %c0_i32_1 = arith.constant 0 : i32
    return %c0_i32, %c0_i32_0 : i32, i32
  }
  func.func @transform_4(%arg0: i32) -> (i32, i32) {
    %c0_i32 = arith.constant 0 : i32
    %c0_i32_0 = arith.constant 0 : i32
    %c0_i32_1 = arith.constant 0 : i32
    return %c0_i32, %c0_i32_0 : i32, i32
  }
  func.func @transform_5(%arg0: i32) -> (i32, i32) {
    %c0_i32 = arith.constant 0 : i32
    %c0_i32_0 = arith.constant 0 : i32
    %c0_i32_1 = arith.constant 0 : i32
    return %c0_i32, %c0_i32_0 : i32, i32
  }
  func.func @transform_6(%arg0: i32) -> (i32, i32) {
    %c0_i32 = arith.constant 0 : i32
    %c0_i32_0 = arith.constant 0 : i32
    %c0_i32_1 = arith.constant 0 : i32
    return %c0_i32, %c0_i32_0 : i32, i32
  }
  func.func @transform_7(%arg0: i32) -> (i32, i32) {
    %c0_i32 = arith.constant 0 : i32
    %c0_i32_0 = arith.constant 0 : i32
    %c0_i32_1 = arith.constant 0 : i32
    return %c0_i32, %c0_i32_0 : i32, i32
  }
  func.func @transform_8(%arg0: i32) -> (i32, i32) {
    %c0_i32 = arith.constant 0 : i32
    %c0_i32_0 = arith.constant 0 : i32
    %c0_i32_1 = arith.constant 0 : i32
    return %c0_i32, %c0_i32_0 : i32, i32
  }
  func.func @transform_9(%arg0: i32) -> (i32, i32) {
    %c0_i32 = arith.constant 0 : i32
    %c0_i32_0 = arith.constant 0 : i32
    %c0_i32_1 = arith.constant 0 : i32
    return %c0_i32, %c0_i32_0 : i32, i32
  }
  func.func @transform_10(%arg0: i32) -> (i32, i32) {
    %c0_i32 = arith.constant 0 : i32
    %c0_i32_0 = arith.constant 0 : i32
    %c0_i32_1 = arith.constant 0 : i32
    return %c0_i32, %c0_i32_0 : i32, i32
  }
  func.func @transform_11(%arg0: i32) -> (i32, i32) {
    %c0_i32 = arith.constant 0 : i32
    %c0_i32_0 = arith.constant 0 : i32
    %c0_i32_1 = arith.constant 0 : i32
    return %c0_i32, %c0_i32_0 : i32, i32
  }
  func.func @transform_12(%arg0: i32) -> (i32, i32) {
    %c0_i32 = arith.constant 0 : i32
    %c0_i32_0 = arith.constant 0 : i32
    %c0_i32_1 = arith.constant 0 : i32
    return %c0_i32, %c0_i32_0 : i32, i32
  }
  func.func @transform_13(%arg0: i32) -> (i32, i32) {
    %c0_i32 = arith.constant 0 : i32
    %c0_i32_0 = arith.constant 0 : i32
    %c0_i32_1 = arith.constant 0 : i32
    return %c0_i32, %c0_i32_0 : i32, i32
  }
  func.func @transform_14(%arg0: i32) -> (i32, i32) {
    %c0_i32 = arith.constant 0 : i32
    %c0_i32_0 = arith.constant 0 : i32
    %c0_i32_1 = arith.constant 0 : i32
    return %c0_i32, %c0_i32_0 : i32, i32
  }
  func.func @transform_15(%arg0: i32) -> (i32, i32) {
    %c0_i32 = arith.constant 0 : i32
    %c0_i32_0 = arith.constant 0 : i32
    %c0_i32_1 = arith.constant 0 : i32
    return %c0_i32, %c0_i32_0 : i32, i32
  }
  func.func @transform_16(%arg0: i32) -> (i32, i32) {
    %c0_i32 = arith.constant 0 : i32
    %c0_i32_0 = arith.constant 0 : i32
    return %arg0, %c0_i32 : i32, i32
  }
}

</mosaic_0001>

<bundles_post_ra>
// kernel: tpu_custom_call.1
= control target key start
LH: loop header
LB: loop body
LE: loop exit
PB: predicated region body
PF: predicated region fallthrough
CT: control target
= control target key end

     0   :  { %s15430_s0 = inlined_call_operand.vmem [shape: f32[36,16], index: 0, kind: input, shape index: {}]   ;;  %s15431_s1 = inlined_call_operand.vmem [shape: f32[16,2048], index: 1, kind: input, shape index: {}]   ;;  %s15432_s2 = inlined_call_operand.vmem [shape: f32[1,2048], index: 2, kind: input, shape index: {}]   ;;  %s15433_s3 = inlined_call_operand.vmem [shape: f32[36,2048], index: 3, kind: input, shape index: {}]   ;;  %s15434_s4 = inlined_call_operand.vmem [shape: f32[1,2048], index: 4, kind: input, shape index: {}]   ;;  %s15435_s5 = inlined_call_operand.vmem [shape: f32[1,2048], index: 5, kind: input, shape index: {}]   ;;  %s15436_s6 = inlined_call_operand.vmem [shape: f32[2048,96], index: 6, kind: input, shape index: {}]   ;;  %s15437_s7 = inlined_call_operand.vmem [shape: f32[36,36], index: 7, kind: input, shape index: {}]   ;;  %s15438_s8 = inlined_call_operand.vmem [shape: f32[32,2048], index: 8, kind: input, shape index: {}]   ;;  %s15439_s9 = inlined_call_operand.vmem [shape: f32[1,2048], index: 9, kind: input, shape index: {}]   ;;  %s15440_s10 = inlined_call_operand.vmem [shape: f32[1,2048], index: 10, kind: input, shape index: {}]   ;;  %s15441_s11 = inlined_call_operand.vmem [shape: f32[1,2048], index: 11, kind: input, shape index: {}]   ;;  %s15442_s12 = inlined_call_operand.vmem [shape: f32[2048,16], index: 12, kind: input, shape index: {}]   ;;  %s15443_s13 = inlined_call_operand.vmem [shape: f32[1,16], index: 13, kind: input, shape index: {}]   ;;  %s15444_s14 = inlined_call_operand.vmem [shape: f32[16,2048], index: 14, kind: input, shape index: {}]   ;;  %s15445_s15 = inlined_call_operand.vmem [shape: f32[1,2048], index: 15, kind: input, shape index: {}]   ;;  %s15446_s16 = inlined_call_operand.hbm [shape: f32[36,2048], index: 16, kind: output, shape index: {}]  }
   0x1   :  { %15866 = sst [smem:[#allocation183_spill]] %s15430_s0 }
   0x2   :  { %v60_v0 = vld [vmem:[%s15431_s1 + $0x8] sm:$0xff]  ;;  %v59_v2 = vld [vmem:[%s15431_s1] sm:$0xff]  ;;  %v15448_v5 = vmov 0.0   ;;  %v62_v6 = vld [vmem:[%s15431_s1 + $0x18] sm:$0xff]  ;;  %s15867_s28 = sld [smem:[#allocation183_spill]]  ;;  %vm175_vm0 = vcmask 130048  }
   0x3   :  { %v76_v1 = vld [vmem:[%s15431_s1 + $0x88] sm:$0xff]  ;;  %v75_v4 = vld [vmem:[%s15431_s1 + $0x80] sm:$0xff]  ;;  %255 = vmatprep.mubr.f32.mxu0 %v15448_v5  ;;  %v78_v7 = vld [vmem:[%s15431_s1 + $0x98] sm:$0xff]  ;;  %350 = vmatprep.mubr.f32.mxu1 %v15448_v5 }
   0x4   :  { %v7890_v3 = vpack.c.bf16 %v76_v1, %v60_v0  ;;  %v7892_v8 = vpack.c.bf16 %v75_v4, %v59_v2  ;;  %v7894_v9 = vpack.c.bf16 %v78_v7, %v62_v6  ;;  %v61_v10 = vld [vmem:[%s15431_s1 + $0x10] sm:$0xff]  ;;  %v64_v13 = vld [vmem:[%s15431_s1 + $0x28] sm:$0xff]  ;;  %v63_v17 = vld [vmem:[%s15431_s1 + $0x20] sm:$0xff] }
   0x5   :  { %v77_v11 = vld [vmem:[%s15431_s1 + $0x90] sm:$0xff]  ;;  %v80_v14 = vld [vmem:[%s15431_s1 + $0xa8] sm:$0xff]  ;;  %v79_v18 = vld [vmem:[%s15431_s1 + $0xa0] sm:$0xff] }
   0x6   :  { %7891 = vmatprep.subr.bf16.mxu0 %v7890_v3  ;;  %v7896_v12 = vpack.c.bf16 %v77_v11, %v61_v10  ;;  %7895 = vmatprep.subr.bf16.mxu1 %v7894_v9  ;;  %v7898_v16 = vpack.c.bf16 %v80_v14, %v64_v13  ;;  %v7900_v19 = vpack.c.bf16 %v79_v18, %v63_v17  ;;  %v66_v20 = vld [vmem:[%s15431_s1 + $0x38] sm:$0xff]  ;;  %v65_v23 = vld [vmem:[%s15431_s1 + $0x30] sm:$0xff]  ;;  %v68_v26 = vld [vmem:[%s15431_s1 + $0x48] sm:$0xff] }
   0x7   :  { %7893 = vmatpush1.bf16.msra.mxu0 %v7892_v8  ;;  %v82_v21 = vld [vmem:[%s15431_s1 + $0xb8] sm:$0xff]  ;;  %v81_v24 = vld [vmem:[%s15431_s1 + $0xb0] sm:$0xff]  ;;  %v84_v27 = vld [vmem:[%s15431_s1 + $0xc8] sm:$0xff] }
   0x8   :  { %v8778_v15 = vld [vmem:[%s15867_s28] sm:$0xff]  ;;  %7897 = vmatpush1.bf16.msra.mxu1 %v7896_v12  ;;  %7899 = vmatprep.subr.bf16.mxu0 %v7898_v16  ;;  %v7902_v22 = vpack.c.bf16 %v82_v21, %v66_v20  ;;  %v7904_v25 = vpack.c.bf16 %v81_v24, %v65_v23  ;;  %v8812_v28 = vld [vmem:[%s15867_s28 + $0x8] sm:$0xff]  ;;  %v7906_v29 = vpack.c.bf16 %v84_v27, %v68_v26  ;;  %v70_v30 = vld [vmem:[%s15431_s1 + $0x58] sm:$0xff] }
   0x9   :  { %v86_v31 = vld [vmem:[%s15431_s1 + $0xd8] sm:$0xff]  ;;  %v8829_v33 = vld [vmem:[%s15867_s28 + $0x10] sm:$0xff] }
   0xa   :  { %6931 = vmatmul.mubr.msk.f32.vlgmr.msra.gmra.mrb[0].mxu0 %vm175_vm0, %v8778_v15  ;;  %v7910_v32 = vpack.c.bf16 %v86_v31, %v70_v30  ;;  %7903 = vmatprep.subr.bf16.mxu1 %v7902_v22 }
   0xb   :  { %261 = vmatprep.mubr.f32.mxu0 %v15448_v5  ;;  %6936 = vmatmul.mubr.msk.f32.vlgmr.msra.gmra.mrb[0].mxu1 %vm175_vm0, %v8778_v15 }
   0xc   :  { %356 = vmatprep.mubr.f32.mxu1 %v15448_v5  ;;  %7901 = vmatpush1.bf16.msra.mxu0 %v7900_v19 }
   0xd   :  { %7907 = vmatprep.subr.bf16.mxu0 %v7906_v29  ;;  %7905 = vmatpush1.bf16.msra.mxu1 %v7904_v25 }
   0xe   :  { %6932 = vmatmul.mubr.msk.f32.gmra.mrb[2].mxu0 %vm175_vm0, %v8812_v28 }
   0xf   :  { %267 = vmatprep.mubr.f32.mxu0 %v15448_v5  ;;  %6937 = vmatmul.mubr.msk.f32.gmra.mrb[2].mxu1 %vm175_vm0, %v8812_v28 }
  0x10   :  { %21 = vsyncpa [#allocation3], 0  ;;  %362 = vmatprep.mubr.f32.mxu1 %v15448_v5  ;;  %7911 = vmatprep.subr.bf16.mxu1 %v7910_v32  ;;  %v8840_v34 = vld [vmem:[%s15867_s28 + $0x18] sm:$0xff]  ;;  %v8851_v35 = vld [vmem:[%s15867_s28 + $0x20] sm:$0xf]  ;;  %v95_v54 = vlaneseq  ;;  %vm1183_vm1 = vcmask 1043456  }
  0x11   :  { %v67_v36 = vld [vmem:[%s15431_s1 + $0x40] sm:$0xff]  ;;  %v69_v38 = vld [vmem:[%s15431_s1 + $0x50] sm:$0xff]  ;;  %v72_v40 = vld [vmem:[%s15431_s1 + $0x68] sm:$0xff]  ;;  %vm8653_vm2 = vmmov 0   ;;  %vm2904_vm3 = vcmask 261120   ;;  %vm3030_vm5 = vcmask 293888  }
  0x12   :  { %6933 = vmatmul.mubr.msk.f32.gmra.mrb[4].mxu0 %vm175_vm0, %v8829_v33  ;;  %v83_v37 = vld [vmem:[%s15431_s1 + $0xc0] sm:$0xff]  ;;  %v85_v39 = vld [vmem:[%s15431_s1 + $0xd0] sm:$0xff]  ;;  %v88_v41 = vld [vmem:[%s15431_s1 + $0xe8] sm:$0xff]  ;;  %v96_v55 = vshrl.u32 %v95_v54, 7  ;;  %vm3043_vm6 = vcmask 289792  }
  0x13   :  { %273 = vmatprep.mubr.f32.mxu0 %v15448_v5  ;;  %6938 = vmatmul.mubr.msk.f32.gmra.mrb[4].mxu1 %vm175_vm0, %v8829_v33  ;;  %v74_v42 = vld [vmem:[%s15431_s1 + $0x78] sm:$0xff]  ;;  %v7908_v44 = vpack.c.bf16 %v83_v37, %v67_v36  ;;  %v7912_v45 = vpack.c.bf16 %v85_v39, %v69_v38  ;;  %v7914_v46 = vpack.c.bf16 %v88_v41, %v72_v40  ;;  %v71_v48 = vld [vmem:[%s15431_s1 + $0x60] sm:$0xff]  ;;  %v73_v50 = vld [vmem:[%s15431_s1 + $0x70] sm:$0xff] }
  0x14   :  { %368 = vmatprep.mubr.f32.mxu1 %v15448_v5  ;;  %v90_v43 = vld [vmem:[%s15431_s1 + $0xf8] sm:$0xff]  ;;  %v87_v49 = vld [vmem:[%s15431_s1 + $0xe0] sm:$0xff]  ;;  %v89_v51 = vld [vmem:[%s15431_s1 + $0xf0] sm:$0xff]  ;;  %v9020_v9 = vsub.s32 0, %v96_v55  ;;  %v9025_v13 = vsub.s32 1, %v96_v55  ;;  %v9027_v14 = vsub.s32 2, %v96_v55 }
  0x15   :  { %v7918_v47 = vpack.c.bf16 %v90_v43, %v74_v42  ;;  %v7916_v52 = vpack.c.bf16 %v87_v49, %v71_v48  ;;  %v7920_v53 = vpack.c.bf16 %v89_v51, %v73_v50  ;;  %v1929_v56 = vld [vmem:[%s15436_s6 + $0x80] sm:$0xff]  ;;  %v1930_v57 = vld [vmem:[%s15436_s6 + $0x88] sm:$0xff]  ;;  %v1931_v3 = vld [vmem:[%s15436_s6 + $0x90] sm:$0xff]  ;;  %v9034_v17 = vsub.s32 4, %v96_v55 }
  0x16   :  { %6934 = vmatmul.mubr.msk.f32.gmra.mrb[6].mxu0 %vm175_vm0, %v8840_v34  ;;  %v1961_v58 = vld [vmem:[%s15436_s6 + $0x180] sm:$0xff]  ;;  %v7922_v59 = vpack.c.bf16 %v1930_v57, %v1929_v56  ;;  %v1962_v60 = vld [vmem:[%s15436_s6 + $0x188] sm:$0xff]  ;;  %v1932_v6 = vld [vmem:[%s15436_s6 + $0x98] sm:$0xff]  ;;  %15868 = vst [vmem:[#allocation5_spill] sm:$0xff] %v9020_v9  ;;  %v9036_v18 = vsub.s32 5, %v96_v55  ;;  %v9044_v21 = vsub.s32 6, %v96_v55 }
  0x17   :  { %279 = vmatprep.mubr.f32.mxu0 %v15448_v5  ;;  %6939 = vmatmul.mubr.msk.f32.gmra.mrb[6].mxu1 %vm175_vm0, %v8840_v34  ;;  %v1913_v61 = vld [vmem:[%s15436_s6] sm:$0xff]  ;;  %v1914_v62 = vld [vmem:[%s15436_s6 + $0x8] sm:$0xff]  ;;  %v7954_v63 = vpack.c.bf16 %v1962_v60, %v1961_v58  ;;  %v1963_v7 = vld [vmem:[%s15436_s6 + $0x190] sm:$0xff]  ;;  %v7926_v10 = vpack.c.bf16 %v1932_v6, %v1931_v3  ;;  %15869 = vst [vmem:[#allocation6_spill] sm:$0xff] %v9025_v13  ;;  %v9046_v22 = vsub.s32 7, %v96_v55 }
  0x18   :  { %374 = vmatprep.mubr.f32.mxu1 %v15448_v5  ;;  %v7924_v0 = vpack.c.bf16 %v1914_v62, %v1913_v61  ;;  %v1945_v1 = vld [vmem:[%s15436_s6 + $0x100] sm:$0xff]  ;;  %v1946_v2 = vld [vmem:[%s15436_s6 + $0x108] sm:$0xff]  ;;  %v1964_v8 = vld [vmem:[%s15436_s6 + $0x198] sm:$0xff]  ;;  %15870 = vst [vmem:[#allocation7_spill] sm:$0xff] %v9027_v14 }
  0x19   :  { %v7956_v4 = vpack.c.bf16 %v1946_v2, %v1945_v1  ;;  %v7958_v11 = vpack.c.bf16 %v1964_v8, %v1963_v7  ;;  %v91_v12 = vld [vmem:[%s15432_s2] sm:$0xff]  ;;  %15872 = vst [vmem:[#allocation9_spill] sm:$0xff] %v9034_v17  ;;  %15873 = vst [vmem:[#allocation10_spill] sm:$0xff] %v9036_v18  ;;  %v9057_v26 = vld [vmem:[%s15432_s2 + $0x8] sm:$0xff] }
  0x1a   :  { %6935 = vmatmul.mubr.msk.f32.gmra.mrb[8].mxu0 %vm175_vm0, %v8851_v35  ;;  %v9032_v16 = vrot.slane %v91_v12, %v9020_v9  ;;  %v9039_v19 = vrot.slane %v91_v12, %v9025_v13  ;;  %v9042_v20 = vrot.slane %v91_v12, %v9027_v14  ;;  %15874 = vst [vmem:[#allocation11_spill] sm:$0xff] %v9044_v21  ;;  %15875 = vst [vmem:[#allocation12_spill] sm:$0xff] %v9046_v22  ;;  %v951_v25 = vld [vmem:[%s15433_s3] sm:$0xff]  ;;  %v952_v29 = vld [vmem:[%s15433_s3 + $0x8] sm:$0xff] }
  0x1b   :  { %6940 = vmatmul.mubr.msk.f32.gmra.mrb[8].mxu1 %vm175_vm0, %v8851_v35  ;;  %445 = vmatprep.mubr.f32.mxu0 %v15448_v5  ;;  %v953_v31 = vld [vmem:[%s15433_s3 + $0x10] sm:$0xff]  ;;  %v9067_v32 = vrot.slane %v91_v12, %v9034_v17  ;;  %v954_v37 = vld [vmem:[%s15433_s3 + $0x18] sm:$0xff]  ;;  %v9078_v38 = vrot.slane %v91_v12, %v9044_v21  ;;  %v9081_v39 = vrot.slane %v91_v12, %v9046_v22  ;;  %v968_v54 = vld [vmem:[%s15433_s3 + $0x88] sm:$0xff] }
  0x1c   :  { %540 = vmatprep.mubr.f32.mxu1 %v15448_v5  ;;  %v9088_v42 = vrot.slane %v9057_v26, %v9020_v9  ;;  %v9092_v43 = vrot.slane %v9057_v26, %v9025_v13  ;;  %v9103_v48 = vrot.slane %v9057_v26, %v9027_v14  ;;  %v9119_v56 = vrot.slane %v9057_v26, %v9034_v17  ;;  %v969_v61 = vld [vmem:[%s15433_s3 + $0x90] sm:$0xff]  ;;  %v970_v2 = vld [vmem:[%s15433_s3 + $0x98] sm:$0xff]  ;;  %vm8180_vm4 = vmpackc.low %vm2904_vm3, %vm2904_vm3 }
  0x1d   :  { %v9140_v3 = vrot.slane %v9057_v26, %v9036_v18 }
  0x1e   :  { %6941 = vmatmul.mubr.msk.f32.vlgmr.msra.gmra.mrb[10].mxu0 %vm175_vm0, %v8778_v15 }
  0x1f   :  { %451 = vmatprep.mubr.f32.mxu0 %v15448_v5  ;;  %6946 = vmatmul.mubr.msk.f32.vlgmr.msra.gmra.mrb[10].mxu1 %vm175_vm0, %v8778_v15 }
  0x20   :  { %546 = vmatprep.mubr.f32.mxu1 %v15448_v5  ;;  %7909 = vmatpush1.bf16.msra.mxu0 %v7908_v44 }
  0x21   :  { %7913 = vmatpush1.bf16.msra.mxu1 %v7912_v45  ;;  %7915 = vmatprep.subr.bf16.mxu0 %v7914_v46 }
  0x22   :  { %6942 = vmatmul.mubr.msk.f32.gmra.mrb[12].mxu0 %vm175_vm0, %v8812_v28  ;;  %7919 = vmatprep.subr.bf16.mxu1 %v7918_v47  ;;  %v967_v47 = vld [vmem:[%s15433_s3 + $0x80] sm:$0xff] }
  0x23   :  { %457 = vmatprep.mubr.f32.mxu0 %v15448_v5  ;;  %6947 = vmatmul.mubr.msk.f32.gmra.mrb[12].mxu1 %vm175_vm0, %v8812_v28 }
  0x24   :  { %552 = vmatprep.mubr.f32.mxu1 %v15448_v5 }
  0x26   :  { %6943 = vmatmul.mubr.msk.f32.gmra.mrb[14].mxu0 %vm175_vm0, %v8829_v33 }
  0x27   :  { %463 = vmatprep.mubr.f32.mxu0 %v15448_v5  ;;  %6948 = vmatmul.mubr.msk.f32.gmra.mrb[14].mxu1 %vm175_vm0, %v8829_v33 }
  0x28   :  { %558 = vmatprep.mubr.f32.mxu1 %v15448_v5 }
  0x2a   :  { %6944 = vmatmul.mubr.msk.f32.gmra.mrb[16].mxu0 %vm175_vm0, %v8840_v34 }
  0x2b   :  { %469 = vmatprep.mubr.f32.mxu0 %v15448_v5  ;;  %6949 = vmatmul.mubr.msk.f32.gmra.mrb[16].mxu1 %vm175_vm0, %v8840_v34 }
  0x2c   :  { %564 = vmatprep.mubr.f32.mxu1 %v15448_v5 }
  0x2e   :  { %6945 = vmatmul.mubr.msk.f32.gmra.mrb[18].mxu0 %vm175_vm0, %v8851_v35 }
  0x2f   :  { %6950 = vmatmul.mubr.msk.f32.gmra.mrb[18].mxu1 %vm175_vm0, %v8851_v35  ;;  %635 = vmatprep.mubr.f32.mxu0 %v15448_v5 }
  0x30   :  { %730 = vmatprep.mubr.f32.mxu1 %v15448_v5 }
  0x32   :  { %6951 = vmatmul.mubr.msk.f32.vlgmr.msra.gmra.mrb[20].mxu0 %vm175_vm0, %v8778_v15 }
  0x33   :  { %641 = vmatprep.mubr.f32.mxu0 %v15448_v5  ;;  %6956 = vmatmul.mubr.msk.f32.vlgmr.msra.gmra.mrb[20].mxu1 %vm175_vm0, %v8778_v15 }
  0x34   :  { %736 = vmatprep.mubr.f32.mxu1 %v15448_v5  ;;  %7917 = vmatpush1.bf16.msra.mxu0 %v7916_v52 }
  0x35   :  { %7921 = vmatpush1.bf16.msra.mxu1 %v7920_v53  ;;  %7923 = vmatprep.subr.bf16.mxu0 %v7922_v59 }
  0x36   :  { %6952 = vmatmul.mubr.msk.f32.gmra.mrb[22].mxu0 %vm175_vm0, %v8812_v28  ;;  %7955 = vmatprep.subr.bf16.mxu1 %v7954_v63 }
  0x37   :  { %647 = vmatprep.mubr.f32.mxu0 %v15448_v5  ;;  %6957 = vmatmul.mubr.msk.f32.gmra.mrb[22].mxu1 %vm175_vm0, %v8812_v28 }
  0x38   :  { %742 = vmatprep.mubr.f32.mxu1 %v15448_v5 }
  0x3a   :  { %6953 = vmatmul.mubr.msk.f32.gmra.mrb[24].mxu0 %vm175_vm0, %v8829_v33 }
  0x3b   :  { %653 = vmatprep.mubr.f32.mxu0 %v15448_v5  ;;  %6958 = vmatmul.mubr.msk.f32.gmra.mrb[24].mxu1 %vm175_vm0, %v8829_v33 }
  0x3c   :  { %748 = vmatprep.mubr.f32.mxu1 %v15448_v5 }
  0x3e   :  { %6954 = vmatmul.mubr.msk.f32.gmra.mrb[26].mxu0 %vm175_vm0, %v8840_v34 }
  0x3f   :  { %659 = vmatprep.mubr.f32.mxu0 %v15448_v5  ;;  %6959 = vmatmul.mubr.msk.f32.gmra.mrb[26].mxu1 %vm175_vm0, %v8840_v34 }
  0x40   :  { %754 = vmatprep.mubr.f32.mxu1 %v15448_v5 }
  0x42   :  { %6955 = vmatmul.mubr.msk.f32.gmra.mrb[28].mxu0 %vm175_vm0, %v8851_v35 }
  0x43   :  { %6960 = vmatmul.mubr.msk.f32.gmra.mrb[28].mxu1 %vm175_vm0, %v8851_v35  ;;  %825 = vmatprep.mubr.f32.mxu0 %v15448_v5 }
  0x44   :  { %920 = vmatprep.mubr.f32.mxu1 %v15448_v5 }
  0x46   :  { %6961 = vmatmul.mubr.msk.f32.vlgmr.msra.gmra.mrb[30].mxu0 %vm175_vm0, %v8778_v15 }
  0x47   :  { %831 = vmatprep.mubr.f32.mxu0 %v15448_v5  ;;  %6966 = vmatmul.mubr.msk.f32.vlgmr.msra.gmra.mrb[30].mxu1 %vm175_vm0, %v8778_v15  ;;  %v9029_v15 = vsub.s32 3, %v96_v55 }
  0x48   :  { %926 = vmatprep.mubr.f32.mxu1 %v15448_v5  ;;  %7925 = vmatpush3.bf16.msra.mxu0 %v7924_v0 }
  0x49   :  { %7957 = vmatpush3.bf16.msra.mxu1 %v7956_v4  ;;  %15871 = vst [vmem:[#allocation8_spill] sm:$0xff] %v9029_v15  ;;  %7927 = vmatprep.subr.bf16.mxu0 %v7926_v10  ;;  %v9049_v23 = vrot.slane %v91_v12, %v9029_v15  ;;  %v9107_v49 = vrot.slane %v9057_v26, %v9029_v15  ;;  %v983_v10 = vld [vmem:[%s15433_s3 + $0x100] sm:$0xff] }
  0x4a   :  { %6962 = vmatmul.mubr.msk.f32.gmra.mrb[32].mxu0 %vm175_vm0, %v8812_v28  ;;  %7959 = vmatprep.subr.bf16.mxu1 %v7958_v11  ;;  %v9150_v11 = vrot.slane %v9057_v26, %v9044_v21 }
  0x4b   :  { %837 = vmatprep.mubr.f32.mxu0 %v15448_v5  ;;  %6967 = vmatmul.mubr.msk.f32.gmra.mrb[32].mxu1 %vm175_vm0, %v8812_v28 }
  0x4c   :  { %932 = vmatprep.mubr.f32.mxu1 %v15448_v5 }
  0x4e   :  { %6963 = vmatmul.mubr.msk.f32.gmra.mrb[34].mxu0 %vm175_vm0, %v8829_v33 }
  0x4f   :  { %843 = vmatprep.mubr.f32.mxu0 %v15448_v5  ;;  %6968 = vmatmul.mubr.msk.f32.gmra.mrb[34].mxu1 %vm175_vm0, %v8829_v33  ;;  %v9070_v33 = vrot.slane %v91_v12, %v9036_v18 }
  0x50   :  { %938 = vmatprep.mubr.f32.mxu1 %v15448_v5 }
  0x52   :  { %6964 = vmatmul.mubr.msk.f32.gmra.mrb[36].mxu0 %vm175_vm0, %v8840_v34 }
  0x53   :  { %849 = vmatprep.mubr.f32.mxu0 %v15448_v5  ;;  %6969 = vmatmul.mubr.msk.f32.gmra.mrb[36].mxu1 %vm175_vm0, %v8840_v34 }
  0x54   :  { %944 = vmatprep.mubr.f32.mxu1 %v15448_v5 }
  0x56   :  { %6965 = vmatmul.mubr.msk.f32.gmra.mrb[38].mxu0 %vm175_vm0, %v8851_v35 }
  0x57   :  { %6970 = vmatmul.mubr.msk.f32.gmra.mrb[38].mxu1 %vm175_vm0, %v8851_v35 }
  0xdd   :  { %v257_v24 = vpop.f32.mrb[0].mxu0 }
  0xde   :  { %v258_v27 = vadd.f32 %v257_v24, %v9032_v16  ;;  %v259_v28 = vpop.f32.mrb[1].mxu0  ;;  %v352_v30 = vpop.f32.mrb[0].mxu1 }
  0xdf   :  { %v260_v34 = vadd.f32 %v259_v28, %v9039_v19  ;;  %v353_v35 = vadd.f32 %v352_v30, %v9042_v20  ;;  %v354_v36 = vpop.f32.mrb[1].mxu1 }
  0xe0   :  { %v9083_v40 = vadd.f32 %v951_v25, %v258_v27  ;;  %v355_v41 = vadd.f32 %v354_v36, %v9049_v23  ;;  %v984_v36 = vld [vmem:[%s15433_s3 + $0x108] sm:$0xff] }
  0xe1   :  { %v9094_v44 = vadd.f32 %v952_v29, %v260_v34  ;;  %v9096_v45 = vadd.f32 %v953_v31, %v353_v35  ;;  %v263_v46 = vpop.f32.mrb[2].mxu0 }
  0xe2   :  { %v1223_v50 = vmul.f32 %v9083_v40, %v9083_v40  ;;  %v264_v51 = vadd.f32 %v263_v46, %v9032_v16  ;;  %v9112_v52 = vadd.f32 %v954_v37, %v355_v41  ;;  %v265_v53 = vpop.f32.mrb[3].mxu0  ;;  %v358_v55 = vpop.f32.mrb[2].mxu1 }
  0xe3   :  { %15876 = vst [vmem:[#allocation13_spill] sm:$0xff] %v9096_v45  ;;  %v1115_v57 = vadd.f32 %v9094_v44, %v9083_v40  ;;  %v1224_v58 = vmul.f32 %v9094_v44, %v9094_v44  ;;  %v1225_v59 = vmul.f32 %v9096_v45, %v9096_v45  ;;  %v266_v60 = vadd.f32 %v265_v53, %v9039_v19  ;;  %v360_v62 = vpop.f32.mrb[3].mxu1 }
  0xe4   :  { %v9131_v63 = vadd.f32 %v967_v47, %v264_v51  ;;  %v359_v0 = vadd.f32 %v358_v55, %v9042_v20  ;;  %v361_v1 = vadd.f32 %v360_v62, %v9049_v23  ;;  %v1226_v24 = vmul.f32 %v9112_v52, %v9112_v52 }
  0xe5   :  { %v1303_v4 = vadd.f32 %v1224_v58, %v1223_v50  ;;  %v1116_v6 = vadd.f32 %v1115_v57, %v9096_v45  ;;  %v9143_v7 = vadd.f32 %v968_v54, %v266_v60  ;;  %v269_v8 = vpop.f32.mrb[4].mxu0  ;;  %v985_v50 = vld [vmem:[%s15433_s3 + $0x110] sm:$0xff]  ;;  %v9179_v51 = vrot.slane %v9057_v26, %v9046_v22  ;;  %v986_v60 = vld [vmem:[%s15433_s3 + $0x118] sm:$0xff] }
  0xe6   :  { %15877 = vst [vmem:[#allocation14_spill] sm:$0xff] %v9131_v63  ;;  %v1239_v12 = vmul.f32 %v9131_v63, %v9131_v63  ;;  %v9156_v25 = vadd.f32 %v969_v61, %v359_v0  ;;  %v270_v27 = vadd.f32 %v269_v8, %v9032_v16  ;;  %v271_v28 = vpop.f32.mrb[5].mxu0  ;;  %v364_v29 = vpop.f32.mrb[4].mxu1  ;;  %v9163_v35 = vadd.f32 %v970_v2, %v361_v1  ;;  %v1000_v2 = vld [vmem:[%s15433_s3 + $0x188] sm:$0xff] }
  0xe7   :  { %15878 = vst [vmem:[#allocation15_spill] sm:$0xff] %v9143_v7  ;;  %v1304_v30 = vadd.f32 %v1303_v4, %v1225_v59  ;;  %v1132_v31 = vadd.f32 %v9143_v7, %v9131_v63  ;;  %v1240_v34 = vmul.f32 %v9143_v7, %v9143_v7  ;;  %v366_v37 = vpop.f32.mrb[5].mxu1  ;;  %v9169_v41 = vadd.f32 %v1116_v6, %v9112_v52  ;;  %v999_v59 = vld [vmem:[%s15433_s3 + $0x180] sm:$0xff] }
  0xe8   :  { %15879 = vst [vmem:[#allocation16_spill] sm:$0xff] %v9156_v25  ;;  %15880 = vst [vmem:[#allocation17_spill] sm:$0xff] %v9163_v35  ;;  %v9171_v46 = vadd.f32 %v983_v10, %v270_v27  ;;  %v272_v47 = vadd.f32 %v271_v28, %v9039_v19  ;;  %v1241_v55 = vmul.f32 %v9156_v25, %v9156_v25 }
  0xe9   :  { %v1320_v53 = vadd.f32 %v1240_v34, %v1239_v12  ;;  %v1133_v54 = vadd.f32 %v1132_v31, %v9156_v25  ;;  %v365_v57 = vadd.f32 %v364_v29, %v9042_v20  ;;  %v275_v58 = vpop.f32.mrb[6].mxu0  ;;  %v367_v0 = vadd.f32 %v366_v37, %v9049_v23 }
  0xea   :  { %15881 = vst [vmem:[#allocation18_spill] sm:$0xff] %v9171_v46  ;;  %v1255_v26 = vmul.f32 %v9171_v46, %v9171_v46  ;;  %v9193_v61 = vadd.f32 %v984_v36, %v272_v47  ;;  %v276_v62 = vadd.f32 %v275_v58, %v9032_v16  ;;  %v277_v1 = vpop.f32.mrb[7].mxu0  ;;  %v370_v4 = vpop.f32.mrb[6].mxu1  ;;  %v9200_v6 = vadd.f32 %v1304_v30, %v1226_v24  ;;  %v1001_v24 = vld [vmem:[%s15433_s3 + $0x190] sm:$0xff] }
  0xeb   :  { %v1242_v8 = vmul.f32 %v9163_v35, %v9163_v35  ;;  %v9204_v10 = vadd.f32 %v985_v50, %v365_v57  ;;  %v278_v12 = vadd.f32 %v277_v1, %v9039_v19  ;;  %v372_v27 = vpop.f32.mrb[7].mxu1  ;;  %v9213_v34 = vadd.f32 %v986_v60, %v367_v0 }
  0xec   :  { %15882 = vst [vmem:[#allocation19_spill] sm:$0xff] %v9193_v61  ;;  %v1149_v28 = vadd.f32 %v9193_v61, %v9171_v46  ;;  %v1256_v29 = vmul.f32 %v9193_v61, %v9193_v61  ;;  %v9211_v31 = vadd.f32 %v999_v59, %v276_v62  ;;  %v1321_v30 = vadd.f32 %v1320_v53, %v1241_v55  ;;  %v1015_v53 = vld [vmem:[%s15433_s3 + $0x200] sm:$0xf] }
  0xed   :  { %15883 = vst [vmem:[#allocation20_spill] sm:$0xff] %v9204_v10  ;;  %15885 = vst [vmem:[#allocation22_spill] sm:$0xff] %v9213_v34  ;;  %v1257_v36 = vmul.f32 %v9204_v10, %v9204_v10  ;;  %v9220_v37 = vadd.f32 %v1000_v2, %v278_v12  ;;  %v371_v47 = vadd.f32 %v370_v4, %v9042_v20  ;;  %v281_v50 = vpop.f32.mrb[8].mxu0  ;;  %v1002_v2 = vld [vmem:[%s15433_s3 + $0x198] sm:$0xff]  ;;  %v1016_v4 = vld [vmem:[%s15433_s3 + $0x208] sm:$0xf] }
  0xee   :  { %15884 = vst [vmem:[#allocation21_spill] sm:$0xff] %v9211_v31  ;;  %v9224_v57 = vadd.f32 %v1133_v54, %v9163_v35  ;;  %v1337_v58 = vadd.f32 %v1256_v29, %v1255_v26  ;;  %v1150_v59 = vadd.f32 %v1149_v28, %v9204_v10  ;;  %v1271_v60 = vmul.f32 %v9211_v31, %v9211_v31  ;;  %v283_v55 = vpop.f32.mrb[9].mxu0  ;;  %v376_v62 = vpop.f32.mrb[8].mxu1 }
  0xef   :  { %15886 = vst [vmem:[#allocation23_spill] sm:$0xff] %v9220_v37  ;;  %v1166_v0 = vadd.f32 %v9220_v37, %v9211_v31  ;;  %v1272_v1 = vmul.f32 %v9220_v37, %v9220_v37  ;;  %v9236_v54 = vadd.f32 %v1001_v24, %v371_v47  ;;  %v282_v26 = vadd.f32 %v281_v50, %v9032_v16  ;;  %v378_v12 = vpop.f32.mrb[9].mxu1 }
  0xf0   :  { %v1338_v28 = vadd.f32 %v1337_v58, %v1257_v36  ;;  %v1258_v29 = vmul.f32 %v9213_v34, %v9213_v34  ;;  %v373_v5 = vadd.f32 %v372_v27, %v9049_v23  ;;  %v284_v24 = vadd.f32 %v283_v55, %v9039_v19  ;;  %v1017_v19 = vld [vmem:[%s15433_s3 + $0x210] sm:$0xf] }
  0xf1   :  { %15887 = vst [vmem:[#allocation24_spill] sm:$0xff] %v9236_v54  ;;  %v9249_v47 = vadd.f32 %v1321_v30, %v1242_v8  ;;  %v1354_v16 = vadd.f32 %v1272_v1, %v1271_v60  ;;  %v1273_v50 = vmul.f32 %v9236_v54, %v9236_v54  ;;  %v9253_v31 = vadd.f32 %v1015_v53, %v282_v26  ;;  %v447_v37 = vpop.f32.mrb[10].mxu0  ;;  %v1018_v8 = vld [vmem:[%s15433_s3 + $0x218] sm:$0xf] }
  0xf2   :  { %v9256_v10 = vadd.f32 %v1150_v59, %v9213_v34  ;;  %v9258_v36 = vadd.f32 %v1002_v2, %v373_v5  ;;  %v9260_v58 = vadd.f32 %v1016_v4, %v284_v24  ;;  %v377_v27 = vadd.f32 %v376_v62, %v9042_v20  ;;  %v449_v30 = vpop.f32.mrb[11].mxu0  ;;  %v542_v60 = vpop.f32.mrb[10].mxu1 }
  0xf3   :  { %15888 = vst [vmem:[#allocation25_spill] sm:$0xff] %v9253_v31  ;;  %v1167_v53 = vadd.f32 %v1166_v0, %v9236_v54  ;;  %v1184_v5 = vsel %vm1183_vm1, %v9253_v31, 0.0  ;;  %v1287_v59 = vmul.f32 %v9253_v31, %v9253_v31  ;;  %v379_v20 = vadd.f32 %v378_v12, %v9049_v23  ;;  %v544_v55 = vpop.f32.mrb[11].mxu1  ;;  %v955_v23 = vld [vmem:[%s15433_s3 + $0x20] sm:$0xff]  ;;  %v956_v12 = vld [vmem:[%s15433_s3 + $0x28] sm:$0xff] }
  0xf4   :  { %15889 = vst [vmem:[#allocation26_spill] sm:$0xff] %v9258_v36  ;;  %15890 = vst [vmem:[#allocation27_spill] sm:$0xff] %v9260_v58  ;;  %v9275_v62 = vadd.f32 %v1338_v28, %v1258_v29  ;;  %v1355_v1 = vadd.f32 %v1354_v16, %v1273_v50  ;;  %v1185_v26 = vsel %vm1183_vm1, %v9260_v58, 0.0  ;;  %v1288_v2 = vmul.f32 %v9260_v58, %v9260_v58 }
  0xf5   :  { %v1371_v0 = vsel %vm1183_vm1, %v1287_v59, 0.0  ;;  %v1186_v4 = vadd.f32 %v1185_v26, %v1184_v5  ;;  %v9282_v24 = vadd.f32 %v1017_v19, %v377_v27  ;;  %v9284_v54 = vadd.f32 %v1018_v8, %v379_v20  ;;  %v453_v28 = vpop.f32.mrb[12].mxu0 }
  0xf6   :  { %v1274_v29 = vmul.f32 %v9258_v36, %v9258_v36  ;;  %v1372_v16 = vsel %vm1183_vm1, %v1288_v2, 0.0  ;;  %v448_v50 = vadd.f32 %v447_v37, %v9067_v32  ;;  %v450_v27 = vadd.f32 %v449_v30, %v9070_v33  ;;  %v455_v19 = vpop.f32.mrb[13].mxu0  ;;  %v548_v8 = vpop.f32.mrb[12].mxu1 }
  0xf7   :  { %15891 = vst [vmem:[#allocation28_spill] sm:$0xff] %v9282_v24  ;;  %15892 = vst [vmem:[#allocation29_spill] sm:$0xff] %v9284_v54  ;;  %v9298_v5 = vadd.f32 %v1167_v53, %v9258_v36  ;;  %v1373_v59 = vadd.f32 %v1372_v16, %v1371_v0  ;;  %v1187_v20 = vsel %vm1183_vm1, %v9282_v24, 0.0  ;;  %v1289_v26 = vmul.f32 %v9282_v24, %v9282_v24  ;;  %v550_v31 = vpop.f32.mrb[13].mxu1  ;;  %v957_v53 = vld [vmem:[%s15433_s3 + $0x30] sm:$0xff]  ;;  %v971_v0 = vld [vmem:[%s15433_s3 + $0xa0] sm:$0xff] }
  0xf8   :  { %v1188_v58 = vadd.f32 %v1187_v20, %v1186_v4  ;;  %v1290_v2 = vmul.f32 %v9284_v54, %v9284_v54  ;;  %v9306_v37 = vadd.f32 %v955_v23, %v448_v50  ;;  %v9308_v30 = vadd.f32 %v956_v12, %v450_v27 }
  0xf9   :  { %v1374_v16 = vsel %vm1183_vm1, %v1289_v26, 0.0  ;;  %v1189_v4 = vsel %vm1183_vm1, %v9284_v54, 0.0  ;;  %v543_v20 = vadd.f32 %v542_v60, %v9078_v38  ;;  %v454_v23 = vadd.f32 %v453_v28, %v9067_v32  ;;  %v459_v50 = vpop.f32.mrb[14].mxu0 }
  0xfa   :  { %15893 = vst [vmem:[#allocation30_spill] sm:$0xff] %v9306_v37  ;;  %15894 = vst [vmem:[#allocation31_spill] sm:$0xff] %v9308_v30  ;;  %v9321_v12 = vadd.f32 %v1355_v1, %v1274_v29  ;;  %v1375_v27 = vadd.f32 %v1374_v16, %v1373_v59  ;;  %v1118_v24 = vadd.f32 %v9169_v41, %v9306_v37  ;;  %v461_v46 = vpop.f32.mrb[15].mxu0  ;;  %v554_v34 = vpop.f32.mrb[14].mxu1  ;;  %v958_v1 = vld [vmem:[%s15433_s3 + $0x38] sm:$0xff]  ;;  %v972_v41 = vld [vmem:[%s15433_s3 + $0xa8] sm:$0xff] }
  0xfb   :  { %v545_v36 = vadd.f32 %v544_v55, %v9081_v39  ;;  %v1227_v26 = vmul.f32 %v9306_v37, %v9306_v37  ;;  %v1228_v54 = vmul.f32 %v9308_v30, %v9308_v30  ;;  %v9330_v60 = vadd.f32 %v957_v53, %v543_v20  ;;  %v556_v55 = vpop.f32.mrb[15].mxu1 }
  0xfc   :  { %v9332_v28 = vadd.f32 %v971_v0, %v454_v23  ;;  %v9340_v29 = vadd.f32 %v1189_v4, %v1188_v58  ;;  %v1376_v59 = vsel %vm1183_vm1, %v1290_v2, 0.0  ;;  %v1119_v16 = vadd.f32 %v1118_v24, %v9308_v30  ;;  %v973_v58 = vld [vmem:[%s15433_s3 + $0xb0] sm:$0xff] }
  0xfd   :  { %15895 = vst [vmem:[#allocation32_spill] sm:$0xff] %v9330_v60  ;;  %v456_v53 = vadd.f32 %v455_v19, %v9070_v33  ;;  %v1306_v0 = vadd.f32 %v9200_v6, %v1227_v26  ;;  %v1229_v20 = vmul.f32 %v9330_v60, %v9330_v60  ;;  %v465_v2 = vpop.f32.mrb[16].mxu0  ;;  %v9356_v4 = vadd.f32 %v958_v1, %v545_v36  ;;  %v974_v26 = vld [vmem:[%s15433_s3 + $0xb8] sm:$0xff] }
  0xfe   :  { %15896 = vst [vmem:[#allocation33_spill] sm:$0xff] %v9332_v28  ;;  %v1135_v23 = vadd.f32 %v9224_v57, %v9332_v28  ;;  %v1243_v37 = vmul.f32 %v9332_v28, %v9332_v28  ;;  %v1120_v24 = vadd.f32 %v1119_v16, %v9330_v60  ;;  %v549_v6 = vadd.f32 %v548_v8, %v9078_v38  ;;  %v987_v57 = vld [vmem:[%s15433_s3 + $0x120] sm:$0xff]  ;;  %v467_v28 = vpop.f32.mrb[17].mxu0  ;;  %v560_v61 = vpop.f32.mrb[16].mxu1 }
  0xff   :  { %15897 = vst [vmem:[#allocation34_spill] sm:$0xff] %v9356_v4  ;;  %v9358_v19 = vadd.f32 %v972_v41, %v456_v53  ;;  %v1307_v25 = vadd.f32 %v1306_v0, %v1228_v54  ;;  %v460_v36 = vadd.f32 %v459_v50, %v9067_v32  ;;  %v551_v1 = vadd.f32 %v550_v31, %v9081_v39  ;;  %v562_v41 = vpop.f32.mrb[17].mxu1  ;;  %v988_v31 = vld [vmem:[%s15433_s3 + $0x128] sm:$0xff] }
 0x100   :  { %v1323_v63 = vadd.f32 %v9249_v47, %v1243_v37  ;;  %v9370_v16 = vadd.f32 %v1376_v59, %v1375_v27  ;;  %v9375_v60 = vadd.f32 %v973_v58, %v549_v6  ;;  %v462_v47 = vadd.f32 %v461_v46, %v9070_v33  ;;  %v989_v37 = vld [vmem:[%s15433_s3 + $0x130] sm:$0xff] }
 0x101   :  { %15898 = vst [vmem:[#allocation35_spill] sm:$0xff] %v9358_v19  ;;  %v1136_v8 = vadd.f32 %v1135_v23, %v9358_v19  ;;  %v1244_v53 = vmul.f32 %v9358_v19, %v9358_v19  ;;  %v1308_v35 = vadd.f32 %v1307_v25, %v1229_v20  ;;  %v9377_v7 = vadd.f32 %v987_v57, %v460_v36  ;;  %v471_v50 = vpop.f32.mrb[18].mxu0 }
 0x102   :  { %15899 = vst [vmem:[#allocation36_spill] sm:$0xff] %v9375_v60  ;;  %v9379_v54 = vadd.f32 %v974_v26, %v551_v1  ;;  %v1230_v27 = vmul.f32 %v9356_v4, %v9356_v4  ;;  %v1245_v25 = vmul.f32 %v9375_v60, %v9375_v60  ;;  %v555_v0 = vadd.f32 %v554_v34, %v9078_v38  ;;  %v473_v20 = vpop.f32.mrb[19].mxu0  ;;  %v9393_v46 = vpop.f32.mrb[18].mxu1 }
 0x103   :  { %15900 = vst [vmem:[#allocation37_spill] sm:$0xff] %v9377_v7  ;;  %v1324_v59 = vadd.f32 %v1323_v63, %v1244_v53  ;;  %v9396_v23 = vadd.f32 %v1120_v24, %v9356_v4  ;;  %v1137_v58 = vadd.f32 %v1136_v8, %v9375_v60  ;;  %v1152_v6 = vadd.f32 %v9256_v10, %v9377_v7  ;;  %v568_v63 = vpop.f32.mrb[19].mxu1  ;;  %v1003_v24 = vld [vmem:[%s15433_s3 + $0x1a0] sm:$0xff]  ;;  %v990_v10 = vld [vmem:[%s15433_s3 + $0x138] sm:$0xff] }
 0x104   :  { %15901 = vst [vmem:[#allocation38_spill] sm:$0xff] %v9379_v54  ;;  %v1259_v57 = vmul.f32 %v9377_v7, %v9377_v7  ;;  %v9403_v26 = vadd.f32 %v1308_v35, %v1230_v27  ;;  %v1246_v34 = vmul.f32 %v9379_v54, %v9379_v54  ;;  %v9407_v36 = vadd.f32 %v988_v31, %v462_v47  ;;  %v1004_v35 = vld [vmem:[%s15433_s3 + $0x1a8] sm:$0xff] }
 0x105   :  { %v9409_v1 = vadd.f32 %v989_v37, %v555_v0  ;;  %v466_v53 = vadd.f32 %v465_v2, %v9067_v32  ;;  %v557_v47 = vadd.f32 %v556_v55, %v9081_v39  ;;  %v468_v31 = vadd.f32 %v467_v28, %v9070_v33  ;;  %v637_v37 = vpop.f32.mrb[20].mxu0 }
 0x106   :  { %15902 = vst [vmem:[#allocation39_spill] sm:$0xff] %v9407_v36  ;;  %v1340_v8 = vadd.f32 %v9275_v62, %v1259_v57  ;;  %v1325_v27 = vadd.f32 %v1324_v59, %v1245_v25  ;;  %v1153_v0 = vadd.f32 %v1152_v6, %v9407_v36  ;;  %v1260_v7 = vmul.f32 %v9407_v36, %v9407_v36  ;;  %v639_v19 = vpop.f32.mrb[21].mxu0  ;;  %v9429_v4 = vpop.f32.mrb[20].mxu1  ;;  %v1005_v59 = vld [vmem:[%s15433_s3 + $0x1b0] sm:$0xff]  ;;  %v1019_v25 = vld [vmem:[%s15433_s3 + $0x220] sm:$0xf] }
 0x107   :  { %15903 = vst [vmem:[#allocation40_spill] sm:$0xff] %v9409_v1  ;;  %v1261_v60 = vmul.f32 %v9409_v1, %v9409_v1  ;;  %v9431_v62 = vadd.f32 %v1003_v24, %v466_v53  ;;  %v9433_v2 = vadd.f32 %v990_v10, %v557_v47  ;;  %v9435_v55 = vadd.f32 %v1004_v35, %v468_v31  ;;  %v9444_v6 = vpop.f32.mrb[21].mxu1 }
 0x108   :  { %v561_v28 = vadd.f32 %v560_v61, %v9078_v38  ;;  %v9447_v57 = vadd.f32 %v1137_v58, %v9379_v54  ;;  %v1341_v24 = vadd.f32 %v1340_v8, %v1260_v7  ;;  %v1154_v10 = vadd.f32 %v1153_v0, %v9409_v1 }
 0x109   :  { %15904 = vst [vmem:[#allocation41_spill] sm:$0xff] %v9431_v62  ;;  %15905 = vst [vmem:[#allocation42_spill] sm:$0xff] %v9433_v2  ;;  %v472_v35 = vadd.f32 %v471_v50, %v9067_v32  ;;  %v1169_v61 = vadd.f32 %v9298_v5, %v9431_v62  ;;  %v1275_v53 = vmul.f32 %v9431_v62, %v9431_v62  ;;  %v9458_v36 = vpop.f32.mrb[22].mxu0  ;;  %v1006_v5 = vld [vmem:[%s15433_s3 + $0x1b8] sm:$0xff] }
 0x10a   :  { %15906 = vst [vmem:[#allocation43_spill] sm:$0xff] %v9435_v55  ;;  %v1276_v47 = vmul.f32 %v9435_v55, %v9435_v55  ;;  %v563_v31 = vadd.f32 %v562_v41, %v9081_v39  ;;  %v9460_v58 = vadd.f32 %v1325_v27, %v1246_v34  ;;  %v1262_v7 = vmul.f32 %v9433_v2, %v9433_v2  ;;  %v9471_v50 = vpop.f32.mrb[23].mxu0  ;;  %v9473_v0 = vpop.f32.mrb[22].mxu1 }
 0x10b   :  { %v9464_v8 = vadd.f32 %v1005_v59, %v561_v28  ;;  %v9466_v32 = vadd.f32 %v1019_v25, %v472_v35  ;;  %v1342_v41 = vadd.f32 %v1341_v24, %v1261_v60  ;;  %v1357_v62 = vadd.f32 %v9321_v12, %v1275_v53  ;;  %v1020_v28 = vld [vmem:[%s15433_s3 + $0x228] sm:$0xf]  ;;  %v9481_v59 = vpop.f32.mrb[23].mxu1  ;;  %v1022_v53 = vld [vmem:[%s15433_s3 + $0x238] sm:$0xf] }
 0x10c   :  { %v1170_v34 = vadd.f32 %v1169_v61, %v9435_v55  ;;  %v474_v27 = vadd.f32 %v473_v20, %v9070_v33  ;;  %v9484_v25 = vadd.f32 %v1154_v10, %v9433_v2  ;;  %v9494_v61 = vadd.f32 %v1006_v5, %v563_v31  ;;  %v1021_v10 = vld [vmem:[%s15433_s3 + $0x230] sm:$0xf] }
 0x10d   :  { %15907 = vst [vmem:[#allocation44_spill] sm:$0xff] %v9464_v8  ;;  %15908 = vst [vmem:[#allocation45_spill] sm:$0xff] %v9466_v32  ;;  %v1277_v35 = vmul.f32 %v9464_v8, %v9464_v8  ;;  %v1191_v60 = vsel %vm1183_vm1, %v9466_v32, 0.0  ;;  %v1291_v12 = vmul.f32 %v9466_v32, %v9466_v32  ;;  %v1358_v24 = vadd.f32 %v1357_v62, %v1276_v47  ;;  %v9502_v55 = vpop.f32.mrb[24].mxu0  ;;  %v959_v47 = vld [vmem:[%s15433_s3 + $0x40] sm:$0xff] }
 0x10e   :  { %v1171_v33 = vadd.f32 %v1170_v34, %v9464_v8  ;;  %v1192_v20 = vadd.f32 %v1191_v60, %v9340_v29  ;;  %15909 = vst [vmem:[#allocation46_spill] sm:$0xff] %v9494_v61  ;;  %v9505_v32 = vadd.f32 %v1020_v28, %v474_v27  ;;  %v567_v62 = vadd.f32 %v9393_v46, %v9078_v38  ;;  %v9513_v31 = vpop.f32.mrb[25].mxu0  ;;  %v9515_v5 = vpop.f32.mrb[24].mxu1 }
 0x10f   :  { %v1378_v1 = vsel %vm1183_vm1, %v1291_v12, 0.0  ;;  %v569_v29 = vadd.f32 %v568_v63, %v9081_v39  ;;  %v9517_v34 = vadd.f32 %v1342_v41, %v1262_v7  ;;  %v1359_v60 = vadd.f32 %v1358_v24, %v1277_v35  ;;  %v9521_v28 = vpop.f32.mrb[25].mxu1 }
 0x110   :  { %15910 = vst [vmem:[#allocation47_spill] sm:$0xff] %v9505_v32  ;;  %v1379_v12 = vadd.f32 %v1378_v1, %v9370_v16  ;;  %v638_v27 = vadd.f32 %v637_v37, %v9088_v42  ;;  %v1193_v38 = vsel %vm1183_vm1, %v9505_v32, 0.0  ;;  %v1292_v39 = vmul.f32 %v9505_v32, %v9505_v32  ;;  %v960_v1 = vld [vmem:[%s15433_s3 + $0x48] sm:$0xff] }
 0x111   :  { %v9527_v46 = vadd.f32 %v1021_v10, %v567_v62  ;;  %v9529_v63 = vadd.f32 %v1022_v53, %v569_v29  ;;  %v1278_v7 = vmul.f32 %v9494_v61, %v9494_v61  ;;  %v1194_v41 = vadd.f32 %v1193_v38, %v1192_v20  ;;  %v9539_v37 = vpop.f32.mrb[26].mxu0  ;;  %v961_v38 = vld [vmem:[%s15433_s3 + $0x50] sm:$0xff] }
 0x112   :  { %v9533_v35 = vadd.f32 %v959_v47, %v638_v27  ;;  %v640_v16 = vadd.f32 %v639_v19, %v9092_v43  ;;  %v9542_v24 = vadd.f32 %v1171_v33, %v9494_v61  ;;  %v1380_v10 = vsel %vm1183_vm1, %v1292_v39, 0.0  ;;  %v9549_v62 = vpop.f32.mrb[27].mxu0  ;;  %v9551_v19 = vpop.f32.mrb[26].mxu1 }
 0x113   :  { %15911 = vst [vmem:[#allocation48_spill] sm:$0xff] %v9527_v46  ;;  %15912 = vst [vmem:[#allocation49_spill] sm:$0xff] %v9529_v63  ;;  %v1195_v53 = vsel %vm1183_vm1, %v9527_v46, 0.0  ;;  %v1293_v20 = vmul.f32 %v9527_v46, %v9527_v46  ;;  %v9553_v29 = vadd.f32 %v1359_v60, %v1278_v7  ;;  %v1381_v47 = vadd.f32 %v1380_v10, %v1379_v12  ;;  %v9562_v39 = vpop.f32.mrb[27].mxu1 }
 0x114   :  { %15913 = vst [vmem:[#allocation50_spill] sm:$0xff] %v9533_v35  ;;  %v1294_v27 = vmul.f32 %v9529_v63, %v9529_v63  ;;  %v1122_v33 = vadd.f32 %v9396_v23, %v9533_v35  ;;  %v1231_v32 = vmul.f32 %v9533_v35, %v9533_v35  ;;  %v9567_v60 = vadd.f32 %v960_v1, %v640_v16  ;;  %v975_v23 = vld [vmem:[%s15433_s3 + $0xc0] sm:$0xff] }
 0x115   :  { %v1382_v46 = vsel %vm1183_vm1, %v1293_v20, 0.0  ;;  %v733_v12 = vadd.f32 %v9429_v4, %v9103_v48  ;;  %v1196_v7 = vadd.f32 %v1195_v53, %v1194_v41  ;;  %v1197_v8 = vsel %vm1183_vm1, %v9529_v63, 0.0  ;;  %v9578_v61 = vpop.f32.mrb[28].mxu0  ;;  %v976_v41 = vld [vmem:[%s15433_s3 + $0xc8] sm:$0xff] }
 0x116   :  { %15914 = vst [vmem:[#allocation51_spill] sm:$0xff] %v9567_v60  ;;  %v1383_v10 = vadd.f32 %v1382_v46, %v1381_v47  ;;  %v644_v20 = vadd.f32 %v9458_v36, %v9088_v42  ;;  %v1310_v16 = vadd.f32 %v9403_v26, %v1231_v32  ;;  %v1123_v1 = vadd.f32 %v1122_v33, %v9567_v60  ;;  %v962_v46 = vld [vmem:[%s15433_s3 + $0x58] sm:$0xff]  ;;  %v9592_v36 = vpop.f32.mrb[29].mxu0  ;;  %v9594_v53 = vpop.f32.mrb[28].mxu1 }
 0x117   :  { %v1232_v4 = vmul.f32 %v9567_v60, %v9567_v60  ;;  %v9584_v35 = vadd.f32 %v961_v38, %v733_v12  ;;  %v1384_v26 = vsel %vm1183_vm1, %v1294_v27, 0.0  ;;  %v735_v47 = vadd.f32 %v9444_v6, %v9107_v49  ;;  %v977_v38 = vld [vmem:[%s15433_s3 + $0xd0] sm:$0xff]  ;;  %v9606_v12 = vpop.f32.mrb[29].mxu1 }
 0x118   :  { %v9597_v32 = vadd.f32 %v975_v23, %v644_v20  ;;  %v646_v33 = vadd.f32 %v9471_v50, %v9092_v43  ;;  %v739_v23 = vadd.f32 %v9473_v0, %v9103_v48  ;;  %v650_v0 = vadd.f32 %v9502_v55, %v9088_v42 }
 0x119   :  { %15915 = vst [vmem:[#allocation52_spill] sm:$0xff] %v9584_v35  ;;  %v1311_v63 = vadd.f32 %v1310_v16, %v1232_v4  ;;  %v1124_v2 = vadd.f32 %v1123_v1, %v9584_v35  ;;  %v1233_v27 = vmul.f32 %v9584_v35, %v9584_v35  ;;  %v9617_v20 = vadd.f32 %v962_v46, %v735_v47  ;;  %v991_v16 = vld [vmem:[%s15433_s3 + $0x140] sm:$0xff]  ;;  %v9624_v1 = vpop.f32.mrb[30].mxu0  ;;  %v978_v46 = vld [vmem:[%s15433_s3 + $0xd8] sm:$0xff] }
 0x11a   :  { %15916 = vst [vmem:[#allocation53_spill] sm:$0xff] %v9597_v32  ;;  %v1139_v6 = vadd.f32 %v9447_v57, %v9597_v32  ;;  %v1247_v50 = vmul.f32 %v9597_v32, %v9597_v32  ;;  %v9619_v60 = vadd.f32 %v976_v41, %v646_v33  ;;  %v9626_v35 = vadd.f32 %v977_v38, %v739_v23  ;;  %v9635_v41 = vpop.f32.mrb[31].mxu0  ;;  %v9637_v47 = vpop.f32.mrb[30].mxu1 }
 0x11b   :  { %15917 = vst [vmem:[#allocation54_spill] sm:$0xff] %v9617_v20  ;;  %v1312_v4 = vadd.f32 %v1311_v63, %v1233_v27  ;;  %v741_v57 = vadd.f32 %v9481_v59, %v9107_v49  ;;  %v9639_v33 = vadd.f32 %v1197_v8, %v1196_v7  ;;  %v9641_v32 = vadd.f32 %v1384_v26, %v1383_v10  ;;  %v9645_v55 = vpop.f32.mrb[31].mxu1  ;;  %v992_v8 = vld [vmem:[%s15433_s3 + $0x148] sm:$0xff] }
 0x11c   :  { %15918 = vst [vmem:[#allocation55_spill] sm:$0xff] %v9619_v60  ;;  %15919 = vst [vmem:[#allocation56_spill] sm:$0xff] %v9626_v35  ;;  %v1327_v63 = vadd.f32 %v9460_v58, %v1247_v50  ;;  %v1140_v38 = vadd.f32 %v1139_v6, %v9619_v60  ;;  %v1234_v59 = vmul.f32 %v9617_v20, %v9617_v20  ;;  %v993_v58 = vld [vmem:[%s15433_s3 + $0x150] sm:$0xff] }
 0x11d   :  { %v1248_v27 = vmul.f32 %v9619_v60, %v9619_v60  ;;  %v1249_v23 = vmul.f32 %v9626_v35, %v9626_v35  ;;  %v9653_v54 = vadd.f32 %v991_v16, %v650_v0  ;;  %v9662_v7 = vadd.f32 %v1124_v2, %v9617_v20  ;;  %v9670_v50 = vpop.f32.mrb[32].mxu0 }
 0x11e   :  { %v9664_v10 = vadd.f32 %v978_v46, %v741_v57  ;;  %v652_v26 = vadd.f32 %v9513_v31, %v9092_v43  ;;  %v745_v6 = vadd.f32 %v9515_v5, %v9103_v48  ;;  %v9672_v16 = vadd.f32 %v1312_v4, %v1234_v59  ;;  %v1007_v57 = vld [vmem:[%s15433_s3 + $0x1c0] sm:$0xff]  ;;  %v9681_v46 = vpop.f32.mrb[33].mxu0  ;;  %v9683_v31 = vpop.f32.mrb[32].mxu1  ;;  %v1008_v59 = vld [vmem:[%s15433_s3 + $0x1c8] sm:$0xff] }
 0x11f   :  { %15920 = vst [vmem:[#allocation57_spill] sm:$0xff] %v9653_v54  ;;  %v1328_v0 = vadd.f32 %v1327_v63, %v1248_v27  ;;  %v1156_v60 = vadd.f32 %v9484_v25, %v9653_v54  ;;  %v1263_v2 = vmul.f32 %v9653_v54, %v9653_v54  ;;  %v1141_v5 = vadd.f32 %v1140_v38, %v9626_v35  ;;  %v994_v63 = vld [vmem:[%s15433_s3 + $0x158] sm:$0xff]  ;;  %v9698_v27 = vpop.f32.mrb[33].mxu1 }
 0x120   :  { %15921 = vst [vmem:[#allocation58_spill] sm:$0xff] %v9664_v10  ;;  %v9686_v20 = vadd.f32 %v992_v8, %v652_v26  ;;  %v9688_v4 = vadd.f32 %v993_v58, %v745_v6  ;;  %v656_v25 = vadd.f32 %v9539_v37, %v9088_v42  ;;  %v747_v8 = vadd.f32 %v9521_v28, %v9107_v49 }
 0x121   :  { %v1329_v54 = vadd.f32 %v1328_v0, %v1249_v23  ;;  %v1344_v38 = vadd.f32 %v9517_v34, %v1263_v2  ;;  %v658_v58 = vadd.f32 %v9549_v62, %v9092_v43  ;;  %v1009_v34 = vld [vmem:[%s15433_s3 + $0x1d0] sm:$0xff]  ;;  %v9715_v23 = vpop.f32.mrb[34].mxu0  ;;  %v1250_v28 = vmul.f32 %v9664_v10, %v9664_v10 }
 0x122   :  { %15922 = vst [vmem:[#allocation59_spill] sm:$0xff] %v9686_v20  ;;  %15923 = vst [vmem:[#allocation60_spill] sm:$0xff] %v9688_v4  ;;  %v1157_v37 = vadd.f32 %v1156_v60, %v9686_v20  ;;  %v1264_v26 = vmul.f32 %v9686_v20, %v9686_v20  ;;  %v1265_v6 = vmul.f32 %v9688_v4, %v9688_v4  ;;  %v9725_v2 = vpop.f32.mrb[35].mxu0 }
 0x123   :  { %v9710_v35 = vadd.f32 %v1007_v57, %v656_v25  ;;  %v9719_v62 = vadd.f32 %v994_v63, %v747_v8  ;;  %v9721_v60 = vadd.f32 %v1008_v59, %v658_v58  ;;  %v751_v0 = vadd.f32 %v9551_v19, %v9103_v48  ;;  %v9727_v57 = vpop.f32.mrb[34].mxu1  ;;  %v1023_v63 = vld [vmem:[%s15433_s3 + $0x240] sm:$0xf] }
 0x124   :  { %v1345_v25 = vadd.f32 %v1344_v38, %v1264_v26  ;;  %v1158_v20 = vadd.f32 %v1157_v37, %v9688_v4  ;;  %v9737_v59 = vpop.f32.mrb[35].mxu1  ;;  %v9740_v19 = vadd.f32 %v1141_v5, %v9664_v10  ;;  %v9748_v58 = vadd.f32 %v1329_v54, %v1250_v28  ;;  %v1010_v5 = vld [vmem:[%s15433_s3 + $0x1d8] sm:$0xff]  ;;  %v1024_v4 = vld [vmem:[%s15433_s3 + $0x248] sm:$0xf] }
 0x125   :  { %15924 = vst [vmem:[#allocation61_spill] sm:$0xff] %v9710_v35  ;;  %15925 = vst [vmem:[#allocation62_spill] sm:$0xff] %v9719_v62  ;;  %v1173_v30 = vadd.f32 %v9542_v24, %v9710_v35  ;;  %v1279_v45 = vmul.f32 %v9710_v35, %v9710_v35  ;;  %v1280_v38 = vmul.f32 %v9721_v60, %v9721_v60 }
 0x126   :  { %15926 = vst [vmem:[#allocation63_spill] sm:$0xff] %v9721_v60  ;;  %v9744_v8 = vadd.f32 %v1009_v34, %v751_v0  ;;  %v662_v24 = vadd.f32 %v9578_v61, %v9088_v42  ;;  %v1346_v37 = vadd.f32 %v1345_v25, %v1265_v6  ;;  %v9758_v34 = vpop.f32.mrb[36].mxu0  ;;  %v1025_v61 = vld [vmem:[%s15433_s3 + $0x250] sm:$0xf]  ;;  %v9773_v6 = vpop.f32.mrb[36].mxu1  ;;  %v9776_v28 = vadd.f32 %v1158_v20, %v9719_v62 }
 0x127   :  { %v1361_v26 = vadd.f32 %v9553_v29, %v1279_v45  ;;  %v1174_v35 = vadd.f32 %v1173_v30, %v9721_v60  ;;  %v753_v45 = vadd.f32 %v9562_v39, %v9107_v49  ;;  %v664_v30 = vadd.f32 %v9592_v36, %v9092_v43  ;;  %v9771_v29 = vpop.f32.mrb[37].mxu0 }
 0x128   :  { %15927 = vst [vmem:[#allocation64_spill] sm:$0xff] %v9744_v8  ;;  %v1281_v42 = vmul.f32 %v9744_v8, %v9744_v8  ;;  %v9762_v54 = vadd.f32 %v1023_v63, %v662_v24  ;;  %v1266_v0 = vmul.f32 %v9719_v62, %v9719_v62  ;;  %v757_v39 = vadd.f32 %v9594_v53, %v9103_v48  ;;  %v9782_v63 = vpop.f32.mrb[37].mxu1  ;;  %v1026_v53 = vld [vmem:[%s15433_s3 + $0x258] sm:$0xf] }
 0x129   :  { %v1362_v25 = vadd.f32 %v1361_v26, %v1280_v38  ;;  %v9788_v24 = vadd.f32 %v1010_v5, %v753_v45  ;;  %v9790_v60 = vadd.f32 %v1024_v4, %v664_v30  ;;  %v759_v48 = vadd.f32 %v9606_v12, %v9107_v49  ;;  %v9802_v26 = vpop.f32.mrb[38].mxu0 }
 0x12a   :  { %15928 = vst [vmem:[#allocation65_spill] sm:$0xff] %v9762_v54  ;;  %v1199_v43 = vsel %vm1183_vm1, %v9762_v54, 0.0  ;;  %v1295_v36 = vmul.f32 %v9762_v54, %v9762_v54  ;;  %v9792_v20 = vadd.f32 %v1346_v37, %v1266_v0  ;;  %v9795_v38 = vadd.f32 %v1025_v61, %v757_v39  ;;  %v9810_v30 = vpop.f32.mrb[38].mxu1 }
 0x12b   :  { %15929 = vst [vmem:[#allocation66_spill] sm:$0xff] %v9788_v24  ;;  %15930 = vst [vmem:[#allocation67_spill] sm:$0xff] %v9790_v60  ;;  %v1200_v62 = vadd.f32 %v1199_v43, %v9639_v33  ;;  %v1175_v5 = vadd.f32 %v1174_v35, %v9744_v8  ;;  %v1363_v45 = vadd.f32 %v1362_v25, %v1281_v42  ;;  %v1201_v37 = vsel %vm1183_vm1, %v9790_v60, 0.0  ;;  %v9808_v33 = vpop.f32.mrb[39].mxu0  ;;  %v9817_v35 = vpop.f32.mrb[39].mxu1  ;;  %v964_v43 = vld [vmem:[%s15433_s3 + $0x68] sm:$0xff] }
 0x12c   :  { %15931 = vst [vmem:[#allocation68_spill] sm:$0xff] %v9795_v38  ;;  %v1386_v4 = vsel %vm1183_vm1, %v1295_v36, 0.0  ;;  %v1296_v61 = vmul.f32 %v9790_v60, %v9790_v60  ;;  %v1203_v0 = vsel %vm1183_vm1, %v9795_v38, 0.0  ;;  %v1282_v42 = vmul.f32 %v9788_v24, %v9788_v24 }
 0x12d   :  { %v1387_v49 = vadd.f32 %v1386_v4, %v9641_v32  ;;  %v1202_v12 = vadd.f32 %v1201_v37, %v1200_v62  ;;  %v1297_v25 = vmul.f32 %v9795_v38, %v9795_v38  ;;  %v9823_v39 = vadd.f32 %v1026_v53, %v759_v48  ;;  %v963_v62 = vld [vmem:[%s15433_s3 + $0x60] sm:$0xff] }
 0x12e   :  { %v828_v32 = vadd.f32 %v9624_v1, %v9119_v56  ;;  %v1388_v36 = vsel %vm1183_vm1, %v1296_v61, 0.0  ;;  %v830_v37 = vadd.f32 %v9635_v41, %v9140_v3  ;;  %v923_v48 = vadd.f32 %v9637_v47, %v9150_v11  ;;  %v965_v1 = vld [vmem:[%s15433_s3 + $0x70] sm:$0xff] }
 0x12f   :  { %15932 = vst [vmem:[#allocation69_spill] sm:$0xff] %v9823_v39  ;;  %v1204_v4 = vadd.f32 %v1203_v0, %v1202_v12  ;;  %v1176_v53 = vadd.f32 %v1175_v5, %v9788_v24  ;;  %v9842_v38 = vadd.f32 %v1363_v45, %v1282_v42  ;;  %v1389_v54 = vadd.f32 %v1388_v36, %v1387_v49  ;;  %v979_v5 = vld [vmem:[%s15433_s3 + $0xe0] sm:$0xff] }
 0x130   :  { %v1390_v60 = vsel %vm1183_vm1, %v1297_v25, 0.0  ;;  %v1205_v12 = vsel %vm1183_vm1, %v9823_v39, 0.0  ;;  %v9849_v41 = vmul.f32 %v9823_v39, %v9823_v39  ;;  %v9851_v61 = vadd.f32 %v963_v62, %v828_v32  ;;  %v980_v25 = vld [vmem:[%s15433_s3 + $0xe8] sm:$0xff]  ;;  %v995_v32 = vld [vmem:[%s15433_s3 + $0x160] sm:$0xff] }
 0x131   :  { %v9853_v47 = vadd.f32 %v964_v43, %v830_v37  ;;  %v9858_v45 = vadd.f32 %v1205_v12, %v1204_v4  ;;  %v9860_v49 = vadd.f32 %v965_v1, %v923_v48  ;;  %v834_v0 = vadd.f32 %v9670_v50, %v9119_v56  ;;  %v966_v50 = vld [vmem:[%s15433_s3 + $0x78] sm:$0xff]  ;;  %v996_v4 = vld [vmem:[%s15433_s3 + $0x168] sm:$0xff]  ;;  %v981_v48 = vld [vmem:[%s15433_s3 + $0xf0] sm:$0xff] }
 0x132   :  { %15933 = vst [vmem:[#allocation70_spill] sm:$0xff] %v9851_v61  ;;  %v925_v42 = vadd.f32 %v9645_v55, %v9179_v51  ;;  %v9872_v62 = vadd.f32 %v1390_v60, %v1389_v54  ;;  %v1235_v43 = vmul.f32 %v9851_v61, %v9851_v61  ;;  %v836_v55 = vadd.f32 %v9681_v46, %v9140_v3 }
 0x133   :  { %15934 = vst [vmem:[#allocation71_spill] sm:$0xff] %v9853_v47  ;;  %15935 = vst [vmem:[#allocation72_spill] sm:$0xff] %v9860_v49  ;;  %v840_v36 = vadd.f32 %v9715_v23, %v9119_v56  ;;  %v1236_v60 = vmul.f32 %v9853_v47, %v9853_v47  ;;  %v9888_v54 = vadd.f32 %v979_v5, %v834_v0  ;;  %v982_v5 = vld [vmem:[%s15433_s3 + $0xf8] sm:$0xff]  ;;  %v1011_v0 = vld [vmem:[%s15433_s3 + $0x1e0] sm:$0xff] }
 0x134   :  { %v929_v37 = vadd.f32 %v9683_v31, %v9150_v11  ;;  %v842_v46 = vadd.f32 %v9725_v2, %v9140_v3  ;;  %v9897_v23 = vadd.f32 %v980_v25, %v836_v55  ;;  %v931_v12 = vadd.f32 %v9698_v27, %v9179_v51 }
 0x135   :  { %15936 = vst [vmem:[#allocation73_spill] sm:$0xff] %v9888_v54  ;;  %v9899_v1 = vadd.f32 %v995_v32, %v840_v36  ;;  %v846_v31 = vadd.f32 %v9758_v34, %v9119_v56  ;;  %v1251_v2 = vmul.f32 %v9888_v54, %v9888_v54  ;;  %v9913_v25 = vadd.f32 %v966_v50, %v925_v42  ;;  %v997_v42 = vld [vmem:[%s15433_s3 + $0x170] sm:$0xff] }
 0x136   :  { %15937 = vst [vmem:[#allocation74_spill] sm:$0xff] %v9897_v23  ;;  %v9915_v32 = vadd.f32 %v996_v4, %v842_v46  ;;  %v935_v27 = vadd.f32 %v9727_v57, %v9150_v11  ;;  %v1252_v55 = vmul.f32 %v9897_v23, %v9897_v23  ;;  %v9925_v39 = vadd.f32 %v981_v48, %v929_v37  ;;  %v1012_v37 = vld [vmem:[%s15433_s3 + $0x1e8] sm:$0xff]  ;;  %v998_v48 = vld [vmem:[%s15433_s3 + $0x178] sm:$0xff]  ;;  %v1027_v46 = vld [vmem:[%s15433_s3 + $0x260] sm:$0xf] }
 0x137   :  { %15938 = vst [vmem:[#allocation75_spill] sm:$0xff] %v9899_v1  ;;  %15939 = vst [vmem:[#allocation76_spill] sm:$0xff] %v9913_v25  ;;  %v1160_v34 = vadd.f32 %v9776_v28, %v9899_v1  ;;  %v1267_v36 = vmul.f32 %v9899_v1, %v9899_v1  ;;  %v9934_v57 = vadd.f32 %v982_v5, %v931_v12 }
 0x138   :  { %15940 = vst [vmem:[#allocation77_spill] sm:$0xff] %v9915_v32  ;;  %15941 = vst [vmem:[#allocation78_spill] sm:$0xff] %v9925_v39  ;;  %v9932_v50 = vmul.f32 %v9915_v32, %v9915_v32  ;;  %v9936_v4 = vadd.f32 %v1011_v0, %v846_v31  ;;  %v1126_v28 = vadd.f32 %v9662_v7, %v9851_v61  ;;  %v1013_v0 = vld [vmem:[%s15433_s3 + $0x1f0] sm:$0xff] }
 0x139   :  { %15942 = vst [vmem:[#allocation79_spill] sm:$0xff] %v9934_v57  ;;  %v848_v12 = vadd.f32 %v9771_v29, %v9140_v3  ;;  %v937_v5 = vadd.f32 %v9737_v59, %v9179_v51  ;;  %v852_v7 = vadd.f32 %v9802_v26, %v9119_v56  ;;  %v941_v31 = vadd.f32 %v9773_v6, %v9150_v11 }
 0x13a   :  { %15943 = vst [vmem:[#allocation80_spill] sm:$0xff] %v9936_v4  ;;  %v1177_v1 = vadd.f32 %v1176_v53, %v9936_v4  ;;  %v9961_v61 = vadd.f32 %v997_v42, %v935_v27  ;;  %v1127_v8 = vadd.f32 %v1126_v28, %v9853_v47  ;;  %v1143_v29 = vadd.f32 %v9740_v19, %v9888_v54  ;;  %v10468_v54 = vld [vmem:[%s15436_s6 + $0x248] sm:$0xff]  ;;  %v10488_v47 = vld [vmem:[%s15436_s6 + $0x2d8] sm:$0xff] }
 0x13b   :  { %v1283_v59 = vmul.f32 %v9936_v4, %v9936_v4  ;;  %v9968_v56 = vadd.f32 %v1012_v37, %v848_v12  ;;  %v9970_v26 = vadd.f32 %v998_v48, %v937_v5  ;;  %v9972_v6 = vadd.f32 %v1027_v46, %v852_v7  ;;  %v1014_v7 = vld [vmem:[%s15433_s3 + $0x1f8] sm:$0xff]  ;;  %v10423_v4 = vld [vmem:[%s15436_s6 + $0x2c0] sm:$0xff]  ;;  %15971 = vst [vmem:[#allocation108_spill] sm:$0xff] %v10468_v54 }
 0x13c   :  { %15944 = vst [vmem:[#allocation81_spill] sm:$0xff] %v9961_v61  ;;  %v1128_v24 = vadd.f32 %v1127_v8, %v9860_v49  ;;  %v9975_v10 = vadd.f32 %v1013_v0, %v941_v31  ;;  %v1144_v53 = vadd.f32 %v1143_v29, %v9897_v23  ;;  %v1237_v27 = vmul.f32 %v9860_v49, %v9860_v49  ;;  %v1028_v8 = vld [vmem:[%s15433_s3 + $0x268] sm:$0xf]  ;;  %v10453_v23 = vld [vmem:[%s15436_s6 + $0x3c0] sm:$0xff] }
 0x13d   :  { %15945 = vst [vmem:[#allocation82_spill] sm:$0xff] %v9968_v56  ;;  %15946 = vst [vmem:[#allocation83_spill] sm:$0xff] %v9970_v26  ;;  %v1284_v19 = vmul.f32 %v9968_v56, %v9968_v56  ;;  %v1207_v42 = vsel %vm1183_vm1, %v9972_v6, 0.0  ;;  %v1238_v28 = vmul.f32 %v9913_v25, %v9913_v25  ;;  %v1314_v37 = vadd.f32 %v9672_v16, %v1235_v43  ;;  %v10478_v49 = vld [vmem:[%s15436_s6 + $0x348] sm:$0xff] }
 0x13e   :  { %15947 = vst [vmem:[#allocation84_spill] sm:$0xff] %v9972_v6  ;;  %15948 = vst [vmem:[#allocation85_spill] sm:$0xff] %v9975_v10  ;;  %v1129_v48 = vadd.f32 %v1128_v24, %v9913_v25  ;;  %v1145_v46 = vadd.f32 %v1144_v53, %v9925_v39  ;;  %v854_v12 = vadd.f32 %v9808_v33, %v9140_v3  ;;  %v1029_v24 = vld [vmem:[%s15433_s3 + $0x270] sm:$0xf] }
 0x13f   :  { %v943_v5 = vadd.f32 %v9782_v63, %v9179_v51  ;;  %v1299_v16 = vmul.f32 %v9972_v6, %v9972_v6  ;;  %v1315_v43 = vadd.f32 %v1314_v37, %v1236_v60  ;;  %v947_v31 = vadd.f32 %v9810_v30, %v9150_v11  ;;  %v1030_v37 = vld [vmem:[%s15433_s3 + $0x278] sm:$0xf]  ;;  %15964 = vst [vmem:[#allocation101_spill] sm:$0xff] %v10423_v4  ;;  %v10483_v25 = vld [vmem:[%s15436_s6 + $0x2d0] sm:$0xff] }
 0x140   :  { %v1253_v3 = vmul.f32 %v9925_v39, %v9925_v39  ;;  %1130 = vadd.xlane.f32.xlu0 %v1129_v48  ;;  %v1146_v63 = vadd.f32 %v1145_v46, %v9934_v57  ;;  %v10009_v33 = vadd.f32 %v1028_v8, %v854_v12  ;;  %v1254_v0 = vmul.f32 %v9934_v57, %v9934_v57  ;;  %v10463_v39 = vld [vmem:[%s15436_s6 + $0x240] sm:$0xff]  ;;  %v10616_v4 = vld [vmem:[%s15436_s6 + $0x2f0] sm:$0xff] }
 0x141   :  { %v1331_v60 = vadd.f32 %v9748_v58, %v1251_v2  ;;  %v1316_v29 = vadd.f32 %v1315_v43, %v1237_v27  ;;  %v10014_v53 = vadd.f32 %v1014_v7, %v943_v5  ;;  %v1161_v11 = vadd.f32 %v1160_v34, %v9915_v32  ;;  %15969 = vst [vmem:[#allocation106_spill] sm:$0xff] %v10453_v23  ;;  %v10473_v57 = vld [vmem:[%s15436_s6 + $0x340] sm:$0xff] }
 0x142   :  { %15949 = vst [vmem:[#allocation86_spill] sm:$0xff] %v10009_v33  ;;  %v949_v30 = vadd.f32 %v9817_v35, %v9179_v51  ;;  %1147 = vadd.xlane.f32.xlu1 %v1146_v63  ;;  %v1300_v8 = vmul.f32 %v10009_v33, %v10009_v33  ;;  %v10024_v48 = vadd.f32 %v1029_v24, %v947_v31  ;;  %15970 = vst [vmem:[#allocation107_spill] sm:$0xff] %v10463_v39 }
 0x143   :  { %15950 = vst [vmem:[#allocation87_spill] sm:$0xff] %v10014_v53  ;;  %v1332_v46 = vadd.f32 %v1331_v60, %v1252_v55  ;;  %v1269_v58 = vmul.f32 %v9961_v61, %v9961_v61  ;;  %v1317_v2 = vadd.f32 %v1316_v29, %v1238_v28  ;;  %v1162_v34 = vadd.f32 %v1161_v11, %v9961_v61 }
 0x144   :  { %15951 = vst [vmem:[#allocation88_spill] sm:$0xff] %v10024_v48  ;;  %v1270_v51 = vmul.f32 %v9970_v26, %v9970_v26  ;;  %v1348_v35 = vadd.f32 %v9792_v20, %v1267_v36  ;;  %v10032_v12 = vadd.f32 %v1030_v37, %v949_v30  ;;  %v1178_v5 = vadd.f32 %v1177_v1, %v9968_v56 }
 0x145   :  { %v1333_v27 = vadd.f32 %v1332_v46, %v1253_v3  ;;  %v1285_v7 = vmul.f32 %v9975_v10, %v9975_v10  ;;  %1318 = vadd.xlane.f32.xlu0 %v1317_v2  ;;  %v1163_v55 = vadd.f32 %v1162_v34, %v9970_v26  ;;  %v1365_v43 = vadd.f32 %v9842_v38, %v1283_v59 }
 0x146   :  { %15952 = vst [vmem:[#allocation89_spill] sm:$0xff] %v10032_v12  ;;  %v1349_v28 = vadd.f32 %v1348_v35, %v9932_v50  ;;  %v1208_v31 = vadd.f32 %v1207_v42, %v9858_v45  ;;  %v1179_v20 = vadd.f32 %v1178_v5, %v9975_v10  ;;  %v1209_v36 = vsel %vm1183_vm1, %v10009_v33, 0.0  ;;  %v1915_v5 = vld [vmem:[%s15436_s6 + $0x10] sm:$0xff]  ;;  %v10406_v10 = vld [vmem:[%s15436_s6 + $0x238] sm:$0xff]  ;;  %15972 = vst [vmem:[#allocation109_spill] sm:$0xff] %v10473_v57 }
 0x147   :  { %v1334_v24 = vadd.f32 %v1333_v27, %v1254_v0  ;;  %v1211_v1 = vsel %vm1183_vm1, %v10024_v48, 0.0  ;;  %v1392_v3 = vsel %vm1183_vm1, %v9849_v41, 0.0  ;;  %v1366_v60 = vadd.f32 %v1365_v43, %v1284_v19  ;;  %v10401_v33 = vld [vmem:[%s15436_s6 + $0x230] sm:$0xff]  ;;  %15973 = vst [vmem:[#allocation110_spill] sm:$0xff] %v10478_v49  ;;  %15974 = vst [vmem:[#allocation111_spill] sm:$0xff] %v10483_v25 }
 0x148   :  { %v1350_v63 = vadd.f32 %v1349_v28, %v1269_v58  ;;  %v1210_v29 = vadd.f32 %v1209_v36, %v1208_v31  ;;  %v1286_v38 = vmul.f32 %v10014_v53, %v10014_v53  ;;  %v1213_v45 = vsel %vm1183_vm1, %v10032_v12, 0.0  ;;  %v1934_v28 = vld [vmem:[%s15436_s6 + $0xa8] sm:$0xff]  ;;  %15961 = vst [vmem:[#allocation98_spill] sm:$0xff] %v10401_v33  ;;  %15975 = vst [vmem:[#allocation112_spill] sm:$0xff] %v10488_v47  ;;  %v10627_v47 = vld [vmem:[%s15436_s6 + $0x2f8] sm:$0xff] }
 0x149   :  { %1335 = vadd.xlane.f32.xlu1 %v1334_v24  ;;  %v1301_v50 = vmul.f32 %v10024_v48, %v10024_v48  ;;  %v1393_v59 = vadd.f32 %v1392_v3, %v9872_v62  ;;  %1164 = vadd.xlane.f32.xlu0 %v1163_v55  ;;  %v1180_v42 = vadd.f32 %v1179_v20, %v10014_v53  ;;  %v1394_v19 = vsel %vm1183_vm1, %v1299_v16, 0.0  ;;  %v1916_v16 = vld [vmem:[%s15436_s6 + $0x18] sm:$0xff]  ;;  %v1933_v55 = vld [vmem:[%s15436_s6 + $0xa0] sm:$0xff]  ;;  %v1966_v36 = vld [vmem:[%s15436_s6 + $0x1a8] sm:$0xff] }
 0x14a   :  { %v1212_v0 = vadd.f32 %v1211_v1, %v1210_v29  ;;  %v1302_v41 = vmul.f32 %v10032_v12, %v10032_v12  ;;  %v1351_v11 = vadd.f32 %v1350_v63, %v1270_v51  ;;  %v1367_v30 = vadd.f32 %v1366_v60, %v1285_v7  ;;  %v1948_v7 = vld [vmem:[%s15436_s6 + $0x118] sm:$0xff]  ;;  %v1965_v20 = vld [vmem:[%s15436_s6 + $0x1a0] sm:$0xff]  ;;  %v1918_v63 = vld [vmem:[%s15436_s6 + $0x28] sm:$0xff]  ;;  %15997 = vst [vmem:[#allocation134_spill] sm:$0xff] %v10616_v4 }
 0x14b   :  { %v1395_v37 = vadd.f32 %v1394_v19, %v1393_v59  ;;  %v1396_v46 = vsel %vm1183_vm1, %v1300_v8, 0.0  ;;  %v1398_v58 = vsel %vm1183_vm1, %v1301_v50, 0.0  ;;  %v1947_v8 = vld [vmem:[%s15436_s6 + $0x110] sm:$0xff]  ;;  %v7928_v51 = vpack.c.bf16 %v1916_v16, %v1915_v5  ;;  %v1917_v3 = vld [vmem:[%s15436_s6 + $0x20] sm:$0xff]  ;;  %v1936_v50 = vld [vmem:[%s15436_s6 + $0xb8] sm:$0xff]  ;;  %15998 = vst [vmem:[#allocation135_spill] sm:$0xff] %v10627_v47 }
 0x14c   :  { %v1214_v62 = vadd.f32 %v1213_v45, %v1212_v0  ;;  %v1400_v34 = vsel %vm1183_vm1, %v1302_v41, 0.0  ;;  %v1368_v35 = vadd.f32 %v1367_v30, %v1286_v38  ;;  %v7960_v31 = vpack.c.bf16 %v1948_v7, %v1947_v8  ;;  %v1949_v60 = vld [vmem:[%s15436_s6 + $0x120] sm:$0xff]  ;;  %v1950_v38 = vld [vmem:[%s15436_s6 + $0x128] sm:$0xff]  ;;  %v1935_v45 = vld [vmem:[%s15436_s6 + $0xb0] sm:$0xff] }
 0x14d   :  { %1352 = vadd.xlane.f32.xlu1 %v1351_v11  ;;  %v1397_v2 = vadd.f32 %v1396_v46, %v1395_v37  ;;  %1181 = vadd.xlane.f32.xlu0 %v1180_v42  ;;  %v7930_v24 = vpack.c.bf16 %v1934_v28, %v1933_v55  ;;  %v7962_v1 = vpack.c.bf16 %v1966_v36, %v1965_v20  ;;  %v1967_v0 = vld [vmem:[%s15436_s6 + $0x1b0] sm:$0xff]  ;;  %v1968_v41 = vld [vmem:[%s15436_s6 + $0x1b8] sm:$0xff]  ;;  %v1970_v5 = vld [vmem:[%s15436_s6 + $0x1c8] sm:$0xff] }
 0x14e   :  { %7929 = vmatpush3.bf16.msra.mxu0 %v7928_v51  ;;  %7961 = vmatpush3.bf16.msra.mxu1 %v7960_v31  ;;  %v7932_v29 = vpack.c.bf16 %v1918_v63, %v1917_v3  ;;  %v7964_v59 = vpack.c.bf16 %v1950_v38, %v1949_v60  ;;  %v7934_v42 = vpack.c.bf16 %v1936_v50, %v1935_v45  ;;  %v1919_v11 = vld [vmem:[%s15436_s6 + $0x30] sm:$0xff]  ;;  %v1920_v30 = vld [vmem:[%s15436_s6 + $0x38] sm:$0xff]  ;;  %v1921_v8 = vld [vmem:[%s15436_s6 + $0x40] sm:$0xff] }
 0x14f   :  { %v1399_v27 = vadd.f32 %v1398_v58, %v1397_v2  ;;  %7931 = vmatprep.subr.bf16.mxu0 %v7930_v24  ;;  %7963 = vmatprep.subr.bf16.mxu1 %v7962_v1  ;;  %v7966_v19 = vpack.c.bf16 %v1968_v41, %v1967_v0  ;;  %v1951_v37 = vld [vmem:[%s15436_s6 + $0x130] sm:$0xff]  ;;  %v7936_v46 = vpack.c.bf16 %v1920_v30, %v1919_v11  ;;  %v1952_v58 = vld [vmem:[%s15436_s6 + $0x138] sm:$0xff]  ;;  %v1937_v2 = vld [vmem:[%s15436_s6 + $0xc0] sm:$0xff] }
 0x150   :  { %v1922_v51 = vld [vmem:[%s15436_s6 + $0x48] sm:$0xff]  ;;  %v1953_v7 = vld [vmem:[%s15436_s6 + $0x140] sm:$0xff]  ;;  %v1940_v31 = vld [vmem:[%s15436_s6 + $0xd8] sm:$0xff] }
 0x151   :  { %1369 = vadd.xlane.f32.xlu1 %v1368_v35  ;;  %v1401_v43 = vadd.f32 %v1400_v34, %v1399_v27  ;;  %1215 = vadd.xlane.f32.xlu0 %v1214_v62  ;;  %v1938_v62 = vld [vmem:[%s15436_s6 + $0xc8] sm:$0xff]  ;;  %v7968_v34 = vpack.c.bf16 %v1952_v58, %v1951_v37  ;;  %v1969_v27 = vld [vmem:[%s15436_s6 + $0x1c0] sm:$0xff]  ;;  %v7940_v55 = vpack.c.bf16 %v1922_v51, %v1921_v8  ;;  %v1971_v36 = vld [vmem:[%s15436_s6 + $0x1d0] sm:$0xff] }
 0x152   :  { %7933 = vmatpush3.bf16.msra.mxu0 %v7932_v29  ;;  %7965 = vmatpush3.bf16.msra.mxu1 %v7964_v59  ;;  %v7938_v35 = vpack.c.bf16 %v1938_v62, %v1937_v2  ;;  %v7970_v16 = vpack.c.bf16 %v1970_v5, %v1969_v27  ;;  %v1954_v28 = vld [vmem:[%s15436_s6 + $0x148] sm:$0xff]  ;;  %v1972_v1 = vld [vmem:[%s15436_s6 + $0x1d8] sm:$0xff]  ;;  %v1923_v63 = vld [vmem:[%s15436_s6 + $0x50] sm:$0xff] }
 0x153   :  { %7935 = vmatprep.subr.bf16.mxu0 %v7934_v42  ;;  %7967 = vmatprep.subr.bf16.mxu1 %v7966_v19  ;;  %v7972_v24 = vpack.c.bf16 %v1954_v28, %v1953_v7  ;;  %v7974_v3 = vpack.c.bf16 %v1972_v1, %v1971_v36  ;;  %v1924_v60 = vld [vmem:[%s15436_s6 + $0x58] sm:$0xff]  ;;  %v1955_v29 = vld [vmem:[%s15436_s6 + $0x150] sm:$0xff]  ;;  %v1941_v50 = vld [vmem:[%s15436_s6 + $0xe0] sm:$0xff] }
 0x154   :  { %v7944_v38 = vpack.c.bf16 %v1924_v60, %v1923_v63  ;;  %v1956_v45 = vld [vmem:[%s15436_s6 + $0x158] sm:$0xff]  ;;  %v1942_v59 = vld [vmem:[%s15436_s6 + $0xe8] sm:$0xff]  ;;  %v1973_v41 = vld [vmem:[%s15436_s6 + $0x1e0] sm:$0xff] }
 0x155   :  { %1402 = vadd.xlane.f32.xlu1 %v1401_v43  ;;  %v1939_v43 = vld [vmem:[%s15436_s6 + $0xd0] sm:$0xff]  ;;  %v7976_v42 = vpack.c.bf16 %v1956_v45, %v1955_v29  ;;  %v7946_v0 = vpack.c.bf16 %v1942_v59, %v1941_v50  ;;  %v1974_v19 = vld [vmem:[%s15436_s6 + $0x1e8] sm:$0xff]  ;;  %v1925_v30 = vld [vmem:[%s15436_s6 + $0x60] sm:$0xff] }
 0x156   :  { %7937 = vmatpush3.bf16.msra.mxu0 %v7936_v46  ;;  %7969 = vmatpush3.bf16.msra.mxu1 %v7968_v34  ;;  %v7942_v20 = vpack.c.bf16 %v1940_v31, %v1939_v43  ;;  %v7978_v11 = vpack.c.bf16 %v1974_v19, %v1973_v41  ;;  %v1926_v37 = vld [vmem:[%s15436_s6 + $0x68] sm:$0xff]  ;;  %v1957_v46 = vld [vmem:[%s15436_s6 + $0x160] sm:$0xff]  ;;  %v1943_v62 = vld [vmem:[%s15436_s6 + $0xf0] sm:$0xff] }
 0x157   :  { %7939 = vmatprep.subr.bf16.mxu0 %v7938_v35  ;;  %7971 = vmatprep.subr.bf16.mxu1 %v7970_v16  ;;  %v7948_v58 = vpack.c.bf16 %v1926_v37, %v1925_v30  ;;  %v1958_v2 = vld [vmem:[%s15436_s6 + $0x168] sm:$0xff]  ;;  %v1944_v34 = vld [vmem:[%s15436_s6 + $0xf8] sm:$0xff]  ;;  %v1975_v5 = vld [vmem:[%s15436_s6 + $0x1f0] sm:$0xff] }
 0x158   :  { %v7980_v35 = vpack.c.bf16 %v1958_v2, %v1957_v46  ;;  %v7950_v27 = vpack.c.bf16 %v1944_v34, %v1943_v62  ;;  %v1976_v16 = vld [vmem:[%s15436_s6 + $0x1f8] sm:$0xff]  ;;  %v1927_v8 = vld [vmem:[%s15436_s6 + $0x70] sm:$0xff]  ;;  %v1993_v31 = vld [vmem:[%s15436_s6 + $0x280] sm:$0xff] }
 0x159   :  { %v7982_v51 = vpack.c.bf16 %v1976_v16, %v1975_v5  ;;  %v1928_v7 = vld [vmem:[%s15436_s6 + $0x78] sm:$0xff]  ;;  %v2025_v36 = vld [vmem:[%s15436_s6 + $0x380] sm:$0xff]  ;;  %v2026_v1 = vld [vmem:[%s15436_s6 + $0x388] sm:$0xff] }
 0x15a   :  { %7941 = vmatpush3.bf16.msra.mxu0 %v7940_v55  ;;  %7973 = vmatpush3.bf16.msra.mxu1 %v7972_v24  ;;  %v1959_v55 = vld [vmem:[%s15436_s6 + $0x170] sm:$0xff]  ;;  %v1960_v28 = vld [vmem:[%s15436_s6 + $0x178] sm:$0xff]  ;;  %v7952_v43 = vpack.c.bf16 %v1928_v7, %v1927_v8  ;;  %v8018_v63 = vpack.c.bf16 %v2026_v1, %v2025_v36  ;;  %v10233_v60 = vld [vmem:[%s15434_s4] sm:$0xff] }
 0x15b   :  { %7943 = vmatprep.subr.bf16.mxu0 %v7942_v20  ;;  %7975 = vmatprep.subr.bf16.mxu1 %v7974_v3  ;;  %v7984_v24 = vpack.c.bf16 %v1960_v28, %v1959_v55  ;;  %v1994_v20 = vld [vmem:[%s15436_s6 + $0x288] sm:$0xff]  ;;  %v10238_v29 = vld [vmem:[%s15435_s5] sm:$0xff]  ;;  %v10273_v41 = vld [vmem:[%s15436_s6 + $0x390] sm:$0xff]  ;;  %v10312_v62 = vrot.slane %v10233_v60, %v9025_v13  ;;  %v10358_v28 = vrot.slane %v10233_v60, %v9020_v9 }
 0x15c   :  { %v7986_v3 = vpack.c.bf16 %v1994_v20, %v1993_v31  ;;  %v10248_v45 = vld [vmem:[%s15436_s6 + $0x208] sm:$0xff]  ;;  %v10253_v50 = vld [vmem:[%s15436_s6 + $0x300] sm:$0xff]  ;;  %v10278_v19 = vld [vmem:[%s15436_s6 + $0x398] sm:$0xff]  ;;  %v10316_v34 = vrot.slane %v10238_v29, %v9025_v13  ;;  %v10354_v55 = vrot.slane %v10238_v29, %v9029_v15  ;;  %v10366_v31 = vrot.slane %v10233_v60, %v9027_v14 }
 0x15d   :  { %v10258_v59 = vld [vmem:[%s15436_s6 + $0x308] sm:$0xff]  ;;  %v10288_v30 = vld [vmem:[%s15436_s6 + $0x218] sm:$0xff]  ;;  %v10293_v37 = vld [vmem:[%s15436_s6 + $0x310] sm:$0xff]  ;;  %v10432_v56 = vrot.slane %v10233_v60, %v9036_v18  ;;  %v10436_v6 = vrot.slane %v10238_v29, %v9036_v18  ;;  %v10440_v61 = vrot.slane %v10233_v60, %v9046_v22 }
 0x15e   :  { %7945 = vmatpush3.bf16.msra.mxu0 %v7944_v38  ;;  %7977 = vmatpush3.bf16.msra.mxu1 %v7976_v42  ;;  %v10243_v38 = vld [vmem:[%s15436_s6 + $0x200] sm:$0xff]  ;;  %v10263_v42 = vld [vmem:[%s15436_s6 + $0x290] sm:$0xff]  ;;  %v10298_v46 = vld [vmem:[%s15436_s6 + $0x318] sm:$0xff] }
 0x15f   :  { %7947 = vmatprep.subr.bf16.mxu0 %v7946_v0  ;;  %7979 = vmatprep.subr.bf16.mxu1 %v7978_v11  ;;  %v10268_v0 = vld [vmem:[%s15436_s6 + $0x298] sm:$0xff]  ;;  %v10283_v11 = vld [vmem:[%s15436_s6 + $0x210] sm:$0xff]  ;;  %v10308_v2 = vld [vmem:[%s15436_s6 + $0x2a8] sm:$0xff]  ;;  %15966 = vst [vmem:[#allocation103_spill] sm:$0xff] %v10432_v56 }
 0x160   :  { %v10330_v5 = vld [vmem:[%s15436_s6 + $0x3a8] sm:$0xff]  ;;  %v10335_v16 = vld [vmem:[%s15436_s6 + $0x220] sm:$0xff]  ;;  %v10376_v20 = vld [vmem:[%s15436_s6 + $0x2b8] sm:$0xff]  ;;  %15967 = vst [vmem:[#allocation104_spill] sm:$0xff] %v10436_v6  ;;  %v10513_v6 = vrot.slane %v10233_v60, %v9034_v17 }
 0x161   :  { %15954 = vst [vmem:[#allocation91_spill] sm:$0xff] %v10335_v16  ;;  %v10340_v8 = vld [vmem:[%s15436_s6 + $0x228] sm:$0xff]  ;;  %v10381_v36 = vld [vmem:[%s15436_s6 + $0x3b0] sm:$0xff]  ;;  %v10386_v1 = vld [vmem:[%s15436_s6 + $0x3b8] sm:$0xff] }
 0x162   :  { %7949 = vmatpush3.bf16.msra.mxu0 %v7948_v58  ;;  %7981 = vmatpush3.bf16.msra.mxu1 %v7980_v35  ;;  %v10303_v58 = vld [vmem:[%s15436_s6 + $0x2a0] sm:$0xff]  ;;  %v10320_v35 = vrot.slane %v10233_v60, %v9029_v15  ;;  %15955 = vst [vmem:[#allocation92_spill] sm:$0xff] %v10340_v8  ;;  %v10350_v7 = vld [vmem:[%s15436_s6 + $0x328] sm:$0xff]  ;;  %15959 = vst [vmem:[#allocation96_spill] sm:$0xff] %v10381_v36 }
 0x163   :  { %7951 = vmatprep.subr.bf16.mxu0 %v7950_v27  ;;  %7983 = vmatprep.subr.bf16.mxu1 %v7982_v51  ;;  %15953 = vst [vmem:[#allocation90_spill] sm:$0xff] %v10303_v58  ;;  %v10325_v27 = vld [vmem:[%s15436_s6 + $0x3a0] sm:$0xff]  ;;  %15957 = vst [vmem:[#allocation94_spill] sm:$0xff] %v10350_v7  ;;  %v10411_v48 = vld [vmem:[%s15436_s6 + $0x330] sm:$0xff]  ;;  %v10521_v7 = vrot.slane %v10238_v29, %v9046_v22 }
 0x164   :  { %v10345_v51 = vld [vmem:[%s15436_s6 + $0x320] sm:$0xff]  ;;  %15960 = vst [vmem:[#allocation97_spill] sm:$0xff] %v10386_v1  ;;  %15962 = vst [vmem:[#allocation99_spill] sm:$0xff] %v10411_v48  ;;  %v10418_v12 = vld [vmem:[%s15436_s6 + $0x338] sm:$0xff] }
 0x165   :  { %15956 = vst [vmem:[#allocation93_spill] sm:$0xff] %v10345_v51  ;;  %15963 = vst [vmem:[#allocation100_spill] sm:$0xff] %v10418_v12  ;;  %v10428_v53 = vld [vmem:[%s15436_s6 + $0x2c8] sm:$0xff]  ;;  %v10499_v56 = vld [vmem:[%s15436_s6 + $0x3d0] sm:$0xff]  ;;  %v10540_v51 = vrot.slane %v10238_v29, %v9034_v17 }
 0x166   :  { %7953 = vmatpush3.bf16.msra.mxu0 %v7952_v43  ;;  %7985 = vmatpush3.bf16.msra.mxu1 %v7984_v24  ;;  %v10362_v43 = vrot.slane %v10238_v29, %v9020_v9  ;;  %v10371_v24 = vld [vmem:[%s15436_s6 + $0x2b0] sm:$0xff]  ;;  %15965 = vst [vmem:[#allocation102_spill] sm:$0xff] %v10428_v53  ;;  %15968 = vst [vmem:[#allocation105_spill] sm:$0xff] %v10440_v61  ;;  %v10504_v58 = vld [vmem:[%s15436_s6 + $0x3d8] sm:$0xff] }
 0x167   :  { %7987 = vmatprep.subr.bf16.mxu0 %v7986_v3  ;;  %8019 = vmatprep.subr.bf16.mxu1 %v8018_v63  ;;  %15958 = vst [vmem:[#allocation95_spill] sm:$0xff] %v10371_v24  ;;  %v10390_v63 = vrot.slane %v10238_v29, %v9027_v14  ;;  %15976 = vst [vmem:[#allocation113_spill] sm:$0xff] %v10499_v56  ;;  %v10509_v18 = vld [vmem:[%s15436_s6 + $0x250] sm:$0xff]  ;;  %v10526_v16 = vld [vmem:[%s15436_s6 + $0x258] sm:$0xff] }
 0x168   :  { %15977 = vst [vmem:[#allocation114_spill] sm:$0xff] %v10504_v58  ;;  %15978 = vst [vmem:[#allocation115_spill] sm:$0xff] %v10509_v18  ;;  %v10531_v8 = vld [vmem:[%s15436_s6 + $0x350] sm:$0xff]  ;;  %v10536_v61 = vld [vmem:[%s15436_s6 + $0x358] sm:$0xff] }
 0x169   :  { %15979 = vst [vmem:[#allocation116_spill] sm:$0xff] %v10513_v6  ;;  %15980 = vst [vmem:[#allocation117_spill] sm:$0xff] %v10521_v7  ;;  %v10551_v1 = vld [vmem:[%s15436_s6 + $0x2e0] sm:$0xff]  ;;  %v10556_v24 = vld [vmem:[%s15436_s6 + $0x2e8] sm:$0xff]  ;;  %v10565_v7 = vrot.slane %v10233_v60, %v9044_v21 }
 0x16a   :  { %15981 = vst [vmem:[#allocation118_spill] sm:$0xff] %v10526_v16  ;;  %15982 = vst [vmem:[#allocation119_spill] sm:$0xff] %v10531_v8  ;;  %v10574_v48 = vld [vmem:[%s15436_s6 + $0x3e8] sm:$0xff]  ;;  %v10579_v12 = vld [vmem:[%s15436_s6 + $0x260] sm:$0xff] }
 0x16b   :  { %15983 = vst [vmem:[#allocation120_spill] sm:$0xff] %v10536_v61  ;;  %15984 = vst [vmem:[#allocation121_spill] sm:$0xff] %v10540_v51  ;;  %v10584_v60 = vld [vmem:[%s15436_s6 + $0x268] sm:$0xff]  ;;  %v10632_v57 = vld [vmem:[%s15436_s6 + $0x3f0] sm:$0xff] }
 0x16c   :  { %15986 = vst [vmem:[#allocation123_spill] sm:$0xff] %v10551_v1  ;;  %15987 = vst [vmem:[#allocation124_spill] sm:$0xff] %v10556_v24  ;;  %v10593_v51 = vld [vmem:[%s15434_s4 + $0x8] sm:$0xff]  ;;  %v10648_v61 = vld [vmem:[%s15436_s6 + $0x270] sm:$0xff] }
 0x16d   :  { %15989 = vst [vmem:[#allocation126_spill] sm:$0xff] %v10565_v7  ;;  %15990 = vst [vmem:[#allocation127_spill] sm:$0xff] %v10574_v48  ;;  %v10653_v18 = vld [vmem:[%s15436_s6 + $0x278] sm:$0xff]  ;;  %v10673_v56 = vld [vmem:[%s15436_s6 + $0x370] sm:$0xff]  ;;  %v10692_v1 = vrot.slane %v10593_v51, %v9029_v15 }
 0x16e   :  { %15991 = vst [vmem:[#allocation128_spill] sm:$0xff] %v10579_v12  ;;  %15992 = vst [vmem:[#allocation129_spill] sm:$0xff] %v10584_v60  ;;  %v16029_v60 = vld [vmem:[#allocation26_spill] sm:$0xff] }
 0x16f   :  { %15994 = vst [vmem:[#allocation131_spill] sm:$0xff] %v10593_v51  ;;  %15999 = vst [vmem:[#allocation136_spill] sm:$0xff] %v10632_v57 }
 0x170   :  { %16001 = vst [vmem:[#allocation138_spill] sm:$0xff] %v10648_v61  ;;  %16002 = vst [vmem:[#allocation139_spill] sm:$0xff] %v10653_v18  ;;  %v16022_v61 = vld [vmem:[#allocation16_spill] sm:$0xff] }
 0x171   :  { %16005 = vst [vmem:[#allocation142_spill] sm:$0xff] %v10673_v56  ;;  %16009 = vst [vmem:[#allocation146_spill] sm:$0xff] %v10692_v1  ;;  %v16020_v56 = vld [vmem:[#allocation34_spill] sm:$0xff] }
 0x1cd   :  { %v1131_v3 = vpop.xlane.xlu0 %1130 }
 0x1ce   :  { %v10442_v26 = vmul.f32 0.00048828125, %v1131_v3  ;;  %v10458_v3 = vld [vmem:[%s15436_s6 + $0x3c8] sm:$0xff] }
 0x1cf   :  { %v1148_v32 = vpop.xlane.xlu1 %1147 }
 0x1d0   :  { %v10542_v6 = vmul.f32 0.00048828125, %v1148_v32  ;;  %v10561_v32 = vld [vmem:[%s15436_s6 + $0x3e0] sm:$0xff]  ;;  %v1409_v36 = vmul.f32 %v10442_v26, %v10442_v26 }
 0x1d1   :  { %15988 = vst [vmem:[#allocation125_spill] sm:$0xff] %v10561_v32 }
 0x1d2   :  { %15985 = vst [vmem:[#allocation122_spill] sm:$0xff] %v10542_v6  ;;  %v1319_v22 = vpop.xlane.xlu0 %1318  ;;  %v1437_v18 = vsub.f32 %v16022_v61, %v10542_v6  ;;  %v16027_v61 = vld [vmem:[#allocation23_spill] sm:$0xff] }
 0x1d3   :  { %v1404_v17 = vmul.f32 0.00048828125, %v1319_v22  ;;  %v10588_v22 = vrot.slane %v10238_v29, %v9044_v21  ;;  %v10606_v29 = vld [vmem:[%s15436_s6 + $0x360] sm:$0xff]  ;;  %v10611_v21 = vld [vmem:[%s15436_s6 + $0x368] sm:$0xff] }
 0x1d4   :  { %15995 = vst [vmem:[#allocation132_spill] sm:$0xff] %v10606_v29  ;;  %15996 = vst [vmem:[#allocation133_spill] sm:$0xff] %v10611_v21 }
 0x1d5   :  { %15993 = vst [vmem:[#allocation130_spill] sm:$0xff] %v10588_v22  ;;  %v1414_v7 = vsub.f32 %v1404_v17, %v1409_v36  ;;  %v10637_v17 = vld [vmem:[%s15436_s6 + $0x3f8] sm:$0xff]  ;;  %v1410_v36 = vmul.f32 %v10542_v6, %v10542_v6 }
 0x1d6   :  { %v1336_v53 = vpop.xlane.xlu1 %1335  ;;  %16000 = vst [vmem:[#allocation137_spill] sm:$0xff] %v10637_v17  ;;  %v1165_v25 = vpop.xlane.xlu0 %1164 }
 0x1d7   :  { %v1405_v22 = vmul.f32 0.00048828125, %v1336_v53  ;;  %v10658_v53 = vld [vmem:[%s15435_s5 + $0x8] sm:$0xff]  ;;  %v1499_v16 = vadd.f32 1e-05, %v1414_v7  ;;  %v10660_v33 = vmul.f32 0.00048828125, %v1165_v25  ;;  %v10678_v25 = vld [vmem:[%s15436_s6 + $0x378] sm:$0xff]  ;;  %v10682_v7 = vrot.slane %v10593_v51, %v9025_v13 }
 0x1d8   :  { %16003 = vst [vmem:[#allocation140_spill] sm:$0xff] %v10658_v53  ;;  %16006 = vst [vmem:[#allocation143_spill] sm:$0xff] %v10678_v25  ;;  %v10688_v24 = vrot.slane %v10658_v53, %v9025_v13  ;;  %v10706_v13 = vrot.slane %v10658_v53, %v9029_v15  ;;  %v1422_v15 = vsub.f32 %v9112_v52, %v10442_v26 }
 0x1d9   :  { %16004 = vst [vmem:[#allocation141_spill] sm:$0xff] %v10660_v33  ;;  %v1415_v48 = vsub.f32 %v1405_v22, %v1410_v36  ;;  %16007 = vst [vmem:[#allocation144_spill] sm:$0xff] %v10682_v7  ;;  %8572 = vrsqrt.f32 %v1499_v16  ;;  %v1411_v57 = vmul.f32 %v10660_v33, %v10660_v33  ;;  %v10698_v16 = vrot.slane %v10593_v51, %v9020_v9 }
 0x1da   :  { %v1353_v22 = vpop.xlane.xlu1 %1352  ;;  %16008 = vst [vmem:[#allocation145_spill] sm:$0xff] %v10688_v24  ;;  %v1182_v17 = vpop.xlane.xlu0 %1181  ;;  %16012 = vst [vmem:[#allocation149_spill] sm:$0xff] %v10706_v13  ;;  %v10714_v24 = vrot.slane %v10658_v53, %v9020_v9  ;;  %v1420_v36 = vsub.f32 %v9094_v44, %v10442_v26  ;;  %v16018_v44 = vld [vmem:[#allocation15_spill] sm:$0xff] }
 0x1db   :  { %v1500_v32 = vadd.f32 1e-05, %v1415_v48  ;;  %v1406_v8 = vmul.f32 0.00048828125, %v1353_v22  ;;  %16010 = vst [vmem:[#allocation147_spill] sm:$0xff] %v10698_v16  ;;  %v10700_v7 = vmul.f32 0.00048828125, %v1182_v17  ;;  %v10710_v48 = vrot.slane %v10593_v51, %v9027_v14  ;;  %v16034_v51 = vld [vmem:[#allocation25_spill] sm:$0xff] }
 0x1dc   :  { %16014 = vst [vmem:[#allocation151_spill] sm:$0xff] %v10714_v24  ;;  %v10718_v17 = vrot.slane %v10658_v53, %v9027_v14  ;;  %v1436_v52 = vsub.f32 %v16018_v44, %v10542_v6  ;;  %v16019_v53 = vld [vmem:[#allocation17_spill] sm:$0xff]  ;;  %v16023_v44 = vld [vmem:[#allocation19_spill] sm:$0xff] }
 0x1dd   :  { %16011 = vst [vmem:[#allocation148_spill] sm:$0xff] %v10700_v7  ;;  %16013 = vst [vmem:[#allocation150_spill] sm:$0xff] %v10710_v48  ;;  %8574 = vrsqrt.f32 %v1500_v32  ;;  %v1416_v22 = vsub.f32 %v1406_v8, %v1411_v57  ;;  %v1419_v48 = vsub.f32 %v9083_v40, %v10442_v26  ;;  %v16016_v57 = vld [vmem:[#allocation13_spill] sm:$0xff]  ;;  %v1412_v24 = vmul.f32 %v10700_v7, %v10700_v7 }
 0x1de   :  { %16015 = vst [vmem:[#allocation152_spill] sm:$0xff] %v10718_v17  ;;  %v1370_v16 = vpop.xlane.xlu1 %1369  ;;  %v1421_v8 = vsub.f32 %v16016_v57, %v10442_v26  ;;  %v1216_v14 = vpop.xlane.xlu0 %1215  ;;  %v16017_v17 = vld [vmem:[#allocation31_spill] sm:$0xff]  ;;  %v1438_v40 = vsub.f32 %v16019_v53, %v10542_v6  ;;  %v1452_v4 = vsub.f32 %v16023_v44, %v10660_v33  ;;  %v16024_v53 = vld [vmem:[#allocation22_spill] sm:$0xff]  ;;  %v1468_v21 = vsub.f32 %v16027_v61, %v10700_v7  ;;  %v16030_v44 = vld [vmem:[#allocation21_spill] sm:$0xff] }
 0x1df   :  { %v1501_v32 = vadd.f32 1e-05, %v1416_v22  ;;  %v1407_v9 = vmul.f32 0.00048828125, %v1370_v16  ;;  %v1424_v13 = vsub.f32 %v16017_v17, %v10442_v26  ;;  %v10732_v1 = vmul.f32 0.00048828125, %v1216_v14  ;;  %v16021_v22 = vld [vmem:[#allocation14_spill] sm:$0xff] }
 0x1e0   :  { %v1435_v25 = vsub.f32 %v16021_v22, %v10542_v6  ;;  %v1454_v47 = vsub.f32 %v16024_v53, %v10660_v33  ;;  %v16025_v57 = vld [vmem:[#allocation18_spill] sm:$0xff]  ;;  %v16026_v22 = vld [vmem:[#allocation20_spill] sm:$0xff]  ;;  %v16033_v6 = vld [vmem:[#allocation29_spill] sm:$0xff] }
 0x1e1   :  { %8576 = vrsqrt.f32 %v1501_v32  ;;  %v1417_v16 = vsub.f32 %v1407_v9, %v1412_v24  ;;  %v1413_v14 = vmul.f32 %v10732_v1, %v10732_v1  ;;  %v1451_v32 = vsub.f32 %v16025_v57, %v10660_v33  ;;  %v16031_v53 = vld [vmem:[#allocation24_spill] sm:$0xff]  ;;  %v16032_v57 = vld [vmem:[#allocation27_spill] sm:$0xff] }
 0x1e2   :  { %v1403_v17 = vpop.xlane.xlu1 %1402  ;;  %v1453_v29 = vsub.f32 %v16026_v22, %v10660_v33 }
 0x1e3   :  { %v1502_v9 = vadd.f32 1e-05, %v1417_v16  ;;  %v1408_v24 = vmul.f32 0.00048828125, %v1403_v17  ;;  %v10756_v12 = vpop.eup %8572 }
 0x1e4   :  { %16028 = vst [vmem:[#allocation13_spill] sm:$0xff] %v10756_v12  ;;  %v1510_v22 = vmul.f32 %v10756_v12, %v1420_v36  ;;  %v1512_v61 = vmul.f32 %v10756_v12, %v1422_v15  ;;  %v1509_v33 = vmul.f32 %v10756_v12, %v1419_v48  ;;  %v1511_v49 = vmul.f32 %v10756_v12, %v1421_v8  ;;  %v16036_v36 = vld [vmem:[#allocation28_spill] sm:$0xff] }
 0x1e5   :  { %8578 = vrsqrt.f32 %v1502_v9  ;;  %v1418_v17 = vsub.f32 %v1408_v24, %v1413_v14 }
 0x1e6   :  { %v1672_v9 = vmul.f32 %v10312_v62, %v1510_v22  ;;  %v1674_v14 = vmul.f32 %v10320_v35, %v1512_v61  ;;  %v1671_v48 = vmul.f32 %v10358_v28, %v1509_v33  ;;  %v1673_v8 = vmul.f32 %v10366_v31, %v1511_v49 }
 0x1e7   :  { %v10774_v58 = vpop.eup %8574  ;;  %v1503_v23 = vadd.f32 1e-05, %v1418_v17 }
 0x1e8   :  { %16035 = vst [vmem:[#allocation31_spill] sm:$0xff] %v10774_v58  ;;  %v1526_v24 = vmul.f32 %v10774_v58, %v1436_v52  ;;  %v1528_v39 = vmul.f32 %v10774_v58, %v1438_v40  ;;  %v1834_v54 = vadd.f32 %v10316_v34, %v1672_v9  ;;  %v1836_v17 = vadd.f32 %v10354_v55, %v1674_v14 }
 0x1e9   :  { %8580 = vrsqrt.f32 %v1503_v23  ;;  %v1525_v22 = vmul.f32 %v10774_v58, %v1435_v25  ;;  %v1833_v61 = vadd.f32 %v10362_v43, %v1671_v48  ;;  %v1835_v16 = vadd.f32 %v10390_v63, %v1673_v8 }
 0x1ea   :  { %v1688_v15 = vmul.f32 %v10312_v62, %v1526_v24  ;;  %v1690_v33 = vmul.f32 %v10320_v35, %v1528_v39  ;;  %2233 = vmatprep.mubr.f32.mxu0 %v1834_v54  ;;  %2323 = vmatprep.mubr.f32.mxu1 %v1836_v17  ;;  %v1527_v52 = vmul.f32 %v10774_v58, %v1437_v18 }
 0x1eb   :  { %v10791_v49 = vpop.eup %8576  ;;  %v1687_v23 = vmul.f32 %v10358_v28, %v1525_v22  ;;  %v10796_v40 = vmul.f32 %v10756_v12, %v1424_v13  ;;  %2234 = vmatmul.mubr.f32.vlgmr.msra.gmra.mrb[40].mxu0 %v1833_v61  ;;  %2324 = vmatmul.mubr.f32.vlgmr.msra.gmra.mrb[40].mxu1 %v1835_v16  ;;  %v16037_v39 = vpack.c.bf16 %v10248_v45, %v10243_v38 }
 0x1ec   :  { %v1850_v25 = vadd.f32 %v10316_v34, %v1688_v15  ;;  %v1852_v9 = vadd.f32 %v10354_v55, %v1690_v33  ;;  %v1542_v14 = vmul.f32 %v10791_v49, %v1452_v4  ;;  %v16038_v54 = vpack.c.bf16 %v10258_v59, %v10253_v50 }
 0x1ed   :  { %7989 = vmatpush3.bf16.msra.mxu0 %v16037_v39  ;;  %v1849_v18 = vadd.f32 %v10362_v43, %v1687_v23  ;;  %v1689_v13 = vmul.f32 %v10366_v31, %v1527_v52  ;;  %v1544_v16 = vmul.f32 %v10791_v49, %v1454_v47  ;;  %v1541_v4 = vmul.f32 %v10791_v49, %v1451_v32 }
 0x1ee   :  { %8021 = vmatpush3.bf16.msra.mxu1 %v16038_v54  ;;  %2238 = vmatprep.mubr.f32.mxu0 %v1850_v25  ;;  %v1704_v15 = vmul.f32 %v10312_v62, %v1542_v14  ;;  %v1543_v48 = vmul.f32 %v10791_v49, %v1453_v29  ;;  %v16039_v45 = vpack.c.bf16 %v10268_v0, %v10263_v42 }
 0x1ef   :  { %2328 = vmatprep.mubr.f32.mxu1 %v1852_v9  ;;  %v10813_v38 = vpop.eup %8578  ;;  %v16040_v50 = vpack.c.bf16 %v10278_v19, %v10273_v41  ;;  %v1851_v47 = vadd.f32 %v10390_v63, %v1689_v13  ;;  %v1706_v59 = vmul.f32 %v10320_v35, %v1544_v16  ;;  %v16041_v8 = vsub.f32 %v16020_v56, %v10442_v26 }
 0x1f0   :  { %7991 = vmatprep.subr.bf16.mxu0 %v16039_v45  ;;  %2239 = vmatmul.mubr.f32.gmra.mrb[42].mxu0 %v1849_v18  ;;  %v1866_v29 = vadd.f32 %v10316_v34, %v1704_v15  ;;  %v1703_v42 = vmul.f32 %v10358_v28, %v1541_v4  ;;  %v1705_v0 = vmul.f32 %v10366_v31, %v1543_v48  ;;  %v10893_v4 = vld [vmem:[%s15436_s6 + $0x580] sm:$0xff]  ;;  %v10898_v48 = vld [vmem:[%s15436_s6 + $0x588] sm:$0xff] }
 0x1f1   :  { %8023 = vmatprep.subr.bf16.mxu1 %v16040_v50  ;;  %v10827_v32 = vmul.f32 %v10756_v12, %v16041_v8  ;;  %v1558_v41 = vmul.f32 %v10813_v38, %v1468_v21  ;;  %2329 = vmatmul.mubr.f32.gmra.mrb[42].mxu1 %v1851_v47  ;;  %v16042_v19 = vpack.c.bf16 %v10288_v30, %v10283_v11  ;;  %v10903_v45 = vld [vmem:[%s15436_s6 + $0x400] sm:$0xff]  ;;  %v10908_v50 = vld [vmem:[%s15436_s6 + $0x408] sm:$0xff]  ;;  %v16055_v47 = vld [vmem:[#allocation94_spill] sm:$0xff] }
 0x1f2   :  { %v1868_v24 = vadd.f32 %v10354_v55, %v1706_v59  ;;  %v16043_v56 = vsub.f32 %v16029_v60, %v10700_v7  ;;  %v16044_v22 = vsub.f32 %v16030_v44, %v10700_v7  ;;  %v16045_v21 = vpack.c.bf16 %v10298_v46, %v10293_v37  ;;  %2243 = vmatprep.mubr.f32.mxu0 %v1866_v29  ;;  %v16046_v60 = vld [vmem:[#allocation90_spill] sm:$0xff]  ;;  %v16056_v59 = vld [vmem:[#allocation93_spill] sm:$0xff] }
 0x1f3   :  { %7993 = vmatpush3.bf16.msra.mxu0 %v16042_v19  ;;  %v1865_v11 = vadd.f32 %v10362_v43, %v1703_v42  ;;  %v1867_v30 = vadd.f32 %v10390_v63, %v1705_v0  ;;  %v1720_v33 = vmul.f32 %v10312_v62, %v1558_v41  ;;  %v10851_v23 = vpop.eup %8580  ;;  %v16047_v52 = vpack.c.bf16 %v10308_v2, %v16046_v60  ;;  %v10922_v19 = vld [vmem:[%s15436_s6 + $0x500] sm:$0xff] }
 0x1f4   :  { %v1560_v17 = vmul.f32 %v10813_v38, %v16043_v56  ;;  %v1557_v61 = vmul.f32 %v10813_v38, %v16044_v22  ;;  %8025 = vmatpush3.bf16.msra.mxu1 %v16045_v21  ;;  %2333 = vmatprep.mubr.f32.mxu1 %v1868_v24  ;;  %v16048_v37 = vsub.f32 %v16031_v53, %v10700_v7  ;;  %v10877_v53 = vld [vmem:[%s15436_s6 + $0x480] sm:$0xff]  ;;  %v10927_v24 = vld [vmem:[%s15436_s6 + $0x508] sm:$0xff]  ;;  %v16062_v21 = vld [vmem:[#allocation103_spill] sm:$0xff] }
 0x1f5   :  { %7995 = vmatprep.subr.bf16.mxu0 %v16047_v52  ;;  %v16049_v9 = vpack.c.bf16 %v10330_v5, %v10325_v27  ;;  %2244 = vmatmul.mubr.f32.gmra.mrb[44].mxu0 %v1865_v11  ;;  %v1882_v14 = vadd.f32 %v10316_v34, %v1720_v33  ;;  %v16050_v2 = vsub.f32 %v16032_v57, %v10732_v1  ;;  %v10882_v27 = vld [vmem:[%s15436_s6 + $0x488] sm:$0xff]  ;;  %v16052_v5 = vld [vmem:[#allocation92_spill] sm:$0xff]  ;;  %v16053_v57 = vld [vmem:[#allocation91_spill] sm:$0xff] }
 0x1f6   :  { %v1722_v44 = vmul.f32 %v10320_v35, %v1560_v17  ;;  %v1719_v25 = vmul.f32 %v10358_v28, %v1557_v61  ;;  %v1559_v46 = vmul.f32 %v10813_v38, %v16048_v37  ;;  %v16051_v54 = vsub.f32 %v16033_v6, %v10732_v1  ;;  %2334 = vmatmul.mubr.f32.gmra.mrb[44].mxu1 %v1867_v30  ;;  %v10952_v30 = vld [vmem:[%s15436_s6 + $0x590] sm:$0xff]  ;;  %v16064_v60 = vld [vmem:[#allocation96_spill] sm:$0xff] }
 0x1f7   :  { %8027 = vmatprep.subr.bf16.mxu1 %v16049_v9  ;;  %v1574_v39 = vmul.f32 %v10851_v23, %v16050_v2  ;;  %v16054_v13 = vpack.c.bf16 %v16052_v5, %v16053_v57  ;;  %v16057_v8 = vpack.c.bf16 %v16055_v47, %v16056_v59  ;;  %2248 = vmatprep.mubr.f32.mxu0 %v1882_v14  ;;  %v10962_v33 = vld [vmem:[%s15436_s6 + $0x410] sm:$0xff]  ;;  %v10983_v9 = vld [vmem:[%s15436_s6 + $0x518] sm:$0xff]  ;;  %v10988_v14 = vld [vmem:[%s15436_s6 + $0x4a0] sm:$0xff] }
 0x1f8   :  { %v1576_v18 = vmul.f32 %v10851_v23, %v16051_v54  ;;  %v1884_v16 = vadd.f32 %v10354_v55, %v1722_v44  ;;  %v1881_v6 = vadd.f32 %v10362_v43, %v1719_v25  ;;  %v1721_v15 = vmul.f32 %v10366_v31, %v1559_v46  ;;  %v10978_v46 = vld [vmem:[%s15436_s6 + $0x510] sm:$0xff]  ;;  %v11006_v5 = vld [vmem:[%s15436_s6 + $0x5a0] sm:$0xff]  ;;  %v11011_v57 = vld [vmem:[%s15436_s6 + $0x5a8] sm:$0xff] }
 0x1f9   :  { %7997 = vmatpush3.bf16.msra.mxu0 %v16054_v13  ;;  %8029 = vmatpush3.bf16.msra.mxu1 %v16057_v8  ;;  %v1736_v29 = vmul.f32 %v10312_v62, %v1574_v39  ;;  %v16058_v0 = vsub.f32 %v16034_v51, %v10732_v1  ;;  %v10932_v62 = vld [vmem:[%s15436_s6 + $0x490] sm:$0xff]  ;;  %v16059_v51 = vld [vmem:[#allocation95_spill] sm:$0xff]  ;;  %v16061_v22 = vsub.f32 %v16036_v36, %v10732_v1  ;;  %v16068_v39 = vld [vmem:[#allocation105_spill] sm:$0xff] }
 0x1fa   :  { %v1738_v42 = vmul.f32 %v10320_v35, %v1576_v18  ;;  %v10937_v35 = vld [vmem:[%s15436_s6 + $0x498] sm:$0xff]  ;;  %2338 = vmatprep.mubr.f32.mxu1 %v1884_v16  ;;  %v16060_v56 = vpack.c.bf16 %v10376_v20, %v16059_v51  ;;  %v1883_v17 = vadd.f32 %v10390_v63, %v1721_v15  ;;  %v1676_v11 = vmul.f32 %v16062_v21, %v10796_v40  ;;  %v16063_v40 = vld [vmem:[#allocation97_spill] sm:$0xff]  ;;  %v11034_v59 = vld [vmem:[%s15436_s6 + $0x520] sm:$0xff] }
 0x1fb   :  { %v1573_v41 = vmul.f32 %v10851_v23, %v16058_v0  ;;  %v1575_v61 = vmul.f32 %v10851_v23, %v16061_v22  ;;  %v10957_v20 = vld [vmem:[%s15436_s6 + $0x598] sm:$0xff]  ;;  %v16065_v52 = vpack.c.bf16 %v16063_v40, %v16064_v60  ;;  %2249 = vmatmul.mubr.f32.gmra.mrb[46].mxu0 %v1881_v6  ;;  %v1898_v44 = vadd.f32 %v10316_v34, %v1736_v29  ;;  %v10993_v34 = vld [vmem:[%s15436_s6 + $0x4a8] sm:$0xff]  ;;  %v16076_v8 = vld [vmem:[#allocation102_spill] sm:$0xff] }
 0x1fc   :  { %7999 = vmatprep.subr.bf16.mxu0 %v16060_v56  ;;  %v10967_v36 = vld [vmem:[%s15436_s6 + $0x418] sm:$0xff]  ;;  %v1900_v25 = vadd.f32 %v10354_v55, %v1738_v42  ;;  %2339 = vmatmul.mubr.f32.gmra.mrb[46].mxu1 %v1883_v17  ;;  %v16066_v55 = vld [vmem:[#allocation98_spill] sm:$0xff]  ;;  %v1678_v54 = vmul.f32 %v16068_v39, %v10827_v32  ;;  %v11029_v47 = vld [vmem:[%s15436_s6 + $0x428] sm:$0xff]  ;;  %16074 = vst [vmem:[#allocation34_spill] sm:$0xff] %v11034_v59 }
 0x1fd   :  { %8031 = vmatprep.subr.bf16.mxu1 %v16065_v52  ;;  %v1735_v37 = vmul.f32 %v10358_v28, %v1573_v41  ;;  %v16067_v28 = vpack.c.bf16 %v10406_v10, %v16066_v55  ;;  %v1737_v2 = vmul.f32 %v10366_v31, %v1575_v61  ;;  %v11016_v10 = vld [vmem:[%s15436_s6 + $0x420] sm:$0xff]  ;;  %v16071_v32 = vld [vmem:[#allocation99_spill] sm:$0xff]  ;;  %2253 = vmatprep.mubr.f32.mxu0 %v1898_v44  ;;  %v16077_v29 = vld [vmem:[#allocation101_spill] sm:$0xff] }
 0x1fe   :  { %16069 = vst [vmem:[#allocation15_spill] sm:$0xff] %v11016_v10  ;;  %v16070_v31 = vld [vmem:[#allocation100_spill] sm:$0xff]  ;;  %16073 = vst [vmem:[#allocation17_spill] sm:$0xff] %v11029_v47  ;;  %2343 = vmatprep.mubr.f32.mxu1 %v1900_v25  ;;  %v16078_v42 = vpack.c.bf16 %v16076_v8, %v16077_v29  ;;  %v11052_v56 = vld [vmem:[%s15436_s6 + $0x4b0] sm:$0xff] }
 0x1ff   :  { %8001 = vmatpush3.bf16.msra.mxu0 %v16067_v28  ;;  %v16072_v13 = vpack.c.bf16 %v16070_v31, %v16071_v32  ;;  %v1897_v16 = vadd.f32 %v10362_v43, %v1735_v37  ;;  %v11039_v43 = vld [vmem:[%s15436_s6 + $0x528] sm:$0xff]  ;;  %v1899_v0 = vadd.f32 %v10390_v63, %v1737_v2  ;;  %16079 = vst [vmem:[#allocation16_spill] sm:$0xff] %v11052_v56  ;;  %v11057_v17 = vld [vmem:[%s15436_s6 + $0x4b8] sm:$0xff]  ;;  %v11062_v63 = vld [vmem:[%s15436_s6 + $0x5b0] sm:$0xff] }
 0x200   :  { %16075 = vst [vmem:[#allocation14_spill] sm:$0xff] %v11039_v43  ;;  %8003 = vmatprep.subr.bf16.mxu0 %v16078_v42  ;;  %16080 = vst [vmem:[#allocation19_spill] sm:$0xff] %v11057_v17  ;;  %v16082_v22 = vld [vmem:[#allocation106_spill] sm:$0xff]  ;;  %v16084_v40 = vld [vmem:[#allocation104_spill] sm:$0xff] }
 0x201   :  { %8033 = vmatpush3.bf16.msra.mxu1 %v16072_v13  ;;  %16081 = vst [vmem:[#allocation22_spill] sm:$0xff] %v11062_v63  ;;  %v16083_v61 = vpack.c.bf16 %v10458_v3, %v16082_v22  ;;  %2254 = vmatmul.mubr.f32.gmra.mrb[48].mxu0 %v1897_v16  ;;  %v1838_v60 = vadd.f32 %v16084_v40, %v1676_v11  ;;  %v11075_v25 = vld [vmem:[%s15436_s6 + $0x5b8] sm:$0xff]  ;;  %v11080_v37 = vld [vmem:[%s15436_s6 + $0x430] sm:$0xff]  ;;  %v16088_v11 = vld [vmem:[#allocation108_spill] sm:$0xff] }
 0x202   :  { %16085 = vst [vmem:[#allocation18_spill] sm:$0xff] %v11075_v25  ;;  %16086 = vst [vmem:[#allocation20_spill] sm:$0xff] %v11080_v37  ;;  %v11085_v3 = vld [vmem:[%s15436_s6 + $0x438] sm:$0xff]  ;;  %2344 = vmatmul.mubr.f32.gmra.mrb[48].mxu1 %v1899_v0  ;;  %v16091_v2 = vld [vmem:[#allocation117_spill] sm:$0xff] }
 0x203   :  { %8035 = vmatprep.subr.bf16.mxu1 %v16083_v61  ;;  %16087 = vst [vmem:[#allocation23_spill] sm:$0xff] %v11085_v3  ;;  %v16089_v55 = vld [vmem:[#allocation107_spill] sm:$0xff]  ;;  %v1840_v31 = vadd.f32 %v16091_v2, %v1678_v54  ;;  %v11098_v16 = vld [vmem:[%s15436_s6 + $0x530] sm:$0xff]  ;;  %v11108_v54 = vld [vmem:[%s15436_s6 + $0x4c0] sm:$0xff]  ;;  %2413 = vmatprep.mubr.f32.mxu0 %v1838_v60 }
 0x204   :  { %v16090_v28 = vpack.c.bf16 %v16088_v11, %v16089_v55  ;;  %16092 = vst [vmem:[#allocation26_spill] sm:$0xff] %v11098_v16  ;;  %v11103_v8 = vld [vmem:[%s15436_s6 + $0x538] sm:$0xff]  ;;  %16094 = vst [vmem:[#allocation24_spill] sm:$0xff] %v11108_v54  ;;  %v16095_v29 = vld [vmem:[#allocation110_spill] sm:$0xff] }
 0x205   :  { %16093 = vst [vmem:[#allocation21_spill] sm:$0xff] %v11103_v8  ;;  %v16096_v42 = vld [vmem:[#allocation109_spill] sm:$0xff]  ;;  %2503 = vmatprep.mubr.f32.mxu1 %v1840_v31  ;;  %v16104_v13 = vld [vmem:[#allocation114_spill] sm:$0xff]  ;;  %v16111_v11 = vld [vmem:[#allocation12_spill] sm:$0xff] }
 0x206   :  { %8005 = vmatpush3.bf16.msra.mxu0 %v16090_v28  ;;  %v16097_v0 = vpack.c.bf16 %v16095_v29, %v16096_v42  ;;  %v11122_v55 = vld [vmem:[%s15436_s6 + $0x4c8] sm:$0xff]  ;;  %v11127_v28 = vld [vmem:[%s15436_s6 + $0x5c0] sm:$0xff]  ;;  %v16102_v42 = vld [vmem:[#allocation111_spill] sm:$0xff] }
 0x207   :  { %16098 = vst [vmem:[#allocation27_spill] sm:$0xff] %v11122_v55  ;;  %16099 = vst [vmem:[#allocation29_spill] sm:$0xff] %v11127_v28  ;;  %v11132_v60 = vld [vmem:[%s15436_s6 + $0x5c8] sm:$0xff]  ;;  %v16101_v29 = vld [vmem:[#allocation112_spill] sm:$0xff] }
 0x208   :  { %8037 = vmatpush3.bf16.msra.mxu1 %v16097_v0  ;;  %16100 = vst [vmem:[#allocation25_spill] sm:$0xff] %v11132_v60  ;;  %v16103_v0 = vpack.c.bf16 %v16101_v29, %v16102_v42  ;;  %v16105_v32 = vld [vmem:[#allocation113_spill] sm:$0xff]  ;;  %v16107_v52 = vld [vmem:[#allocation30_spill] sm:$0xff]  ;;  %v16114_v22 = vld [vmem:[#allocation115_spill] sm:$0xff] }
 0x209   :  { %v16106_v44 = vpack.c.bf16 %v16104_v13, %v16105_v32  ;;  %v1423_v31 = vsub.f32 %v16107_v52, %v10442_v26  ;;  %v16108_v42 = vld [vmem:[#allocation10_spill] sm:$0xff]  ;;  %v16118_v52 = vld [vmem:[#allocation35_spill] sm:$0xff]  ;;  %v16128_v54 = vld [vmem:[#allocation125_spill] sm:$0xff] }
 0x20a   :  { %8007 = vmatprep.subr.bf16.mxu0 %v16103_v0  ;;  %v16109_v0 = vld [vmem:[#allocation131_spill] sm:$0xff]  ;;  %v16113_v41 = vld [vmem:[#allocation118_spill] sm:$0xff]  ;;  %v16144_v56 = vld [vmem:[#allocation132_spill] sm:$0xff] }
 0x20b   :  { %8039 = vmatprep.subr.bf16.mxu1 %v16106_v44  ;;  %v11152_v51 = vrot.slane %v16109_v0, %v16108_v42  ;;  %v11156_v61 = vrot.slane %v16109_v0, %v16111_v11  ;;  %v16115_v15 = vpack.c.bf16 %v16113_v41, %v16114_v22  ;;  %v16116_v44 = vld [vmem:[#allocation32_spill] sm:$0xff]  ;;  %v16117_v13 = vld [vmem:[#allocation122_spill] sm:$0xff]  ;;  %v16120_v16 = vld [vmem:[#allocation119_spill] sm:$0xff] }
 0x20c   :  { %v1425_v32 = vsub.f32 %v16116_v44, %v10442_v26  ;;  %v1440_v6 = vsub.f32 %v16118_v52, %v16117_v13  ;;  %v16123_v8 = vld [vmem:[#allocation123_spill] sm:$0xff]  ;;  %v16125_v22 = vld [vmem:[#allocation38_spill] sm:$0xff]  ;;  %v16126_v52 = vld [vmem:[#allocation33_spill] sm:$0xff] }
 0x20d   :  { %16110 = vst [vmem:[#allocation28_spill] sm:$0xff] %v11152_v51  ;;  %16112 = vst [vmem:[#allocation90_spill] sm:$0xff] %v11156_v61  ;;  %8009 = vmatpush3.bf16.msra.mxu0 %v16115_v15  ;;  %v16119_v51 = vld [vmem:[#allocation120_spill] sm:$0xff]  ;;  %v1513_v15 = vmul.f32 %v10756_v12, %v1423_v31  ;;  %v1442_v44 = vsub.f32 %v16125_v22, %v16117_v13  ;;  %v1439_v37 = vsub.f32 %v16126_v52, %v16117_v13  ;;  %v16127_v29 = vld [vmem:[#allocation127_spill] sm:$0xff] }
 0x20e   :  { %v16121_v0 = vpack.c.bf16 %v16119_v51, %v16120_v16  ;;  %v16122_v61 = vld [vmem:[#allocation124_spill] sm:$0xff]  ;;  %v16129_v55 = vpack.c.bf16 %v16127_v29, %v16128_v54  ;;  %v1515_v18 = vmul.f32 %v10756_v12, %v1425_v32  ;;  %v1530_v51 = vmul.f32 %v10774_v58, %v1440_v6  ;;  %v16133_v22 = vld [vmem:[#allocation39_spill] sm:$0xff]  ;;  %v16134_v52 = vld [vmem:[#allocation42_spill] sm:$0xff] }
 0x20f   :  { %v16124_v41 = vpack.c.bf16 %v16122_v61, %v16123_v8  ;;  %v16130_v16 = vld [vmem:[#allocation36_spill] sm:$0xff]  ;;  %v16131_v61 = vld [vmem:[#allocation51_spill] sm:$0xff]  ;;  %v16135_v54 = vld [vmem:[#allocation54_spill] sm:$0xff] }
 0x210   :  { %8041 = vmatpush3.bf16.msra.mxu1 %v16121_v0  ;;  %v1441_v8 = vsub.f32 %v16130_v16, %v16117_v13  ;;  %v1532_v0 = vmul.f32 %v10774_v58, %v1442_v44  ;;  %v16136_v29 = vld [vmem:[#allocation129_spill] sm:$0xff]  ;;  %v16137_v32 = vld [vmem:[#allocation128_spill] sm:$0xff]  ;;  %v16141_v44 = vld [vmem:[#allocation43_spill] sm:$0xff] }
 0x211   :  { %8011 = vmatprep.subr.bf16.mxu0 %v16124_v41  ;;  %8043 = vmatprep.subr.bf16.mxu1 %v16129_v55  ;;  %v16132_v41 = vld [vmem:[#allocation141_spill] sm:$0xff]  ;;  %v16138_v6 = vpack.c.bf16 %v16136_v29, %v16137_v32  ;;  %v16140_v31 = vld [vmem:[#allocation40_spill] sm:$0xff]  ;;  %v1472_v63 = vsub.f32 %v16141_v44, %v10700_v7  ;;  %v16146_v55 = vld [vmem:[#allocation135_spill] sm:$0xff] }
 0x212   :  { %v1456_v28 = vsub.f32 %v16133_v22, %v16132_v41  ;;  %v1458_v60 = vsub.f32 %v16134_v52, %v16132_v41  ;;  %v16139_v16 = vld [vmem:[#allocation37_spill] sm:$0xff]  ;;  %v1457_v3 = vsub.f32 %v16140_v31, %v16132_v41  ;;  %v16142_v22 = vld [vmem:[#allocation46_spill] sm:$0xff]  ;;  %v16149_v32 = vld [vmem:[#allocation116_spill] sm:$0xff] }
 0x213   :  { %8013 = vmatpush3.bf16.msra.mxu0 %v16138_v6  ;;  %v1455_v13 = vsub.f32 %v16139_v16, %v16132_v41  ;;  %v1474_v25 = vsub.f32 %v16142_v22, %v10700_v7  ;;  %v16143_v52 = vld [vmem:[#allocation133_spill] sm:$0xff]  ;;  %v16147_v59 = vld [vmem:[#allocation134_spill] sm:$0xff]  ;;  %v1675_v6 = vmul.f32 %v16149_v32, %v1513_v15  ;;  %v1529_v16 = vmul.f32 %v10774_v58, %v1439_v37  ;;  %v16152_v44 = vld [vmem:[#allocation136_spill] sm:$0xff] }
 0x214   :  { %v16145_v17 = vpack.c.bf16 %v16143_v52, %v16144_v56  ;;  %v16148_v29 = vpack.c.bf16 %v16146_v55, %v16147_v59  ;;  %v16150_v31 = vld [vmem:[#allocation41_spill] sm:$0xff]  ;;  %v16154_v22 = vld [vmem:[#allocation126_spill] sm:$0xff]  ;;  %v1692_v56 = vmul.f32 %v16062_v21, %v1530_v51  ;;  %v1546_v59 = vmul.f32 %v10791_v49, %v1456_v28  ;;  %v16155_v37 = vld [vmem:[#allocation44_spill] sm:$0xff] }
 0x215   :  { %v1471_v41 = vsub.f32 %v16150_v31, %v10700_v7  ;;  %v16151_v43 = vld [vmem:[#allocation137_spill] sm:$0xff]  ;;  %v1677_v47 = vmul.f32 %v16154_v22, %v1515_v18  ;;  %v1694_v55 = vmul.f32 %v16068_v39, %v1532_v0  ;;  %v1548_v15 = vmul.f32 %v10791_v49, %v1458_v60  ;;  %v16161_v60 = vld [vmem:[#allocation143_spill] sm:$0xff] }
 0x216   :  { %8045 = vmatpush3.bf16.msra.mxu1 %v16145_v17  ;;  %8015 = vmatprep.subr.bf16.mxu0 %v16148_v29  ;;  %v16153_v10 = vpack.c.bf16 %v16151_v43, %v16152_v44  ;;  %v1531_v17 = vmul.f32 %v10774_v58, %v1441_v8  ;;  %v1473_v52 = vsub.f32 %v16155_v37, %v10700_v7  ;;  %v16156_v29 = vld [vmem:[#allocation47_spill] sm:$0xff]  ;;  %v16160_v8 = vld [vmem:[#allocation49_spill] sm:$0xff]  ;;  %v16162_v58 = vld [vmem:[#allocation142_spill] sm:$0xff] }
 0x217   :  { %v1488_v31 = vsub.f32 %v16156_v29, %v10732_v1  ;;  %v16157_v43 = vld [vmem:[#allocation139_spill] sm:$0xff]  ;;  %v1545_v18 = vmul.f32 %v10791_v49, %v1455_v13  ;;  %v1547_v51 = vmul.f32 %v10791_v49, %v1457_v3  ;;  %v1562_v28 = vmul.f32 %v10813_v38, %v1472_v63  ;;  %v16164_v37 = vld [vmem:[#allocation121_spill] sm:$0xff] }
 0x218   :  { %8047 = vmatprep.subr.bf16.mxu1 %v16153_v10  ;;  %v16158_v10 = vld [vmem:[#allocation138_spill] sm:$0xff]  ;;  %v1490_v0 = vsub.f32 %v16160_v8, %v10732_v1  ;;  %v16163_v11 = vpack.c.bf16 %v16161_v60, %v16162_v58  ;;  %v1837_v7 = vadd.f32 %v16164_v37, %v1675_v6  ;;  %v16165_v29 = vpack.c.bf16 %v10882_v27, %v10877_v53  ;;  %v16166_v13 = vld [vmem:[#allocation45_spill] sm:$0xff]  ;;  %v16169_v8 = vld [vmem:[#allocation48_spill] sm:$0xff] }
 0x219   :  { %v16159_v44 = vpack.c.bf16 %v16157_v43, %v16158_v10  ;;  %v1691_v43 = vmul.f32 %v16149_v32, %v1529_v16  ;;  %v1487_v3 = vsub.f32 %v16166_v13, %v10732_v1  ;;  %v16167_v10 = vld [vmem:[#allocation130_spill] sm:$0xff]  ;;  %v1854_v58 = vadd.f32 %v16084_v40, %v1692_v56  ;;  %v11301_v60 = vld [vmem:[%s15436_s6 + $0x448] sm:$0xff] }
 0x21a   :  { %8049 = vmatpush3.bf16.msra.mxu1 %v16163_v11  ;;  %v1839_v63 = vadd.f32 %v16167_v10, %v1677_v47  ;;  %v1693_v11 = vmul.f32 %v16154_v22, %v1531_v17  ;;  %v1708_v6 = vmul.f32 %v16062_v21, %v1546_v59  ;;  %v1856_v53 = vadd.f32 %v16091_v2, %v1694_v55 }
 0x21b   :  { %8017 = vmatpush3.bf16.msra.mxu0 %v16159_v44  ;;  %v16168_v44 = vpack.c.bf16 %v10898_v48, %v10893_v4  ;;  %v1710_v27 = vmul.f32 %v16068_v39, %v1548_v15  ;;  %v1564_v16 = vmul.f32 %v10813_v38, %v1474_v25  ;;  %v1489_v47 = vsub.f32 %v16169_v8, %v10732_v1 }
 0x21c   :  { %8051 = vmatprep.subr.bf16.mxu0 %v16165_v29  ;;  %v1707_v4 = vmul.f32 %v16149_v32, %v1545_v18  ;;  %v1709_v48 = vmul.f32 %v16154_v22, %v1547_v51  ;;  %v1724_v56 = vmul.f32 %v16062_v21, %v1562_v28  ;;  %v1853_v17 = vadd.f32 %v16164_v37, %v1691_v43 }
 0x21d   :  { %8083 = vmatprep.subr.bf16.mxu1 %v16168_v44  ;;  %2504 = vmatmul.mubr.f32.vlgmr.msra.gmra.mrb[50].mxu1 %v1839_v63  ;;  %v1561_v25 = vmul.f32 %v10813_v38, %v1471_v41  ;;  %v1563_v59 = vmul.f32 %v10813_v38, %v1473_v52  ;;  %v16171_v55 = vpack.c.bf16 %v10927_v24, %v10922_v19  ;;  %v11318_v63 = vld [vmem:[%s15436_s6 + $0x540] sm:$0xff]  ;;  %v11337_v44 = vld [vmem:[%s15436_s6 + $0x4d0] sm:$0xff] }
 0x21e   :  { %2414 = vmatmul.mubr.f32.vlgmr.msra.gmra.mrb[50].mxu0 %v1837_v7  ;;  %2508 = vmatprep.mubr.f32.mxu1 %v1856_v53  ;;  %v16170_v7 = vpack.c.bf16 %v10908_v50, %v10903_v45  ;;  %v1855_v15 = vadd.f32 %v16167_v10, %v1693_v11  ;;  %v16172_v18 = vpack.c.bf16 %v10937_v35, %v10932_v62  ;;  %v11374_v53 = vld [vmem:[%s15436_s6 + $0x558] sm:$0xff] }
 0x21f   :  { %2418 = vmatprep.mubr.f32.mxu0 %v1854_v58  ;;  %8085 = vmatpush3.bf16.msra.mxu1 %v16171_v55  ;;  %v1870_v51 = vadd.f32 %v16084_v40, %v1708_v6  ;;  %v1578_v45 = vmul.f32 %v10851_v23, %v1488_v31  ;;  %v16173_v50 = vpack.c.bf16 %v10957_v20, %v10952_v30  ;;  %v11342_v58 = vld [vmem:[%s15436_s6 + $0x4d8] sm:$0xff]  ;;  %v11369_v6 = vld [vmem:[%s15436_s6 + $0x550] sm:$0xff]  ;;  %v11398_v55 = vld [vmem:[%s15436_s6 + $0x4e8] sm:$0xff] }
 0x220   :  { %8053 = vmatpush3.bf16.msra.mxu0 %v16170_v7  ;;  %v1872_v41 = vadd.f32 %v16091_v2, %v1710_v27  ;;  %v1726_v19 = vmul.f32 %v16068_v39, %v1564_v16  ;;  %v1580_v24 = vmul.f32 %v10851_v23, %v1490_v0  ;;  %v1869_v62 = vadd.f32 %v16164_v37, %v1707_v4  ;;  %v11296_v0 = vld [vmem:[%s15436_s6 + $0x440] sm:$0xff] }
 0x221   :  { %8055 = vmatprep.subr.bf16.mxu0 %v16172_v18  ;;  %8087 = vmatprep.subr.bf16.mxu1 %v16173_v50  ;;  %v1871_v35 = vadd.f32 %v16167_v10, %v1709_v48  ;;  %v1886_v52 = vadd.f32 %v16084_v40, %v1724_v56  ;;  %v16174_v31 = vpack.c.bf16 %v10967_v36, %v10962_v33  ;;  %v11379_v27 = vld [vmem:[%s15436_s6 + $0x4e0] sm:$0xff]  ;;  %v16184_v48 = vld [vmem:[#allocation17_spill] sm:$0xff]  ;;  %v16185_v56 = vld [vmem:[#allocation15_spill] sm:$0xff] }
 0x222   :  { %2419 = vmatmul.mubr.f32.gmra.mrb[52].mxu0 %v1853_v17  ;;  %2509 = vmatmul.mubr.f32.gmra.mrb[52].mxu1 %v1855_v15  ;;  %v1723_v30 = vmul.f32 %v16149_v32, %v1561_v25  ;;  %v1725_v20 = vmul.f32 %v16154_v22, %v1563_v59  ;;  %v1577_v28 = vmul.f32 %v10851_v23, %v1487_v3  ;;  %v16180_v16 = vld [vmem:[#allocation140_spill] sm:$0xff]  ;;  %v11408_v18 = vld [vmem:[%s15436_s6 + $0x5e8] sm:$0xff] }
 0x223   :  { %2423 = vmatprep.mubr.f32.mxu0 %v1870_v51  ;;  %2513 = vmatprep.mubr.f32.mxu1 %v1872_v41  ;;  %v16175_v33 = vpack.c.bf16 %v10983_v9, %v10978_v46  ;;  %v16176_v36 = vpack.c.bf16 %v10993_v34, %v10988_v14  ;;  %v1740_v29 = vmul.f32 %v16062_v21, %v1578_v45  ;;  %v11323_v46 = vld [vmem:[%s15436_s6 + $0x548] sm:$0xff]  ;;  %v11403_v15 = vld [vmem:[%s15436_s6 + $0x5e0] sm:$0xff]  ;;  %v16187_v51 = vld [vmem:[#allocation14_spill] sm:$0xff] }
 0x224   :  { %8057 = vmatpush3.bf16.msra.mxu0 %v16174_v31  ;;  %v1579_v43 = vmul.f32 %v10851_v23, %v1489_v47  ;;  %v16177_v13 = vsub.f32 %v16131_v61, %v10442_v26  ;;  %v16178_v21 = vpack.c.bf16 %v11011_v57, %v11006_v5  ;;  %v1888_v9 = vadd.f32 %v16091_v2, %v1726_v19  ;;  %v11347_v5 = vld [vmem:[%s15436_s6 + $0x5d0] sm:$0xff]  ;;  %v16182_v47 = vld [vmem:[#allocation12_spill] sm:$0xff] }
 0x225   :  { %8089 = vmatpush3.bf16.msra.mxu1 %v16175_v33  ;;  %8059 = vmatprep.subr.bf16.mxu0 %v16176_v36  ;;  %v1742_v14 = vmul.f32 %v16068_v39, %v1580_v24  ;;  %v16179_v34 = vsub.f32 %v16135_v54, %v10442_v26  ;;  %v11352_v39 = vld [vmem:[%s15436_s6 + $0x5d8] sm:$0xff]  ;;  %v11357_v57 = vld [vmem:[%s15436_s6 + $0x450] sm:$0xff]  ;;  %v8068_v11 = vpack.c.bf16 %v11301_v60, %v11296_v0  ;;  %v16191_v41 = vld [vmem:[#allocation16_spill] sm:$0xff] }
 0x226   :  { %v1518_v3 = vmul.f32 %v10756_v12, %v16177_v13  ;;  %2424 = vmatmul.mubr.f32.gmra.mrb[54].mxu0 %v1869_v62  ;;  %8091 = vmatprep.subr.bf16.mxu1 %v16178_v21  ;;  %v11362_v54 = vld [vmem:[%s15436_s6 + $0x458] sm:$0xff]  ;;  %v11383_v8 = vrot.slane %v16180_v16, %v16108_v42  ;;  %v11387_v4 = vrot.slane %v16180_v16, %v16182_v47  ;;  %v16188_v45 = vld [vmem:[#allocation34_spill] sm:$0xff]  ;;  %v11422_v31 = vld [vmem:[%s15436_s6 + $0x460] sm:$0xff] }
 0x227   :  { %v1520_v61 = vmul.f32 %v10756_v12, %v16179_v34  ;;  %2514 = vmatmul.mubr.f32.gmra.mrb[54].mxu1 %v1871_v35  ;;  %2428 = vmatprep.mubr.f32.mxu0 %v1886_v52  ;;  %v16186_v7 = vpack.c.bf16 %v16184_v48, %v16185_v56  ;;  %v1885_v17 = vadd.f32 %v16164_v37, %v1723_v30  ;;  %v16193_v35 = vld [vmem:[#allocation144_spill] sm:$0xff]  ;;  %v11427_v30 = vld [vmem:[%s15436_s6 + $0x468] sm:$0xff]  ;;  %v11454_v21 = vld [vmem:[%s15436_s6 + $0x4f8] sm:$0xff] }
 0x228   :  { %16181 = vst [vmem:[#allocation92_spill] sm:$0xff] %v11383_v8  ;;  %16183 = vst [vmem:[#allocation91_spill] sm:$0xff] %v11387_v4  ;;  %2518 = vmatprep.mubr.f32.mxu1 %v1888_v9  ;;  %v1887_v25 = vadd.f32 %v16167_v10, %v1725_v20  ;;  %v1739_v59 = vmul.f32 %v16149_v32, %v1577_v28  ;;  %v16189_v50 = vpack.c.bf16 %v16187_v51, %v16188_v45  ;;  %v16190_v32 = vld [vmem:[#allocation19_spill] sm:$0xff]  ;;  %v11432_v20 = vld [vmem:[%s15436_s6 + $0x560] sm:$0xff] }
 0x229   :  { %8061 = vmatpush3.bf16.msra.mxu0 %v16186_v7  ;;  %v16192_v19 = vpack.c.bf16 %v16190_v32, %v16191_v41  ;;  %v1902_v24 = vadd.f32 %v16084_v40, %v1740_v29  ;;  %v1741_v62 = vmul.f32 %v16154_v22, %v1579_v43  ;;  %v1680_v52 = vmul.f32 %v16193_v35, %v1518_v3  ;;  %v11437_v40 = vld [vmem:[%s15436_s6 + $0x568] sm:$0xff]  ;;  %v16194_v22 = vld [vmem:[#allocation18_spill] sm:$0xff]  ;;  %v11490_v48 = vld [vmem:[%s15436_s6 + $0x578] sm:$0xff] }
 0x22a   :  { %8093 = vmatpush3.bf16.msra.mxu1 %v16189_v50  ;;  %2429 = vmatmul.mubr.f32.gmra.mrb[56].mxu0 %v1885_v17  ;;  %v16195_v28 = vld [vmem:[#allocation22_spill] sm:$0xff]  ;;  %v1904_v36 = vadd.f32 %v16091_v2, %v1742_v14  ;;  %v8100_v29 = vpack.c.bf16 %v11323_v46, %v11318_v63  ;;  %v11464_v2 = vld [vmem:[%s15436_s6 + $0x5f8] sm:$0xff]  ;;  %v8070_v14 = vpack.c.bf16 %v11342_v58, %v11337_v44  ;;  %v11495_v44 = vld [vmem:[%s15436_s6 + $0x680] sm:$0xff] }
 0x22b   :  { %8063 = vmatprep.subr.bf16.mxu0 %v16192_v19  ;;  %v16196_v33 = vpack.c.bf16 %v16194_v22, %v16195_v28  ;;  %v16197_v43 = vld [vmem:[#allocation146_spill] sm:$0xff]  ;;  %v11474_v46 = vld [vmem:[%s15436_s6 + $0x478] sm:$0xff]  ;;  %2519 = vmatmul.mubr.f32.gmra.mrb[56].mxu1 %v1887_v25  ;;  %v8102_v34 = vpack.c.bf16 %v11352_v39, %v11347_v5  ;;  %v11500_v58 = vld [vmem:[%s15436_s6 + $0x688] sm:$0xff]  ;;  %v1901_v7 = vadd.f32 %v16164_v37, %v1739_v59 }
 0x22c   :  { %v1682_v13 = vmul.f32 %v16197_v43, %v1520_v61  ;;  %v11449_v3 = vld [vmem:[%s15436_s6 + $0x4f0] sm:$0xff]  ;;  %2433 = vmatprep.mubr.f32.mxu0 %v1902_v24  ;;  %2523 = vmatprep.mubr.f32.mxu1 %v1904_v36  ;;  %v16198_v5 = vld [vmem:[#allocation23_spill] sm:$0xff]  ;;  %v16199_v39 = vld [vmem:[#allocation20_spill] sm:$0xff]  ;;  %v1903_v41 = vadd.f32 %v16167_v10, %v1741_v62  ;;  %v8106_v36 = vpack.c.bf16 %v11408_v18, %v11403_v15 }
 0x22d   :  { %8095 = vmatprep.subr.bf16.mxu1 %v16196_v33  ;;  %v11459_v9 = vld [vmem:[%s15436_s6 + $0x5f0] sm:$0xff]  ;;  %v16200_v56 = vpack.c.bf16 %v16198_v5, %v16199_v39  ;;  %v11513_v51 = vld [vmem:[%s15436_s6 + $0x780] sm:$0xff]  ;;  %v11518_v45 = vld [vmem:[%s15436_s6 + $0x788] sm:$0xff] }
 0x22e   :  { %v11469_v63 = vld [vmem:[%s15436_s6 + $0x470] sm:$0xff]  ;;  %v11523_v37 = vld [vmem:[%s15436_s6 + $0x600] sm:$0xff]  ;;  %v16201_v59 = vld [vmem:[#allocation21_spill] sm:$0xff]  ;;  %2434 = vmatmul.mubr.f32.gmra.mrb[58].mxu0 %v1901_v7 }
 0x22f   :  { %v11485_v16 = vld [vmem:[%s15436_s6 + $0x570] sm:$0xff]  ;;  %8065 = vmatpush3.bf16.msra.mxu0 %v16200_v56  ;;  %v16204_v19 = vld [vmem:[#allocation27_spill] sm:$0xff]  ;;  %v16205_v24 = vld [vmem:[#allocation24_spill] sm:$0xff]  ;;  %2524 = vmatmul.mubr.f32.gmra.mrb[58].mxu1 %v1903_v41 }
 0x230   :  { %v16202_v50 = vld [vmem:[#allocation26_spill] sm:$0xff]  ;;  %v16206_v22 = vpack.c.bf16 %v16204_v19, %v16205_v24  ;;  %v16207_v28 = vld [vmem:[#allocation145_spill] sm:$0xff]  ;;  %v11543_v39 = vld [vmem:[%s15436_s6 + $0x700] sm:$0xff] }
 0x231   :  { %v16203_v32 = vpack.c.bf16 %v16201_v59, %v16202_v50  ;;  %v1842_v33 = vadd.f32 %v16207_v28, %v1680_v52  ;;  %v11538_v5 = vld [vmem:[%s15436_s6 + $0x608] sm:$0xff]  ;;  %v11566_v7 = vld [vmem:[%s15436_s6 + $0x698] sm:$0xff]  ;;  %v11606_v24 = vld [vmem:[%s15436_s6 + $0x710] sm:$0xff] }
 0x232   :  { %8067 = vmatprep.subr.bf16.mxu0 %v16206_v22  ;;  %v11548_v10 = vld [vmem:[%s15436_s6 + $0x708] sm:$0xff]  ;;  %v11592_v41 = vld [vmem:[%s15436_s6 + $0x618] sm:$0xff]  ;;  %16214 = vst [vmem:[#allocation95_spill] sm:$0xff] %v11606_v24  ;;  %v11622_v22 = vld [vmem:[%s15436_s6 + $0x6a0] sm:$0xff] }
 0x233   :  { %8097 = vmatpush3.bf16.msra.mxu1 %v16203_v32  ;;  %v16208_v62 = vld [vmem:[#allocation25_spill] sm:$0xff]  ;;  %v11561_v32 = vld [vmem:[%s15436_s6 + $0x690] sm:$0xff]  ;;  %2593 = vmatprep.mubr.f32.mxu0 %v1842_v33  ;;  %16213 = vst [vmem:[#allocation93_spill] sm:$0xff] %v11592_v41  ;;  %v11611_v0 = vld [vmem:[%s15436_s6 + $0x718] sm:$0xff] }
 0x234   :  { %v16209_v52 = vld [vmem:[#allocation29_spill] sm:$0xff]  ;;  %8069 = vmatpush3.bf16.msra.mxu0 %v8068_v11  ;;  %16215 = vst [vmem:[#allocation103_spill] sm:$0xff] %v11611_v0  ;;  %v16219_v60 = vld [vmem:[#allocation55_spill] sm:$0xff]  ;;  %v16220_v11 = vld [vmem:[#allocation58_spill] sm:$0xff] }
 0x235   :  { %v16210_v56 = vpack.c.bf16 %v16208_v62, %v16209_v52  ;;  %v16211_v15 = vld [vmem:[#allocation149_spill] sm:$0xff]  ;;  %v11582_v62 = vld [vmem:[%s15436_s6 + $0x798] sm:$0xff]  ;;  %v11587_v52 = vld [vmem:[%s15436_s6 + $0x610] sm:$0xff]  ;;  %8071 = vmatprep.subr.bf16.mxu0 %v8070_v14 }
 0x236   :  { %v1844_v18 = vadd.f32 %v16211_v15, %v1682_v13  ;;  %v11571_v13 = vld [vmem:[%s15436_s6 + $0x790] sm:$0xff]  ;;  %16212 = vst [vmem:[#allocation94_spill] sm:$0xff] %v11587_v52  ;;  %v16221_v59 = vld [vmem:[#allocation53_spill] sm:$0xff]  ;;  %v11658_v61 = vld [vmem:[%s15436_s6 + $0x620] sm:$0xff] }
 0x237   :  { %8099 = vmatprep.subr.bf16.mxu1 %v16210_v56  ;;  %v16216_v56 = vld [vmem:[#allocation50_spill] sm:$0xff]  ;;  %v11663_v47 = vld [vmem:[%s15436_s6 + $0x628] sm:$0xff]  ;;  %v16223_v42 = vld [vmem:[#allocation56_spill] sm:$0xff] }
 0x238   :  { %2683 = vmatprep.mubr.f32.mxu1 %v1844_v18  ;;  %8101 = vmatpush3.bf16.msra.mxu1 %v8100_v29  ;;  %v1427_v33 = vsub.f32 %v16216_v56, %v10442_v26  ;;  %v16217_v29 = vld [vmem:[#allocation52_spill] sm:$0xff]  ;;  %v11635_v18 = vld [vmem:[%s15436_s6 + $0x6a8] sm:$0xff]  ;;  %v16225_v24 = vld [vmem:[#allocation59_spill] sm:$0xff] }
 0x239   :  { %8103 = vmatprep.subr.bf16.mxu1 %v8102_v34  ;;  %v1429_v14 = vsub.f32 %v16217_v29, %v10442_v26  ;;  %v11640_v34 = vld [vmem:[%s15436_s6 + $0x7a0] sm:$0xff]  ;;  %v11645_v56 = vld [vmem:[%s15436_s6 + $0x7a8] sm:$0xff]  ;;  %v16218_v29 = vld [vmem:[#allocation122_spill] sm:$0xff] }
 0x23a   :  { %v1444_v19 = vsub.f32 %v16219_v60, %v16218_v29  ;;  %v1446_v50 = vsub.f32 %v16220_v11, %v16218_v29  ;;  %v1443_v25 = vsub.f32 %v16221_v59, %v16218_v29  ;;  %v11668_v60 = vld [vmem:[%s15436_s6 + $0x720] sm:$0xff]  ;;  %v16222_v59 = vpack.c.bf16 %v11362_v54, %v11357_v57  ;;  %v16224_v8 = vld [vmem:[#allocation141_spill] sm:$0xff]  ;;  %v11687_v57 = vld [vmem:[%s15436_s6 + $0x6b0] sm:$0xff] }
 0x23b   :  { %v1517_v11 = vmul.f32 %v10756_v12, %v1427_v33  ;;  %v1519_v17 = vmul.f32 %v10756_v12, %v1429_v14  ;;  %v1445_v4 = vsub.f32 %v16223_v42, %v16218_v29  ;;  %v1460_v0 = vsub.f32 %v16225_v24, %v16224_v8  ;;  %v11682_v52 = vld [vmem:[%s15436_s6 + $0x728] sm:$0xff]  ;;  %v11692_v54 = vld [vmem:[%s15436_s6 + $0x6b8] sm:$0xff]  ;;  %v16234_v41 = vld [vmem:[#allocation60_spill] sm:$0xff] }
 0x23c   :  { %8073 = vmatpush3.bf16.msra.mxu0 %v16222_v59  ;;  %v16226_v42 = vpack.c.bf16 %v11374_v53, %v11369_v6  ;;  %v16227_v24 = vpack.c.bf16 %v11398_v55, %v11379_v27  ;;  %v16228_v33 = vld [vmem:[#allocation31_spill] sm:$0xff]  ;;  %v16229_v55 = vld [vmem:[#allocation62_spill] sm:$0xff]  ;;  %v16233_v53 = vld [vmem:[#allocation57_spill] sm:$0xff] }
 0x23d   :  { %v1534_v14 = vmul.f32 %v16228_v33, %v1444_v19  ;;  %v1536_v59 = vmul.f32 %v16228_v33, %v1446_v50  ;;  %v1533_v29 = vmul.f32 %v16228_v33, %v1443_v25  ;;  %v1535_v12 = vmul.f32 %v16228_v33, %v1445_v4  ;;  %v16231_v50 = vld [vmem:[#allocation147_spill] sm:$0xff]  ;;  %v11729_v25 = vld [vmem:[%s15436_s6 + $0x7b0] sm:$0xff] }
 0x23e   :  { %8105 = vmatpush3.bf16.msra.mxu1 %v16226_v42  ;;  %8075 = vmatprep.subr.bf16.mxu0 %v16227_v24  ;;  %v1550_v27 = vmul.f32 %v10791_v49, %v1460_v0  ;;  %v1462_v19 = vsub.f32 %v16229_v55, %v16224_v8  ;;  %v1679_v42 = vmul.f32 %v16231_v50, %v1517_v11  ;;  %v16232_v24 = vld [vmem:[#allocation150_spill] sm:$0xff] }
 0x23f   :  { %8107 = vmatprep.subr.bf16.mxu1 %v8106_v36  ;;  %v16230_v36 = vpack.c.bf16 %v11427_v30, %v11422_v31  ;;  %v1681_v6 = vmul.f32 %v16232_v24, %v1519_v17  ;;  %v1459_v0 = vsub.f32 %v16233_v53, %v16224_v8  ;;  %v1461_v55 = vsub.f32 %v16234_v41, %v16224_v8  ;;  %v11734_v31 = vld [vmem:[%s15436_s6 + $0x7b8] sm:$0xff] }
 0x240   :  { %v16235_v30 = vpack.c.bf16 %v11437_v40, %v11432_v20  ;;  %v16236_v17 = vpack.c.bf16 %v11454_v21, %v11449_v3  ;;  %v1696_v41 = vmul.f32 %v16193_v35, %v1534_v14  ;;  %v1698_v11 = vmul.f32 %v16197_v43, %v1536_v59  ;;  %v16238_v40 = vld [vmem:[#allocation148_spill] sm:$0xff] }
 0x241   :  { %8077 = vmatpush3.bf16.msra.mxu0 %v16230_v36  ;;  %v1695_v53 = vmul.f32 %v16231_v50, %v1533_v29  ;;  %v16237_v36 = vpack.c.bf16 %v11464_v2, %v11459_v9  ;;  %v1697_v4 = vmul.f32 %v16232_v24, %v1535_v12  ;;  %v1552_v8 = vmul.f32 %v10791_v49, %v1462_v19  ;;  %v16240_v29 = vld [vmem:[#allocation71_spill] sm:$0xff]  ;;  %v16241_v9 = vld [vmem:[#allocation76_spill] sm:$0xff] }
 0x242   :  { %8109 = vmatpush3.bf16.msra.mxu1 %v16235_v30  ;;  %8079 = vmatprep.subr.bf16.mxu0 %v16236_v17  ;;  %v1549_v20 = vmul.f32 %v10791_v49, %v1459_v0  ;;  %v16239_v30 = vld [vmem:[#allocation63_spill] sm:$0xff]  ;;  %v1712_v21 = vmul.f32 %v16193_v35, %v1550_v27  ;;  %v1432_v59 = vsub.f32 %v16240_v29, %v10442_v26  ;;  %v16244_v17 = vld [vmem:[#allocation152_spill] sm:$0xff] }
 0x243   :  { %8111 = vmatprep.subr.bf16.mxu1 %v16237_v36  ;;  %v1476_v3 = vsub.f32 %v16239_v30, %v16238_v40  ;;  %v16242_v12 = vpack.c.bf16 %v11474_v46, %v11469_v63  ;;  %v16243_v19 = vld [vmem:[#allocation151_spill] sm:$0xff]  ;;  %v1843_v36 = vadd.f32 %v16244_v17, %v1681_v6  ;;  %v1551_v30 = vmul.f32 %v10791_v49, %v1461_v55  ;;  %v16247_v46 = vld [vmem:[#allocation66_spill] sm:$0xff] }
 0x244   :  { %v1841_v0 = vadd.f32 %v16243_v19, %v1679_v42  ;;  %v16245_v14 = vpack.c.bf16 %v11490_v48, %v11485_v16  ;;  %v16246_v29 = vpack.c.bf16 %v11500_v58, %v11495_v44  ;;  %v1858_v2 = vadd.f32 %v16207_v28, %v1696_v41 }
 0x245   :  { %8081 = vmatpush3.bf16.msra.mxu0 %v16242_v12  ;;  %v1566_v27 = vmul.f32 %v10813_v38, %v1476_v3  ;;  %v1860_v63 = vadd.f32 %v16211_v15, %v1698_v11  ;;  %v1478_v42 = vsub.f32 %v16247_v46, %v16238_v40  ;;  %v16248_v6 = vpack.c.bf16 %v11518_v45, %v11513_v51  ;;  %v16249_v11 = vld [vmem:[#allocation61_spill] sm:$0xff] }
 0x246   :  { %8113 = vmatpush3.bf16.msra.mxu1 %v16245_v14  ;;  %8115 = vmatprep.subr.bf16.mxu0 %v16246_v29  ;;  %v1857_v55 = vadd.f32 %v16243_v19, %v1695_v53  ;;  %v1859_v16 = vadd.f32 %v16244_v17, %v1697_v4  ;;  %v1714_v48 = vmul.f32 %v16197_v43, %v1552_v8  ;;  %v16250_v14 = vld [vmem:[#allocation64_spill] sm:$0xff]  ;;  %v16251_v8 = vld [vmem:[#allocation67_spill] sm:$0xff] }
 0x247   :  { %8147 = vmatprep.subr.bf16.mxu1 %v16248_v6  ;;  %v1711_v44 = vmul.f32 %v16231_v50, %v1549_v20  ;;  %v1874_v58 = vadd.f32 %v16207_v28, %v1712_v21  ;;  %v1568_v41 = vmul.f32 %v10813_v38, %v1478_v42  ;;  %v1475_v3 = vsub.f32 %v16249_v11, %v16238_v40  ;;  %v2111_v42 = vld [vmem:[%s15436_s6 + $0x630] sm:$0xff]  ;;  %v16258_v6 = vld [vmem:[#allocation68_spill] sm:$0xff]  ;;  %v2144_v11 = vld [vmem:[%s15436_s6 + $0x738] sm:$0xff] }
 0x248   :  { %2594 = vmatmul.mubr.f32.vlgmr.msra.gmra.mrb[60].mxu0 %v1841_v0  ;;  %v1477_v51 = vsub.f32 %v16250_v14, %v16238_v40  ;;  %v1713_v45 = vmul.f32 %v16232_v24, %v1551_v30  ;;  %v1728_v4 = vmul.f32 %v16193_v35, %v1566_v27  ;;  %v1492_v53 = vsub.f32 %v16251_v8, %v10732_v1  ;;  %v16253_v0 = vld [vmem:[#allocation69_spill] sm:$0xff]  ;;  %v2129_v14 = vld [vmem:[%s15436_s6 + $0x6c0] sm:$0xff] }
 0x249   :  { %2684 = vmatmul.mubr.f32.vlgmr.msra.gmra.mrb[60].mxu1 %v1843_v36  ;;  %2598 = vmatprep.mubr.f32.mxu0 %v1858_v2  ;;  %v16252_v20 = vpack.c.bf16 %v11538_v5, %v11523_v37  ;;  %v1565_v21 = vmul.f32 %v10813_v38, %v1475_v3  ;;  %v1494_v36 = vsub.f32 %v16253_v0, %v10732_v1 }
 0x24a   :  { %2688 = vmatprep.mubr.f32.mxu1 %v1860_v63  ;;  %v1567_v12 = vmul.f32 %v10813_v38, %v1477_v51  ;;  %v16254_v2 = vpack.c.bf16 %v11548_v10, %v11543_v39  ;;  %v16255_v30 = vpack.c.bf16 %v11566_v7, %v11561_v32  ;;  %v1876_v27 = vadd.f32 %v16211_v15, %v1714_v48  ;;  %v16257_v10 = vld [vmem:[#allocation65_spill] sm:$0xff]  ;;  %v16260_v48 = vld [vmem:[#allocation94_spill] sm:$0xff] }
 0x24b   :  { %8117 = vmatpush3.bf16.msra.mxu0 %v16252_v20  ;;  %v1873_v37 = vadd.f32 %v16243_v19, %v1711_v44  ;;  %v1582_v5 = vmul.f32 %v10851_v23, %v1492_v53  ;;  %v16256_v29 = vpack.c.bf16 %v11582_v62, %v11571_v13  ;;  %v1730_v63 = vmul.f32 %v16197_v43, %v1568_v41  ;;  %v2112_v13 = vld [vmem:[%s15436_s6 + $0x638] sm:$0xff]  ;;  %v2143_v62 = vld [vmem:[%s15436_s6 + $0x730] sm:$0xff]  ;;  %v2130_v51 = vld [vmem:[%s15436_s6 + $0x6c8] sm:$0xff] }
 0x24c   :  { %8149 = vmatpush3.bf16.msra.mxu1 %v16254_v2  ;;  %8119 = vmatprep.subr.bf16.mxu0 %v16255_v30  ;;  %v1584_v39 = vmul.f32 %v10851_v23, %v1494_v36  ;;  %v1491_v46 = vsub.f32 %v16257_v10, %v10732_v1  ;;  %v1875_v32 = vadd.f32 %v16244_v17, %v1713_v45  ;;  %v16262_v45 = vld [vmem:[#allocation103_spill] sm:$0xff]  ;;  %v16272_v10 = vld [vmem:[#allocation28_spill] sm:$0xff] }
 0x24d   :  { %2599 = vmatmul.mubr.f32.gmra.mrb[62].mxu0 %v1857_v55  ;;  %8151 = vmatprep.subr.bf16.mxu1 %v16256_v29  ;;  %v1890_v7 = vadd.f32 %v16207_v28, %v1728_v4  ;;  %v1493_v55 = vsub.f32 %v16258_v6, %v10732_v1  ;;  %v1729_v41 = vmul.f32 %v16232_v24, %v1567_v12  ;;  %v16263_v4 = vld [vmem:[#allocation95_spill] sm:$0xff]  ;;  %v16266_v12 = vld [vmem:[#allocation13_spill] sm:$0xff]  ;;  %v2113_v29 = vld [vmem:[%s15436_s6 + $0x640] sm:$0xff] }
 0x24e   :  { %2689 = vmatmul.mubr.f32.gmra.mrb[62].mxu1 %v1859_v16  ;;  %2603 = vmatprep.mubr.f32.mxu0 %v1874_v58  ;;  %v16259_v16 = vld [vmem:[#allocation93_spill] sm:$0xff]  ;;  %v1727_v58 = vmul.f32 %v16231_v50, %v1565_v21  ;;  %v1581_v3 = vmul.f32 %v10851_v23, %v1491_v46  ;;  %v16264_v8 = vpack.c.bf16 %v16262_v45, %v16263_v4  ;;  %v2165_v45 = vld [vmem:[%s15436_s6 + $0x7e0] sm:$0xff] }
 0x24f   :  { %2693 = vmatprep.mubr.f32.mxu1 %v1876_v27  ;;  %v16261_v44 = vpack.c.bf16 %v16259_v16, %v16260_v48  ;;  %v16265_v53 = vpack.c.bf16 %v11635_v18, %v11622_v22  ;;  %v1744_v20 = vmul.f32 %v16193_v35, %v1582_v5  ;;  %v1583_v21 = vmul.f32 %v10851_v23, %v1493_v55  ;;  %v16275_v55 = vld [vmem:[#allocation92_spill] sm:$0xff]  ;;  %v2166_v4 = vld [vmem:[%s15436_s6 + $0x7e8] sm:$0xff] }
 0x250   :  { %8153 = vmatpush3.bf16.msra.mxu1 %v16264_v8  ;;  %v1522_v0 = vmul.f32 %v16266_v12, %v1432_v59  ;;  %v16267_v36 = vpack.c.bf16 %v11645_v56, %v11640_v34  ;;  %v1892_v2 = vadd.f32 %v16211_v15, %v1730_v63  ;;  %v1746_v30 = vmul.f32 %v16197_v43, %v1584_v39  ;;  %v2161_v59 = vld [vmem:[%s15436_s6 + $0x7c0] sm:$0xff]  ;;  %v2162_v34 = vld [vmem:[%s15436_s6 + $0x7c8] sm:$0xff] }
 0x251   :  { %8121 = vmatpush3.bf16.msra.mxu0 %v16261_v44  ;;  %v16268_v27 = vsub.f32 %v16241_v9, %v10442_v26  ;;  %v8128_v35 = vpack.c.bf16 %v2112_v13, %v2111_v42  ;;  %v8160_v18 = vpack.c.bf16 %v2144_v11, %v2143_v62  ;;  %v8130_v5 = vpack.c.bf16 %v2130_v51, %v2129_v14  ;;  %v2132_v42 = vld [vmem:[%s15436_s6 + $0x6d8] sm:$0xff]  ;;  %v2115_v44 = vld [vmem:[%s15436_s6 + $0x650] sm:$0xff]  ;;  %v2133_v14 = vld [vmem:[%s15436_s6 + $0x6e0] sm:$0xff] }
 0x252   :  { %8123 = vmatprep.subr.bf16.mxu0 %v16265_v53  ;;  %2604 = vmatmul.mubr.f32.gmra.mrb[64].mxu0 %v1873_v37  ;;  %v16269_v43 = vpack.c.bf16 %v11663_v47, %v11658_v61  ;;  %v1889_v56 = vadd.f32 %v16243_v19, %v1727_v58  ;;  %v1891_v9 = vadd.f32 %v16244_v17, %v1729_v41  ;;  %v2116_v58 = vld [vmem:[%s15436_s6 + $0x658] sm:$0xff]  ;;  %v2134_v51 = vld [vmem:[%s15436_s6 + $0x6e8] sm:$0xff]  ;;  %v2117_v53 = vld [vmem:[%s15436_s6 + $0x660] sm:$0xff] }
 0x253   :  { %8155 = vmatprep.subr.bf16.mxu1 %v16267_v36  ;;  %v1524_v22 = vmul.f32 %v16266_v12, %v16268_v27  ;;  %2694 = vmatmul.mubr.f32.gmra.mrb[64].mxu1 %v1875_v32  ;;  %v1743_v37 = vmul.f32 %v16231_v50, %v1581_v3  ;;  %v16270_v63 = vpack.c.bf16 %v11682_v52, %v11668_v60  ;;  %v2114_v50 = vld [vmem:[%s15436_s6 + $0x648] sm:$0xff]  ;;  %v2145_v32 = vld [vmem:[%s15436_s6 + $0x740] sm:$0xff]  ;;  %v16276_v41 = vld [vmem:[#allocation91_spill] sm:$0xff] }
 0x254   :  { %2608 = vmatprep.mubr.f32.mxu0 %v1890_v7  ;;  %2698 = vmatprep.mubr.f32.mxu1 %v1892_v2  ;;  %v16271_v39 = vpack.c.bf16 %v11692_v54, %v11687_v57  ;;  %v1906_v47 = vadd.f32 %v16207_v28, %v1744_v20  ;;  %v1745_v61 = vmul.f32 %v16232_v24, %v1583_v21  ;;  %v2146_v52 = vld [vmem:[%s15436_s6 + $0x748] sm:$0xff]  ;;  %v16274_v54 = vld [vmem:[#allocation90_spill] sm:$0xff]  ;;  %v2148_v3 = vld [vmem:[%s15436_s6 + $0x758] sm:$0xff] }
 0x255   :  { %8125 = vmatpush3.bf16.msra.mxu0 %v16269_v43  ;;  %8157 = vmatpush3.bf16.msra.mxu1 %v16270_v63  ;;  %v1684_v46 = vmul.f32 %v16272_v10, %v1522_v0  ;;  %v16273_v28 = vpack.c.bf16 %v11734_v31, %v11729_v25  ;;  %v1908_v60 = vadd.f32 %v16211_v15, %v1746_v30  ;;  %v2131_v7 = vld [vmem:[%s15436_s6 + $0x6d0] sm:$0xff]  ;;  %v2164_v15 = vld [vmem:[%s15436_s6 + $0x7d8] sm:$0xff]  ;;  %v2118_v20 = vld [vmem:[%s15436_s6 + $0x668] sm:$0xff] }
 0x256   :  { %8127 = vmatprep.subr.bf16.mxu0 %v16271_v39  ;;  %2609 = vmatmul.mubr.f32.gmra.mrb[66].mxu0 %v1889_v56  ;;  %v8162_v57 = vpack.c.bf16 %v2162_v34, %v2161_v59  ;;  %v1686_v24 = vmul.f32 %v16274_v54, %v1524_v22  ;;  %v2163_v25 = vld [vmem:[%s15436_s6 + $0x7d0] sm:$0xff]  ;;  %v1905_v31 = vadd.f32 %v16243_v19, %v1743_v37  ;;  %v2149_v36 = vld [vmem:[%s15436_s6 + $0x760] sm:$0xff]  ;;  %v2150_v2 = vld [vmem:[%s15436_s6 + $0x768] sm:$0xff] }
 0x257   :  { %8159 = vmatprep.subr.bf16.mxu1 %v16273_v28  ;;  %2699 = vmatmul.mubr.f32.gmra.mrb[66].mxu1 %v1891_v9  ;;  %v8132_v13 = vpack.c.bf16 %v2114_v50, %v2113_v29  ;;  %v8164_v62 = vpack.c.bf16 %v2146_v52, %v2145_v32  ;;  %v1907_v6 = vadd.f32 %v16244_v17, %v1745_v61  ;;  %v2147_v19 = vld [vmem:[%s15436_s6 + $0x750] sm:$0xff]  ;;  %v2136_v22 = vld [vmem:[%s15436_s6 + $0x6f8] sm:$0xff]  ;;  %v8622_v43 = vld [vmem:[%s15434_s4 + $0x8] sm:$0xff]  ;;  %s8654_s4 = smov 64  }
 0x258   :  { %2613 = vmatprep.mubr.f32.mxu0 %v1906_v47  ;;  %2703 = vmatprep.mubr.f32.mxu1 %v1908_v60  ;;  %v1846_v16 = vadd.f32 %v16275_v55, %v1684_v46  ;;  %v8134_v48 = vpack.c.bf16 %v2132_v42, %v2131_v7  ;;  %v1848_v17 = vadd.f32 %v16276_v41, %v1686_v24  ;;  %v2135_v27 = vld [vmem:[%s15436_s6 + $0x6f0] sm:$0xff]  ;;  %v2168_v34 = vld [vmem:[%s15436_s6 + $0x7f8] sm:$0xff]  ;;  %v16278_v56 = vld [vmem:[#allocation9_spill] sm:$0xff] }
 0x259   :  { %8129 = vmatpush3.bf16.msra.mxu0 %v8128_v35  ;;  %8161 = vmatpush3.bf16.msra.mxu1 %v8160_v18  ;;  %v8166_v11 = vpack.c.bf16 %v2164_v15, %v2163_v25  ;;  %v8136_v8 = vpack.c.bf16 %v2116_v58, %v2115_v44  ;;  %v8168_v21 = vpack.c.bf16 %v2148_v3, %v2147_v19  ;;  %v16277_v35 = vld [vmem:[#allocation70_spill] sm:$0xff]  ;;  %v16279_v37 = vld [vmem:[#allocation72_spill] sm:$0xff]  ;;  %v16280_v63 = vld [vmem:[#allocation11_spill] sm:$0xff] }
 0x25a   :  { %8131 = vmatprep.subr.bf16.mxu0 %v8130_v5  ;;  %2614 = vmatmul.mubr.f32.gmra.mrb[68].mxu0 %v1905_v31  ;;  %v8138_v0 = vpack.c.bf16 %v2134_v51, %v2133_v14  ;;  %v8170_v30 = vpack.c.bf16 %v2166_v4, %v2165_v45  ;;  %v1431_v18 = vsub.f32 %v16277_v35, %v10442_v26  ;;  %v2167_v59 = vld [vmem:[%s15436_s6 + $0x7f0] sm:$0xff]  ;;  %v16283_v52 = vld [vmem:[#allocation79_spill] sm:$0xff]  ;;  %v16284_v7 = vld [vmem:[#allocation73_spill] sm:$0xff] }
 0x25b   :  { %8163 = vmatprep.subr.bf16.mxu1 %v8162_v57  ;;  %2704 = vmatmul.mubr.f32.gmra.mrb[68].mxu1 %v1907_v6  ;;  %v8140_v5 = vpack.c.bf16 %v2118_v20, %v2117_v53  ;;  %v11971_v9 = vrot.slane %v8622_v43, %v16278_v56  ;;  %v1433_v29 = vsub.f32 %v16279_v37, %v10442_v26  ;;  %v16281_v50 = vld [vmem:[#allocation122_spill] sm:$0xff]  ;;  %v2120_v57 = vld [vmem:[%s15436_s6 + $0x678] sm:$0xff]  ;;  %v16286_v3 = vld [vmem:[#allocation141_spill] sm:$0xff] }
 0x25c   :  { %2773 = vmatprep.mubr.f32.mxu0 %v1846_v16  ;;  %2863 = vmatprep.mubr.f32.mxu1 %v1848_v17  ;;  %v11976_v39 = vrot.slane %v8622_v43, %v16280_v63  ;;  %v8172_v47 = vpack.c.bf16 %v2150_v2, %v2149_v36  ;;  %v1521_v61 = vmul.f32 %v16266_v12, %v1431_v18  ;;  %v16282_v46 = vld [vmem:[#allocation74_spill] sm:$0xff]  ;;  %v2152_v31 = vld [vmem:[%s15436_s6 + $0x778] sm:$0xff]  ;;  %v8623_v16 = vld [vmem:[%s15435_s5 + $0x8] sm:$0xff]  ;;  %s8652_s5 = smov 96  }
 0x25d   :  { %8133 = vmatpush3.bf16.msra.mxu0 %v8132_v13  ;;  %8165 = vmatpush3.bf16.msra.mxu1 %v8164_v62  ;;  %v1448_v32 = vsub.f32 %v16282_v46, %v16281_v50  ;;  %v1450_v28 = vsub.f32 %v16283_v52, %v16281_v50  ;;  %v8142_v60 = vpack.c.bf16 %v2136_v22, %v2135_v27  ;;  %v2119_v26 = vld [vmem:[%s15436_s6 + $0x670] sm:$0xff]  ;;  %v16287_v14 = vld [vmem:[#allocation77_spill] sm:$0xff]  ;;  %v16289_v2 = vld [vmem:[#allocation75_spill] sm:$0xff] }
 0x25e   :  { %8135 = vmatprep.subr.bf16.mxu0 %v8134_v48  ;;  %8167 = vmatprep.subr.bf16.mxu1 %v8166_v11  ;;  %v1523_v24 = vmul.f32 %v16266_v12, %v1433_v29  ;;  %v1447_v42 = vsub.f32 %v16284_v7, %v16281_v50  ;;  %v8174_v25 = vpack.c.bf16 %v2168_v34, %v2167_v59  ;;  %v2151_v15 = vld [vmem:[%s15436_s6 + $0x770] sm:$0xff]  ;;  %v16290_v27 = vld [vmem:[#allocation81_spill] sm:$0xff]  ;;  %v16292_v29 = vld [vmem:[#allocation87_spill] sm:$0xff] }
 0x25f   :  { %v1538_v13 = vmul.f32 %v16228_v33, %v1448_v32  ;;  %v1540_v62 = vmul.f32 %v16228_v33, %v1450_v28  ;;  %v16285_v6 = vld [vmem:[#allocation78_spill] sm:$0xff]  ;;  %v12006_v48 = vrot.slane %v8623_v16, %v16278_v56  ;;  %v12009_v44 = vrot.slane %v8623_v16, %v16280_v63 }
 0x260   :  { %v1449_v12 = vsub.f32 %v16285_v6, %v16281_v50  ;;  %v1537_v58 = vmul.f32 %v16228_v33, %v1447_v42  ;;  %v8144_v19 = vpack.c.bf16 %v2120_v57, %v2119_v26  ;;  %v1683_v17 = vmul.f32 %v11971_v9, %v1521_v61  ;;  %v16295_v42 = vld [vmem:[#allocation86_spill] sm:$0xff] }
 0x261   :  { %8137 = vmatpush3.bf16.msra.mxu0 %v8136_v8  ;;  %8169 = vmatpush3.bf16.msra.mxu1 %v8168_v21  ;;  %v1464_v51 = vsub.f32 %v16287_v14, %v16286_v3  ;;  %v8176_v45 = vpack.c.bf16 %v2152_v31, %v2151_v15  ;;  %v1685_v4 = vmul.f32 %v11976_v39, %v1523_v24  ;;  %v16288_v8 = vld [vmem:[#allocation83_spill] sm:$0xff]  ;;  %v16294_v24 = vld [vmem:[#allocation85_spill] sm:$0xff] }
 0x262   :  { %8139 = vmatprep.subr.bf16.mxu0 %v8138_v0  ;;  %8171 = vmatprep.subr.bf16.mxu1 %v8170_v30  ;;  %v1539_v11 = vmul.f32 %v16228_v33, %v1449_v12  ;;  %v1466_v53 = vsub.f32 %v16288_v8, %v16286_v3  ;;  %v1700_v20 = vmul.f32 %v16272_v10, %v1538_v13 }
 0x263   :  { %v1702_v21 = vmul.f32 %v16274_v54, %v1540_v62  ;;  %v1554_v0 = vmul.f32 %v10791_v49, %v1464_v51  ;;  %v1699_v33 = vmul.f32 %v11971_v9, %v1537_v58  ;;  %v1463_v30 = vsub.f32 %v16289_v2, %v16286_v3  ;;  %v16296_v62 = vld [vmem:[#allocation89_spill] sm:$0xff]  ;;  %v16298_v51 = vld [vmem:[#allocation88_spill] sm:$0xff] }
 0x264   :  { %v1556_v36 = vmul.f32 %v10791_v49, %v1466_v53  ;;  %v1465_v22 = vsub.f32 %v16290_v27, %v16286_v3  ;;  %v1845_v35 = vadd.f32 %v12006_v48, %v1683_v17  ;;  %v1701_v18 = vmul.f32 %v11976_v39, %v1539_v11  ;;  %v16297_v3 = vld [vmem:[#allocation84_spill] sm:$0xff] }
 0x265   :  { %8141 = vmatpush3.bf16.msra.mxu0 %v8140_v5  ;;  %8173 = vmatpush3.bf16.msra.mxu1 %v8172_v47  ;;  %v16291_v5 = vld [vmem:[#allocation82_spill] sm:$0xff]  ;;  %v1847_v34 = vadd.f32 %v12009_v44, %v1685_v4  ;;  %v1553_v43 = vmul.f32 %v10791_v49, %v1463_v30  ;;  %v1482_v47 = vsub.f32 %v16292_v29, %v16238_v40 }
 0x266   :  { %8143 = vmatprep.subr.bf16.mxu0 %v8142_v60  ;;  %8175 = vmatprep.subr.bf16.mxu1 %v8174_v25  ;;  %v1480_v59 = vsub.f32 %v16291_v5, %v16238_v40  ;;  %v1555_v37 = vmul.f32 %v10791_v49, %v1465_v22  ;;  %v1862_v61 = vadd.f32 %v16275_v55, %v1700_v20  ;;  %v16293_v49 = vld [vmem:[#allocation80_spill] sm:$0xff] }
 0x267   :  { %v1864_v50 = vadd.f32 %v16276_v41, %v1702_v21  ;;  %v1716_v46 = vmul.f32 %v16272_v10, %v1554_v0  ;;  %v1861_v52 = vadd.f32 %v12006_v48, %v1699_v33  ;;  %v1718_v28 = vmul.f32 %v16274_v54, %v1556_v36 }
 0x268   :  { %v1570_v32 = vmul.f32 %v10813_v38, %v1480_v59  ;;  %v1572_v60 = vmul.f32 %v10813_v38, %v1482_v47  ;;  %v1479_v26 = vsub.f32 %v16293_v49, %v16238_v40  ;;  %v1863_v57 = vadd.f32 %v12009_v44, %v1701_v18 }
 0x269   :  { %8145 = vmatpush3.bf16.msra.mxu0 %v8144_v19  ;;  %8177 = vmatpush3.bf16.msra.mxu1 %v8176_v45  ;;  %v1481_v7 = vsub.f32 %v16294_v24, %v16238_v40  ;;  %v1496_v25 = vsub.f32 %v16295_v42, %v10732_v1  ;;  %v1715_v15 = vmul.f32 %v11971_v9, %v1553_v43 }
 0x26a   :  { %v1717_v31 = vmul.f32 %v11976_v39, %v1555_v37  ;;  %v1569_v13 = vmul.f32 %v10813_v38, %v1479_v26  ;;  %v1498_v6 = vsub.f32 %v16296_v62, %v10732_v1  ;;  %v1878_v12 = vadd.f32 %v16275_v55, %v1716_v46 }
 0x26b   :  { %v1732_v16 = vmul.f32 %v16272_v10, %v1570_v32  ;;  %v1571_v58 = vmul.f32 %v10813_v38, %v1481_v7  ;;  %v1586_v40 = vmul.f32 %v10851_v23, %v1496_v25  ;;  %v1880_v19 = vadd.f32 %v16276_v41, %v1718_v28 }
 0x26c   :  { %2774 = vmatmul.mubr.f32.vlgmr.msra.gmra.mrb[70].mxu0 %v1845_v35  ;;  %2864 = vmatmul.mubr.f32.vlgmr.msra.gmra.mrb[70].mxu1 %v1847_v34  ;;  %v1734_v17 = vmul.f32 %v16274_v54, %v1572_v60  ;;  %v1588_v11 = vmul.f32 %v10851_v23, %v1498_v6  ;;  %v1495_v14 = vsub.f32 %v16297_v3, %v10732_v1 }
 0x26d   :  { %2778 = vmatprep.mubr.f32.mxu0 %v1862_v61  ;;  %2868 = vmatprep.mubr.f32.mxu1 %v1864_v50  ;;  %v1497_v45 = vsub.f32 %v16298_v51, %v10732_v1  ;;  %v1877_v38 = vadd.f32 %v12006_v48, %v1715_v15  ;;  %v1879_v4 = vadd.f32 %v12009_v44, %v1717_v31 }
 0x26e   :  { %v1731_v8 = vmul.f32 %v11971_v9, %v1569_v13  ;;  %v1585_v53 = vmul.f32 %v10851_v23, %v1495_v14  ;;  %v1894_v20 = vadd.f32 %v16275_v55, %v1732_v16  ;;  %v1733_v21 = vmul.f32 %v11976_v39, %v1571_v58 }
 0x26f   :  { %v1748_v0 = vmul.f32 %v16272_v10, %v1586_v40  ;;  %v1587_v33 = vmul.f32 %v10851_v23, %v1497_v45  ;;  %v1896_v1 = vadd.f32 %v16276_v41, %v1734_v17  ;;  %v1750_v36 = vmul.f32 %v16274_v54, %v1588_v11 }
 0x270   :  { %2779 = vmatmul.mubr.f32.gmra.mrb[72].mxu0 %v1861_v52  ;;  %2869 = vmatmul.mubr.f32.gmra.mrb[72].mxu1 %v1863_v57  ;;  %v1893_v2 = vadd.f32 %v12006_v48, %v1731_v8  ;;  %v1747_v30 = vmul.f32 %v11971_v9, %v1585_v53  ;;  %v1895_v27 = vadd.f32 %v12009_v44, %v1733_v21 }
 0x271   :  { %2783 = vmatprep.mubr.f32.mxu0 %v1878_v12  ;;  %2873 = vmatprep.mubr.f32.mxu1 %v1880_v19  ;;  %v1910_v22 = vadd.f32 %v16275_v55, %v1748_v0  ;;  %v1749_v10 = vmul.f32 %v11976_v39, %v1587_v33  ;;  %v1912_v23 = vadd.f32 %v16276_v41, %v1750_v36 }
 0x272   :  { %v1909_v54 = vadd.f32 %v12006_v48, %v1747_v30 }
 0x273   :  { %v1911_v35 = vadd.f32 %v12009_v44, %v1749_v10 }
 0x274   :  { %2784 = vmatmul.mubr.f32.gmra.mrb[74].mxu0 %v1877_v38  ;;  %2874 = vmatmul.mubr.f32.gmra.mrb[74].mxu1 %v1879_v4 }
 0x275   :  { %2788 = vmatprep.mubr.f32.mxu0 %v1894_v20  ;;  %2878 = vmatprep.mubr.f32.mxu1 %v1896_v1 }
 0x278   :  { %2789 = vmatmul.mubr.f32.gmra.mrb[76].mxu0 %v1893_v2  ;;  %2879 = vmatmul.mubr.f32.gmra.mrb[76].mxu1 %v1895_v27 }
 0x279   :  { %2793 = vmatprep.mubr.f32.mxu0 %v1910_v22  ;;  %2883 = vmatprep.mubr.f32.mxu1 %v1912_v23 }
 0x27c   :  { %2794 = vmatmul.mubr.f32.gmra.mrb[78].mxu0 %v1909_v54  ;;  %2884 = vmatmul.mubr.f32.gmra.mrb[78].mxu1 %v1911_v35 }
 0x2be   :  { %v7100_v18 = vpop.f32.mrb[40].mxu0  ;;  %v7147_v9 = vpop.f32.mrb[40].mxu1 }
 0x2bf   :  { %v7101_v5 = vpop.f32.mrb[41].mxu0  ;;  %v7148_v59 = vpop.f32.mrb[41].mxu1 }
 0x2c0   :  { %v7102_v34 = vadd.f32 %v7101_v5, %v7100_v18  ;;  %v7149_v55 = vadd.f32 %v7148_v59, %v7147_v9 }
 0x2c2   :  { %v2326_v43 = vadd.f32 %v7149_v55, %v7102_v34 }
 0x2c3   :  { %v7103_v39 = vpop.f32.mrb[42].mxu0 }
 0x2c4   :  { %v7150_v37 = vpop.f32.mrb[42].mxu1  ;;  %v7104_v29 = vpop.f32.mrb[43].mxu0 }
 0x2c5   :  { %v7105_v41 = vadd.f32 %v7104_v29, %v7103_v39  ;;  %v7151_v47 = vpop.f32.mrb[43].mxu1 }
 0x2c6   :  { %v7152_v61 = vadd.f32 %v7151_v47, %v7150_v37 }
 0x2c8   :  { %v7106_v50 = vpop.f32.mrb[44].mxu0  ;;  %v2331_v46 = vadd.f32 %v7152_v61, %v7105_v41 }
 0x2c9   :  { %v7153_v48 = vpop.f32.mrb[44].mxu1  ;;  %v7107_v32 = vpop.f32.mrb[45].mxu0 }
 0x2ca   :  { %v7108_v44 = vadd.f32 %v7107_v32, %v7106_v50  ;;  %v7154_v52 = vpop.f32.mrb[45].mxu1 }
 0x2cb   :  { %v7155_v28 = vadd.f32 %v7154_v52, %v7153_v48 }
 0x2cd   :  { %v2336_v49 = vadd.f32 %v7155_v28, %v7108_v44 }
 0x2ce   :  { %v7109_v60 = vpop.f32.mrb[46].mxu0 }
 0x2cf   :  { %v7156_v26 = vpop.f32.mrb[46].mxu1  ;;  %v7110_v57 = vpop.f32.mrb[47].mxu0 }
 0x2d0   :  { %v7111_v24 = vadd.f32 %v7110_v57, %v7109_v60  ;;  %v7157_v7 = vpop.f32.mrb[47].mxu1 }
 0x2d1   :  { %v7158_v42 = vadd.f32 %v7157_v7, %v7156_v26 }
 0x2d3   :  { %v2341_v15 = vadd.f32 %v7158_v42, %v7111_v24 }
 0x2d4   :  { %v7112_v25 = vpop.f32.mrb[48].mxu0 }
 0x2d5   :  { %v7159_v31 = vpop.f32.mrb[48].mxu1  ;;  %v7113_v13 = vpop.f32.mrb[49].mxu0 }
 0x2d6   :  { %v7114_v62 = vadd.f32 %v7113_v13, %v7112_v25  ;;  %v7160_v6 = vpop.f32.mrb[49].mxu1 }
 0x2d7   :  { %v7161_v12 = vadd.f32 %v7160_v6, %v7159_v31 }
 0x2d9   :  { %v2346_v16 = vadd.f32 %v7161_v12, %v7114_v62 }
 0x2f0   :  { %v7241_v40 = vpop.f32.mrb[50].mxu1 }
 0x2f1   :  { %v7194_v58 = vpop.f32.mrb[50].mxu0  ;;  %v7242_v11 = vpop.f32.mrb[51].mxu1 }
 0x2f2   :  { %v7195_v19 = vpop.f32.mrb[51].mxu0  ;;  %v7243_v3 = vadd.f32 %v7242_v11, %v7241_v40 }
 0x2f3   :  { %v7196_v17 = vadd.f32 %v7195_v19, %v7194_v58 }
 0x2f5   :  { %v2416_v14 = vadd.f32 %v7196_v17, %v2326_v43  ;;  %v7197_v51 = vpop.f32.mrb[52].mxu0  ;;  %v7244_v45 = vpop.f32.mrb[52].mxu1 }
 0x2f6   :  { %v7198_v38 = vpop.f32.mrb[53].mxu0  ;;  %v7245_v53 = vpop.f32.mrb[53].mxu1 }
 0x2f7   :  { %v2506_v4 = vadd.f32 %v7243_v3, %v2416_v14  ;;  %v7199_v8 = vadd.f32 %v7198_v38, %v7197_v51  ;;  %v7246_v20 = vadd.f32 %v7245_v53, %v7244_v45 }
 0x2f9   :  { %v2421_v21 = vadd.f32 %v7199_v8, %v2331_v46  ;;  %v7200_v0 = vpop.f32.mrb[54].mxu0 }
 0x2fa   :  { %v7247_v33 = vpop.f32.mrb[54].mxu1  ;;  %v7201_v1 = vpop.f32.mrb[55].mxu0 }
 0x2fb   :  { %v2511_v36 = vadd.f32 %v7246_v20, %v2421_v21  ;;  %v7202_v2 = vadd.f32 %v7201_v1, %v7200_v0  ;;  %v7248_v30 = vpop.f32.mrb[55].mxu1 }
 0x2fc   :  { %v7249_v27 = vadd.f32 %v7248_v30, %v7247_v33 }
 0x2fd   :  { %v2426_v22 = vadd.f32 %v7202_v2, %v2336_v49  ;;  %v7203_v10 = vpop.f32.mrb[56].mxu0 }
 0x2fe   :  { %v7250_v23 = vpop.f32.mrb[56].mxu1  ;;  %v7204_v54 = vpop.f32.mrb[57].mxu0 }
 0x2ff   :  { %v2516_v35 = vadd.f32 %v7249_v27, %v2426_v22  ;;  %v7205_v18 = vadd.f32 %v7204_v54, %v7203_v10  ;;  %v7251_v9 = vpop.f32.mrb[57].mxu1 }
 0x300   :  { %v7252_v5 = vadd.f32 %v7251_v9, %v7250_v23 }
 0x301   :  { %v2431_v59 = vadd.f32 %v7205_v18, %v2341_v15  ;;  %v7206_v34 = vpop.f32.mrb[58].mxu0 }
 0x302   :  { %v7253_v55 = vpop.f32.mrb[58].mxu1  ;;  %v7207_v43 = vpop.f32.mrb[59].mxu0 }
 0x303   :  { %v2521_v39 = vadd.f32 %v7252_v5, %v2431_v59  ;;  %v7208_v37 = vadd.f32 %v7207_v43, %v7206_v34  ;;  %v7254_v29 = vpop.f32.mrb[59].mxu1 }
 0x304   :  { %v7255_v41 = vadd.f32 %v7254_v29, %v7253_v55 }
 0x305   :  { %v2436_v47 = vadd.f32 %v7208_v37, %v2346_v16 }
 0x307   :  { %v2526_v61 = vadd.f32 %v7255_v41, %v2436_v47 }
 0x31b   :  { %v7288_v50 = vpop.f32.mrb[60].mxu0 }
 0x31c   :  { %v7335_v46 = vpop.f32.mrb[60].mxu1  ;;  %v7289_v48 = vpop.f32.mrb[61].mxu0 }
 0x31d   :  { %v7290_v32 = vadd.f32 %v7289_v48, %v7288_v50  ;;  %v7336_v44 = vpop.f32.mrb[61].mxu1 }
 0x31e   :  { %v7337_v52 = vadd.f32 %v7336_v44, %v7335_v46 }
 0x31f   :  { %v2596_v28 = vadd.f32 %v7290_v32, %v2506_v4 }
 0x320   :  { %v7291_v60 = vpop.f32.mrb[62].mxu0 }
 0x321   :  { %v7338_v49 = vpop.f32.mrb[62].mxu1  ;;  %v7292_v26 = vpop.f32.mrb[63].mxu0  ;;  %v2686_v57 = vadd.f32 %v7337_v52, %v2596_v28 }
 0x322   :  { %v7293_v24 = vadd.f32 %v7292_v26, %v7291_v60  ;;  %v7339_v7 = vpop.f32.mrb[63].mxu1 }
 0x323   :  { %v7340_v42 = vadd.f32 %v7339_v7, %v7338_v49 }
 0x324   :  { %v2601_v25 = vadd.f32 %v7293_v24, %v2511_v36 }
 0x325   :  { %v7294_v15 = vpop.f32.mrb[64].mxu0 }
 0x326   :  { %v7341_v31 = vpop.f32.mrb[64].mxu1  ;;  %v7295_v13 = vpop.f32.mrb[65].mxu0  ;;  %v2691_v62 = vadd.f32 %v7340_v42, %v2601_v25 }
 0x327   :  { %v7296_v6 = vadd.f32 %v7295_v13, %v7294_v15  ;;  %v7342_v12 = vpop.f32.mrb[65].mxu1 }
 0x328   :  { %v7343_v16 = vadd.f32 %v7342_v12, %v7341_v31 }
 0x329   :  { %v2606_v58 = vadd.f32 %v7296_v6, %v2516_v35  ;;  %v7297_v40 = vpop.f32.mrb[66].mxu0  ;;  %v8651_v35 = vmov 0.0|0.0  }
 0x32a   :  { %v7344_v19 = vpop.f32.mrb[66].mxu1  ;;  %v7298_v17 = vpop.f32.mrb[67].mxu0  ;;  %8178 = vmatprep.subr.bf16.mxu0 %v8651_v35  ;;  %8186 = vmatprep.subr.bf16.mxu1 %v8651_v35 }
 0x32b   :  { %v2696_v11 = vadd.f32 %v7343_v16, %v2606_v58  ;;  %v7299_v3 = vadd.f32 %v7298_v17, %v7297_v40  ;;  %v7345_v14 = vpop.f32.mrb[67].mxu1  ;;  %v16299_v16 = vmov 0.0  }
 0x32c   :  { %v7346_v51 = vadd.f32 %v7345_v14, %v7344_v19  ;;  %7850 = vmatprep.mubr.msk.f32.mxu0 %vm8653_vm2, %v16299_v16  ;;  %7875 = vmatprep.mubr.msk.f32.mxu1 %vm8653_vm2, %v16299_v16 }
 0x32d   :  { %v2611_v45 = vadd.f32 %v7299_v3, %v2521_v39  ;;  %v7300_v38 = vpop.f32.mrb[68].mxu0 }
 0x32e   :  { %v7347_v4 = vpop.f32.mrb[68].mxu1  ;;  %v7301_v8 = vpop.f32.mrb[69].mxu0 }
 0x32f   :  { %v2701_v53 = vadd.f32 %v7346_v51, %v2611_v45  ;;  %v7302_v20 = vadd.f32 %v7301_v8, %v7300_v38  ;;  %v7348_v21 = vpop.f32.mrb[69].mxu1 }
 0x330   :  { %v7349_v0 = vadd.f32 %v7348_v21, %v7347_v4  ;;  %v3020_v4 = vld [vmem:[%s15437_s7] sm:$0xff] }
 0x331   :  { %v2616_v33 = vadd.f32 %v7302_v20, %v2526_v61 }
 0x333   :  { %v2706_v1 = vadd.f32 %v7349_v0, %v2616_v33  ;;  %v3021_v0 = vld [vmem:[%s15437_s7 + $0x8] sm:$0xff] }
 0x33f   :  { %v7382_v36 = vpop.f32.mrb[70].mxu0  ;;  %v7429_v2 = vpop.f32.mrb[70].mxu1 }
 0x340   :  { %v7383_v30 = vpop.f32.mrb[71].mxu0  ;;  %v7430_v22 = vpop.f32.mrb[71].mxu1 }
 0x341   :  { %v7384_v27 = vadd.f32 %v7383_v30, %v7382_v36  ;;  %v7431_v10 = vadd.f32 %v7430_v22, %v7429_v2 }
 0x343   :  { %v2776_v23 = vadd.f32 %v7384_v27, %v2686_v57  ;;  %v7385_v54 = vpop.f32.mrb[72].mxu0  ;;  %v7432_v18 = vpop.f32.mrb[72].mxu1  ;;  %v3022_v27 = vld [vmem:[%s15437_s7 + $0x10] sm:$0xff] }
 0x344   :  { %v7386_v9 = vpop.f32.mrb[73].mxu0  ;;  %v7433_v34 = vpop.f32.mrb[73].mxu1 }
 0x345   :  { %v2866_v5 = vadd.f32 %v7431_v10, %v2776_v23  ;;  %v7387_v59 = vadd.f32 %v7386_v9, %v7385_v54  ;;  %v7434_v55 = vadd.f32 %v7433_v34, %v7432_v18  ;;  %v3023_v9 = vld [vmem:[%s15437_s7 + $0x18] sm:$0xff] }
 0x347   :  { %v2781_v43 = vadd.f32 %v7387_v59, %v2691_v62  ;;  %v7388_v39 = vpop.f32.mrb[74].mxu0  ;;  %v7435_v37 = vpop.f32.mrb[74].mxu1 }
 0x348   :  { %v7389_v29 = vpop.f32.mrb[75].mxu0  ;;  %v7436_v61 = vpop.f32.mrb[75].mxu1 }
 0x349   :  { %v2871_v41 = vadd.f32 %v7434_v55, %v2781_v43  ;;  %v7390_v47 = vadd.f32 %v7389_v29, %v7388_v39  ;;  %v7437_v50 = vadd.f32 %v7436_v61, %v7435_v37  ;;  %v3024_v39 = vld [vmem:[%s15437_s7 + $0x20] sm:$0xf] }
 0x34b   :  { %v2786_v46 = vadd.f32 %v7390_v47, %v2696_v11  ;;  %v7391_v48 = vpop.f32.mrb[76].mxu0  ;;  %v12087_v32 = vpack.i.bf16 %v2871_v41, %v2866_v5  ;;  %v7438_v44 = vpop.f32.mrb[76].mxu1 }
 0x34c   :  { %v7392_v52 = vpop.f32.mrb[77].mxu0  ;;  %v7439_v49 = vpop.f32.mrb[77].mxu1 }
 0x34d   :  { %v2876_v28 = vadd.f32 %v7437_v50, %v2786_v46  ;;  %v7393_v60 = vadd.f32 %v7392_v52, %v7391_v48  ;;  %8553 = vrot.lane.b32.xlu0 %v12087_v32, %s8652_s5  ;;  %v7440_v26 = vadd.f32 %v7439_v49, %v7438_v44 }
 0x34f   :  { %v2791_v57 = vadd.f32 %v7393_v60, %v2701_v53  ;;  %v7394_v24 = vpop.f32.mrb[78].mxu0  ;;  %v7441_v7 = vpop.f32.mrb[78].mxu1 }
 0x350   :  { %v7395_v42 = vpop.f32.mrb[79].mxu0  ;;  %v7442_v31 = vpop.f32.mrb[79].mxu1 }
 0x351   :  { %v2881_v25 = vadd.f32 %v7440_v26, %v2791_v57  ;;  %v7396_v15 = vadd.f32 %v7395_v42, %v7394_v24  ;;  %v7443_v13 = vadd.f32 %v7442_v31, %v7441_v7 }
 0x353   :  { %v2796_v62 = vadd.f32 %v7396_v15, %v2706_v1  ;;  %v12090_v6 = vpack.i.bf16 %v2881_v25, %v2876_v28 }
 0x355   :  { %v12092_v12 = vadd.f32 %v7443_v13, %v2796_v62  ;;  %8558 = vrot.lane.b32.xlu1 %v12090_v6, %s8652_s5 }
 0x359   :  { %2902 = vrot.lane.b32.xlu1 %v12092_v12, %s8652_s5 }
 0x3bf   :  { %v8554_v58 = vpop.permute.xlu0 %8553 }
 0x3c0   :  { %v8556_v40 = vunpack.i.h.bf16 %v8554_v58  ;;  %v8555_v19 = vunpack.i.l.bf16 %v8554_v58 }
 0x3c2   :  { %v8179_v17 = vpack.c.bf16 %v8556_v40, %v8555_v19 }
 0x3c4   :  { %8181 = vmatpush3.bf16.xpose.msk.msra.mxu0 %vm8180_vm4, %v8179_v17 }
 0x3c5   :  { %8182 = vmatprep.subr.bf16.mxu0 %v8651_v35 }
 0x3c7   :  { %v8559_v11 = vpop.permute.xlu1 %8558 }
 0x3c8   :  { %v8561_v3 = vunpack.i.h.bf16 %v8559_v11  ;;  %v8560_v14 = vunpack.i.l.bf16 %v8559_v11 }
 0x3ca   :  { %v8183_v51 = vpack.c.bf16 %v8561_v3, %v8560_v14 }
 0x3cb   :  { %v2903_v45 = vpop.permute.xlu1 %2902 }
 0x3cc   :  { %8185 = vmatpush3.bf16.xpose.msk.msra.mxu0 %vm8180_vm4, %v8183_v51 }
 0x3cd   :  { %7848 = vmatprep.subr.mxu0 %v16299_v16 }
 0x3d4   :  { %7849 = vmatpush3.xpose.msk.msra.mxu0 %vm2904_vm3, %v2903_v45 }
 0x3d7   :  { %7851 = vmatmul.mubr.msk.f32.vlgmr.msra.gmra.mrb[80].mxu0 %vm2904_vm3, %v2866_v5 }
 0x3d8   :  { %7853 = vmatprep.mubr.msk.f32.mxu0 %vm8653_vm2, %v16299_v16 }
 0x3db   :  { %7854 = vmatmul.mubr.msk.f32.gmra.mrb[82].mxu0 %vm2904_vm3, %v2871_v41 }
 0x3dc   :  { %7856 = vmatprep.mubr.msk.f32.mxu0 %vm8653_vm2, %v16299_v16 }
 0x3df   :  { %7857 = vmatmul.mubr.msk.f32.gmra.mrb[84].mxu0 %vm2904_vm3, %v2876_v28 }
 0x3e0   :  { %7859 = vmatprep.mubr.msk.f32.mxu0 %vm8653_vm2, %v16299_v16 }
 0x3e3   :  { %7860 = vmatmul.mubr.msk.f32.gmra.mrb[86].mxu0 %vm2904_vm3, %v2881_v25 }
 0x3e4   :  { %7862 = vmatprep.mubr.msk.f32.mxu0 %vm8653_vm2, %v16299_v16 }
 0x3e7   :  { %7863 = vmatmul.mubr.msk.f32.gmra.mrb[88].mxu0 %vm2904_vm3, %v12092_v12 }
 0x3e8   :  { %3440 = vmatprep.mubr.f32.mxu0 %v16299_v16 }
 0x4aa   :  { %v2991_v38 = vpop.f32.mrb[80].mxu0 }
 0x4ab   :  { %v3015_v8 = vmul.f32 0.022097087, %v2991_v38  ;;  %v7852_v53 = vpop.f32.mrb[81].mxu0 }
 0x4ad   :  { %v3025_v20 = vadd.f32 %v3020_v4, %v3015_v8  ;;  %v3230_v4 = vld [vmem:[%s15438_s8 + $0x88] sm:$0xff]  ;;  %v3213_v8 = vld [vmem:[%s15438_s8] sm:$0xff] }
 0x4ae   :  { %v2996_v21 = vpop.f32.mrb[82].mxu0 }
 0x4af   :  { %v3016_v33 = vmul.f32 0.022097087, %v2996_v21  ;;  %v7855_v1 = vpop.f32.mrb[83].mxu0  ;;  %v3031_v36 = vsel %vm3030_vm5, %v3025_v20, -inf  ;;  %v3262_v21 = vld [vmem:[%s15438_s8 + $0x188] sm:$0xff] }
 0x4b0   :  { %3032 = vmax.xlane.f32.xlu1 %v3031_v36  ;;  %v3261_v1 = vld [vmem:[%s15438_s8 + $0x180] sm:$0xff] }
 0x4b1   :  { %v3026_v2 = vadd.f32 %v3021_v0, %v3016_v33  ;;  %v3245_v33 = vld [vmem:[%s15438_s8 + $0x100] sm:$0xff] }
 0x4b2   :  { %v3001_v30 = vpop.f32.mrb[84].mxu0  ;;  %v8198_v36 = vpack.c.bf16 %v3261_v1, %v3245_v33  ;;  %v3224_v33 = vld [vmem:[%s15438_s8 + $0x58] sm:$0xff] }
 0x4b3   :  { %v3017_v22 = vmul.f32 0.022097087, %v3001_v30  ;;  %v7858_v10 = vpop.f32.mrb[85].mxu0  ;;  %v3034_v23 = vsel %vm3030_vm5, %v3026_v2, -inf  ;;  %v3240_v1 = vld [vmem:[%s15438_s8 + $0xd8] sm:$0xff] }
 0x4b4   :  { %3035 = vmax.xlane.f32.xlu0 %v3034_v23 }
 0x4b5   :  { %v3027_v54 = vadd.f32 %v3022_v27, %v3017_v22 }
 0x4b6   :  { %v3006_v18 = vpop.f32.mrb[86].mxu0 }
 0x4b7   :  { %v3018_v5 = vmul.f32 0.022097087, %v3006_v18  ;;  %v7861_v59 = vpop.f32.mrb[87].mxu0  ;;  %v3037_v34 = vsel %vm3030_vm5, %v3027_v54, -inf }
 0x4b8   :  { %3038 = vmax.xlane.f32.xlu0 %v3037_v34  ;;  %v3232_v59 = vld [vmem:[%s15438_s8 + $0x98] sm:$0xff]  ;;  %v3215_v34 = vld [vmem:[%s15438_s8 + $0x10] sm:$0xff] }
 0x4b9   :  { %v3028_v55 = vadd.f32 %v3023_v9, %v3018_v5  ;;  %v3216_v5 = vld [vmem:[%s15438_s8 + $0x18] sm:$0xff] }
 0x4ba   :  { %v3011_v43 = vpop.f32.mrb[88].mxu0 }
 0x4bb   :  { %v3019_v37 = vmul.f32 0.022097087, %v3011_v43  ;;  %v7864_v29 = vpop.f32.mrb[89].mxu0  ;;  %v3040_v41 = vsel %vm3030_vm5, %v3028_v55, -inf }
 0x4bc   :  { %3041 = vmax.xlane.f32.xlu0 %v3040_v41  ;;  %v8200_v29 = vpack.c.bf16 %v3232_v59, %v3216_v5  ;;  %v3221_v5 = vld [vmem:[%s15438_s8 + $0x40] sm:$0xff] }
 0x4bd   :  { %v3029_v47 = vadd.f32 %v3024_v39, %v3019_v37  ;;  %v3248_v39 = vld [vmem:[%s15438_s8 + $0x118] sm:$0xff]  ;;  %v3237_v59 = vld [vmem:[%s15438_s8 + $0xc0] sm:$0xff] }
 0x4be   :  { %v3264_v37 = vld [vmem:[%s15438_s8 + $0x198] sm:$0xff] }
 0x4bf   :  { %v3044_v61 = vsel %vm3043_vm6, %v3029_v47, -inf }
 0x4c0   :  { %3045 = vmax.xlane.f32.xlu1 %v3044_v61 }
 0x4d1   :  { %8563 = vrot.lane.b32.xlu1 %v12087_v32, %s8654_s4 }
 0x53d   :  { %v3033_v50 = vpop.xlane.xlu1 %3032 }
 0x53e   :  { %v3047_v46 = vsub.f32 %v3025_v20, %v3033_v50  ;;  %v8204_v50 = vpack.c.bf16 %v3264_v37, %v3248_v39  ;;  %v3254_v39 = vld [vmem:[%s15438_s8 + $0x148] sm:$0xff] }
 0x540   :  { %v3052_v48 = vmul.f32 1.442695, %v3047_v46  ;;  %v3247_v46 = vld [vmem:[%s15438_s8 + $0x110] sm:$0xff] }
 0x541   :  { %v3036_v44 = vpop.xlane.xlu0 %3035 }
 0x542   :  { %8582 = vpow2.f32 %v3052_v48  ;;  %v3048_v52 = vsub.f32 %v3026_v2, %v3036_v44  ;;  %v3263_v48 = vld [vmem:[%s15438_s8 + $0x190] sm:$0xff] }
 0x544   :  { %v3054_v28 = vmul.f32 1.442695, %v3048_v52  ;;  %v8206_v52 = vpack.c.bf16 %v3263_v48, %v3247_v46  ;;  %v3253_v46 = vld [vmem:[%s15438_s8 + $0x140] sm:$0xff] }
 0x545   :  { %v3039_v60 = vpop.xlane.xlu0 %3038  ;;  %v3269_v48 = vld [vmem:[%s15438_s8 + $0x1c0] sm:$0xff] }
 0x546   :  { %8584 = vpow2.f32 %v3054_v28  ;;  %v3049_v49 = vsub.f32 %v3027_v54, %v3039_v60 }
 0x548   :  { %v3056_v26 = vmul.f32 1.442695, %v3049_v49 }
 0x549   :  { %v3042_v57 = vpop.xlane.xlu0 %3041 }
 0x54a   :  { %8586 = vpow2.f32 %v3056_v26  ;;  %v3050_v24 = vsub.f32 %v3028_v55, %v3042_v57  ;;  %v3231_v55 = vld [vmem:[%s15438_s8 + $0x90] sm:$0xff] }
 0x54b   :  { %v8202_v41 = vpack.c.bf16 %v3231_v55, %v3215_v34  ;;  %v3223_v55 = vld [vmem:[%s15438_s8 + $0x50] sm:$0xff] }
 0x54c   :  { %v12142_v7 = vpop.eup %8582  ;;  %v3058_v42 = vmul.f32 1.442695, %v3050_v24 }
 0x54d   :  { %v3046_v25 = vpop.xlane.xlu1 %3045  ;;  %v3062_v32 = vsel %vm3030_vm5, %v12142_v7, 0.0 }
 0x54e   :  { %8588 = vpow2.f32 %v3058_v42  ;;  %v3051_v15 = vsub.f32 %v3029_v47, %v3046_v25  ;;  %3063 = vadd.xlane.f32.xlu0 %v3062_v32  ;;  %v3218_v42 = vld [vmem:[%s15438_s8 + $0x28] sm:$0xff] }
 0x54f   :  { %v3234_v25 = vld [vmem:[%s15438_s8 + $0xa8] sm:$0xff] }
 0x550   :  { %v12146_v31 = vpop.eup %8584  ;;  %v3060_v13 = vmul.f32 1.442695, %v3051_v15  ;;  %v8208_v32 = vpack.c.bf16 %v3234_v25, %v3218_v42  ;;  %v3220_v15 = vld [vmem:[%s15438_s8 + $0x38] sm:$0xff] }
 0x551   :  { %v8564_v62 = vpop.permute.xlu1 %8563  ;;  %v3065_v58 = vsel %vm3030_vm5, %v12146_v31, 0.0 }
 0x552   :  { %8590 = vpow2.f32 %v3060_v13  ;;  %v8566_v40 = vunpack.i.h.bf16 %v8564_v62  ;;  %v8565_v19 = vunpack.i.l.bf16 %v8564_v62  ;;  %3066 = vadd.xlane.f32.xlu1 %v3065_v58  ;;  %v3217_v62 = vld [vmem:[%s15438_s8 + $0x20] sm:$0xff] }
 0x553   :  { %v3233_v58 = vld [vmem:[%s15438_s8 + $0xa0] sm:$0xff] }
 0x554   :  { %v12150_v17 = vpop.eup %8586  ;;  %v8187_v11 = vpack.c.bf16 %v8566_v40, %v8565_v19  ;;  %v3219_v40 = vld [vmem:[%s15438_s8 + $0x30] sm:$0xff] }
 0x555   :  { %v3068_v3 = vsel %vm3030_vm5, %v12150_v17, 0.0  ;;  %v3235_v19 = vld [vmem:[%s15438_s8 + $0xb0] sm:$0xff] }
 0x556   :  { %3069 = vadd.xlane.f32.xlu0 %v3068_v3  ;;  %8188 = vmatpush3.bf16.msra.mxu1 %v8187_v11  ;;  %v3266_v11 = vld [vmem:[%s15438_s8 + $0x1a8] sm:$0xff]  ;;  %v3252_v3 = vld [vmem:[%s15438_s8 + $0x138] sm:$0xff] }
 0x557   :  { %8189 = vmatprep.subr.bf16.mxu1 %v8651_v35  ;;  %v3214_v35 = vld [vmem:[%s15438_s8 + $0x8] sm:$0xff] }
 0x558   :  { %v12155_v14 = vpop.eup %8588  ;;  %v8192_v53 = vpack.c.bf16 %v3230_v4, %v3214_v35  ;;  %v3265_v35 = vld [vmem:[%s15438_s8 + $0x1a0] sm:$0xff] }
 0x559   :  { %v3071_v51 = vsel %vm3030_vm5, %v12155_v14, 0.0 }
 0x55a   :  { %3072 = vadd.xlane.f32.xlu1 %v3071_v51  ;;  %8193 = vmatprep.subr.bf16.mxu0 %v8192_v53  ;;  %v8210_v51 = vpack.c.bf16 %v3233_v58, %v3217_v62  ;;  %v3243_v62 = vld [vmem:[%s15438_s8 + $0xf0] sm:$0xff]  ;;  %v3258_v58 = vld [vmem:[%s15438_s8 + $0x168] sm:$0xff] }
 0x55c   :  { %v12159_v45 = vpop.eup %8590 }
 0x55d   :  { %v3074_v38 = vsel %vm3043_vm6, %v12159_v45, 0.0 }
 0x55e   :  { %3075 = vadd.xlane.f32.xlu0 %v3074_v38  ;;  %v3249_v38 = vld [vmem:[%s15438_s8 + $0x120] sm:$0xff] }
 0x56b   :  { %3100 = vrot.lane.b32.xlu1 %v12092_v12, %s8654_s4  ;;  %v3229_v12 = vld [vmem:[%s15438_s8 + $0x80] sm:$0xff] }
 0x56c   :  { %v8194_v20 = vpack.c.bf16 %v3229_v12, %v3213_v8  ;;  %v3251_v12 = vld [vmem:[%s15438_s8 + $0x130] sm:$0xff] }
 0x56e   :  { %8195 = vmatpush1.bf16.msra.mxu0 %v8194_v20  ;;  %v3267_v20 = vld [vmem:[%s15438_s8 + $0x1b0] sm:$0xff] }
 0x574   :  { %8568 = vrot.lane.b32.xlu0 %v12090_v6, %s8654_s4  ;;  %v3246_v6 = vld [vmem:[%s15438_s8 + $0x108] sm:$0xff] }
 0x575   :  { %v8196_v0 = vpack.c.bf16 %v3262_v21, %v3246_v6  ;;  %v3222_v6 = vld [vmem:[%s15438_s8 + $0x48] sm:$0xff] }
 0x577   :  { %8197 = vmatprep.subr.bf16.mxu0 %v8196_v0  ;;  %v3238_v0 = vld [vmem:[%s15438_s8 + $0xc8] sm:$0xff] }
 0x578   :  { %8199 = vmatpush1.bf16.msra.mxu0 %v8198_v36  ;;  %v8214_v36 = vpack.c.bf16 %v3265_v35, %v3249_v38  ;;  %v3273_v38 = vld [vmem:[%s15438_s8 + $0x1e0] sm:$0xff]  ;;  %v3259_v35 = vld [vmem:[%s15438_s8 + $0x170] sm:$0xff] }
 0x579   :  { %8209 = vmatprep.subr.bf16.mxu0 %v8208_v32 }
 0x5db   :  { %v3064_v2 = vpop.xlane.xlu0 %3063 }
 0x5dc   :  { %8592 = vrcp.f32 %v3064_v2  ;;  %v8222_v2 = vpack.c.bf16 %v3267_v20, %v3251_v12  ;;  %v4953_v20 = vld [vmem:[%s15442_s12 + $0x88] sm:$0xff] }
 0x5df   :  { %v3067_v27 = vpop.xlane.xlu1 %3066 }
 0x5e0   :  { %8594 = vrcp.f32 %v3067_v27  ;;  %v8224_v27 = vpack.c.bf16 %v3238_v0, %v3222_v6  ;;  %v4984_v6 = vld [vmem:[%s15442_s12 + $0x180] sm:$0xff]  ;;  %v4985_v0 = vld [vmem:[%s15442_s12 + $0x188] sm:$0xff] }
 0x5e3   :  { %v3070_v30 = vpop.xlane.xlu0 %3069 }
 0x5e4   :  { %8596 = vrcp.f32 %v3070_v30 }
 0x5e6   :  { %v8593_v43 = vpop.eup %8592 }
 0x5e7   :  { %v3073_v18 = vpop.xlane.xlu1 %3072  ;;  %v3087_v47 = vmul.f32 %v8593_v43, %v12142_v7  ;;  %v3239_v43 = vld [vmem:[%s15438_s8 + $0xd0] sm:$0xff] }
 0x5e8   :  { %8598 = vrcp.f32 %v3073_v18 }
 0x5ea   :  { %v8595_v44 = vpop.eup %8594 }
 0x5eb   :  { %v3076_v22 = vpop.xlane.xlu0 %3075  ;;  %v3101_v61 = vpop.permute.xlu1 %3100  ;;  %v3088_v28 = vmul.f32 %v8595_v44, %v12146_v31  ;;  %v3236_v31 = vld [vmem:[%s15438_s8 + $0xb8] sm:$0xff] }
 0x5ec   :  { %8600 = vrcp.f32 %v3076_v22  ;;  %v8216_v13 = vpack.c.bf16 %v3236_v31, %v3220_v15  ;;  %v8232_v22 = vpack.c.bf16 %v3240_v1, %v3224_v33  ;;  %v3225_v15 = vld [vmem:[%s15438_s8 + $0x60] sm:$0xff]  ;;  %v4937_v1 = vld [vmem:[%s15442_s12 + $0x8] sm:$0xff] }
 0x5ed   :  { %v3241_v31 = vld [vmem:[%s15438_s8 + $0xe0] sm:$0xff] }
 0x5ee   :  { %v8597_v60 = vpop.eup %8596  ;;  %v4936_v33 = vld [vmem:[%s15442_s12] sm:$0xff] }
 0x5ef   :  { %v8569_v10 = vpop.permute.xlu0 %8568  ;;  %v3089_v49 = vmul.f32 %v8597_v60, %v12150_v17  ;;  %v3250_v17 = vld [vmem:[%s15438_s8 + $0x128] sm:$0xff]  ;;  %v3271_v60 = vld [vmem:[%s15438_s8 + $0x1d0] sm:$0xff] }
 0x5f0   :  { %v8571_v23 = vunpack.i.h.bf16 %v8569_v10  ;;  %v8570_v54 = vunpack.i.l.bf16 %v8569_v10  ;;  %v8212_v8 = vpack.c.bf16 %v3266_v11, %v3250_v17  ;;  %v3276_v17 = vld [vmem:[%s15438_s8 + $0x1f8] sm:$0xff]  ;;  %v8242_v11 = vpack.c.bf16 %v3241_v31, %v3225_v15  ;;  %v3278_v15 = vld [vmem:[%s15439_s9 + $0x8] sm:$0xff] }
 0x5f2   :  { %v8190_v9 = vpack.c.bf16 %v8571_v23, %v8570_v54  ;;  %v8599_v26 = vpop.eup %8598 }
 0x5f3   :  { %v3090_v57 = vmul.f32 %v8599_v26, %v12155_v14  ;;  %v3268_v14 = vld [vmem:[%s15438_s8 + $0x1b8] sm:$0xff]  ;;  %v3242_v26 = vld [vmem:[%s15438_s8 + $0xe8] sm:$0xff] }
 0x5f4   :  { %8191 = vmatpush3.bf16.msra.mxu1 %v8190_v9  ;;  %v8220_v53 = vpack.c.bf16 %v3268_v14, %v3252_v3  ;;  %v3257_v14 = vld [vmem:[%s15438_s8 + $0x160] sm:$0xff] }
 0x5f5   :  { %7873 = vmatprep.subr.mxu1 %v16299_v16 }
 0x5f6   :  { %v8601_v24 = vpop.eup %8600 }
 0x5f7   :  { %v3091_v7 = vmul.f32 %v8601_v24, %v12159_v45  ;;  %v8218_v45 = vpack.c.bf16 %v3235_v19, %v3219_v40  ;;  %v3244_v24 = vld [vmem:[%s15438_s8 + $0xf8] sm:$0xff]  ;;  %v3274_v40 = vld [vmem:[%s15438_s8 + $0x1e8] sm:$0xff] }
 0x5f8   :  { %7874 = vmatpush3.msk.msra.mxu1 %vm1183_vm1, %v3101_v61  ;;  %v8226_v61 = vpack.c.bf16 %v3237_v59, %v3221_v5  ;;  %v3260_v19 = vld [vmem:[%s15438_s8 + $0x178] sm:$0xff]  ;;  %v4938_v59 = vld [vmem:[%s15442_s12 + $0x10] sm:$0xff] }
 0x5f9   :  { %7876 = vmatmul.mubr.msk.f32.vlgmr.msra.gmra.mrb[80].mxu1 %vm3030_vm5, %v3087_v47  ;;  %8201 = vmatprep.subr.bf16.mxu1 %v8200_v29  ;;  %v3270_v29 = vld [vmem:[%s15438_s8 + $0x1c8] sm:$0xff]  ;;  %v3272_v47 = vld [vmem:[%s15438_s8 + $0x1d8] sm:$0xff] }
 0x5fa   :  { %7878 = vmatprep.mubr.msk.f32.mxu1 %vm8653_vm2, %v16299_v16  ;;  %8203 = vmatpush1.bf16.msra.mxu1 %v8202_v41  ;;  %v3256_v41 = vld [vmem:[%s15438_s8 + $0x158] sm:$0xff]  ;;  %v8228_v44 = vpack.c.bf16 %v3270_v29, %v3254_v39  ;;  %v3277_v29 = vld [vmem:[%s15439_s9] sm:$0xff] }
 0x5fb   :  { %8205 = vmatprep.subr.bf16.mxu1 %v8204_v50  ;;  %v8234_v50 = vpack.c.bf16 %v3239_v43, %v3223_v55  ;;  %v4970_v55 = vld [vmem:[%s15442_s12 + $0x110] sm:$0xff]  ;;  %v4971_v39 = vld [vmem:[%s15442_s12 + $0x118] sm:$0xff] }
 0x5fd   :  { %7879 = vmatmul.mubr.msk.f32.gmra.mrb[82].mxu1 %vm3030_vm5, %v3088_v28  ;;  %v3255_v28 = vld [vmem:[%s15438_s8 + $0x150] sm:$0xff] }
 0x5fe   :  { %7881 = vmatprep.mubr.msk.f32.mxu1 %vm8653_vm2, %v16299_v16  ;;  %8207 = vmatpush1.bf16.msra.mxu1 %v8206_v52  ;;  %v8236_v52 = vpack.c.bf16 %v3272_v47, %v3256_v41  ;;  %v8238_v42 = vpack.c.bf16 %v3271_v60, %v3255_v28  ;;  %v16300_v41 = vld [vmem:[#allocation5_spill] sm:$0xff]  ;;  %v16302_v60 = vld [vmem:[#allocation7_spill] sm:$0xff] }
 0x5ff   :  { %8217 = vmatprep.subr.bf16.mxu1 %v8216_v13  ;;  %v3227_v13 = vld [vmem:[%s15438_s8 + $0x70] sm:$0xff]  ;;  %v12560_v47 = vrot.slane %v3277_v29, %v16300_v41 }
 0x600   :  { %v8250_v3 = vpack.c.bf16 %v3243_v62, %v3227_v13 }
 0x601   :  { %7882 = vmatmul.mubr.msk.f32.gmra.mrb[84].mxu1 %vm3030_vm5, %v3089_v49  ;;  %v3226_v49 = vld [vmem:[%s15438_s8 + $0x68] sm:$0xff] }
 0x602   :  { %7884 = vmatprep.mubr.msk.f32.mxu1 %vm8653_vm2, %v16299_v16  ;;  %v8240_v25 = vpack.c.bf16 %v3242_v26, %v3226_v49  ;;  %v12569_v49 = vrot.slane %v3277_v29, %v16302_v60 }
 0x605   :  { %7885 = vmatmul.mubr.msk.f32.gmra.mrb[86].mxu1 %vm3030_vm5, %v3090_v57  ;;  %v3228_v57 = vld [vmem:[%s15438_s8 + $0x78] sm:$0xff] }
 0x606   :  { %7887 = vmatprep.mubr.msk.f32.mxu1 %vm8653_vm2, %v16299_v16  ;;  %v8248_v32 = vpack.c.bf16 %v3244_v24, %v3228_v57 }
 0x609   :  { %7888 = vmatmul.mubr.msk.f32.gmra.mrb[88].mxu1 %vm3030_vm5, %v3091_v7  ;;  %v8230_v7 = vpack.c.bf16 %v3269_v48, %v3253_v46 }
 0x60a   :  { %3535 = vmatprep.mubr.f32.mxu1 %v16299_v16 }
 0x6cc   :  { %v12278_v4 = vpop.f32.mrb[80].mxu1 }
 0x6cd   :  { %v7877_v21 = vpop.f32.mrb[81].mxu1  ;;  %6987 = vmatmul.mubr.msk.f32.vlgmr.msra.gmra.mrb[90].mxu0 %vm2904_vm3, %v12278_v4  ;;  %6992 = vmatmul.mubr.msk.f32.vlgmr.msra.gmra.mrb[90].mxu1 %vm2904_vm3, %v12278_v4 }
 0x6ce   :  { %3446 = vmatprep.mubr.f32.mxu0 %v16299_v16  ;;  %3541 = vmatprep.mubr.f32.mxu1 %v16299_v16 }
 0x6cf   :  { %8211 = vmatpush1.bf16.msra.mxu0 %v8210_v51  ;;  %8219 = vmatpush1.bf16.msra.mxu1 %v8218_v45  ;;  %v8244_v51 = vpack.c.bf16 %v3274_v40, %v3258_v58  ;;  %v8252_v45 = vpack.c.bf16 %v3276_v17, %v3260_v19  ;;  %v12594_v19 = vrot.slane %v3277_v29, %v16278_v56 }
 0x6d0   :  { %v12304_v30 = vpop.f32.mrb[82].mxu1  ;;  %8213 = vmatprep.subr.bf16.mxu0 %v8212_v8  ;;  %8221 = vmatprep.subr.bf16.mxu1 %v8220_v53  ;;  %v3275_v8 = vld [vmem:[%s15438_s8 + $0x1f0] sm:$0xff]  ;;  %v8246_v53 = vpack.c.bf16 %v3273_v38, %v3257_v14  ;;  %v12597_v17 = vrot.slane %v3277_v29, %v16280_v63  ;;  %v12608_v38 = vrot.slane %v3278_v15, %v16300_v41 }
 0x6d1   :  { %v7880_v10 = vpop.f32.mrb[83].mxu1  ;;  %6988 = vmatmul.mubr.msk.f32.gmra.mrb[92].mxu0 %vm2904_vm3, %v12304_v30  ;;  %6993 = vmatmul.mubr.msk.f32.gmra.mrb[92].mxu1 %vm2904_vm3, %v12304_v30  ;;  %v8254_v12 = vpack.c.bf16 %v3275_v8, %v3259_v35 }
 0x6d2   :  { %3452 = vmatprep.mubr.f32.mxu0 %v16299_v16  ;;  %3547 = vmatprep.mubr.f32.mxu1 %v16299_v16 }
 0x6d3   :  { %8215 = vmatpush1.bf16.msra.mxu0 %v8214_v36  ;;  %8223 = vmatpush1.bf16.msra.mxu1 %v8222_v2  ;;  %v8288_v36 = vpack.c.bf16 %v4985_v0, %v4984_v6  ;;  %v8258_v2 = vpack.c.bf16 %v4937_v1, %v4936_v33  ;;  %v12624_v1 = vrot.slane %v3278_v15, %v16302_v60 }
 0x6d4   :  { %v12312_v23 = vpop.f32.mrb[84].mxu1  ;;  %8225 = vmatprep.subr.bf16.mxu0 %v8224_v27  ;;  %8233 = vmatprep.subr.bf16.mxu1 %v8232_v22  ;;  %v4969_v27 = vld [vmem:[%s15442_s12 + $0x108] sm:$0xff]  ;;  %v4954_v22 = vld [vmem:[%s15442_s12 + $0x90] sm:$0xff] }
 0x6d5   :  { %v7883_v54 = vpop.f32.mrb[85].mxu1  ;;  %6989 = vmatmul.mubr.msk.f32.gmra.mrb[94].mxu0 %vm2904_vm3, %v12312_v23  ;;  %6994 = vmatmul.mubr.msk.f32.gmra.mrb[94].mxu1 %vm2904_vm3, %v12312_v23 }
 0x6d6   :  { %3458 = vmatprep.mubr.f32.mxu0 %v16299_v16  ;;  %3553 = vmatprep.mubr.f32.mxu1 %v16299_v16  ;;  %v4986_v54 = vld [vmem:[%s15442_s12 + $0x190] sm:$0xff] }
 0x6d8   :  { %v12320_v18 = vpop.f32.mrb[86].mxu1 }
 0x6d9   :  { %v7886_v9 = vpop.f32.mrb[87].mxu1  ;;  %6990 = vmatmul.mubr.msk.f32.gmra.mrb[96].mxu0 %vm2904_vm3, %v12320_v18  ;;  %6995 = vmatmul.mubr.msk.f32.gmra.mrb[96].mxu1 %vm2904_vm3, %v12320_v18 }
 0x6da   :  { %3464 = vmatprep.mubr.f32.mxu0 %v16299_v16  ;;  %3559 = vmatprep.mubr.f32.mxu1 %v16299_v16 }
 0x6dc   :  { %v12334_v34 = vpop.f32.mrb[88].mxu1 }
 0x6dd   :  { %v7889_v37 = vpop.f32.mrb[89].mxu1  ;;  %6991 = vmatmul.mubr.msk.f32.gmra.mrb[98].mxu0 %vm2904_vm3, %v12334_v34  ;;  %6996 = vmatmul.mubr.msk.f32.gmra.mrb[98].mxu1 %vm2904_vm3, %v12334_v34 }
 0x6de   :  { %3630 = vmatprep.mubr.f32.mxu0 %v16299_v16  ;;  %3725 = vmatprep.mubr.f32.mxu1 %v16299_v16  ;;  %v8294_v37 = vpack.c.bf16 %v4971_v39, %v4970_v55 }
 0x6e1   :  { %6997 = vmatmul.mubr.msk.f32.vlgmr.msra.gmra.mrb[100].mxu0 %vm2904_vm3, %v12278_v4  ;;  %7002 = vmatmul.mubr.msk.f32.vlgmr.msra.gmra.mrb[100].mxu1 %vm2904_vm3, %v12278_v4 }
 0x6e2   :  { %3636 = vmatprep.mubr.f32.mxu0 %v16299_v16  ;;  %3731 = vmatprep.mubr.f32.mxu1 %v16299_v16 }
 0x6e3   :  { %8227 = vmatpush1.bf16.msra.mxu0 %v8226_v61  ;;  %8235 = vmatpush1.bf16.msra.mxu1 %v8234_v50  ;;  %v16301_v61 = vld [vmem:[#allocation6_spill] sm:$0xff] }
 0x6e4   :  { %8229 = vmatprep.subr.bf16.mxu0 %v8228_v44  ;;  %8237 = vmatprep.subr.bf16.mxu1 %v8236_v52  ;;  %v12563_v50 = vrot.slane %v3277_v29, %v16301_v61 }
 0x6e5   :  { %6998 = vmatmul.mubr.msk.f32.gmra.mrb[102].mxu0 %vm2904_vm3, %v12304_v30  ;;  %7003 = vmatmul.mubr.msk.f32.gmra.mrb[102].mxu1 %vm2904_vm3, %v12304_v30 }
 0x6e6   :  { %3642 = vmatprep.mubr.f32.mxu0 %v16299_v16  ;;  %3737 = vmatprep.mubr.f32.mxu1 %v16299_v16 }
 0x6e7   :  { %8231 = vmatpush1.bf16.msra.mxu0 %v8230_v7  ;;  %8239 = vmatpush1.bf16.msra.mxu1 %v8238_v42  ;;  %v16303_v7 = vld [vmem:[#allocation8_spill] sm:$0xff] }
 0x6e8   :  { %8241 = vmatprep.subr.bf16.mxu0 %v8240_v25  ;;  %8249 = vmatprep.subr.bf16.mxu1 %v8248_v32  ;;  %v12579_v42 = vrot.slane %v3277_v29, %v16303_v7 }
 0x6e9   :  { %6999 = vmatmul.mubr.msk.f32.gmra.mrb[104].mxu0 %vm2904_vm3, %v12312_v23  ;;  %7004 = vmatmul.mubr.msk.f32.gmra.mrb[104].mxu1 %vm2904_vm3, %v12312_v23 }
 0x6ea   :  { %3648 = vmatprep.mubr.f32.mxu0 %v16299_v16  ;;  %3743 = vmatprep.mubr.f32.mxu1 %v16299_v16 }
 0x6ed   :  { %7000 = vmatmul.mubr.msk.f32.gmra.mrb[106].mxu0 %vm2904_vm3, %v12320_v18  ;;  %7005 = vmatmul.mubr.msk.f32.gmra.mrb[106].mxu1 %vm2904_vm3, %v12320_v18 }
 0x6ee   :  { %3654 = vmatprep.mubr.f32.mxu0 %v16299_v16  ;;  %3749 = vmatprep.mubr.f32.mxu1 %v16299_v16 }
 0x6f1   :  { %7001 = vmatmul.mubr.msk.f32.gmra.mrb[108].mxu0 %vm2904_vm3, %v12334_v34  ;;  %7006 = vmatmul.mubr.msk.f32.gmra.mrb[108].mxu1 %vm2904_vm3, %v12334_v34 }
 0x6f2   :  { %3820 = vmatprep.mubr.f32.mxu0 %v16299_v16  ;;  %3915 = vmatprep.mubr.f32.mxu1 %v16299_v16 }
 0x6f5   :  { %7007 = vmatmul.mubr.msk.f32.vlgmr.msra.gmra.mrb[110].mxu0 %vm2904_vm3, %v12278_v4  ;;  %7012 = vmatmul.mubr.msk.f32.vlgmr.msra.gmra.mrb[110].mxu1 %vm2904_vm3, %v12278_v4 }
 0x6f6   :  { %3826 = vmatprep.mubr.f32.mxu0 %v16299_v16  ;;  %3921 = vmatprep.mubr.f32.mxu1 %v16299_v16 }
 0x6f7   :  { %8243 = vmatpush1.bf16.msra.mxu0 %v8242_v11  ;;  %8251 = vmatpush1.bf16.msra.mxu1 %v8250_v3  ;;  %v16304_v3 = vld [vmem:[#allocation10_spill] sm:$0xff] }
 0x6f8   :  { %8245 = vmatprep.subr.bf16.mxu0 %v8244_v51  ;;  %8253 = vmatprep.subr.bf16.mxu1 %v8252_v45  ;;  %v12602_v14 = vrot.slane %v3277_v29, %v16304_v3  ;;  %v16305_v51 = vld [vmem:[#allocation12_spill] sm:$0xff] }
 0x6f9   :  { %7008 = vmatmul.mubr.msk.f32.gmra.mrb[112].mxu0 %vm2904_vm3, %v12304_v30  ;;  %7013 = vmatmul.mubr.msk.f32.gmra.mrb[112].mxu1 %vm2904_vm3, %v12304_v30  ;;  %v12605_v45 = vrot.slane %v3277_v29, %v16305_v51 }
 0x6fa   :  { %3832 = vmatprep.mubr.f32.mxu0 %v16299_v16  ;;  %3927 = vmatprep.mubr.f32.mxu1 %v16299_v16 }
 0x6fb   :  { %8247 = vmatpush1.bf16.msra.mxu0 %v8246_v53  ;;  %8255 = vmatpush1.bf16.msra.mxu1 %v8254_v12 }
 0x6fc   :  { %8289 = vmatprep.subr.bf16.mxu1 %v8288_v36  ;;  %v12627_v36 = vrot.slane %v3278_v15, %v16301_v61 }
 0x6fd   :  { %7009 = vmatmul.mubr.msk.f32.gmra.mrb[114].mxu0 %vm2904_vm3, %v12312_v23  ;;  %7014 = vmatmul.mubr.msk.f32.gmra.mrb[114].mxu1 %vm2904_vm3, %v12312_v23 }
 0x6fe   :  { %3838 = vmatprep.mubr.f32.mxu0 %v16299_v16  ;;  %3933 = vmatprep.mubr.f32.mxu1 %v16299_v16 }
 0x701   :  { %7010 = vmatmul.mubr.msk.f32.gmra.mrb[116].mxu0 %vm2904_vm3, %v12320_v18  ;;  %7015 = vmatmul.mubr.msk.f32.gmra.mrb[116].mxu1 %vm2904_vm3, %v12320_v18 }
 0x702   :  { %3844 = vmatprep.mubr.f32.mxu0 %v16299_v16  ;;  %3939 = vmatprep.mubr.f32.mxu1 %v16299_v16 }
 0x705   :  { %7011 = vmatmul.mubr.msk.f32.gmra.mrb[118].mxu0 %vm2904_vm3, %v12334_v34  ;;  %7016 = vmatmul.mubr.msk.f32.gmra.mrb[118].mxu1 %vm2904_vm3, %v12334_v34 }
 0x706   :  { %4010 = vmatprep.mubr.f32.mxu0 %v16299_v16  ;;  %4105 = vmatprep.mubr.f32.mxu1 %v16299_v16 }
 0x709   :  { %7017 = vmatmul.mubr.msk.f32.vlgmr.msra.gmra.mrb[120].mxu0 %vm2904_vm3, %v12278_v4  ;;  %7022 = vmatmul.mubr.msk.f32.vlgmr.msra.gmra.mrb[120].mxu1 %vm2904_vm3, %v12278_v4  ;;  %v4952_v4 = vld [vmem:[%s15442_s12 + $0x80] sm:$0xff] }
 0x70a   :  { %4016 = vmatprep.mubr.f32.mxu0 %v16299_v16  ;;  %4111 = vmatprep.mubr.f32.mxu1 %v16299_v16  ;;  %v8256_v21 = vpack.c.bf16 %v4953_v20, %v4952_v4 }
 0x70c   :  { %8257 = vmatprep.subr.bf16.mxu0 %v8256_v21 }
 0x70d   :  { %7018 = vmatmul.mubr.msk.f32.gmra.mrb[122].mxu0 %vm2904_vm3, %v12304_v30  ;;  %7023 = vmatmul.mubr.msk.f32.gmra.mrb[122].mxu1 %vm2904_vm3, %v12304_v30  ;;  %v4968_v30 = vld [vmem:[%s15442_s12 + $0x100] sm:$0xff] }
 0x70e   :  { %4022 = vmatprep.mubr.f32.mxu0 %v16299_v16  ;;  %4117 = vmatprep.mubr.f32.mxu1 %v16299_v16  ;;  %v8290_v10 = vpack.c.bf16 %v4969_v27, %v4968_v30 }
 0x70f   :  { %8259 = vmatpush3.bf16.msra.mxu0 %v8258_v2 }
 0x710   :  { %8291 = vmatpush3.bf16.msra.mxu1 %v8290_v10 }
 0x711   :  { %7019 = vmatmul.mubr.msk.f32.gmra.mrb[124].mxu0 %vm2904_vm3, %v12312_v23  ;;  %7024 = vmatmul.mubr.msk.f32.gmra.mrb[124].mxu1 %vm2904_vm3, %v12312_v23  ;;  %v4955_v23 = vld [vmem:[%s15442_s12 + $0x98] sm:$0xff] }
 0x712   :  { %4028 = vmatprep.mubr.f32.mxu0 %v16299_v16  ;;  %4123 = vmatprep.mubr.f32.mxu1 %v16299_v16  ;;  %v8260_v9 = vpack.c.bf16 %v4955_v23, %v4954_v22  ;;  %v12637_v22 = vrot.slane %v3278_v15, %v16303_v7 }
 0x714   :  { %8261 = vmatprep.subr.bf16.mxu0 %v8260_v9 }
 0x715   :  { %7020 = vmatmul.mubr.msk.f32.gmra.mrb[126].mxu0 %vm2904_vm3, %v12320_v18  ;;  %7025 = vmatmul.mubr.msk.f32.gmra.mrb[126].mxu1 %vm2904_vm3, %v12320_v18  ;;  %v4987_v18 = vld [vmem:[%s15442_s12 + $0x198] sm:$0xff] }
 0x716   :  { %4034 = vmatprep.mubr.f32.mxu0 %v16299_v16  ;;  %4129 = vmatprep.mubr.f32.mxu1 %v16299_v16  ;;  %v8292_v5 = vpack.c.bf16 %v4987_v18, %v4986_v54  ;;  %v12644_v54 = vrot.slane %v3278_v15, %v16278_v56  ;;  %v12647_v18 = vrot.slane %v3278_v15, %v16280_v63 }
 0x718   :  { %8293 = vmatprep.subr.bf16.mxu1 %v8292_v5 }
 0x719   :  { %7021 = vmatmul.mubr.msk.f32.gmra.mrb[128].mxu0 %vm2904_vm3, %v12334_v34  ;;  %7026 = vmatmul.mubr.msk.f32.gmra.mrb[128].mxu1 %vm2904_vm3, %v12334_v34  ;;  %v4939_v34 = vld [vmem:[%s15442_s12 + $0x18] sm:$0xff] }
 0x71a   :  { %v8262_v43 = vpack.c.bf16 %v4939_v34, %v4938_v59  ;;  %8295 = vmatpush3.bf16.msra.mxu1 %v8294_v37 }
 0x71c   :  { %8263 = vmatpush3.bf16.msra.mxu0 %v8262_v43  ;;  %v12652_v43 = vrot.slane %v3278_v15, %v16304_v3 }
 0x7a0   :  { %v3442_v46 = vpop.f32.mrb[90].mxu0  ;;  %v3537_v48 = vpop.f32.mrb[90].mxu1 }
 0x7a1   :  { %v12566_v44 = vadd.f32 %v3442_v46, %v12560_v47  ;;  %v3444_v52 = vpop.f32.mrb[91].mxu0  ;;  %v3539_v28 = vpop.f32.mrb[91].mxu1  ;;  %v12588_v58 = vadd.f32 %v3537_v48, %v12569_v49 }
 0x7a2   :  { %v12572_v26 = vadd.f32 %v3444_v52, %v12563_v50  ;;  %v12611_v8 = vadd.f32 %v3539_v28, %v12579_v42 }
 0x7a3   :  { %v4246_v57 = vmul.f32 %v12566_v44, %v12566_v44  ;;  %v4248_v2 = vmul.f32 %v12588_v58, %v12588_v58 }
 0x7a4   :  { %v4247_v24 = vmul.f32 %v12572_v26, %v12572_v26  ;;  %v3448_v25 = vpop.f32.mrb[92].mxu0  ;;  %v3543_v32 = vpop.f32.mrb[92].mxu1  ;;  %v4140_v11 = vadd.f32 %v12572_v26, %v12566_v44  ;;  %v4249_v9 = vmul.f32 %v12611_v8, %v12611_v8 }
 0x7a5   :  { %v12585_v31 = vadd.f32 %v3448_v25, %v12560_v47  ;;  %v3450_v13 = vpop.f32.mrb[93].mxu0  ;;  %v3545_v62 = vpop.f32.mrb[93].mxu1  ;;  %v12618_v6 = vadd.f32 %v3543_v32, %v12569_v49 }
 0x7a6   :  { %v12591_v40 = vadd.f32 %v3450_v13, %v12563_v50  ;;  %v4326_v35 = vadd.f32 %v4247_v24, %v4246_v57  ;;  %v4141_v10 = vadd.f32 %v4140_v11, %v12588_v58  ;;  %v12641_v23 = vadd.f32 %v3545_v62, %v12579_v42 }
 0x7a7   :  { %v4262_v53 = vmul.f32 %v12585_v31, %v12585_v31  ;;  %v4264_v39 = vmul.f32 %v12618_v6, %v12618_v6  ;;  %v12678_v11 = vrot.slane %v3278_v15, %v16305_v51 }
 0x7a8   :  { %v4263_v12 = vmul.f32 %v12591_v40, %v12591_v40  ;;  %v3454_v4 = vpop.f32.mrb[94].mxu0  ;;  %v3549_v20 = vpop.f32.mrb[94].mxu1  ;;  %v4157_v30 = vadd.f32 %v12591_v40, %v12585_v31  ;;  %v4327_v5 = vadd.f32 %v4326_v35, %v4248_v2  ;;  %v4142_v32 = vadd.f32 %v4141_v10, %v12611_v8 }
 0x7a9   :  { %v12621_v21 = vadd.f32 %v3454_v4, %v12560_v47  ;;  %v3456_v0 = vpop.f32.mrb[95].mxu0  ;;  %v3551_v33 = vpop.f32.mrb[95].mxu1  ;;  %v12665_v57 = vadd.f32 %v3549_v20, %v12569_v49  ;;  %v4265_v13 = vmul.f32 %v12641_v23, %v12641_v23 }
 0x7aa   :  { %v12634_v27 = vadd.f32 %v3456_v0, %v12563_v50  ;;  %v4343_v59 = vadd.f32 %v4263_v12, %v4262_v53  ;;  %v4158_v28 = vadd.f32 %v4157_v30, %v12618_v6  ;;  %v4328_v35 = vadd.f32 %v4327_v5, %v4249_v9 }
 0x7ab   :  { %16306 = vst [vmem:[#allocation97_spill] sm:$0xff] %v12621_v21  ;;  %v4278_v37 = vmul.f32 %v12621_v21, %v12621_v21  ;;  %16309 = vst [vmem:[#allocation105_spill] sm:$0xff] %v12665_v57  ;;  %v12681_v12 = vadd.f32 %v3551_v33, %v12579_v42 }
 0x7ac   :  { %16307 = vst [vmem:[#allocation96_spill] sm:$0xff] %v12634_v27  ;;  %v3460_v34 = vpop.f32.mrb[96].mxu0  ;;  %v3555_v55 = vpop.f32.mrb[96].mxu1  ;;  %v4279_v29 = vmul.f32 %v12634_v27, %v12634_v27  ;;  %v4174_v24 = vadd.f32 %v12634_v27, %v12621_v21  ;;  %v4344_v53 = vadd.f32 %v4343_v59, %v4264_v39  ;;  %v4159_v33 = vadd.f32 %v4158_v28, %v12641_v23 }
 0x7ad   :  { %v12661_v46 = vadd.f32 %v3460_v34, %v12560_v47  ;;  %v3462_v48 = vpop.f32.mrb[97].mxu0  ;;  %v3557_v52 = vpop.f32.mrb[97].mxu1  ;;  %16311 = vst [vmem:[#allocation99_spill] sm:$0xff] %v12681_v12  ;;  %v12686_v30 = vadd.f32 %v3555_v55, %v12569_v49  ;;  %v4280_v59 = vmul.f32 %v12665_v57, %v12665_v57 }
 0x7ae   :  { %v12670_v25 = vadd.f32 %v3462_v48, %v12563_v50  ;;  %v4360_v2 = vadd.f32 %v4279_v29, %v4278_v37  ;;  %v4175_v34 = vadd.f32 %v4174_v24, %v12665_v57  ;;  %v12701_v37 = vadd.f32 %v3557_v52, %v12579_v42 }
 0x7af   :  { %16308 = vst [vmem:[#allocation98_spill] sm:$0xff] %v12661_v46  ;;  %v4294_v62 = vmul.f32 %v12661_v46, %v12661_v46  ;;  %16312 = vst [vmem:[#allocation102_spill] sm:$0xff] %v12686_v30  ;;  %v4281_v48 = vmul.f32 %v12681_v12, %v12681_v12 }
 0x7b0   :  { %16310 = vst [vmem:[#allocation100_spill] sm:$0xff] %v12670_v25  ;;  %v4295_v4 = vmul.f32 %v12670_v25, %v12670_v25  ;;  %v3466_v20 = vpop.f32.mrb[98].mxu0  ;;  %v3561_v0 = vpop.f32.mrb[98].mxu1  ;;  %v4191_v10 = vadd.f32 %v12670_v25, %v12661_v46  ;;  %16315 = vst [vmem:[#allocation104_spill] sm:$0xff] %v12701_v37  ;;  %v4176_v46 = vadd.f32 %v4175_v34, %v12681_v12 }
 0x7b1   :  { %v12691_v15 = vadd.f32 %v3466_v20, %v12560_v47  ;;  %v3468_v9 = vpop.f32.mrb[99].mxu0  ;;  %v3563_v5 = vpop.f32.mrb[99].mxu1  ;;  %v12706_v29 = vadd.f32 %v3561_v0, %v12569_v49  ;;  %v4361_v20 = vadd.f32 %v4360_v2, %v4280_v59  ;;  %v4296_v49 = vmul.f32 %v12686_v30, %v12686_v30 }
 0x7b2   :  { %v12698_v39 = vadd.f32 %v3468_v9, %v12563_v50  ;;  %v4377_v55 = vadd.f32 %v4295_v4, %v4294_v62  ;;  %v4345_v4 = vadd.f32 %v4344_v53, %v4265_v13  ;;  %v4192_v0 = vadd.f32 %v4191_v10, %v12686_v30 }
 0x7b3   :  { %16313 = vst [vmem:[#allocation101_spill] sm:$0xff] %v12691_v15  ;;  %v4310_v47 = vmul.f32 %v12691_v15, %v12691_v15  ;;  %16316 = vst [vmem:[#allocation108_spill] sm:$0xff] %v12706_v29  ;;  %v4208_v28 = vsel %vm1183_vm1, %v12691_v15, 0.0  ;;  %v4297_v13 = vmul.f32 %v12701_v37, %v12701_v37  ;;  %v4312_v2 = vmul.f32 %v12706_v29, %v12706_v29 }
 0x7b4   :  { %16314 = vst [vmem:[#allocation106_spill] sm:$0xff] %v12698_v39  ;;  %v4209_v50 = vsel %vm1183_vm1, %v12698_v39, 0.0  ;;  %v4311_v24 = vmul.f32 %v12698_v39, %v12698_v39  ;;  %v3632_v52 = vpop.f32.mrb[100].mxu0  ;;  %v3727_v62 = vpop.f32.mrb[100].mxu1  ;;  %v4378_v53 = vadd.f32 %v4377_v55, %v4296_v49  ;;  %v12730_v10 = vadd.f32 %v3563_v5, %v12579_v42 }
 0x7b5   :  { %v3634_v9 = vpop.f32.mrb[101].mxu0  ;;  %v3729_v16 = vpop.f32.mrb[101].mxu1  ;;  %v4394_v15 = vsel %vm1183_vm1, %v4310_v47, 0.0  ;;  %v12723_v57 = vadd.f32 %v3632_v52, %v12594_v19  ;;  %v4210_v59 = vadd.f32 %v4209_v50, %v4208_v28  ;;  %v4362_v30 = vadd.f32 %v4361_v20, %v4281_v48 }
 0x7b6   :  { %v4395_v25 = vsel %vm1183_vm1, %v4311_v24, 0.0  ;;  %16318 = vst [vmem:[#allocation117_spill] sm:$0xff] %v12730_v10  ;;  %v12736_v24 = vadd.f32 %v3634_v9, %v12602_v14  ;;  %v4193_v55 = vadd.f32 %v4192_v0, %v12701_v37  ;;  %v4211_v49 = vsel %vm1183_vm1, %v12706_v29, 0.0 }
 0x7b7   :  { %16317 = vst [vmem:[#allocation107_spill] sm:$0xff] %v12723_v57  ;;  %v4143_v34 = vadd.f32 %v4142_v32, %v12723_v57  ;;  %v4250_v47 = vmul.f32 %v12723_v57, %v12723_v57  ;;  %v4396_v28 = vadd.f32 %v4395_v25, %v4394_v15  ;;  %v12742_v32 = vadd.f32 %v3727_v62, %v12597_v17 }
 0x7b8   :  { %v3638_v52 = vpop.f32.mrb[102].mxu0  ;;  %v3733_v39 = vpop.f32.mrb[102].mxu1  ;;  %v4251_v57 = vmul.f32 %v12736_v24, %v12736_v24  ;;  %v4379_v21 = vadd.f32 %v4378_v53, %v4297_v13  ;;  %v4397_v48 = vsel %vm1183_vm1, %v4312_v2, 0.0  ;;  %v4212_v20 = vadd.f32 %v4211_v49, %v4210_v59 }
 0x7b9   :  { %v3640_v50 = vpop.f32.mrb[103].mxu0  ;;  %v3735_v42 = vpop.f32.mrb[103].mxu1  ;;  %v4329_v5 = vadd.f32 %v4328_v35, %v4250_v47  ;;  %16319 = vst [vmem:[#allocation110_spill] sm:$0xff] %v12742_v32  ;;  %v12747_v9 = vadd.f32 %v3638_v52, %v12594_v19  ;;  %v4313_v25 = vmul.f32 %v12730_v10, %v12730_v10  ;;  %v4144_v35 = vadd.f32 %v4143_v34, %v12736_v24 }
 0x7ba   :  { %v12751_v0 = vadd.f32 %v3640_v50, %v12602_v14  ;;  %v4213_v13 = vsel %vm1183_vm1, %v12730_v10, 0.0  ;;  %v4398_v53 = vadd.f32 %v4397_v48, %v4396_v28  ;;  %v4252_v34 = vmul.f32 %v12742_v32, %v12742_v32 }
 0x7bb   :  { %16320 = vst [vmem:[#allocation109_spill] sm:$0xff] %v12747_v9  ;;  %v4160_v15 = vadd.f32 %v4159_v33, %v12747_v9  ;;  %v4266_v62 = vmul.f32 %v12747_v9, %v12747_v9  ;;  %v4330_v2 = vadd.f32 %v4329_v5, %v4251_v57  ;;  %v12767_v33 = vadd.f32 %v3729_v16, %v12605_v45 }
 0x7bc   :  { %16321 = vst [vmem:[#allocation112_spill] sm:$0xff] %v12751_v0  ;;  %v3644_v47 = vpop.f32.mrb[104].mxu0  ;;  %v3739_v52 = vpop.f32.mrb[104].mxu1  ;;  %v4267_v9 = vmul.f32 %v12751_v0, %v12751_v0  ;;  %v4214_v37 = vadd.f32 %v4213_v13, %v4212_v20  ;;  %v12772_v10 = vadd.f32 %v3733_v39, %v12597_v17  ;;  %v4399_v5 = vsel %vm1183_vm1, %v4313_v25, 0.0 }
 0x7bd   :  { %v12762_v59 = vadd.f32 %v3644_v47, %v12594_v19  ;;  %v3646_v49 = vpop.f32.mrb[105].mxu0  ;;  %v3741_v50 = vpop.f32.mrb[105].mxu1  ;;  %v4346_v29 = vadd.f32 %v4345_v4, %v4266_v62  ;;  %v4161_v57 = vadd.f32 %v4160_v15, %v12751_v0  ;;  %v4145_v48 = vadd.f32 %v4144_v35, %v12742_v32 }
 0x7be   :  { %16323 = vst [vmem:[#allocation114_spill] sm:$0xff] %v12772_v10  ;;  %v12781_v4 = vadd.f32 %v3646_v49, %v12602_v14  ;;  %v4400_v20 = vadd.f32 %v4399_v5, %v4398_v53  ;;  %v4331_v13 = vadd.f32 %v4330_v2, %v4252_v34  ;;  %v12784_v39 = vadd.f32 %v3735_v42, %v12605_v45 }
 0x7bf   :  { %16322 = vst [vmem:[#allocation111_spill] sm:$0xff] %v12762_v59  ;;  %v4282_v28 = vmul.f32 %v12762_v59, %v12762_v59  ;;  %v4177_v16 = vadd.f32 %v4176_v46, %v12762_v59  ;;  %v4253_v25 = vmul.f32 %v12767_v33, %v12767_v33  ;;  %v4347_v35 = vadd.f32 %v4346_v29, %v4267_v9 }
 0x7c0   :  { %16324 = vst [vmem:[#allocation113_spill] sm:$0xff] %v12781_v4  ;;  %v3650_v62 = vpop.f32.mrb[106].mxu0  ;;  %v3745_v47 = vpop.f32.mrb[106].mxu1  ;;  %16325 = vst [vmem:[#allocation30_spill] sm:$0xff] %v12784_v39  ;;  %v4283_v49 = vmul.f32 %v12781_v4, %v12781_v4  ;;  %v4268_v53 = vmul.f32 %v12772_v10, %v12772_v10  ;;  %v4162_v2 = vadd.f32 %v4161_v57, %v12772_v10 }
 0x7c1   :  { %v12787_v15 = vadd.f32 %v3650_v62, %v12594_v19  ;;  %v3652_v0 = vpop.f32.mrb[107].mxu0  ;;  %v3747_v12 = vpop.f32.mrb[107].mxu1  ;;  %v4363_v46 = vadd.f32 %v4362_v30, %v4282_v28  ;;  %v12797_v42 = vadd.f32 %v3739_v52, %v12597_v17  ;;  %v4146_v5 = vadd.f32 %v4145_v48, %v12767_v33 }
 0x7c2   :  { %v4178_v62 = vadd.f32 %v4177_v16, %v12781_v4  ;;  %v12805_v29 = vadd.f32 %v3652_v0, %v12602_v14  ;;  %v4332_v59 = vadd.f32 %v4331_v13, %v4253_v25  ;;  %v4269_v57 = vmul.f32 %v12784_v39, %v12784_v39 }
 0x7c3   :  { %16326 = vst [vmem:[#allocation131_spill] sm:$0xff] %v12787_v15  ;;  %16327 = vst [vmem:[#allocation118_spill] sm:$0xff] %v12797_v42  ;;  %v4298_v34 = vmul.f32 %v12787_v15, %v12787_v15  ;;  %v4194_v30 = vadd.f32 %v4193_v55, %v12787_v15  ;;  %v12810_v52 = vadd.f32 %v3741_v50, %v12605_v45 }
 0x7c4   :  { %16328 = vst [vmem:[#allocation115_spill] sm:$0xff] %v12805_v29  ;;  %v3656_v9 = vpop.f32.mrb[108].mxu0  ;;  %v3751_v28 = vpop.f32.mrb[108].mxu1  ;;  %v4348_v16 = vadd.f32 %v4347_v35, %v4268_v53  ;;  %v4364_v4 = vadd.f32 %v4363_v46, %v4283_v49  ;;  %v4299_v0 = vmul.f32 %v12805_v29, %v12805_v29  ;;  %v4163_v15 = vadd.f32 %v4162_v2, %v12784_v39 }
 0x7c5   :  { %16329 = vst [vmem:[#allocation32_spill] sm:$0xff] %v12810_v52  ;;  %v12813_v10 = vadd.f32 %v3656_v9, %v12594_v19  ;;  %v3658_v48 = vpop.f32.mrb[109].mxu0  ;;  %v3753_v32 = vpop.f32.mrb[109].mxu1  ;;  %v4380_v55 = vadd.f32 %v4379_v21, %v4298_v34  ;;  %v4284_v13 = vmul.f32 %v12797_v42, %v12797_v42  ;;  %v4179_v25 = vadd.f32 %v4178_v62, %v12797_v42 }
 0x7c6   :  { %v12826_v35 = vadd.f32 %v3745_v47, %v12597_v17  ;;  %v4195_v21 = vadd.f32 %v4194_v30, %v12805_v29  ;;  %v12830_v46 = vadd.f32 %v3751_v28, %v12597_v17  ;;  %v4285_v2 = vmul.f32 %v12810_v52, %v12810_v52 }
 0x7c7   :  { %16330 = vst [vmem:[#allocation35_spill] sm:$0xff] %v12813_v10  ;;  %v4215_v50 = vsel %vm1183_vm1, %v12813_v10, 0.0  ;;  %v4314_v19 = vmul.f32 %v12813_v10, %v12813_v10  ;;  %v12835_v34 = vadd.f32 %v3747_v12, %v12605_v45  ;;  %v12839_v62 = vadd.f32 %v3658_v48, %v12602_v14 }
 0x7c8   :  { %16331 = vst [vmem:[#allocation120_spill] sm:$0xff] %v12826_v35  ;;  %16332 = vst [vmem:[#allocation119_spill] sm:$0xff] %v12830_v46  ;;  %v3822_v49 = vpop.f32.mrb[110].mxu0  ;;  %v3917_v53 = vpop.f32.mrb[110].mxu1  ;;  %v4349_v42 = vadd.f32 %v4348_v16, %v4269_v57  ;;  %v4365_v30 = vadd.f32 %v4364_v4, %v4284_v13  ;;  %v4381_v29 = vadd.f32 %v4380_v55, %v4299_v0 }
 0x7c9   :  { %16333 = vst [vmem:[#allocation124_spill] sm:$0xff] %v12835_v34  ;;  %v4401_v9 = vsel %vm1183_vm1, %v4314_v19, 0.0  ;;  %16334 = vst [vmem:[#allocation123_spill] sm:$0xff] %v12839_v62  ;;  %v3824_v47 = vpop.f32.mrb[111].mxu0  ;;  %v3919_v10 = vpop.f32.mrb[111].mxu1  ;;  %v4216_v17 = vadd.f32 %v4215_v50, %v4214_v37  ;;  %v4217_v39 = vsel %vm1183_vm1, %v12839_v62, 0.0  ;;  %v4315_v27 = vmul.f32 %v12839_v62, %v12839_v62 }
 0x7ca   :  { %v4402_v28 = vadd.f32 %v4401_v9, %v4400_v20  ;;  %v12846_v12 = vadd.f32 %v3822_v49, %v12608_v38  ;;  %v12849_v19 = vadd.f32 %v4179_v25, %v12810_v52  ;;  %v4300_v14 = vmul.f32 %v12826_v35, %v12826_v35 }
 0x7cb   :  { %v4196_v4 = vadd.f32 %v4195_v21, %v12826_v35  ;;  %v4316_v37 = vmul.f32 %v12830_v46, %v12830_v46  ;;  %v4301_v48 = vmul.f32 %v12835_v34, %v12835_v34  ;;  %v4403_v16 = vsel %vm1183_vm1, %v4315_v27, 0.0 }
 0x7cc   :  { %16335 = vst [vmem:[#allocation38_spill] sm:$0xff] %v12846_v12  ;;  %v3828_v20 = vpop.f32.mrb[112].mxu0  ;;  %v3923_v57 = vpop.f32.mrb[112].mxu1  ;;  %v4147_v55 = vadd.f32 %v4146_v5, %v12846_v12  ;;  %v4254_v0 = vmul.f32 %v12846_v12, %v12846_v12  ;;  %v4366_v25 = vadd.f32 %v4365_v30, %v4285_v2  ;;  %v4218_v49 = vadd.f32 %v4217_v39, %v4216_v17 }
 0x7cd   :  { %v3830_v13 = vpop.f32.mrb[113].mxu0  ;;  %v3925_v50 = vpop.f32.mrb[113].mxu1  ;;  %v12863_v21 = vadd.f32 %v3753_v32, %v12605_v45  ;;  %v12866_v9 = vadd.f32 %v3824_v47, %v12627_v36  ;;  %v4382_v62 = vadd.f32 %v4381_v29, %v4300_v14  ;;  %v4404_v35 = vadd.f32 %v4403_v16, %v4402_v28 }
 0x7ce   :  { %v4333_v52 = vadd.f32 %v4332_v59, %v4254_v0  ;;  %v12869_v27 = vadd.f32 %v3828_v20, %v12608_v38  ;;  %v4197_v5 = vadd.f32 %v4196_v4, %v12835_v34  ;;  %v4219_v12 = vsel %vm1183_vm1, %v12830_v46, 0.0 }
 0x7cf   :  { %16336 = vst [vmem:[#allocation33_spill] sm:$0xff] %v12863_v21  ;;  %16337 = vst [vmem:[#allocation127_spill] sm:$0xff] %v12866_v9  ;;  %v4405_v2 = vsel %vm1183_vm1, %v4316_v37, 0.0  ;;  %v4255_v45 = vmul.f32 %v12866_v9, %v12866_v9  ;;  %v12878_v47 = vadd.f32 %v3917_v53, %v12624_v1  ;;  %v4148_v59 = vadd.f32 %v4147_v55, %v12866_v9 }
 0x7d0   :  { %16338 = vst [vmem:[#allocation125_spill] sm:$0xff] %v12869_v27  ;;  %v3834_v32 = vpop.f32.mrb[114].mxu0  ;;  %v3929_v39 = vpop.f32.mrb[114].mxu1  ;;  %v4164_v29 = vadd.f32 %v4163_v15, %v12869_v27  ;;  %v4270_v30 = vmul.f32 %v12869_v27, %v12869_v27  ;;  %v4220_v14 = vadd.f32 %v4219_v12, %v4218_v49  ;;  %v4317_v4 = vmul.f32 %v12863_v21, %v12863_v21 }
 0x7d1   :  { %16339 = vst [vmem:[#allocation36_spill] sm:$0xff] %v12878_v47  ;;  %v3836_v17 = vpop.f32.mrb[115].mxu0  ;;  %v3931_v28 = vpop.f32.mrb[115].mxu1  ;;  %v12887_v37 = vadd.f32 %v3919_v10, %v12637_v22  ;;  %v12890_v20 = vadd.f32 %v3830_v13, %v12627_v36  ;;  %v4383_v53 = vadd.f32 %v4382_v62, %v4301_v48  ;;  %v4406_v16 = vadd.f32 %v4405_v2, %v4404_v35 }
 0x7d2   :  { %v4334_v55 = vadd.f32 %v4333_v52, %v4255_v45  ;;  %v12893_v15 = vadd.f32 %v3834_v32, %v12608_v38  ;;  %v4350_v0 = vadd.f32 %v4349_v42, %v4270_v30  ;;  %v12896_v27 = vadd.f32 %v3923_v57, %v12624_v1 }
 0x7d3   :  { %16340 = vst [vmem:[#allocation51_spill] sm:$0xff] %v12887_v37  ;;  %16341 = vst [vmem:[#allocation39_spill] sm:$0xff] %v12890_v20  ;;  %v4165_v12 = vadd.f32 %v4164_v29, %v12890_v20  ;;  %v4271_v49 = vmul.f32 %v12890_v20, %v12890_v20  ;;  %v4221_v13 = vsel %vm1183_vm1, %v12863_v21, 0.0  ;;  %v4256_v52 = vmul.f32 %v12878_v47, %v12878_v47 }
 0x7d4   :  { %16342 = vst [vmem:[#allocation42_spill] sm:$0xff] %v12893_v15  ;;  %16343 = vst [vmem:[#allocation54_spill] sm:$0xff] %v12896_v27  ;;  %v3840_v10 = vpop.f32.mrb[116].mxu0  ;;  %v3935_v46 = vpop.f32.mrb[116].mxu1  ;;  %v4149_v35 = vadd.f32 %v4148_v59, %v12878_v47  ;;  %v4286_v42 = vmul.f32 %v12893_v15, %v12893_v15  ;;  %v4222_v48 = vadd.f32 %v4221_v13, %v4220_v14  ;;  %v4407_v2 = vsel %vm1183_vm1, %v4317_v4, 0.0 }
 0x7d5   :  { %v3842_v62 = vpop.f32.mrb[117].mxu0  ;;  %v3937_v57 = vpop.f32.mrb[117].mxu1  ;;  %v4257_v45 = vmul.f32 %v12887_v37, %v12887_v37  ;;  %v12912_v32 = vadd.f32 %v3836_v17, %v12627_v36  ;;  %v4408_v29 = vadd.f32 %v4407_v2, %v4406_v16  ;;  %v4335_v30 = vadd.f32 %v4334_v55, %v4256_v52 }
 0x7d6   :  { %v12915_v20 = vadd.f32 %v3925_v50, %v12637_v22  ;;  %v12918_v59 = vadd.f32 %v3840_v10, %v12608_v38  ;;  %v4272_v47 = vmul.f32 %v12896_v27, %v12896_v27  ;;  %v4351_v14 = vadd.f32 %v4350_v0, %v4271_v49 }
 0x7d7   :  { %16344 = vst [vmem:[#allocation129_spill] sm:$0xff] %v12912_v32  ;;  %v4166_v4 = vadd.f32 %v4165_v12, %v12896_v27  ;;  %v12924_v13 = vadd.f32 %v3929_v39, %v12624_v1  ;;  %v4150_v16 = vadd.f32 %v4149_v35, %v12887_v37  ;;  %v4181_v50 = vadd.f32 %v12849_v19, %v12893_v15 }
 0x7d8   :  { %16345 = vst [vmem:[#allocation128_spill] sm:$0xff] %v12915_v20  ;;  %16346 = vst [vmem:[#allocation37_spill] sm:$0xff] %v12918_v59  ;;  %v3846_v21 = vpop.f32.mrb[118].mxu0  ;;  %v3941_v17 = vpop.f32.mrb[118].mxu1  ;;  %v4367_v55 = vadd.f32 %v4366_v25, %v4286_v42  ;;  %v4302_v10 = vmul.f32 %v12918_v59, %v12918_v59  ;;  %v4287_v0 = vmul.f32 %v12912_v32, %v12912_v32 }
 0x7d9   :  { %16347 = vst [vmem:[#allocation40_spill] sm:$0xff] %v12924_v13  ;;  %v3848_v52 = vpop.f32.mrb[119].mxu0  ;;  %v3943_v2 = vpop.f32.mrb[119].mxu1  ;;  %v12934_v12 = vadd.f32 %v3931_v28, %v12637_v22  ;;  %v4198_v39 = vadd.f32 %v4197_v5, %v12918_v59  ;;  %v12938_v49 = vadd.f32 %v3842_v62, %v12627_v36  ;;  %v12940_v35 = vadd.f32 %v4335_v30, %v4257_v45 }
 0x7da   :  { %v4273_v19 = vmul.f32 %v12915_v20, %v12915_v20  ;;  %v4384_v25 = vadd.f32 %v4383_v53, %v4302_v10  ;;  %v12945_v42 = vadd.f32 %v3846_v21, %v12608_v38  ;;  %v12948_v15 = vadd.f32 %v4166_v4, %v12915_v20 }
 0x7db   :  { %16348 = vst [vmem:[#allocation43_spill] sm:$0xff] %v12934_v12  ;;  %16349 = vst [vmem:[#allocation46_spill] sm:$0xff] %v12938_v49  ;;  %v4352_v27 = vadd.f32 %v4351_v14, %v4272_v47  ;;  %v4288_v28 = vmul.f32 %v12924_v13, %v12924_v13  ;;  %v4303_v5 = vmul.f32 %v12938_v49, %v12938_v49 }
 0x7dc   :  { %16350 = vst [vmem:[#allocation133_spill] sm:$0xff] %v12945_v42  ;;  %v4012_v62 = vpop.f32.mrb[120].mxu0  ;;  %v4107_v45 = vpop.f32.mrb[120].mxu1  ;;  %v4182_v30 = vadd.f32 %v4181_v50, %v12912_v32  ;;  %v12956_v59 = vadd.f32 %v3935_v46, %v12624_v1  ;;  %v4223_v38 = vsel %vm1183_vm1, %v12945_v42, 0.0  ;;  %v4318_v21 = vmul.f32 %v12945_v42, %v12945_v42 }
 0x7dd   :  { %v4014_v47 = vpop.f32.mrb[121].mxu0  ;;  %v4109_v53 = vpop.f32.mrb[121].mxu1  ;;  %v4368_v14 = vadd.f32 %v4367_v55, %v4287_v0  ;;  %v4289_v4 = vmul.f32 %v12934_v12, %v12934_v12  ;;  %v4199_v10 = vadd.f32 %v4198_v39, %v12938_v49  ;;  %v4224_v20 = vadd.f32 %v4223_v38, %v4222_v48 }
 0x7de   :  { %16351 = vst [vmem:[#allocation132_spill] sm:$0xff] %v12956_v59  ;;  %v4385_v34 = vadd.f32 %v4384_v25, %v4303_v5  ;;  %v4409_v50 = vsel %vm1183_vm1, %v4318_v21, 0.0  ;;  %v12967_v46 = vadd.f32 %v3941_v17, %v12624_v1  ;;  %v12970_v32 = vadd.f32 %v3848_v52, %v12627_v36 }
 0x7df   :  { %v4353_v37 = vadd.f32 %v4352_v27, %v4273_v19  ;;  %v12973_v42 = vadd.f32 %v3937_v57, %v12637_v22  ;;  %v4410_v55 = vadd.f32 %v4409_v50, %v4408_v29  ;;  %v12976_v0 = vadd.f32 %v3943_v2, %v12637_v22 }
 0x7e0   :  { %16352 = vst [vmem:[#allocation135_spill] sm:$0xff] %v12967_v46  ;;  %16353 = vst [vmem:[#allocation134_spill] sm:$0xff] %v12970_v32  ;;  %v4018_v9 = vpop.f32.mrb[122].mxu0  ;;  %v4113_v39 = vpop.f32.mrb[122].mxu1  ;;  %v4304_v48 = vmul.f32 %v12956_v59, %v12956_v59  ;;  %v4225_v1 = vsel %vm1183_vm1, %v12970_v32, 0.0  ;;  %v4319_v36 = vmul.f32 %v12970_v32, %v12970_v32  ;;  %v12985_v27 = vadd.f32 %v4012_v62, %v12644_v54 }
 0x7e1   :  { %16354 = vst [vmem:[#allocation116_spill] sm:$0xff] %v12973_v42  ;;  %16355 = vst [vmem:[#allocation41_spill] sm:$0xff] %v12976_v0  ;;  %v4020_v57 = vpop.f32.mrb[123].mxu0  ;;  %v4115_v17 = vpop.f32.mrb[123].mxu1  ;;  %v4183_v29 = vadd.f32 %v4182_v30, %v12924_v13  ;;  %v4369_v22 = vadd.f32 %v4368_v14, %v4288_v28  ;;  %v4200_v52 = vadd.f32 %v4199_v10, %v12956_v59 }
 0x7e2   :  { %16356 = vst [vmem:[#allocation137_spill] sm:$0xff] %v12985_v27  ;;  %v4226_v2 = vadd.f32 %v4225_v1, %v4224_v20  ;;  %v4386_v19 = vadd.f32 %v4385_v34, %v4304_v48  ;;  %v4320_v25 = vmul.f32 %v12967_v46, %v12967_v46  ;;  %v4411_v5 = vsel %vm1183_vm1, %v4319_v36, 0.0 }
 0x7e3   :  { %v4151_v38 = vadd.f32 %v4150_v16, %v12985_v27  ;;  %v4305_v62 = vmul.f32 %v12973_v42, %v12973_v42  ;;  %v4412_v21 = vadd.f32 %v4411_v5, %v4410_v55  ;;  %v4321_v50 = vmul.f32 %v12976_v0, %v12976_v0 }
 0x7e4   :  { %v12998_v28 = vadd.f32 %v4014_v47, %v12652_v43  ;;  %v4024_v30 = vpop.f32.mrb[124].mxu0  ;;  %v4119_v20 = vpop.f32.mrb[124].mxu1  ;;  %v4227_v34 = vsel %vm1183_vm1, %v12967_v46, 0.0  ;;  %v4258_v14 = vmul.f32 %v12985_v27, %v12985_v27  ;;  %v13005_v16 = vadd.f32 %v4107_v45, %v12647_v18 }
 0x7e5   :  { %v13008_v10 = vadd.f32 %v4018_v9, %v12644_v54  ;;  %v4026_v55 = vpop.f32.mrb[125].mxu0  ;;  %v4121_v48 = vpop.f32.mrb[125].mxu1  ;;  %v4184_v1 = vadd.f32 %v4183_v29, %v12934_v12  ;;  %v4370_v47 = vadd.f32 %v4369_v22, %v4289_v4  ;;  %v4201_v36 = vadd.f32 %v4200_v52, %v12973_v42 }
 0x7e6   :  { %16357 = vst [vmem:[#allocation136_spill] sm:$0xff] %v12998_v28  ;;  %16358 = vst [vmem:[#allocation126_spill] sm:$0xff] %v13005_v16  ;;  %v4228_v5 = vadd.f32 %v4227_v34, %v4226_v2  ;;  %v4387_v32 = vadd.f32 %v4386_v19, %v4305_v62  ;;  %v4413_v46 = vsel %vm1183_vm1, %v4320_v25, 0.0  ;;  %v4229_v27 = vsel %vm1183_vm1, %v12976_v0, 0.0 }
 0x7e7   :  { %16359 = vst [vmem:[#allocation44_spill] sm:$0xff] %v13008_v10  ;;  %v4152_v45 = vadd.f32 %v4151_v38, %v12998_v28  ;;  %v4414_v59 = vadd.f32 %v4413_v46, %v4412_v21  ;;  %v4415_v9 = vsel %vm1183_vm1, %v4321_v50, 0.0  ;;  %v4274_v49 = vmul.f32 %v13008_v10, %v13008_v10 }
 0x7e8   :  { %v13020_v29 = vadd.f32 %v4024_v30, %v12644_v54  ;;  %v4030_v4 = vpop.f32.mrb[126].mxu0  ;;  %v4125_v22 = vpop.f32.mrb[126].mxu1  ;;  %v4337_v52 = vadd.f32 %v12940_v35, %v4258_v14  ;;  %v4260_v2 = vmul.f32 %v13005_v16, %v13005_v16  ;;  %v13026_v19 = vadd.f32 %v4109_v53, %v12678_v11 }
 0x7e9   :  { %v13029_v46 = vadd.f32 %v4113_v39, %v12647_v18  ;;  %v4032_v25 = vpop.f32.mrb[127].mxu0  ;;  %v4127_v38 = vpop.f32.mrb[127].mxu1  ;;  %v4230_v62 = vadd.f32 %v4229_v27, %v4228_v5  ;;  %v4259_v21 = vmul.f32 %v12998_v28, %v12998_v28  ;;  %v4168_v50 = vadd.f32 %v12948_v15, %v13008_v10  ;;  %v13539_v28 = vld [vmem:[%s15442_s12 + $0x3d8] sm:$0xff] }
 0x7ea   :  { %16360 = vst [vmem:[#allocation47_spill] sm:$0xff] %v13020_v29  ;;  %16361 = vst [vmem:[#allocation139_spill] sm:$0xff] %v13026_v19  ;;  %v13036_v35 = vadd.f32 %v4020_v57, %v12652_v43  ;;  %v4290_v30 = vmul.f32 %v13020_v29, %v13020_v29  ;;  %v13041_v53 = vadd.f32 %v4119_v20, %v12647_v18 }
 0x7eb   :  { %16362 = vst [vmem:[#allocation138_spill] sm:$0xff] %v13029_v46  ;;  %v4153_v39 = vadd.f32 %v4152_v45, %v13005_v16  ;;  %v13045_v34 = vadd.f32 %v4030_v4, %v12644_v54  ;;  %v4416_v27 = vadd.f32 %v4415_v9, %v4414_v59  ;;  %v4354_v14 = vadd.f32 %v4353_v37, %v4274_v49 }
 0x7ec   :  { %16363 = vst [vmem:[#allocation49_spill] sm:$0xff] %v13036_v35  ;;  %16364 = vst [vmem:[#allocation143_spill] sm:$0xff] %v13041_v53  ;;  %v13048_v5 = vadd.f32 %v4115_v17, %v12678_v11  ;;  %v13051_v15 = vadd.f32 %v4026_v55, %v12652_v43  ;;  %v4036_v57 = vpop.f32.mrb[128].mxu0  ;;  %v4131_v10 = vpop.f32.mrb[128].mxu1  ;;  %v4276_v0 = vmul.f32 %v13029_v46, %v13029_v46 }
 0x7ed   :  { %16365 = vst [vmem:[#allocation142_spill] sm:$0xff] %v13045_v34  ;;  %v4154_v20 = vadd.f32 %v4153_v39, %v13026_v19  ;;  %v4306_v45 = vmul.f32 %v13045_v34, %v13045_v34  ;;  %v13059_v4 = vadd.f32 %v4032_v25, %v12652_v43  ;;  %v4038_v37 = vpop.f32.mrb[129].mxu0  ;;  %v4133_v59 = vpop.f32.mrb[129].mxu1  ;;  %v4169_v49 = vadd.f32 %v4168_v50, %v13036_v35 }
 0x7ee   :  { %16366 = vst [vmem:[#allocation121_spill] sm:$0xff] %v13048_v5  ;;  %16367 = vst [vmem:[#allocation45_spill] sm:$0xff] %v13051_v15  ;;  %v4275_v17 = vmul.f32 %v13036_v35, %v13036_v35  ;;  %v4185_v55 = vadd.f32 %v4184_v1, %v13020_v29  ;;  %v4338_v9 = vadd.f32 %v4337_v52, %v4259_v21  ;;  %v13474_v29 = vld [vmem:[%s15442_s12 + $0x3c0] sm:$0xff] }
 0x7ef   :  { %16368 = vst [vmem:[#allocation130_spill] sm:$0xff] %v13059_v4  ;;  %v4371_v16 = vadd.f32 %v4370_v47, %v4290_v30  ;;  %v4292_v39 = vmul.f32 %v13041_v53, %v13041_v53  ;;  %4155 = vadd.xlane.f32.xlu1 %v4154_v20  ;;  %v13068_v42 = vadd.f32 %v4125_v22, %v12647_v18  ;;  %16403 = vst [vmem:[#allocation60_spill] sm:$0xff] %v13474_v29  ;;  %v13727_v29 = vld [vmem:[%s15442_s12 + $0x508] sm:$0xff] }
 0x7f0   :  { %v13071_v25 = vadd.f32 %v4036_v57, %v12644_v54  ;;  %v4291_v50 = vmul.f32 %v13051_v15, %v13051_v15  ;;  %v4261_v35 = vmul.f32 %v13026_v19, %v13026_v19  ;;  %v4339_v13 = vadd.f32 %v4338_v9, %v4260_v2  ;;  %16412 = vst [vmem:[#allocation64_spill] sm:$0xff] %v13539_v28  ;;  %v13717_v28 = vld [vmem:[%s15442_s12 + $0x408] sm:$0xff] }
 0x7f1   :  { %16369 = vst [vmem:[#allocation48_spill] sm:$0xff] %v13068_v42  ;;  %v13078_v1 = vadd.f32 %v4038_v37, %v12652_v43  ;;  %v4388_v47 = vadd.f32 %v4387_v32, %v4306_v45  ;;  %v4307_v52 = vmul.f32 %v13059_v4, %v13059_v4  ;;  %v4186_v21 = vadd.f32 %v4185_v55, %v13051_v15  ;;  %v13484_v15 = vld [vmem:[%s15442_s12 + $0x240] sm:$0xff] }
 0x7f2   :  { %16370 = vst [vmem:[#allocation140_spill] sm:$0xff] %v13071_v25  ;;  %v4231_v22 = vsel %vm1183_vm1, %v13071_v25, 0.0  ;;  %v4322_v54 = vmul.f32 %v13071_v25, %v13071_v25  ;;  %v4202_v30 = vadd.f32 %v4201_v36, %v13045_v34  ;;  %v4340_v57 = vadd.f32 %v4339_v13, %v4261_v35  ;;  %v13454_v34 = vld [vmem:[%s15442_s12 + $0x330] sm:$0xff]  ;;  %16405 = vst [vmem:[#allocation63_spill] sm:$0xff] %v13484_v15 }
 0x7f3   :  { %16371 = vst [vmem:[#allocation17_spill] sm:$0xff] %v13078_v1  ;;  %v4170_v2 = vadd.f32 %v4169_v49, %v13029_v46  ;;  %v13090_v43 = vadd.f32 %v4121_v48, %v12678_v11  ;;  %v4308_v32 = vmul.f32 %v13068_v42, %v13068_v42  ;;  %v13095_v20 = vadd.f32 %v4131_v10, %v12647_v18  ;;  %v13489_v46 = vld [vmem:[%s15442_s12 + $0x248] sm:$0xff] }
 0x7f4   :  { %v4355_v45 = vadd.f32 %v4354_v14, %v4275_v17  ;;  %4341 = vadd.xlane.f32.xlu0 %v4340_v57  ;;  %v4232_v37 = vadd.f32 %v4231_v22, %v4230_v62  ;;  %v4323_v55 = vmul.f32 %v13078_v1, %v13078_v1  ;;  %v4277_v13 = vmul.f32 %v13048_v5, %v13048_v5 }
 0x7f5   :  { %16372 = vst [vmem:[#allocation15_spill] sm:$0xff] %v13090_v43  ;;  %16373 = vst [vmem:[#allocation14_spill] sm:$0xff] %v13095_v20  ;;  %v4372_v36 = vadd.f32 %v4371_v16, %v4291_v50  ;;  %v4417_v35 = vsel %vm1183_vm1, %v4322_v54, 0.0  ;;  %v4233_v48 = vsel %vm1183_vm1, %v13078_v1, 0.0  ;;  %v4389_v9 = vadd.f32 %v4388_v47, %v4307_v52 }
 0x7f6   :  { %v4356_v49 = vadd.f32 %v4355_v45, %v4276_v0  ;;  %v4203_v18 = vadd.f32 %v4202_v30, %v13059_v4  ;;  %v4171_v10 = vadd.f32 %v4170_v2, %v13048_v5  ;;  %v4187_v62 = vadd.f32 %v4186_v21, %v13041_v53  ;;  %16399 = vst [vmem:[#allocation62_spill] sm:$0xff] %v13454_v34  ;;  %v13464_v4 = vld [vmem:[%s15442_s12 + $0x2c0] sm:$0xff]  ;;  %v13469_v53 = vld [vmem:[%s15442_s12 + $0x2c8] sm:$0xff] }
 0x7f7   :  { %v4373_v14 = vadd.f32 %v4372_v36, %v4292_v39  ;;  %v13108_v17 = vadd.f32 %v4127_v38, %v12678_v11  ;;  %v13111_v22 = vadd.f32 %v4133_v59, %v12678_v11  ;;  %v4293_v50 = vmul.f32 %v13090_v43, %v13090_v43  ;;  %v4988_v36 = vld [vmem:[%s15442_s12 + $0x1a0] sm:$0xff]  ;;  %16401 = vst [vmem:[#allocation150_spill] sm:$0xff] %v13464_v4  ;;  %v13750_v4 = vld [vmem:[%s15442_s12 + $0x590] sm:$0xff] }
 0x7f8   :  { %v4357_v16 = vadd.f32 %v4356_v49, %v4277_v13  ;;  %v4324_v0 = vmul.f32 %v13095_v20, %v13095_v20  ;;  %4172 = vadd.xlane.f32.xlu0 %v4171_v10  ;;  %v4234_v47 = vadd.f32 %v4233_v48, %v4232_v37  ;;  %v4418_v52 = vadd.f32 %v4417_v35, %v4416_v27  ;;  %v4957_v13 = vld [vmem:[%s15442_s12 + $0xa8] sm:$0xff] }
 0x7f9   :  { %16374 = vst [vmem:[#allocation34_spill] sm:$0xff] %v13108_v17  ;;  %16375 = vst [vmem:[#allocation19_spill] sm:$0xff] %v13111_v22  ;;  %v4419_v54 = vsel %vm1183_vm1, %v4323_v55, 0.0  ;;  %v4374_v39 = vadd.f32 %v4373_v14, %v4293_v50  ;;  %v4390_v21 = vadd.f32 %v4389_v9, %v4308_v32  ;;  %v4188_v38 = vadd.f32 %v4187_v62, %v13090_v43  ;;  %v4956_v55 = vld [vmem:[%s15442_s12 + $0xa0] sm:$0xff]  ;;  %v4989_v49 = vld [vmem:[%s15442_s12 + $0x1a8] sm:$0xff] }
 0x7fa   :  { %4358 = vadd.xlane.f32.xlu1 %v4357_v16  ;;  %v4204_v11 = vadd.f32 %v4203_v18, %v13068_v42  ;;  %v4420_v59 = vadd.f32 %v4419_v54, %v4418_v52  ;;  %v4309_v30 = vmul.f32 %v13108_v17, %v13108_v17  ;;  %v4235_v57 = vsel %vm1183_vm1, %v13095_v20, 0.0  ;;  %v4940_v16 = vld [vmem:[%s15442_s12 + $0x20] sm:$0xff]  ;;  %v4941_v50 = vld [vmem:[%s15442_s12 + $0x28] sm:$0xff]  ;;  %v4958_v54 = vld [vmem:[%s15442_s12 + $0xb0] sm:$0xff]  ;;  %16402 = vst [vmem:[#allocation57_spill] sm:$0xff] %v13469_v53 }
 0x7fb   :  { %v4236_v2 = vadd.f32 %v4235_v57, %v4234_v47  ;;  %v4325_v27 = vmul.f32 %v13111_v22, %v13111_v22  ;;  %v4421_v45 = vsel %vm1183_vm1, %v4324_v0, 0.0  ;;  %v8264_v48 = vpack.c.bf16 %v4957_v13, %v4956_v55  ;;  %v4972_v0 = vld [vmem:[%s15442_s12 + $0x120] sm:$0xff]  ;;  %v4973_v52 = vld [vmem:[%s15442_s12 + $0x128] sm:$0xff]  ;;  %v4942_v57 = vld [vmem:[%s15442_s12 + $0x30] sm:$0xff]  ;;  %16406 = vst [vmem:[#allocation71_spill] sm:$0xff] %v13489_v46 }
 0x7fc   :  { %4189 = vadd.xlane.f32.xlu0 %v4188_v38  ;;  %v4391_v32 = vadd.f32 %v4390_v21, %v4309_v30  ;;  %v4422_v37 = vadd.f32 %v4421_v45, %v4420_v59  ;;  %v4205_v35 = vadd.f32 %v4204_v11, %v13108_v17  ;;  %v4237_v9 = vsel %vm1183_vm1, %v13111_v22, 0.0  ;;  %v4990_v11 = vld [vmem:[%s15442_s12 + $0x1b0] sm:$0xff]  ;;  %v4991_v59 = vld [vmem:[%s15442_s12 + $0x1b8] sm:$0xff]  ;;  %v4961_v55 = vld [vmem:[%s15442_s12 + $0xc8] sm:$0xff]  ;;  %16434 = vst [vmem:[#allocation77_spill] sm:$0xff] %v13717_v28 }
 0x7fd   :  { %v8296_v18 = vpack.c.bf16 %v4989_v49, %v4988_v36  ;;  %v4238_v10 = vadd.f32 %v4237_v9, %v4236_v2  ;;  %v4423_v62 = vsel %vm1183_vm1, %v4325_v27, 0.0  ;;  %8265 = vmatprep.subr.bf16.mxu0 %v8264_v48  ;;  %v8266_v47 = vpack.c.bf16 %v4941_v50, %v4940_v16  ;;  %v4943_v2 = vld [vmem:[%s15442_s12 + $0x38] sm:$0xff]  ;;  %v4974_v27 = vld [vmem:[%s15442_s12 + $0x130] sm:$0xff]  ;;  %v4993_v48 = vld [vmem:[%s15442_s12 + $0x1c8] sm:$0xff]  ;;  %16436 = vst [vmem:[#allocation75_spill] sm:$0xff] %v13727_v29 }
 0x7fe   :  { %4375 = vadd.xlane.f32.xlu1 %v4374_v39  ;;  %v4424_v14 = vadd.f32 %v4423_v62, %v4422_v37  ;;  %v4959_v39 = vld [vmem:[%s15442_s12 + $0xb8] sm:$0xff]  ;;  %v8298_v21 = vpack.c.bf16 %v4973_v52, %v4972_v0  ;;  %v8300_v30 = vpack.c.bf16 %v4991_v59, %v4990_v11  ;;  %v8270_v45 = vpack.c.bf16 %v4943_v2, %v4942_v57  ;;  %v4960_v37 = vld [vmem:[%s15442_s12 + $0xc0] sm:$0xff]  ;;  %v4962_v16 = vld [vmem:[%s15442_s12 + $0xd0] sm:$0xff] }
 0x7ff   :  { %8297 = vmatprep.subr.bf16.mxu1 %v8296_v18  ;;  %v8268_v38 = vpack.c.bf16 %v4959_v39, %v4958_v54  ;;  %8267 = vmatpush3.bf16.msra.mxu0 %v8266_v47  ;;  %v8272_v36 = vpack.c.bf16 %v4961_v55, %v4960_v37  ;;  %v4944_v9 = vld [vmem:[%s15442_s12 + $0x40] sm:$0xff]  ;;  %v4945_v18 = vld [vmem:[%s15442_s12 + $0x48] sm:$0xff]  ;;  %v4963_v50 = vld [vmem:[%s15442_s12 + $0xd8] sm:$0xff]  ;;  %16438 = vst [vmem:[#allocation82_spill] sm:$0xff] %v13750_v4 }
 0x800   :  { %4206 = vadd.xlane.f32.xlu0 %v4205_v35  ;;  %8299 = vmatpush3.bf16.msra.mxu1 %v8298_v21  ;;  %v4992_v35 = vld [vmem:[%s15442_s12 + $0x1c0] sm:$0xff]  ;;  %v8274_v62 = vpack.c.bf16 %v4945_v18, %v4944_v9  ;;  %v8276_v47 = vpack.c.bf16 %v4963_v50, %v4962_v16  ;;  %v4994_v52 = vld [vmem:[%s15442_s12 + $0x1d0] sm:$0xff]  ;;  %v4995_v54 = vld [vmem:[%s15442_s12 + $0x1d8] sm:$0xff] }
 0x801   :  { %8269 = vmatprep.subr.bf16.mxu0 %v8268_v38  ;;  %8301 = vmatprep.subr.bf16.mxu1 %v8300_v30  ;;  %v8304_v49 = vpack.c.bf16 %v4993_v48, %v4992_v35  ;;  %v8308_v39 = vpack.c.bf16 %v4995_v54, %v4994_v52  ;;  %v4946_v21 = vld [vmem:[%s15442_s12 + $0x50] sm:$0xff]  ;;  %v4947_v38 = vld [vmem:[%s15442_s12 + $0x58] sm:$0xff]  ;;  %v4964_v57 = vld [vmem:[%s15442_s12 + $0xe0] sm:$0xff] }
 0x802   :  { %4392 = vadd.xlane.f32.xlu1 %v4391_v32  ;;  %v4975_v32 = vld [vmem:[%s15442_s12 + $0x138] sm:$0xff]  ;;  %v4978_v11 = vld [vmem:[%s15442_s12 + $0x150] sm:$0xff]  ;;  %v8278_v59 = vpack.c.bf16 %v4947_v38, %v4946_v21  ;;  %v4965_v2 = vld [vmem:[%s15442_s12 + $0xe8] sm:$0xff] }
 0x803   :  { %v8302_v13 = vpack.c.bf16 %v4975_v32, %v4974_v27  ;;  %8271 = vmatpush3.bf16.msra.mxu0 %v8270_v45  ;;  %v4979_v30 = vld [vmem:[%s15442_s12 + $0x158] sm:$0xff]  ;;  %v8280_v45 = vpack.c.bf16 %v4965_v2, %v4964_v57  ;;  %v4996_v32 = vld [vmem:[%s15442_s12 + $0x1e0] sm:$0xff]  ;;  %v4997_v37 = vld [vmem:[%s15442_s12 + $0x1e8] sm:$0xff] }
 0x804   :  { %4239 = vadd.xlane.f32.xlu0 %v4238_v10  ;;  %8273 = vmatprep.subr.bf16.mxu0 %v8272_v36  ;;  %v4976_v10 = vld [vmem:[%s15442_s12 + $0x140] sm:$0xff]  ;;  %v8310_v27 = vpack.c.bf16 %v4979_v30, %v4978_v11  ;;  %v4949_v36 = vld [vmem:[%s15442_s12 + $0x68] sm:$0xff]  ;;  %v4966_v18 = vld [vmem:[%s15442_s12 + $0xf0] sm:$0xff] }
 0x805   :  { %8303 = vmatpush3.bf16.msra.mxu1 %v8302_v13  ;;  %v4948_v55 = vld [vmem:[%s15442_s12 + $0x60] sm:$0xff]  ;;  %v8312_v13 = vpack.c.bf16 %v4997_v37, %v4996_v32  ;;  %v4981_v48 = vld [vmem:[%s15442_s12 + $0x168] sm:$0xff]  ;;  %v4999_v16 = vld [vmem:[%s15442_s12 + $0x1f8] sm:$0xff] }
 0x806   :  { %4425 = vadd.xlane.f32.xlu1 %v4424_v14  ;;  %8305 = vmatprep.subr.bf16.mxu1 %v8304_v49  ;;  %v4977_v14 = vld [vmem:[%s15442_s12 + $0x148] sm:$0xff]  ;;  %v4980_v35 = vld [vmem:[%s15442_s12 + $0x160] sm:$0xff]  ;;  %v8282_v49 = vpack.c.bf16 %v4949_v36, %v4948_v55  ;;  %v4950_v50 = vld [vmem:[%s15442_s12 + $0x70] sm:$0xff] }
 0x807   :  { %v8306_v0 = vpack.c.bf16 %v4977_v14, %v4976_v10  ;;  %8275 = vmatpush3.bf16.msra.mxu0 %v8274_v62  ;;  %v8314_v9 = vpack.c.bf16 %v4981_v48, %v4980_v35  ;;  %v4967_v10 = vld [vmem:[%s15442_s12 + $0xf8] sm:$0xff]  ;;  %v4998_v62 = vld [vmem:[%s15442_s12 + $0x1f0] sm:$0xff]  ;;  %v5016_v21 = vld [vmem:[%s15442_s12 + $0x280] sm:$0xff] }
 0x808   :  { %8277 = vmatprep.subr.bf16.mxu0 %v8276_v47  ;;  %v8284_v14 = vpack.c.bf16 %v4967_v10, %v4966_v18  ;;  %v8316_v47 = vpack.c.bf16 %v4999_v16, %v4998_v62  ;;  %v4982_v52 = vld [vmem:[%s15442_s12 + $0x170] sm:$0xff]  ;;  %v4983_v54 = vld [vmem:[%s15442_s12 + $0x178] sm:$0xff]  ;;  %v5017_v38 = vld [vmem:[%s15442_s12 + $0x288] sm:$0xff] }
 0x809   :  { %8307 = vmatpush3.bf16.msra.mxu1 %v8306_v0  ;;  %v4951_v0 = vld [vmem:[%s15442_s12 + $0x78] sm:$0xff]  ;;  %v8318_v11 = vpack.c.bf16 %v4983_v54, %v4982_v52  ;;  %v5048_v30 = vld [vmem:[%s15442_s12 + $0x380] sm:$0xff]  ;;  %v5049_v57 = vld [vmem:[%s15442_s12 + $0x388] sm:$0xff] }
 0x80a   :  { %8309 = vmatprep.subr.bf16.mxu1 %v8308_v39  ;;  %v8286_v39 = vpack.c.bf16 %v4951_v0, %v4950_v50  ;;  %v8352_v2 = vpack.c.bf16 %v5049_v57, %v5048_v30  ;;  %v13300_v32 = vld [vmem:[%s15442_s12 + $0x200] sm:$0xff]  ;;  %v13305_v37 = vld [vmem:[%s15442_s12 + $0x208] sm:$0xff]  ;;  %v13320_v36 = vld [vmem:[%s15442_s12 + $0x290] sm:$0xff] }
 0x80b   :  { %8279 = vmatpush3.bf16.msra.mxu0 %v8278_v59  ;;  %v8320_v59 = vpack.c.bf16 %v5017_v38, %v5016_v21  ;;  %16376 = vst [vmem:[#allocation16_spill] sm:$0xff] %v13300_v32  ;;  %16377 = vst [vmem:[#allocation144_spill] sm:$0xff] %v13305_v37  ;;  %v13310_v55 = vld [vmem:[%s15442_s12 + $0x300] sm:$0xff]  ;;  %v13325_v35 = vld [vmem:[%s15442_s12 + $0x298] sm:$0xff] }
 0x80c   :  { %8281 = vmatprep.subr.bf16.mxu0 %v8280_v45  ;;  %v13295_v45 = vld [vmem:[%s15441_s11] sm:$0xff]  ;;  %16378 = vst [vmem:[#allocation18_spill] sm:$0xff] %v13310_v55  ;;  %v13330_v48 = vld [vmem:[%s15442_s12 + $0x390] sm:$0xff]  ;;  %v13345_v18 = vld [vmem:[%s15442_s12 + $0x218] sm:$0xff] }
 0x80d   :  { %8311 = vmatpush3.bf16.msra.mxu1 %v8310_v27  ;;  %v13290_v27 = vld [vmem:[%s15440_s10] sm:$0xff]  ;;  %16381 = vst [vmem:[#allocation23_spill] sm:$0xff] %v13345_v18  ;;  %v13350_v10 = vld [vmem:[%s15442_s12 + $0x310] sm:$0xff]  ;;  %v13355_v62 = vld [vmem:[%s15442_s12 + $0x318] sm:$0xff]  ;;  %v13437_v25 = vrot.slane %v13295_v45, %v16301_v61  ;;  %v13441_v22 = vrot.slane %v13295_v45, %v16303_v7  ;;  %v13449_v42 = vrot.slane %v13295_v45, %v16300_v41 }
 0x80e   :  { %8313 = vmatprep.subr.bf16.mxu1 %v8312_v13  ;;  %v13315_v13 = vld [vmem:[%s15442_s12 + $0x308] sm:$0xff]  ;;  %16382 = vst [vmem:[#allocation20_spill] sm:$0xff] %v13350_v10  ;;  %16383 = vst [vmem:[#allocation21_spill] sm:$0xff] %v13355_v62  ;;  %v13370_v50 = vld [vmem:[%s15442_s12 + $0x3a0] sm:$0xff]  ;;  %v13399_v21 = vrot.slane %v13290_v27, %v16301_v61  ;;  %v13403_v38 = vrot.slane %v13290_v27, %v16303_v7  ;;  %v13445_v1 = vrot.slane %v13290_v27, %v16300_v41 }
 0x80f   :  { %8283 = vmatpush3.bf16.msra.mxu0 %v8282_v49  ;;  %16379 = vst [vmem:[#allocation22_spill] sm:$0xff] %v13315_v13  ;;  %v13335_v49 = vld [vmem:[%s15442_s12 + $0x398] sm:$0xff]  ;;  %v13365_v16 = vld [vmem:[%s15442_s12 + $0x2a8] sm:$0xff]  ;;  %16386 = vst [vmem:[#allocation24_spill] sm:$0xff] %v13370_v50  ;;  %v13493_v5 = vrot.slane %v13290_v27, %v16302_v60  ;;  %v13497_v19 = vrot.slane %v13295_v45, %v16302_v60  ;;  %v13660_v15 = vrot.slane %v13295_v45, %v16304_v3 }
 0x810   :  { %8285 = vmatprep.subr.bf16.mxu0 %v8284_v14  ;;  %v13360_v14 = vld [vmem:[%s15442_s12 + $0x2a0] sm:$0xff]  ;;  %16385 = vst [vmem:[#allocation27_spill] sm:$0xff] %v13365_v16  ;;  %v13375_v0 = vld [vmem:[%s15442_s12 + $0x3a8] sm:$0xff]  ;;  %v13418_v30 = vld [vmem:[%s15442_s12 + $0x3b0] sm:$0xff] }
 0x811   :  { %8315 = vmatpush3.bf16.msra.mxu1 %v8314_v9  ;;  %v13340_v9 = vld [vmem:[%s15442_s12 + $0x210] sm:$0xff]  ;;  %16384 = vst [vmem:[#allocation26_spill] sm:$0xff] %v13360_v14  ;;  %16387 = vst [vmem:[#allocation145_spill] sm:$0xff] %v13375_v0  ;;  %v13385_v52 = vld [vmem:[%s15442_s12 + $0x228] sm:$0xff] }
 0x812   :  { %8317 = vmatprep.subr.bf16.mxu1 %v8316_v47  ;;  %16380 = vst [vmem:[#allocation146_spill] sm:$0xff] %v13340_v9  ;;  %v13380_v47 = vld [vmem:[%s15442_s12 + $0x220] sm:$0xff]  ;;  %16389 = vst [vmem:[#allocation29_spill] sm:$0xff] %v13385_v52  ;;  %v13423_v57 = vld [vmem:[%s15442_s12 + $0x3b8] sm:$0xff] }
 0x813   :  { %8287 = vmatpush3.bf16.msra.mxu0 %v8286_v39  ;;  %16388 = vst [vmem:[#allocation25_spill] sm:$0xff] %v13380_v47  ;;  %v13390_v54 = vld [vmem:[%s15442_s12 + $0x320] sm:$0xff]  ;;  %v13395_v39 = vld [vmem:[%s15442_s12 + $0x328] sm:$0xff]  ;;  %16394 = vst [vmem:[#allocation58_spill] sm:$0xff] %v13418_v30 }
 0x814   :  { %8321 = vmatprep.subr.bf16.mxu0 %v8320_v59  ;;  %16390 = vst [vmem:[#allocation149_spill] sm:$0xff] %v13390_v54  ;;  %16391 = vst [vmem:[#allocation50_spill] sm:$0xff] %v13395_v39  ;;  %v13413_v59 = vld [vmem:[%s15442_s12 + $0x2b8] sm:$0xff]  ;;  %v13479_v43 = vld [vmem:[%s15442_s12 + $0x3c8] sm:$0xff] }
 0x815   :  { %8319 = vmatpush3.bf16.msra.mxu1 %v8318_v11  ;;  %v13408_v11 = vld [vmem:[%s15442_s12 + $0x2b0] sm:$0xff]  ;;  %16393 = vst [vmem:[#allocation55_spill] sm:$0xff] %v13413_v59  ;;  %16395 = vst [vmem:[#allocation53_spill] sm:$0xff] %v13423_v57  ;;  %v13433_v20 = vld [vmem:[%s15442_s12 + $0x238] sm:$0xff] }
 0x816   :  { %8353 = vmatprep.subr.bf16.mxu1 %v8352_v2  ;;  %16392 = vst [vmem:[#allocation52_spill] sm:$0xff] %v13408_v11  ;;  %v13428_v2 = vld [vmem:[%s15442_s12 + $0x230] sm:$0xff]  ;;  %16397 = vst [vmem:[#allocation59_spill] sm:$0xff] %v13433_v20  ;;  %v13459_v17 = vld [vmem:[%s15442_s12 + $0x338] sm:$0xff] }
 0x817   :  { %16396 = vst [vmem:[#allocation56_spill] sm:$0xff] %v13428_v2  ;;  %16398 = vst [vmem:[#allocation31_spill] sm:$0xff] %v13449_v42  ;;  %v13506_v41 = vld [vmem:[%s15442_s12 + $0x340] sm:$0xff]  ;;  %v13511_v42 = vld [vmem:[%s15442_s12 + $0x348] sm:$0xff]  ;;  %v13656_v2 = vrot.slane %v13290_v27, %v16304_v3 }
 0x818   :  { %16400 = vst [vmem:[#allocation147_spill] sm:$0xff] %v13459_v17  ;;  %16404 = vst [vmem:[#allocation148_spill] sm:$0xff] %v13479_v43  ;;  %v13516_v60 = vld [vmem:[%s15442_s12 + $0x2d0] sm:$0xff]  ;;  %v13529_v32 = vld [vmem:[%s15442_s12 + $0x2d8] sm:$0xff] }
 0x819   :  { %16407 = vst [vmem:[#allocation76_spill] sm:$0xff] %v13506_v41  ;;  %16408 = vst [vmem:[#allocation151_spill] sm:$0xff] %v13511_v42  ;;  %v13534_v37 = vld [vmem:[%s15442_s12 + $0x3d0] sm:$0xff]  ;;  %v13557_v18 = vld [vmem:[%s15442_s12 + $0x258] sm:$0xff] }
 0x81a   :  { %16409 = vst [vmem:[#allocation152_spill] sm:$0xff] %v13516_v60  ;;  %16410 = vst [vmem:[#allocation66_spill] sm:$0xff] %v13529_v32  ;;  %v13552_v9 = vld [vmem:[%s15442_s12 + $0x250] sm:$0xff]  ;;  %v13567_v10 = vld [vmem:[%s15442_s12 + $0x358] sm:$0xff]  ;;  %v13683_v32 = vrot.slane %v13290_v27, %v16305_v51 }
 0x81b   :  { %16411 = vst [vmem:[#allocation61_spill] sm:$0xff] %v13534_v37  ;;  %v13562_v13 = vld [vmem:[%s15442_s12 + $0x350] sm:$0xff]  ;;  %v13572_v62 = vld [vmem:[%s15442_s12 + $0x2e0] sm:$0xff]  ;;  %v13577_v55 = vld [vmem:[%s15442_s12 + $0x2e8] sm:$0xff] }
 0x81c   :  { %16413 = vst [vmem:[#allocation67_spill] sm:$0xff] %v13572_v62  ;;  %16414 = vst [vmem:[#allocation69_spill] sm:$0xff] %v13577_v55  ;;  %v13582_v54 = vld [vmem:[%s15442_s12 + $0x3e0] sm:$0xff]  ;;  %v13587_v39 = vld [vmem:[%s15442_s12 + $0x3e8] sm:$0xff] }
 0x81d   :  { %16415 = vst [vmem:[#allocation65_spill] sm:$0xff] %v13582_v54  ;;  %16416 = vst [vmem:[#allocation68_spill] sm:$0xff] %v13587_v39  ;;  %v13600_v14 = vld [vmem:[%s15442_s12 + $0x260] sm:$0xff]  ;;  %v13605_v16 = vld [vmem:[%s15442_s12 + $0x268] sm:$0xff] }
 0x81e   :  { %16417 = vst [vmem:[#allocation93_spill] sm:$0xff] %v13600_v14  ;;  %16418 = vst [vmem:[#allocation94_spill] sm:$0xff] %v13605_v16  ;;  %v13615_v50 = vld [vmem:[%s15442_s12 + $0x368] sm:$0xff]  ;;  %v13620_v0 = vld [vmem:[%s15442_s12 + $0x2f0] sm:$0xff]  ;;  %v13808_v14 = vrot.slane %v13295_v45, %v16278_v56 }
 0x81f   :  { %16420 = vst [vmem:[#allocation95_spill] sm:$0xff] %v13615_v50  ;;  %16421 = vst [vmem:[#allocation13_spill] sm:$0xff] %v13620_v0  ;;  %v13625_v52 = vld [vmem:[%s15442_s12 + $0x2f8] sm:$0xff]  ;;  %v13638_v11 = vld [vmem:[%s15442_s12 + $0x3f0] sm:$0xff]  ;;  %v13804_v50 = vrot.slane %v13290_v27, %v16278_v56 }
 0x820   :  { %16422 = vst [vmem:[#allocation28_spill] sm:$0xff] %v13625_v52  ;;  %16423 = vst [vmem:[#allocation90_spill] sm:$0xff] %v13638_v11  ;;  %v13643_v59 = vld [vmem:[%s15442_s12 + $0x3f8] sm:$0xff]  ;;  %v13648_v20 = vld [vmem:[%s15442_s12 + $0x270] sm:$0xff] }
 0x821   :  { %16424 = vst [vmem:[#allocation92_spill] sm:$0xff] %v13643_v59  ;;  %16425 = vst [vmem:[#allocation91_spill] sm:$0xff] %v13648_v20  ;;  %v13665_v46 = vld [vmem:[%s15442_s12 + $0x278] sm:$0xff]  ;;  %v13670_v30 = vld [vmem:[%s15442_s12 + $0x370] sm:$0xff] }
 0x822   :  { %16426 = vst [vmem:[#allocation70_spill] sm:$0xff] %v13656_v2  ;;  %16427 = vst [vmem:[#allocation72_spill] sm:$0xff] %v13660_v15  ;;  %v13675_v57 = vld [vmem:[%s15442_s12 + $0x378] sm:$0xff]  ;;  %v13687_v15 = vrot.slane %v13295_v45, %v16305_v51  ;;  %v13692_v41 = vld [vmem:[%s15442_s12 + $0x480] sm:$0xff] }
 0x823   :  { %16428 = vst [vmem:[#allocation122_spill] sm:$0xff] %v13665_v46  ;;  %16429 = vst [vmem:[#allocation74_spill] sm:$0xff] %v13670_v30  ;;  %v13697_v42 = vld [vmem:[%s15442_s12 + $0x488] sm:$0xff]  ;;  %v13702_v3 = vld [vmem:[%s15442_s12 + $0x580] sm:$0xff]  ;;  %v13829_v46 = vrot.slane %v13290_v27, %v16280_v63 }
 0x824   :  { %16430 = vst [vmem:[#allocation79_spill] sm:$0xff] %v13675_v57  ;;  %16431 = vst [vmem:[#allocation73_spill] sm:$0xff] %v13683_v32  ;;  %v13707_v51 = vld [vmem:[%s15442_s12 + $0x588] sm:$0xff]  ;;  %v13712_v37 = vld [vmem:[%s15442_s12 + $0x400] sm:$0xff] }
 0x825   :  { %16432 = vst [vmem:[#allocation78_spill] sm:$0xff] %v13687_v15  ;;  %16433 = vst [vmem:[#allocation141_spill] sm:$0xff] %v13712_v37  ;;  %v13722_v15 = vld [vmem:[%s15442_s12 + $0x500] sm:$0xff]  ;;  %v13740_v17 = vld [vmem:[%s15442_s12 + $0x490] sm:$0xff] }
 0x826   :  { %16435 = vst [vmem:[#allocation83_spill] sm:$0xff] %v13722_v15  ;;  %16437 = vst [vmem:[#allocation81_spill] sm:$0xff] %v13740_v17  ;;  %v13745_v2 = vld [vmem:[%s15442_s12 + $0x498] sm:$0xff]  ;;  %v13766_v62 = vld [vmem:[%s15442_s12 + $0x410] sm:$0xff] }
 0x827   :  { %v13755_v53 = vld [vmem:[%s15442_s12 + $0x598] sm:$0xff]  ;;  %v13786_v39 = vld [vmem:[%s15442_s12 + $0x4a0] sm:$0xff]  ;;  %v13791_v32 = vld [vmem:[%s15442_s12 + $0x4a8] sm:$0xff]  ;;  %16444 = vst [vmem:[#allocation84_spill] sm:$0xff] %v13804_v50 }
 0x828   :  { %16439 = vst [vmem:[#allocation87_spill] sm:$0xff] %v13755_v53  ;;  %v13771_v55 = vld [vmem:[%s15442_s12 + $0x418] sm:$0xff]  ;;  %16441 = vst [vmem:[#allocation85_spill] sm:$0xff] %v13786_v39  ;;  %v13796_v0 = vld [vmem:[%s15442_s12 + $0x5a0] sm:$0xff] }
 0x829   :  { %v13781_v54 = vld [vmem:[%s15442_s12 + $0x518] sm:$0xff]  ;;  %16442 = vst [vmem:[#allocation86_spill] sm:$0xff] %v13791_v32  ;;  %16443 = vst [vmem:[#allocation89_spill] sm:$0xff] %v13796_v0  ;;  %v13813_v16 = vld [vmem:[%s15442_s12 + $0x5a8] sm:$0xff] }
 0x82a   :  { %16445 = vst [vmem:[#allocation88_spill] sm:$0xff] %v13808_v14  ;;  %16446 = vst [vmem:[#allocation153_spill] sm:$0xff] %v13813_v16  ;;  %v13818_v52 = vld [vmem:[%s15442_s12 + $0x420] sm:$0xff]  ;;  %v13833_v14 = vrot.slane %v13295_v45, %v16280_v63  ;;  %v13853_v27 = vld [vmem:[%s15442_s12 + $0x4b8] sm:$0xff] }
 0x82b   :  { %16447 = vst [vmem:[#allocation154_spill] sm:$0xff] %v13818_v52  ;;  %16449 = vst [vmem:[#allocation156_spill] sm:$0xff] %v13829_v46  ;;  %v13838_v11 = vld [vmem:[%s15442_s12 + $0x520] sm:$0xff]  ;;  %v13858_v45 = vld [vmem:[%s15442_s12 + $0x5b0] sm:$0xff] }
 0x82c   :  { %16450 = vst [vmem:[#allocation157_spill] sm:$0xff] %v13833_v14  ;;  %16452 = vst [vmem:[#allocation159_spill] sm:$0xff] %v13858_v45  ;;  %v13863_v56 = vld [vmem:[%s15442_s12 + $0x5b8] sm:$0xff]  ;;  %v13876_v46 = vld [vmem:[%s15442_s12 + $0x430] sm:$0xff] }
 0x82d   :  { %16453 = vst [vmem:[#allocation160_spill] sm:$0xff] %v13863_v56  ;;  %16454 = vst [vmem:[#allocation161_spill] sm:$0xff] %v13876_v46  ;;  %v13881_v50 = vld [vmem:[%s15442_s12 + $0x438] sm:$0xff]  ;;  %v13886_v57 = vld [vmem:[%s15442_s12 + $0x530] sm:$0xff] }
 0x82e   :  { %16455 = vst [vmem:[#allocation162_spill] sm:$0xff] %v13881_v50  ;;  %16456 = vst [vmem:[#allocation163_spill] sm:$0xff] %v13886_v57  ;;  %v13897_v29 = vld [vmem:[%s15442_s12 + $0x538] sm:$0xff]  ;;  %v13902_v28 = vld [vmem:[%s15442_s12 + $0x4c0] sm:$0xff] }
 0x82f   :  { %16458 = vst [vmem:[#allocation165_spill] sm:$0xff] %v13897_v29  ;;  %16459 = vst [vmem:[#allocation166_spill] sm:$0xff] %v13902_v28  ;;  %v13920_v53 = vld [vmem:[%s15442_s12 + $0x5c0] sm:$0xff]  ;;  %v13925_v17 = vld [vmem:[%s15442_s12 + $0x5c8] sm:$0xff] }
 0x830   :  { %16461 = vst [vmem:[#allocation168_spill] sm:$0xff] %v13920_v53  ;;  %16462 = vst [vmem:[#allocation169_spill] sm:$0xff] %v13925_v17  ;;  %v13930_v15 = vld [vmem:[%s15442_s12 + $0x440] sm:$0xff]  ;;  %v13939_v0 = vld [vmem:[%s15442_s12 + $0x448] sm:$0xff] }
 0x831   :  { %16463 = vst [vmem:[#allocation170_spill] sm:$0xff] %v13930_v15  ;;  %16464 = vst [vmem:[#allocation171_spill] sm:$0xff] %v13939_v0  ;;  %v13944_v16 = vld [vmem:[%s15440_s10 + $0x8] sm:$0xff]  ;;  %v13962_v32 = vld [vmem:[%s15442_s12 + $0x540] sm:$0xff] }
 0x832   :  { %16465 = vst [vmem:[#allocation172_spill] sm:$0xff] %v13962_v32  ;;  %v13983_v50 = vld [vmem:[%s15442_s12 + $0x4d8] sm:$0xff]  ;;  %v13988_v56 = vld [vmem:[%s15442_s12 + $0x5d0] sm:$0xff]  ;;  %v14001_v46 = vrot.slane %v13944_v16, %v16301_v61  ;;  %v14011_v29 = vrot.slane %v13944_v16, %v16303_v7 }
 0x833   :  { %16469 = vst [vmem:[#allocation176_spill] sm:$0xff] %v13983_v50  ;;  %16470 = vst [vmem:[#allocation177_spill] sm:$0xff] %v13988_v56  ;;  %v16480_v17 = vld [vmem:[#allocation31_spill] sm:$0xff] }
 0x834   :  { %16472 = vst [vmem:[#allocation179_spill] sm:$0xff] %v14001_v46  ;;  %16474 = vst [vmem:[#allocation181_spill] sm:$0xff] %v14011_v29 }
 0x87c   :  { %v4156_v12 = vpop.xlane.xlu1 %4155 }
 0x87d   :  { %v13589_v47 = vmul.f32 0.00048828125, %v4156_v12  ;;  %v13610_v12 = vld [vmem:[%s15442_s12 + $0x360] sm:$0xff] }
 0x87e   :  { %16419 = vst [vmem:[#allocation103_spill] sm:$0xff] %v13610_v12  ;;  %v13823_v12 = vld [vmem:[%s15442_s12 + $0x428] sm:$0xff] }
 0x87f   :  { %v4432_v60 = vmul.f32 %v13589_v47, %v13589_v47  ;;  %16448 = vst [vmem:[#allocation155_spill] sm:$0xff] %v13823_v12  ;;  %v4443_v53 = vsub.f32 %v12572_v26, %v13589_v47 }
 0x881   :  { %v4342_v43 = vpop.xlane.xlu0 %4341 }
 0x882   :  { %v4427_v34 = vmul.f32 0.00048828125, %v4342_v43  ;;  %v13776_v43 = vld [vmem:[%s15442_s12 + $0x510] sm:$0xff] }
 0x883   :  { %16440 = vst [vmem:[#allocation80_spill] sm:$0xff] %v13776_v43  ;;  %v13967_v43 = vld [vmem:[%s15442_s12 + $0x548] sm:$0xff] }
 0x884   :  { %v4437_v20 = vsub.f32 %v4427_v34, %v4432_v60  ;;  %v13843_v60 = vld [vmem:[%s15442_s12 + $0x528] sm:$0xff]  ;;  %v13848_v34 = vld [vmem:[%s15442_s12 + $0x4b0] sm:$0xff]  ;;  %16466 = vst [vmem:[#allocation173_spill] sm:$0xff] %v13967_v43 }
 0x885   :  { %16451 = vst [vmem:[#allocation158_spill] sm:$0xff] %v13848_v34  ;;  %v4173_v63 = vpop.xlane.xlu0 %4172  ;;  %v16479_v43 = vld [vmem:[#allocation105_spill] sm:$0xff]  ;;  %v16490_v34 = vld [vmem:[#allocation18_spill] sm:$0xff] }
 0x886   :  { %v4522_v30 = vadd.f32 1e-05, %v4437_v20  ;;  %v13888_v14 = vmul.f32 0.00048828125, %v4173_v63  ;;  %v13907_v63 = vld [vmem:[%s15442_s12 + $0x4c8] sm:$0xff]  ;;  %v13972_v20 = vld [vmem:[%s15442_s12 + $0x4d0] sm:$0xff] }
 0x887   :  { %v4359_v37 = vpop.xlane.xlu1 %4358  ;;  %16460 = vst [vmem:[#allocation167_spill] sm:$0xff] %v13907_v63  ;;  %16467 = vst [vmem:[#allocation174_spill] sm:$0xff] %v13972_v20 }
 0x888   :  { %16457 = vst [vmem:[#allocation164_spill] sm:$0xff] %v13888_v14  ;;  %8602 = vrsqrt.f32 %v4522_v30  ;;  %v4433_v59 = vmul.f32 %v13888_v14, %v13888_v14  ;;  %v4428_v4 = vmul.f32 0.00048828125, %v4359_v37  ;;  %v13949_v30 = vld [vmem:[%s15441_s11 + $0x8] sm:$0xff] }
 0x889   :  { %v4190_v39 = vpop.xlane.xlu0 %4189  ;;  %v14005_v12 = vrot.slane %v13949_v30, %v16301_v61  ;;  %v14017_v15 = vrot.slane %v13949_v30, %v16303_v7  ;;  %v4442_v7 = vsub.f32 %v12566_v44, %v13589_v47  ;;  %v4444_v61 = vsub.f32 %v12588_v58, %v13589_v47 }
 0x88a   :  { %v4438_v37 = vsub.f32 %v4428_v4, %v4433_v59  ;;  %v13974_v52 = vmul.f32 0.00048828125, %v4190_v39  ;;  %v13993_v4 = vld [vmem:[%s15442_s12 + $0x5d8] sm:$0xff]  ;;  %v4445_v59 = vsub.f32 %v12611_v8, %v13589_v47  ;;  %v4459_v8 = vsub.f32 %v12591_v40, %v13888_v14 }
 0x88b   :  { %v4376_v45 = vpop.xlane.xlu1 %4375  ;;  %16471 = vst [vmem:[#allocation178_spill] sm:$0xff] %v13993_v4  ;;  %16473 = vst [vmem:[#allocation180_spill] sm:$0xff] %v14005_v12  ;;  %v4461_v44 = vsub.f32 %v12641_v23, %v13888_v14  ;;  %v4458_v58 = vsub.f32 %v12585_v31, %v13888_v14  ;;  %v16476_v4 = vld [vmem:[#allocation96_spill] sm:$0xff] }
 0x88c   :  { %16468 = vst [vmem:[#allocation175_spill] sm:$0xff] %v13974_v52  ;;  %v4523_v28 = vadd.f32 1e-05, %v4438_v37  ;;  %v4434_v63 = vmul.f32 %v13974_v52, %v13974_v52  ;;  %v4429_v57 = vmul.f32 0.00048828125, %v4376_v45  ;;  %16475 = vst [vmem:[#allocation182_spill] sm:$0xff] %v14017_v15  ;;  %v4475_v20 = vsub.f32 %v16476_v4, %v13974_v52 }
 0x88d   :  { %v4207_v39 = vpop.xlane.xlu0 %4206  ;;  %v4476_v15 = vsub.f32 %v16479_v43, %v13974_v52 }
 0x88e   :  { %8604 = vrsqrt.f32 %v4523_v28  ;;  %v4439_v45 = vsub.f32 %v4429_v57, %v4434_v63  ;;  %v14023_v0 = vmul.f32 0.00048828125, %v4207_v39 }
 0x88f   :  { %v4393_v12 = vpop.xlane.xlu1 %4392 }
 0x890   :  { %v4524_v28 = vadd.f32 1e-05, %v4439_v45  ;;  %v4435_v57 = vmul.f32 %v14023_v0, %v14023_v0  ;;  %v4430_v63 = vmul.f32 0.00048828125, %v4393_v12  ;;  %v4460_v45 = vsub.f32 %v12618_v6, %v13888_v14 }
 0x891   :  { %v4240_v39 = vpop.xlane.xlu0 %4239 }
 0x892   :  { %v14047_v37 = vpop.eup %8602  ;;  %8606 = vrsqrt.f32 %v4524_v28  ;;  %v4440_v12 = vsub.f32 %v4430_v63, %v4435_v57  ;;  %v14049_v56 = vmul.f32 0.00048828125, %v4240_v39  ;;  %v16477_v57 = vld [vmem:[#allocation99_spill] sm:$0xff] }
 0x893   :  { %v4426_v26 = vpop.xlane.xlu1 %4425  ;;  %v4533_v50 = vmul.f32 %v14047_v37, %v4443_v53  ;;  %v4535_v23 = vmul.f32 %v14047_v37, %v4445_v59  ;;  %v4532_v31 = vmul.f32 %v14047_v37, %v4442_v7  ;;  %v4534_v28 = vmul.f32 %v14047_v37, %v4444_v61  ;;  %v16478_v53 = vld [vmem:[#allocation97_spill] sm:$0xff] }
 0x894   :  { %v4431_v40 = vmul.f32 0.00048828125, %v4426_v26  ;;  %v4525_v32 = vadd.f32 1e-05, %v4440_v12  ;;  %v4436_v6 = vmul.f32 %v14049_v56, %v14049_v56  ;;  %v4477_v63 = vsub.f32 %v16477_v57, %v13974_v52 }
 0x895   :  { %v4695_v39 = vmul.f32 %v13399_v21, %v4533_v50  ;;  %v4697_v4 = vmul.f32 %v13403_v38, %v4535_v23  ;;  %v4694_v26 = vmul.f32 %v13445_v1, %v4532_v31  ;;  %v4474_v59 = vsub.f32 %v16478_v53, %v13974_v52  ;;  %v16481_v23 = vld [vmem:[#allocation100_spill] sm:$0xff] }
 0x896   :  { %8608 = vrsqrt.f32 %v4525_v32  ;;  %v4441_v7 = vsub.f32 %v4431_v40, %v4436_v6  ;;  %v4696_v12 = vmul.f32 %v13493_v5, %v4534_v28  ;;  %v4491_v29 = vsub.f32 %v16481_v23, %v14023_v0  ;;  %v16482_v40 = vld [vmem:[#allocation104_spill] sm:$0xff]  ;;  %v16483_v28 = vld [vmem:[#allocation98_spill] sm:$0xff] }
 0x897   :  { %v4857_v61 = vadd.f32 %v13437_v25, %v4695_v39  ;;  %v4859_v57 = vadd.f32 %v13441_v22, %v4697_v4  ;;  %v4856_v50 = vadd.f32 %v16480_v17, %v4694_v26  ;;  %v4493_v6 = vsub.f32 %v16482_v40, %v14023_v0  ;;  %v16485_v23 = vld [vmem:[#allocation106_spill] sm:$0xff] }
 0x898   :  { %v14074_v31 = vpop.eup %8604  ;;  %v4526_v46 = vadd.f32 1e-05, %v4441_v7  ;;  %v4858_v32 = vadd.f32 %v13497_v19, %v4696_v12  ;;  %v4490_v43 = vsub.f32 %v16483_v28, %v14023_v0  ;;  %v16484_v7 = vld [vmem:[#allocation102_spill] sm:$0xff]  ;;  %v4507_v40 = vsub.f32 %v16485_v23, %v14049_v56  ;;  %v16486_v28 = vld [vmem:[#allocation144_spill] sm:$0xff] }
 0x899   :  { %5263 = vmatprep.mubr.f32.mxu0 %v4857_v61  ;;  %5353 = vmatprep.mubr.f32.mxu1 %v4859_v57  ;;  %v4549_v39 = vmul.f32 %v14074_v31, %v4459_v8  ;;  %v4551_v4 = vmul.f32 %v14074_v31, %v4461_v44  ;;  %v4548_v26 = vmul.f32 %v14074_v31, %v4458_v58  ;;  %v16487_v61 = vld [vmem:[#allocation16_spill] sm:$0xff]  ;;  %v16489_v8 = vld [vmem:[#allocation22_spill] sm:$0xff] }
 0x89a   :  { %8610 = vrsqrt.f32 %v4526_v46  ;;  %5264 = vmatmul.mubr.f32.vlgmr.msra.gmra.mrb[130].mxu0 %v4856_v50  ;;  %5354 = vmatmul.mubr.f32.vlgmr.msra.gmra.mrb[130].mxu1 %v4858_v32  ;;  %v4550_v53 = vmul.f32 %v14074_v31, %v4460_v45  ;;  %v4492_v12 = vsub.f32 %v16484_v7, %v14023_v0  ;;  %v16488_v57 = vpack.c.bf16 %v16486_v28, %v16487_v61 }
 0x89b   :  { %v16491_v44 = vpack.c.bf16 %v16489_v8, %v16490_v34  ;;  %v4711_v46 = vmul.f32 %v13399_v21, %v4549_v39  ;;  %v4713_v58 = vmul.f32 %v13403_v38, %v4551_v4  ;;  %v4710_v45 = vmul.f32 %v13445_v1, %v4548_v26  ;;  %v16494_v34 = vld [vmem:[#allocation117_spill] sm:$0xff]  ;;  %v16496_v8 = vld [vmem:[#allocation23_spill] sm:$0xff] }
 0x89c   :  { %8323 = vmatpush3.bf16.msra.mxu0 %v16488_v57  ;;  %v14098_v50 = vpop.eup %8606  ;;  %v16492_v32 = vpack.c.bf16 %v13325_v35, %v13320_v36  ;;  %v16493_v7 = vpack.c.bf16 %v13335_v49, %v13330_v48  ;;  %v4712_v23 = vmul.f32 %v13493_v5, %v4550_v53  ;;  %v4509_v28 = vsub.f32 %v16494_v34, %v14049_v56  ;;  %v16495_v39 = vld [vmem:[#allocation101_spill] sm:$0xff] }
 0x89d   :  { %8355 = vmatpush3.bf16.msra.mxu1 %v16491_v44  ;;  %v4506_v4 = vsub.f32 %v16495_v39, %v14049_v56  ;;  %v4873_v26 = vadd.f32 %v13437_v25, %v4711_v46  ;;  %v4875_v61 = vadd.f32 %v13441_v22, %v4713_v58  ;;  %v4872_v57 = vadd.f32 %v16480_v17, %v4710_v45  ;;  %v16497_v44 = vld [vmem:[#allocation146_spill] sm:$0xff]  ;;  %v16500_v46 = vld [vmem:[#allocation20_spill] sm:$0xff] }
 0x89e   :  { %8325 = vmatprep.subr.bf16.mxu0 %v16492_v32  ;;  %8357 = vmatprep.subr.bf16.mxu1 %v16493_v7  ;;  %v4565_v36 = vmul.f32 %v14098_v50, %v4475_v20  ;;  %v4874_v35 = vadd.f32 %v13497_v19, %v4712_v23  ;;  %v4567_v48 = vmul.f32 %v14098_v50, %v4477_v63  ;;  %v16499_v7 = vld [vmem:[#allocation21_spill] sm:$0xff]  ;;  %v16502_v20 = vld [vmem:[#allocation108_spill] sm:$0xff] }
 0x89f   :  { %v4564_v49 = vmul.f32 %v14098_v50, %v4474_v59  ;;  %v4566_v53 = vmul.f32 %v14098_v50, %v4476_v15  ;;  %v16498_v32 = vpack.c.bf16 %v16496_v8, %v16497_v44  ;;  %v16501_v34 = vpack.c.bf16 %v16499_v7, %v16500_v46  ;;  %5268 = vmatprep.mubr.f32.mxu0 %v4873_v26  ;;  %v16505_v7 = vld [vmem:[#allocation26_spill] sm:$0xff]  ;;  %v16507_v26 = vld [vmem:[#allocation145_spill] sm:$0xff] }
 0x8a0   :  { %v4727_v58 = vmul.f32 %v13399_v21, %v4565_v36  ;;  %v4508_v45 = vsub.f32 %v16502_v20, %v14049_v56  ;;  %v16503_v63 = vsub.f32 %v12736_v24, %v13589_v47  ;;  %v14132_v23 = vpop.eup %8608  ;;  %5358 = vmatprep.mubr.f32.mxu1 %v4875_v61  ;;  %v4729_v15 = vmul.f32 %v13403_v38, %v4567_v48  ;;  %v16508_v61 = vld [vmem:[#allocation24_spill] sm:$0xff] }
 0x8a1   :  { %8327 = vmatpush3.bf16.msra.mxu0 %v16498_v32  ;;  %8359 = vmatpush3.bf16.msra.mxu1 %v16501_v34  ;;  %v4726_v39 = vmul.f32 %v13445_v1, %v4564_v49  ;;  %v4728_v8 = vmul.f32 %v13493_v5, %v4566_v53  ;;  %v4581_v44 = vmul.f32 %v14132_v23, %v4491_v29  ;;  %v16504_v32 = vld [vmem:[#allocation27_spill] sm:$0xff]  ;;  %v16511_v53 = vld [vmem:[#allocation25_spill] sm:$0xff]  ;;  %v16513_v29 = vld [vmem:[#allocation50_spill] sm:$0xff] }
 0x8a2   :  { %v4537_v59 = vmul.f32 %v14047_v37, %v16503_v63  ;;  %5269 = vmatmul.mubr.f32.gmra.mrb[132].mxu0 %v4872_v57  ;;  %5359 = vmatmul.mubr.f32.gmra.mrb[132].mxu1 %v4874_v35  ;;  %v4889_v36 = vadd.f32 %v13437_v25, %v4727_v58  ;;  %v4583_v24 = vmul.f32 %v14132_v23, %v4493_v6  ;;  %v16510_v35 = vld [vmem:[#allocation29_spill] sm:$0xff] }
 0x8a3   :  { %v16506_v46 = vpack.c.bf16 %v16504_v32, %v16505_v7  ;;  %v16509_v34 = vpack.c.bf16 %v16507_v26, %v16508_v61  ;;  %v4891_v48 = vadd.f32 %v13441_v22, %v4729_v15  ;;  %v4888_v49 = vadd.f32 %v16480_v17, %v4726_v39  ;;  %v16514_v6 = vld [vmem:[#allocation149_spill] sm:$0xff]  ;;  %v16517_v39 = vld [vmem:[#allocation70_spill] sm:$0xff] }
 0x8a4   :  { %v4890_v57 = vadd.f32 %v13497_v19, %v4728_v8  ;;  %v16512_v58 = vpack.c.bf16 %v16510_v35, %v16511_v53  ;;  %v16515_v20 = vpack.c.bf16 %v16513_v29, %v16514_v6  ;;  %v4743_v63 = vmul.f32 %v13399_v21, %v4581_v44  ;;  %5273 = vmatprep.mubr.f32.mxu0 %v4889_v36  ;;  %v16520_v36 = vld [vmem:[#allocation52_spill] sm:$0xff]  ;;  %v16523_v35 = vld [vmem:[#allocation58_spill] sm:$0xff]  ;;  %v16528_v6 = vld [vmem:[#allocation147_spill] sm:$0xff] }
 0x8a5   :  { %8329 = vmatprep.subr.bf16.mxu0 %v16506_v46  ;;  %8361 = vmatprep.subr.bf16.mxu1 %v16509_v34  ;;  %v4745_v32 = vmul.f32 %v13403_v38, %v4583_v24  ;;  %v4580_v7 = vmul.f32 %v14132_v23, %v4490_v43  ;;  %v14158_v46 = vpop.eup %8610  ;;  %v4582_v15 = vmul.f32 %v14132_v23, %v4492_v12  ;;  %v16519_v34 = vld [vmem:[#allocation55_spill] sm:$0xff]  ;;  %v16522_v12 = vld [vmem:[#allocation53_spill] sm:$0xff] }
 0x8a6   :  { %8331 = vmatpush3.bf16.msra.mxu0 %v16512_v58  ;;  %8363 = vmatpush3.bf16.msra.mxu1 %v16515_v20  ;;  %16516 = vst [vmem:[#allocation96_spill] sm:$0xff] %v14158_v46  ;;  %v4699_v8 = vmul.f32 %v16517_v39, %v4537_v59  ;;  %v16518_v26 = vsub.f32 %v12767_v33, %v13589_v47  ;;  %v16526_v58 = vld [vmem:[#allocation56_spill] sm:$0xff]  ;;  %v16529_v20 = vld [vmem:[#allocation62_spill] sm:$0xff] }
 0x8a7   :  { %5363 = vmatprep.mubr.f32.mxu1 %v4891_v48  ;;  %5274 = vmatmul.mubr.f32.gmra.mrb[134].mxu0 %v4888_v49  ;;  %v4905_v44 = vadd.f32 %v13437_v25, %v4743_v63  ;;  %v4907_v24 = vadd.f32 %v13441_v22, %v4745_v32  ;;  %v4742_v43 = vmul.f32 %v13445_v1, %v4580_v7 }
 0x8a8   :  { %v4539_v61 = vmul.f32 %v14047_v37, %v16518_v26  ;;  %5364 = vmatmul.mubr.f32.gmra.mrb[134].mxu1 %v4890_v57  ;;  %v16521_v48 = vpack.c.bf16 %v16519_v34, %v16520_v36  ;;  %v16524_v59 = vpack.c.bf16 %v16522_v12, %v16523_v35  ;;  %v4744_v33 = vmul.f32 %v13493_v5, %v4582_v15  ;;  %v16525_v57 = vld [vmem:[#allocation59_spill] sm:$0xff]  ;;  %v16531_v36 = vld [vmem:[#allocation57_spill] sm:$0xff]  ;;  %v14219_v35 = vld [vmem:[%s15442_s12 + $0x4e0] sm:$0xff] }
 0x8a9   :  { %v4597_v53 = vmul.f32 %v14158_v46, %v4507_v40  ;;  %v4599_v49 = vmul.f32 %v14158_v46, %v4509_v28  ;;  %v16527_v29 = vpack.c.bf16 %v16525_v57, %v16526_v58  ;;  %v16530_v63 = vpack.c.bf16 %v16528_v6, %v16529_v20  ;;  %v14190_v40 = vld [vmem:[%s15442_s12 + $0x450] sm:$0xff]  ;;  %v14195_v28 = vld [vmem:[%s15442_s12 + $0x458] sm:$0xff]  ;;  %5278 = vmatprep.mubr.f32.mxu0 %v4905_v44  ;;  %v16543_v20 = vld [vmem:[#allocation76_spill] sm:$0xff] }
 0x8aa   :  { %8333 = vmatprep.subr.bf16.mxu0 %v16521_v48  ;;  %8365 = vmatprep.subr.bf16.mxu1 %v16524_v59  ;;  %v4904_v32 = vadd.f32 %v16480_v17, %v4742_v43  ;;  %v4596_v7 = vmul.f32 %v14158_v46, %v4506_v4  ;;  %v4598_v26 = vmul.f32 %v14158_v46, %v4508_v45  ;;  %v14203_v45 = vld [vmem:[%s15442_s12 + $0x550] sm:$0xff]  ;;  %v14208_v34 = vld [vmem:[%s15442_s12 + $0x558] sm:$0xff]  ;;  %v14224_v59 = vld [vmem:[%s15442_s12 + $0x4e8] sm:$0xff] }
 0x8ab   :  { %8335 = vmatpush3.bf16.msra.mxu0 %v16527_v29  ;;  %8367 = vmatpush3.bf16.msra.mxu1 %v16530_v63  ;;  %v4906_v15 = vadd.f32 %v13497_v19, %v4744_v33  ;;  %v4759_v43 = vmul.f32 %v13399_v21, %v4597_v53  ;;  %v4761_v4 = vmul.f32 %v13403_v38, %v4599_v49  ;;  %v16532_v44 = vld [vmem:[#allocation150_spill] sm:$0xff]  ;;  %v16534_v38 = vld [vmem:[#allocation73_spill] sm:$0xff]  ;;  %v16536_v33 = vld [vmem:[#allocation148_spill] sm:$0xff] }
 0x8ac   :  { %5368 = vmatprep.mubr.f32.mxu1 %v4907_v24  ;;  %5279 = vmatmul.mubr.f32.gmra.mrb[136].mxu0 %v4904_v32  ;;  %v16533_v24 = vpack.c.bf16 %v16531_v36, %v16532_v44  ;;  %v4758_v48 = vmul.f32 %v13445_v1, %v4596_v7  ;;  %v4760_v21 = vmul.f32 %v13493_v5, %v4598_v26  ;;  %v16537_v53 = vld [vmem:[#allocation60_spill] sm:$0xff]  ;;  %v16539_v57 = vld [vmem:[#allocation71_spill] sm:$0xff]  ;;  %v14251_v26 = vld [vmem:[%s15442_s12 + $0x5e8] sm:$0xff] }
 0x8ad   :  { %v4701_v12 = vmul.f32 %v16534_v38, %v4539_v61  ;;  %16535 = vst [vmem:[#allocation99_spill] sm:$0xff] %v14219_v35  ;;  %5369 = vmatmul.mubr.f32.gmra.mrb[136].mxu1 %v4906_v15  ;;  %v16538_v49 = vpack.c.bf16 %v16536_v33, %v16537_v53  ;;  %v4921_v1 = vadd.f32 %v13437_v25, %v4759_v43  ;;  %v16540_v58 = vld [vmem:[#allocation63_spill] sm:$0xff]  ;;  %16546 = vst [vmem:[#allocation105_spill] sm:$0xff] %v14251_v26  ;;  %v16547_v15 = vld [vmem:[#allocation72_spill] sm:$0xff] }
 0x8ae   :  { %8337 = vmatprep.subr.bf16.mxu0 %v16533_v24  ;;  %v4923_v5 = vadd.f32 %v13441_v22, %v4761_v4  ;;  %v16541_v29 = vpack.c.bf16 %v16539_v57, %v16540_v58  ;;  %v16542_v6 = vld [vmem:[#allocation151_spill] sm:$0xff]  ;;  %v4920_v32 = vadd.f32 %v16480_v17, %v4758_v48  ;;  %v4922_v7 = vadd.f32 %v13497_v19, %v4760_v21  ;;  %v14246_v22 = vld [vmem:[%s15442_s12 + $0x5e0] sm:$0xff]  ;;  %v16549_v36 = vld [vmem:[#allocation66_spill] sm:$0xff] }
 0x8af   :  { %8369 = vmatprep.subr.bf16.mxu1 %v16538_v49  ;;  %v16544_v63 = vpack.c.bf16 %v16542_v6, %v16543_v20  ;;  %16545 = vst [vmem:[#allocation97_spill] sm:$0xff] %v14246_v22  ;;  %5283 = vmatprep.mubr.f32.mxu0 %v4921_v1  ;;  %v4861_v43 = vadd.f32 %v16547_v15, %v4699_v8  ;;  %v16548_v17 = vld [vmem:[#allocation107_spill] sm:$0xff]  ;;  %v16550_v44 = vld [vmem:[#allocation152_spill] sm:$0xff]  ;;  %v16552_v48 = vld [vmem:[#allocation78_spill] sm:$0xff] }
 0x8b0   :  { %8339 = vmatpush3.bf16.msra.mxu0 %v16541_v29  ;;  %5373 = vmatprep.mubr.f32.mxu1 %v4923_v5  ;;  %v4446_v19 = vsub.f32 %v16548_v17, %v13589_v47  ;;  %v16551_v24 = vpack.c.bf16 %v16549_v36, %v16550_v44  ;;  %v4863_v21 = vadd.f32 %v16552_v48, %v4701_v12  ;;  %v16553_v33 = vld [vmem:[#allocation110_spill] sm:$0xff]  ;;  %v16554_v49 = vld [vmem:[#allocation112_spill] sm:$0xff]  ;;  %v16556_v57 = vld [vmem:[#allocation109_spill] sm:$0xff] }
 0x8b1   :  { %8371 = vmatpush3.bf16.msra.mxu1 %v16544_v63  ;;  %5284 = vmatmul.mubr.f32.gmra.mrb[138].mxu0 %v4920_v32  ;;  %v4448_v53 = vsub.f32 %v16553_v33, %v13589_v47  ;;  %v4463_v1 = vsub.f32 %v16554_v49, %v13888_v14  ;;  %v16555_v8 = vld [vmem:[#allocation30_spill] sm:$0xff]  ;;  %v4462_v58 = vsub.f32 %v16556_v57, %v13888_v14  ;;  %v16557_v6 = vld [vmem:[#allocation64_spill] sm:$0xff]  ;;  %v16558_v20 = vld [vmem:[#allocation61_spill] sm:$0xff] }
 0x8b2   :  { %8341 = vmatprep.subr.bf16.mxu0 %v16551_v24  ;;  %5374 = vmatmul.mubr.f32.gmra.mrb[138].mxu1 %v4922_v7  ;;  %v4465_v5 = vsub.f32 %v16555_v8, %v13888_v14  ;;  %v16559_v12 = vpack.c.bf16 %v16557_v6, %v16558_v20  ;;  %v4536_v63 = vmul.f32 %v14047_v37, %v4446_v19  ;;  %v16562_v36 = vld [vmem:[#allocation114_spill] sm:$0xff]  ;;  %v16563_v24 = vld [vmem:[#allocation5_spill] sm:$0xff]  ;;  %v16565_v19 = vld [vmem:[#allocation7_spill] sm:$0xff] }
 0x8b3   :  { %5443 = vmatprep.mubr.f32.mxu0 %v4861_v43  ;;  %5533 = vmatprep.mubr.f32.mxu1 %v4863_v21  ;;  %v4538_v32 = vmul.f32 %v14047_v37, %v4448_v53  ;;  %v4553_v7 = vmul.f32 %v14074_v31, %v4463_v1  ;;  %v16560_v43 = vpack.c.bf16 %v13557_v18, %v13552_v9  ;;  %v16567_v53 = vld [vmem:[#allocation69_spill] sm:$0xff]  ;;  %v16568_v49 = vld [vmem:[#allocation67_spill] sm:$0xff]  ;;  %v16570_v9 = vld [vmem:[#allocation68_spill] sm:$0xff] }
 0x8b4   :  { %8373 = vmatprep.subr.bf16.mxu1 %v16559_v12  ;;  %v16561_v17 = vpack.c.bf16 %v13567_v10, %v13562_v13  ;;  %v4464_v44 = vsub.f32 %v16562_v36, %v13888_v14  ;;  %v14288_v21 = vrot.slane %v13944_v16, %v16563_v24  ;;  %v14292_v33 = vrot.slane %v13944_v16, %v16565_v19  ;;  %v16571_v18 = vld [vmem:[#allocation65_spill] sm:$0xff]  ;;  %v16573_v57 = vld [vmem:[#allocation127_spill] sm:$0xff]  ;;  %v16580_v4 = vld [vmem:[#allocation94_spill] sm:$0xff] }
 0x8b5   :  { %8343 = vmatpush3.bf16.msra.mxu0 %v16560_v43  ;;  %v16569_v1 = vpack.c.bf16 %v16567_v53, %v16568_v49  ;;  %v16572_v8 = vpack.c.bf16 %v16570_v9, %v16571_v18  ;;  %v4555_v13 = vmul.f32 %v14074_v31, %v4465_v5  ;;  %v4552_v10 = vmul.f32 %v14074_v31, %v4462_v58  ;;  %v16574_v12 = vld [vmem:[#allocation113_spill] sm:$0xff]  ;;  %v16576_v53 = vld [vmem:[#allocation51_spill] sm:$0xff]  ;;  %v16578_v18 = vld [vmem:[#allocation156_spill] sm:$0xff] }
 0x8b6   :  { %8375 = vmatpush3.bf16.msra.mxu1 %v16561_v17  ;;  %16564 = vst [vmem:[#allocation31_spill] sm:$0xff] %v14288_v21  ;;  %16566 = vst [vmem:[#allocation100_spill] sm:$0xff] %v14292_v33  ;;  %v4554_v20 = vmul.f32 %v14074_v31, %v4464_v44  ;;  %v4479_v43 = vsub.f32 %v16574_v12, %v13974_v52  ;;  %v16575_v17 = vld [vmem:[#allocation32_spill] sm:$0xff]  ;;  %v4700_v5 = vmul.f32 %v16578_v18, %v4538_v32  ;;  %v16581_v44 = vld [vmem:[#allocation93_spill] sm:$0xff] }
 0x8b7   :  { %8345 = vmatprep.subr.bf16.mxu0 %v16569_v1  ;;  %8377 = vmatprep.subr.bf16.mxu1 %v16572_v8  ;;  %v4481_v36 = vsub.f32 %v16575_v17, %v13974_v52  ;;  %v16577_v1 = vld [vmem:[#allocation84_spill] sm:$0xff]  ;;  %v4715_v58 = vmul.f32 %v16517_v39, %v4553_v7  ;;  %v16579_v8 = vld [vmem:[#allocation111_spill] sm:$0xff]  ;;  %v16582_v25 = vpack.c.bf16 %v16580_v4, %v16581_v44  ;;  %v16586_v49 = vld [vmem:[#allocation118_spill] sm:$0xff] }
 0x8b8   :  { %v4698_v9 = vmul.f32 %v16577_v1, %v4536_v63  ;;  %v4478_v29 = vsub.f32 %v16579_v8, %v13974_v52  ;;  %v16583_v12 = vld [vmem:[#allocation95_spill] sm:$0xff]  ;;  %v4569_v17 = vmul.f32 %v14098_v50, %v4479_v43  ;;  %v4480_v63 = vsub.f32 %v16586_v49, %v13974_v52  ;;  %v16588_v7 = vld [vmem:[#allocation28_spill] sm:$0xff]  ;;  %v16589_v21 = vld [vmem:[#allocation13_spill] sm:$0xff] }
 0x8b9   :  { %8347 = vmatpush3.bf16.msra.mxu0 %v16582_v25  ;;  %v16584_v61 = vld [vmem:[#allocation103_spill] sm:$0xff]  ;;  %v16590_v22 = vpack.c.bf16 %v16588_v7, %v16589_v21  ;;  %v16591_v8 = vld [vmem:[#allocation92_spill] sm:$0xff]  ;;  %v16592_v26 = vld [vmem:[#allocation90_spill] sm:$0xff]  ;;  %v4717_v25 = vmul.f32 %v16534_v38, %v4555_v13  ;;  %v4716_v43 = vmul.f32 %v16578_v18, %v4554_v20  ;;  %v4877_v13 = vadd.f32 %v16547_v15, %v4715_v58 }
 0x8ba   :  { %v16585_v6 = vpack.c.bf16 %v16583_v12, %v16584_v61  ;;  %v16587_v32 = vld [vmem:[#allocation115_spill] sm:$0xff]  ;;  %v16593_v4 = vpack.c.bf16 %v16591_v8, %v16592_v26  ;;  %v4714_v61 = vmul.f32 %v16577_v1, %v4552_v10  ;;  %v4568_v49 = vmul.f32 %v14098_v50, %v4478_v29  ;;  %v16594_v44 = vld [vmem:[#allocation124_spill] sm:$0xff]  ;;  %v16597_v26 = vld [vmem:[#allocation157_spill] sm:$0xff] }
 0x8bb   :  { %v4495_v33 = vsub.f32 %v16587_v32, %v14023_v0  ;;  %8349 = vmatprep.subr.bf16.mxu0 %v16590_v22  ;;  %v4497_v12 = vsub.f32 %v16594_v44, %v14023_v0  ;;  %v16595_v21 = vld [vmem:[#allocation131_spill] sm:$0xff]  ;;  %v16596_v32 = vld [vmem:[#allocation88_spill] sm:$0xff]  ;;  %v4862_v8 = vadd.f32 %v16597_v26, %v4700_v5  ;;  %v4570_v10 = vmul.f32 %v14098_v50, %v4480_v63  ;;  %v16602_v29 = vld [vmem:[#allocation74_spill] sm:$0xff] }
 0x8bc   :  { %8379 = vmatpush3.bf16.msra.mxu1 %v16585_v6  ;;  %v4571_v6 = vmul.f32 %v14098_v50, %v4481_v36  ;;  %v4494_v22 = vsub.f32 %v16595_v21, %v14023_v0  ;;  %v4860_v7 = vadd.f32 %v16596_v32, %v4698_v9  ;;  %v16599_v36 = vld [vmem:[#allocation91_spill] sm:$0xff]  ;;  %v4731_v44 = vmul.f32 %v16517_v39, %v4569_v17 }
 0x8bd   :  { %8381 = vmatprep.subr.bf16.mxu1 %v16593_v4  ;;  %v16598_v4 = vld [vmem:[#allocation122_spill] sm:$0xff]  ;;  %v16601_v20 = vld [vmem:[#allocation79_spill] sm:$0xff]  ;;  %v4585_v21 = vmul.f32 %v14132_v23, %v4495_v33  ;;  %v4587_v9 = vmul.f32 %v14132_v23, %v4497_v12  ;;  %v16604_v5 = vpack.c.bf16 %v13697_v42, %v13692_v41  ;;  %v16605_v58 = vpack.c.bf16 %v13707_v51, %v13702_v3 }
 0x8be   :  { %v16600_v52 = vpack.c.bf16 %v16598_v4, %v16599_v36  ;;  %v16603_v35 = vpack.c.bf16 %v16601_v20, %v16602_v29  ;;  %v4876_v63 = vadd.f32 %v16596_v32, %v4714_v61  ;;  %v4878_v17 = vadd.f32 %v16597_v26, %v4716_v43  ;;  %v16606_v4 = vld [vmem:[#allocation120_spill] sm:$0xff]  ;;  %v16607_v51 = vld [vmem:[#allocation123_spill] sm:$0xff]  ;;  %v16610_v36 = vld [vmem:[#allocation141_spill] sm:$0xff] }
 0x8bf   :  { %v4730_v33 = vmul.f32 %v16577_v1, %v4568_v49  ;;  %v4584_v12 = vmul.f32 %v14132_v23, %v4494_v22  ;;  %v4496_v41 = vsub.f32 %v16606_v4, %v14023_v0  ;;  %v4732_v3 = vmul.f32 %v16578_v18, %v4570_v10  ;;  %v16609_v22 = vld [vmem:[#allocation77_spill] sm:$0xff]  ;;  %v16613_v10 = vld [vmem:[#allocation83_spill] sm:$0xff] }
 0x8c0   :  { %8351 = vmatpush3.bf16.msra.mxu0 %v16600_v52  ;;  %8383 = vmatpush3.bf16.msra.mxu1 %v16603_v35  ;;  %v4879_v52 = vadd.f32 %v16552_v48, %v4717_v25  ;;  %v4733_v35 = vmul.f32 %v16534_v38, %v4571_v6  ;;  %v4511_v42 = vsub.f32 %v16607_v51, %v14049_v56  ;;  %v16608_v25 = vld [vmem:[#allocation33_spill] sm:$0xff] }
 0x8c1   :  { %8385 = vmatprep.subr.bf16.mxu0 %v16604_v5  ;;  %8417 = vmatprep.subr.bf16.mxu1 %v16605_v58  ;;  %v4513_v61 = vsub.f32 %v16608_v25, %v14049_v56  ;;  %v4747_v6 = vmul.f32 %v16517_v39, %v4585_v21  ;;  %v4749_v43 = vmul.f32 %v16534_v38, %v4587_v9  ;;  %v16615_v21 = vld [vmem:[#allocation81_spill] sm:$0xff]  ;;  %v16617_v9 = vld [vmem:[#allocation87_spill] sm:$0xff] }
 0x8c2   :  { %v4586_v49 = vmul.f32 %v14132_v23, %v4496_v41  ;;  %v4893_v29 = vadd.f32 %v16547_v15, %v4731_v44  ;;  %v4895_v5 = vadd.f32 %v16552_v48, %v4733_v35  ;;  %v16616_v58 = vpack.c.bf16 %v13745_v2, %v16615_v21  ;;  %v16620_v35 = vld [vmem:[#allocation35_spill] sm:$0xff] }
 0x8c3   :  { %5444 = vmatmul.mubr.f32.vlgmr.msra.gmra.mrb[140].mxu0 %v4860_v7  ;;  %5534 = vmatmul.mubr.f32.vlgmr.msra.gmra.mrb[140].mxu1 %v4862_v8  ;;  %v16611_v7 = vpack.c.bf16 %v16609_v22, %v16610_v36  ;;  %v16612_v8 = vld [vmem:[#allocation75_spill] sm:$0xff]  ;;  %v4892_v41 = vadd.f32 %v16596_v32, %v4730_v33  ;;  %v4746_v51 = vmul.f32 %v16577_v1, %v4584_v12 }
 0x8c4   :  { %5448 = vmatprep.mubr.f32.mxu0 %v4877_v13  ;;  %5538 = vmatprep.mubr.f32.mxu1 %v4879_v52  ;;  %v16614_v20 = vpack.c.bf16 %v16612_v8, %v16613_v10  ;;  %v4601_v13 = vmul.f32 %v14158_v46, %v4511_v42  ;;  %v16618_v52 = vld [vmem:[#allocation82_spill] sm:$0xff]  ;;  %v4603_v25 = vmul.f32 %v14158_v46, %v4513_v61  ;;  %v16621_v2 = vld [vmem:[#allocation119_spill] sm:$0xff]  ;;  %v16623_v61 = vld [vmem:[#allocation80_spill] sm:$0xff] }
 0x8c5   :  { %8387 = vmatpush3.bf16.msra.mxu0 %v16611_v7  ;;  %v16619_v4 = vpack.c.bf16 %v16617_v9, %v16618_v52  ;;  %v4894_v44 = vadd.f32 %v16597_v26, %v4732_v3  ;;  %v4510_v42 = vsub.f32 %v16620_v35, %v14049_v56  ;;  %v4512_v22 = vsub.f32 %v16621_v2, %v14049_v56  ;;  %v16625_v8 = vld [vmem:[#allocation86_spill] sm:$0xff]  ;;  %v16626_v10 = vld [vmem:[#allocation85_spill] sm:$0xff]  ;;  %v14442_v9 = vld [vmem:[%s15442_s12 + $0x560] sm:$0xff] }
 0x8c6   :  { %8419 = vmatpush3.bf16.msra.mxu1 %v16614_v20  ;;  %8389 = vmatprep.subr.bf16.mxu0 %v16616_v58  ;;  %v4909_v36 = vadd.f32 %v16547_v15, %v4747_v6  ;;  %v4911_v33 = vadd.f32 %v16552_v48, %v4749_v43  ;;  %v4748_v12 = vmul.f32 %v16578_v18, %v4586_v49  ;;  %v16633_v52 = vld [vmem:[#allocation10_spill] sm:$0xff]  ;;  %v14477_v2 = vld [vmem:[%s15442_s12 + $0x5f8] sm:$0xff] }
 0x8c7   :  { %8421 = vmatprep.subr.bf16.mxu1 %v16619_v4  ;;  %5449 = vmatmul.mubr.f32.gmra.mrb[142].mxu0 %v4876_v63  ;;  %v14406_v63 = vld [vmem:[%s15442_s12 + $0x460] sm:$0xff]  ;;  %v16622_v3 = vpack.c.bf16 %v13771_v55, %v13766_v62  ;;  %v16624_v6 = vpack.c.bf16 %v13781_v54, %v16623_v61  ;;  %v4763_v43 = vmul.f32 %v16517_v39, %v4601_v13  ;;  %v14602_v58 = vld [vmem:[%s15442_s12 + $0x790] sm:$0xff] }
 0x8c8   :  { %5539 = vmatmul.mubr.f32.gmra.mrb[142].mxu1 %v4878_v17  ;;  %5453 = vmatprep.mubr.f32.mxu0 %v4893_v29  ;;  %v14411_v17 = vld [vmem:[%s15442_s12 + $0x468] sm:$0xff]  ;;  %v4600_v49 = vmul.f32 %v14158_v46, %v4510_v42  ;;  %v4602_v7 = vmul.f32 %v14158_v46, %v4512_v22  ;;  %v16627_v20 = vpack.c.bf16 %v16625_v8, %v16626_v10  ;;  %v14472_v42 = vld [vmem:[%s15442_s12 + $0x5f0] sm:$0xff]  ;;  %v16637_v22 = vld [vmem:[#allocation155_spill] sm:$0xff] }
 0x8c9   :  { %5543 = vmatprep.mubr.f32.mxu1 %v4895_v5  ;;  %8391 = vmatpush3.bf16.msra.mxu0 %v16622_v3  ;;  %v16628_v29 = vld [vmem:[#allocation153_spill] sm:$0xff]  ;;  %v4765_v55 = vmul.f32 %v16534_v38, %v4603_v25  ;;  %v16631_v62 = vsub.f32 %v16573_v57, %v13589_v47  ;;  %v16632_v39 = vsub.f32 %v16576_v53, %v13589_v47  ;;  %v14452_v57 = vld [vmem:[%s15442_s12 + $0x4f0] sm:$0xff]  ;;  %v14457_v53 = vld [vmem:[%s15442_s12 + $0x4f8] sm:$0xff] }
 0x8ca   :  { %8423 = vmatpush3.bf16.msra.mxu1 %v16624_v6  ;;  %8393 = vmatprep.subr.bf16.mxu0 %v16627_v20  ;;  %v16629_v5 = vld [vmem:[#allocation89_spill] sm:$0xff]  ;;  %v14461_v4 = vrot.slane %v13944_v16, %v16633_v52  ;;  %v4910_v35 = vadd.f32 %v16597_v26, %v4748_v12  ;;  %v16640_v12 = vpack.c.bf16 %v13843_v60, %v13838_v11  ;;  %v14500_v8 = vld [vmem:[%s15442_s12 + $0x478] sm:$0xff]  ;;  %v14505_v10 = vld [vmem:[%s15442_s12 + $0x570] sm:$0xff] }
 0x8cb   :  { %v16630_v21 = vpack.c.bf16 %v16628_v29, %v16629_v5  ;;  %v4541_v54 = vmul.f32 %v14047_v37, %v16631_v62  ;;  %v4543_v13 = vmul.f32 %v14047_v37, %v16632_v39  ;;  %5454 = vmatmul.mubr.f32.gmra.mrb[144].mxu0 %v4892_v41  ;;  %v14447_v38 = vld [vmem:[%s15442_s12 + $0x568] sm:$0xff]  ;;  %v16635_v41 = vld [vmem:[#allocation12_spill] sm:$0xff]  ;;  %v4925_v3 = vadd.f32 %v16547_v15, %v4763_v43  ;;  %v14510_v11 = vld [vmem:[%s15442_s12 + $0x578] sm:$0xff] }
 0x8cc   :  { %5544 = vmatmul.mubr.f32.gmra.mrb[144].mxu1 %v4894_v44  ;;  %16634 = vst [vmem:[#allocation104_spill] sm:$0xff] %v14461_v4  ;;  %v14465_v25 = vrot.slane %v13944_v16, %v16635_v41  ;;  %5458 = vmatprep.mubr.f32.mxu0 %v4909_v36  ;;  %v4908_v44 = vadd.f32 %v16596_v32, %v4746_v51  ;;  %v14482_v16 = vld [vmem:[%s15442_s12 + $0x470] sm:$0xff]  ;;  %v16647_v29 = vld [vmem:[#allocation181_spill] sm:$0xff]  ;;  %v14534_v62 = vld [vmem:[%s15442_s12 + $0x780] sm:$0xff] }
 0x8cd   :  { %8425 = vmatprep.subr.bf16.mxu1 %v16630_v21  ;;  %5548 = vmatprep.mubr.f32.mxu1 %v4911_v33  ;;  %v14486_v51 = vrot.slane %v13949_v30, %v16563_v24  ;;  %v16638_v36 = vld [vmem:[#allocation154_spill] sm:$0xff]  ;;  %v4762_v61 = vmul.f32 %v16577_v1, %v4600_v49  ;;  %v4764_v6 = vmul.f32 %v16578_v18, %v4602_v7  ;;  %v16643_v1 = vld [vmem:[#allocation160_spill] sm:$0xff]  ;;  %v16644_v18 = vld [vmem:[#allocation159_spill] sm:$0xff] }
 0x8ce   :  { %16636 = vst [vmem:[#allocation98_spill] sm:$0xff] %v14465_v25  ;;  %v16639_v33 = vpack.c.bf16 %v16637_v22, %v16638_v36  ;;  %8427 = vmatpush3.bf16.msra.mxu1 %v16640_v12  ;;  %v16641_v60 = vld [vmem:[#allocation158_spill] sm:$0xff]  ;;  %v16645_v43 = vpack.c.bf16 %v16643_v1, %v16644_v18  ;;  %v4927_v49 = vadd.f32 %v16552_v48, %v4765_v55  ;;  %v16646_v7 = vld [vmem:[#allocation179_spill] sm:$0xff]  ;;  %v14524_v21 = vld [vmem:[%s15442_s12 + $0x680] sm:$0xff] }
 0x8cf   :  { %v16642_v15 = vpack.c.bf16 %v13853_v27, %v16641_v60  ;;  %v4703_v20 = vmul.f32 %v16646_v7, %v4541_v54  ;;  %v4705_v5 = vmul.f32 %v16647_v29, %v4543_v13  ;;  %v14529_v27 = vld [vmem:[%s15442_s12 + $0x688] sm:$0xff]  ;;  %5459 = vmatmul.mubr.f32.gmra.mrb[146].mxu0 %v4908_v44  ;;  %v14543_v55 = vrot.slane %v13949_v30, %v16565_v19  ;;  %v14548_v54 = vld [vmem:[%s15442_s12 + $0x600] sm:$0xff]  ;;  %v16650_v60 = vld [vmem:[#allocation162_spill] sm:$0xff] }
 0x8d0   :  { %8395 = vmatpush3.bf16.msra.mxu0 %v16639_v33  ;;  %8429 = vmatprep.subr.bf16.mxu1 %v16645_v43  ;;  %v14539_v48 = vld [vmem:[%s15442_s12 + $0x788] sm:$0xff]  ;;  %v14558_v13 = vld [vmem:[%s15442_s12 + $0x700] sm:$0xff]  ;;  %v14562_v44 = vrot.slane %v13949_v30, %v16633_v52  ;;  %v16654_v43 = vld [vmem:[#allocation163_spill] sm:$0xff]  ;;  %v4924_v33 = vadd.f32 %v16596_v32, %v4762_v61  ;;  %v4926_v36 = vadd.f32 %v16597_v26, %v4764_v6 }
 0x8d1   :  { %8397 = vmatprep.subr.bf16.mxu0 %v16642_v15  ;;  %5549 = vmatmul.mubr.f32.gmra.mrb[146].mxu1 %v4910_v35  ;;  %v14553_v39 = vld [vmem:[%s15442_s12 + $0x608] sm:$0xff]  ;;  %v14566_v35 = vrot.slane %v13949_v30, %v16635_v41  ;;  %v14582_v30 = vld [vmem:[%s15442_s12 + $0x690] sm:$0xff]  ;;  %16656 = vst [vmem:[#allocation144_spill] sm:$0xff] %v14602_v58  ;;  %v16658_v32 = vld [vmem:[#allocation167_spill] sm:$0xff] }
 0x8d2   :  { %16648 = vst [vmem:[#allocation102_spill] sm:$0xff] %v14562_v44  ;;  %5463 = vmatprep.mubr.f32.mxu0 %v4925_v3  ;;  %5553 = vmatprep.mubr.f32.mxu1 %v4927_v49  ;;  %v14577_v12 = vld [vmem:[%s15442_s12 + $0x708] sm:$0xff]  ;;  %v14587_v3 = vld [vmem:[%s15442_s12 + $0x698] sm:$0xff]  ;;  %v16659_v26 = vld [vmem:[#allocation166_spill] sm:$0xff] }
 0x8d3   :  { %16649 = vst [vmem:[#allocation106_spill] sm:$0xff] %v14566_v35  ;;  %v16651_v15 = vld [vmem:[#allocation161_spill] sm:$0xff]  ;;  %v16660_v61 = vpack.c.bf16 %v16658_v32, %v16659_v26  ;;  %v16665_v22 = vld [vmem:[#allocation182_spill] sm:$0xff]  ;;  %v14627_v19 = vld [vmem:[%s15442_s12 + $0x618] sm:$0xff]  ;;  %5464 = vmatmul.mubr.f32.gmra.mrb[148].mxu0 %v4924_v33 }
 0x8d4   :  { %v16652_v1 = vpack.c.bf16 %v16650_v60, %v16651_v15  ;;  %v16653_v18 = vld [vmem:[#allocation165_spill] sm:$0xff]  ;;  %v14607_v60 = vld [vmem:[%s15442_s12 + $0x798] sm:$0xff]  ;;  %v14612_v15 = vld [vmem:[%s15442_s12 + $0x610] sm:$0xff]  ;;  %v4867_v41 = vadd.f32 %v16665_v22, %v4705_v5  ;;  %16666 = vst [vmem:[#allocation22_spill] sm:$0xff] %v14627_v19 }
 0x8d5   :  { %v16655_v49 = vpack.c.bf16 %v16653_v18, %v16654_v43  ;;  %16657 = vst [vmem:[#allocation16_spill] sm:$0xff] %v14612_v15  ;;  %v16661_v6 = vld [vmem:[#allocation169_spill] sm:$0xff]  ;;  %v16664_v43 = vld [vmem:[#allocation180_spill] sm:$0xff]  ;;  %v14632_v32 = vld [vmem:[%s15442_s12 + $0x710] sm:$0xff]  ;;  %5554 = vmatmul.mubr.f32.gmra.mrb[148].mxu1 %v4926_v36 }
 0x8d6   :  { %8399 = vmatpush3.bf16.msra.mxu0 %v16652_v1  ;;  %v16662_v1 = vld [vmem:[#allocation168_spill] sm:$0xff]  ;;  %16667 = vst [vmem:[#allocation18_spill] sm:$0xff] %v14632_v32  ;;  %v14637_v26 = vld [vmem:[%s15442_s12 + $0x718] sm:$0xff]  ;;  %5713 = vmatprep.mubr.f32.mxu1 %v4867_v41  ;;  %v14669_v5 = vld [vmem:[%s15442_s12 + $0x7a8] sm:$0xff] }
 0x8d7   :  { %8431 = vmatpush3.bf16.msra.mxu1 %v16655_v49  ;;  %8401 = vmatprep.subr.bf16.mxu0 %v16660_v61  ;;  %v16663_v18 = vpack.c.bf16 %v16661_v6, %v16662_v1  ;;  %v4865_v49 = vadd.f32 %v16664_v43, %v4703_v20  ;;  %16668 = vst [vmem:[#allocation117_spill] sm:$0xff] %v14637_v26  ;;  %v14648_v6 = vld [vmem:[%s15442_s12 + $0x6a0] sm:$0xff]  ;;  %v14653_v1 = vld [vmem:[%s15442_s12 + $0x6a8] sm:$0xff]  ;;  %v16678_v35 = vld [vmem:[#allocation38_spill] sm:$0xff] }
 0x8d8   :  { %v14658_v36 = vld [vmem:[%s15442_s12 + $0x7a0] sm:$0xff]  ;;  %v14679_v41 = vld [vmem:[%s15442_s12 + $0x628] sm:$0xff]  ;;  %v4450_v44 = vsub.f32 %v16678_v35, %v13589_v47  ;;  %v16684_v35 = vld [vmem:[#allocation178_spill] sm:$0xff] }
 0x8d9   :  { %8433 = vmatprep.subr.bf16.mxu1 %v16663_v18  ;;  %16669 = vst [vmem:[#allocation101_spill] sm:$0xff] %v14658_v36  ;;  %5623 = vmatprep.mubr.f32.mxu0 %v4865_v49  ;;  %v14674_v20 = vld [vmem:[%s15442_s12 + $0x620] sm:$0xff]  ;;  %16671 = vst [vmem:[#allocation146_spill] sm:$0xff] %v14679_v41  ;;  %v16672_v49 = vld [vmem:[#allocation171_spill] sm:$0xff] }
 0x8da   :  { %16670 = vst [vmem:[#allocation23_spill] sm:$0xff] %v14674_v20  ;;  %v16673_v18 = vld [vmem:[#allocation170_spill] sm:$0xff]  ;;  %v16675_v61 = vld [vmem:[#allocation173_spill] sm:$0xff]  ;;  %v16676_v52 = vld [vmem:[#allocation172_spill] sm:$0xff] }
 0x8db   :  { %v16674_v33 = vpack.c.bf16 %v16672_v49, %v16673_v18  ;;  %v16677_v24 = vpack.c.bf16 %v16675_v61, %v16676_v52  ;;  %v14696_v46 = vld [vmem:[%s15442_s12 + $0x720] sm:$0xff]  ;;  %v16682_v52 = vld [vmem:[#allocation174_spill] sm:$0xff]  ;;  %v16685_v18 = vld [vmem:[#allocation177_spill] sm:$0xff] }
 0x8dc   :  { %16679 = vst [vmem:[#allocation21_spill] sm:$0xff] %v14696_v46  ;;  %v16686_v49 = vpack.c.bf16 %v16684_v35, %v16685_v18  ;;  %v16687_v4 = vld [vmem:[#allocation36_spill] sm:$0xff]  ;;  %v16688_v32 = vld [vmem:[#allocation39_spill] sm:$0xff]  ;;  %v14718_v58 = vld [vmem:[%s15442_s12 + $0x6b0] sm:$0xff] }
 0x8dd   :  { %8403 = vmatpush3.bf16.msra.mxu0 %v16674_v33  ;;  %8435 = vmatpush3.bf16.msra.mxu1 %v16677_v24  ;;  %v14701_v33 = vld [vmem:[%s15442_s12 + $0x728] sm:$0xff]  ;;  %v16681_v24 = vld [vmem:[#allocation176_spill] sm:$0xff]  ;;  %v4452_v25 = vsub.f32 %v16687_v4, %v13589_v47  ;;  %v4467_v26 = vsub.f32 %v16688_v32, %v13888_v14  ;;  %v14740_v35 = vld [vmem:[%s15442_s12 + $0x7b8] sm:$0xff]  ;;  %v16692_v4 = vpack.c.bf16 %v14208_v34, %v14203_v45 }
 0x8de   :  { %16680 = vst [vmem:[#allocation20_spill] sm:$0xff] %v14701_v33  ;;  %v16683_v61 = vpack.c.bf16 %v16681_v24, %v16682_v52  ;;  %8437 = vmatprep.subr.bf16.mxu1 %v16686_v49  ;;  %v16689_v15 = vld [vmem:[#allocation128_spill] sm:$0xff]  ;;  %v14723_v24 = vld [vmem:[%s15442_s12 + $0x6b8] sm:$0xff]  ;;  %v4540_v52 = vmul.f32 %v14047_v37, %v4450_v44  ;;  %v16693_v20 = vld [vmem:[#allocation125_spill] sm:$0xff] }
 0x8df   :  { %v4469_v19 = vsub.f32 %v16689_v15, %v13888_v14  ;;  %v4542_v44 = vmul.f32 %v14047_v37, %v4452_v25  ;;  %v4557_v18 = vmul.f32 %v14074_v31, %v4467_v26  ;;  %v16691_v15 = vpack.c.bf16 %v14195_v28, %v14190_v40  ;;  %v16694_v25 = vld [vmem:[#allocation54_spill] sm:$0xff]  ;;  %v16695_v26 = vld [vmem:[#allocation99_spill] sm:$0xff]  ;;  %v16697_v46 = vld [vmem:[#allocation105_spill] sm:$0xff] }
 0x8e0   :  { %8405 = vmatprep.subr.bf16.mxu0 %v16683_v61  ;;  %v14735_v61 = vld [vmem:[%s15442_s12 + $0x7b0] sm:$0xff]  ;;  %v4466_v41 = vsub.f32 %v16693_v20, %v13888_v14  ;;  %v4468_v36 = vsub.f32 %v16694_v25, %v13888_v14  ;;  %v16696_v32 = vpack.c.bf16 %v14224_v59, %v16695_v26  ;;  %v16698_v40 = vld [vmem:[#allocation97_spill] sm:$0xff]  ;;  %v16703_v14 = vld [vmem:[#allocation31_spill] sm:$0xff]  ;;  %v16707_v25 = vpack.c.bf16 %v14411_v17, %v14406_v63 }
 0x8e1   :  { %16690 = vst [vmem:[#allocation108_spill] sm:$0xff] %v14735_v61  ;;  %v4559_v49 = vmul.f32 %v14074_v31, %v4469_v19  ;;  %8407 = vmatpush3.bf16.msra.mxu0 %v16691_v15  ;;  %8439 = vmatpush3.bf16.msra.mxu1 %v16692_v4  ;;  %v16699_v28 = vpack.c.bf16 %v16697_v46, %v16698_v40  ;;  %v16700_v15 = vld [vmem:[#allocation175_spill] sm:$0xff]  ;;  %v16701_v45 = vld [vmem:[#allocation129_spill] sm:$0xff]  ;;  %v16702_v4 = vld [vmem:[#allocation136_spill] sm:$0xff] }
 0x8e2   :  { %8409 = vmatprep.subr.bf16.mxu0 %v16696_v32  ;;  %v4483_v34 = vsub.f32 %v16701_v45, %v16700_v15  ;;  %v4702_v33 = vmul.f32 %v16703_v14, %v4540_v52  ;;  %v4556_v19 = vmul.f32 %v14074_v31, %v4466_v41  ;;  %v4558_v59 = vmul.f32 %v14074_v31, %v4468_v36  ;;  %v16704_v32 = vld [vmem:[#allocation43_spill] sm:$0xff]  ;;  %v16705_v46 = vld [vmem:[#allocation100_spill] sm:$0xff]  ;;  %v16706_v20 = vld [vmem:[#allocation42_spill] sm:$0xff] }
 0x8e3   :  { %8441 = vmatprep.subr.bf16.mxu1 %v16699_v28  ;;  %v4485_v26 = vsub.f32 %v16704_v32, %v16700_v15  ;;  %v4704_v40 = vmul.f32 %v16705_v46, %v4542_v44  ;;  %v4719_v28 = vmul.f32 %v16646_v7, %v4557_v18  ;;  %v4721_v45 = vmul.f32 %v16647_v29, %v4559_v49  ;;  %v16709_v44 = vld [vmem:[#allocation40_spill] sm:$0xff]  ;;  %v16712_v17 = vld [vmem:[#allocation46_spill] sm:$0xff] }
 0x8e4   :  { %v4482_v61 = vsub.f32 %v16706_v20, %v16700_v15  ;;  %v16708_v41 = vpack.c.bf16 %v14447_v38, %v14442_v9  ;;  %v4573_v36 = vmul.f32 %v14098_v50, %v4483_v34  ;;  %v4484_v18 = vsub.f32 %v16709_v44, %v16700_v15  ;;  %v16713_v38 = vld [vmem:[#allocation116_spill] sm:$0xff] }
 0x8e5   :  { %8411 = vmatpush3.bf16.msra.mxu0 %v16707_v25  ;;  %v4575_v52 = vmul.f32 %v14098_v50, %v4485_v26  ;;  %v16710_v49 = vpack.c.bf16 %v14457_v53, %v14452_v57  ;;  %v16711_v20 = vpack.c.bf16 %v14477_v2, %v14472_v42  ;;  %v4499_v9 = vsub.f32 %v16712_v17, %v14023_v0  ;;  %v16714_v57 = vld [vmem:[#allocation139_spill] sm:$0xff] }
 0x8e6   :  { %8443 = vmatpush3.bf16.msra.mxu1 %v16708_v41  ;;  %v4572_v63 = vmul.f32 %v14098_v50, %v4482_v61  ;;  %v4501_v34 = vsub.f32 %v16713_v38, %v14023_v0  ;;  %v4718_v25 = vmul.f32 %v16703_v14, %v4556_v19  ;;  %v4720_v32 = vmul.f32 %v16705_v46, %v4558_v59 }
 0x8e7   :  { %8413 = vmatprep.subr.bf16.mxu0 %v16710_v49  ;;  %8445 = vmatprep.subr.bf16.mxu1 %v16711_v20  ;;  %v4574_v26 = vmul.f32 %v14098_v50, %v4484_v18  ;;  %v4457_v53 = vsub.f32 %v16714_v57, %v13589_v47  ;;  %v4864_v42 = vadd.f32 %v14486_v51, %v4702_v33  ;;  %v16742_v57 = vld [vmem:[#allocation23_spill] sm:$0xff] }
 0x8e8   :  { %v4866_v2 = vadd.f32 %v14543_v55, %v4704_v40  ;;  %v4589_v61 = vmul.f32 %v14132_v23, %v4499_v9  ;;  %v4591_v41 = vmul.f32 %v14132_v23, %v4501_v34  ;;  %v16715_v44 = vpack.c.bf16 %v14500_v8, %v14482_v16  ;;  %v16722_v9 = vld [vmem:[#allocation41_spill] sm:$0xff] }
 0x8e9   :  { %v16716_v19 = vpack.c.bf16 %v14510_v11, %v14505_v10  ;;  %v4881_v59 = vadd.f32 %v16664_v43, %v4719_v28  ;;  %v4883_v18 = vadd.f32 %v16665_v22, %v4721_v45  ;;  %v4735_v33 = vmul.f32 %v16646_v7, %v4573_v36  ;;  %v16719_v10 = vld [vmem:[#allocation37_spill] sm:$0xff] }
 0x8ea   :  { %8415 = vmatpush3.bf16.msra.mxu0 %v16715_v44  ;;  %v16717_v40 = vpack.c.bf16 %v14529_v27, %v14524_v21  ;;  %v16718_v49 = vpack.c.bf16 %v14539_v48, %v14534_v62  ;;  %v4737_v16 = vmul.f32 %v16647_v29, %v4575_v52  ;;  %v4734_v8 = vmul.f32 %v16703_v14, %v4572_v63  ;;  %v16720_v21 = vld [vmem:[#allocation132_spill] sm:$0xff]  ;;  %v16721_v63 = vld [vmem:[#allocation134_spill] sm:$0xff] }
 0x8eb   :  { %8447 = vmatpush3.bf16.msra.mxu1 %v16716_v19  ;;  %v4498_v11 = vsub.f32 %v16719_v10, %v14023_v0  ;;  %v4880_v28 = vadd.f32 %v14486_v51, %v4718_v25  ;;  %v4882_v45 = vadd.f32 %v14543_v55, %v4720_v32  ;;  %v4736_v36 = vmul.f32 %v16705_v46, %v4574_v26  ;;  %v5134_v19 = vld [vmem:[%s15442_s12 + $0x630] sm:$0xff]  ;;  %v5152_v10 = vld [vmem:[%s15442_s12 + $0x6c0] sm:$0xff] }
 0x8ec   :  { %8449 = vmatprep.subr.bf16.mxu0 %v16717_v40  ;;  %8481 = vmatprep.subr.bf16.mxu1 %v16718_v49  ;;  %v4500_v27 = vsub.f32 %v16720_v21, %v14023_v0  ;;  %v4751_v62 = vmul.f32 %v16646_v7, %v4589_v61  ;;  %v4753_v48 = vmul.f32 %v16647_v29, %v4591_v41  ;;  %v16726_v61 = vld [vmem:[#allocation144_spill] sm:$0xff]  ;;  %v16734_v21 = vld [vmem:[#allocation117_spill] sm:$0xff] }
 0x8ed   :  { %5624 = vmatmul.mubr.f32.vlgmr.msra.gmra.mrb[150].mxu0 %v4864_v42  ;;  %v4588_v52 = vmul.f32 %v14132_v23, %v4498_v11  ;;  %v4515_v17 = vsub.f32 %v16721_v63, %v14049_v56  ;;  %v4517_v38 = vsub.f32 %v16722_v9, %v14049_v56  ;;  %v16723_v34 = vpack.c.bf16 %v14553_v39, %v14548_v54  ;;  %v16728_v39 = vld [vmem:[#allocation96_spill] sm:$0xff]  ;;  %v5153_v11 = vld [vmem:[%s15442_s12 + $0x6c8] sm:$0xff] }
 0x8ee   :  { %5714 = vmatmul.mubr.f32.vlgmr.msra.gmra.mrb[150].mxu1 %v4866_v2  ;;  %5628 = vmatprep.mubr.f32.mxu0 %v4881_v59  ;;  %v4590_v20 = vmul.f32 %v14132_v23, %v4500_v27  ;;  %v16724_v25 = vpack.c.bf16 %v14577_v12, %v14558_v13  ;;  %v4897_v32 = vadd.f32 %v16664_v43, %v4735_v33  ;;  %v16735_v27 = vld [vmem:[#allocation18_spill] sm:$0xff]  ;;  %v5185_v63 = vld [vmem:[%s15442_s12 + $0x7c8] sm:$0xff] }
 0x8ef   :  { %5718 = vmatprep.mubr.f32.mxu1 %v4883_v18  ;;  %8451 = vmatpush3.bf16.msra.mxu0 %v16723_v34  ;;  %v4899_v26 = vadd.f32 %v16665_v22, %v4737_v16  ;;  %v4896_v42 = vadd.f32 %v14486_v51, %v4734_v8  ;;  %v16725_v2 = vpack.c.bf16 %v14587_v3, %v14582_v30  ;;  %v5135_v30 = vld [vmem:[%s15442_s12 + $0x638] sm:$0xff]  ;;  %v5166_v3 = vld [vmem:[%s15442_s12 + $0x730] sm:$0xff]  ;;  %v16739_v34 = vld [vmem:[#allocation101_spill] sm:$0xff] }
 0x8f0   :  { %8483 = vmatpush3.bf16.msra.mxu1 %v16724_v25  ;;  %v16727_v41 = vpack.c.bf16 %v14607_v60, %v16726_v61  ;;  %v4898_v54 = vadd.f32 %v14543_v55, %v4736_v36  ;;  %v4605_v44 = vmul.f32 %v16728_v39, %v4515_v17  ;;  %v4607_v13 = vmul.f32 %v16728_v39, %v4517_v38  ;;  %v16729_v60 = vld [vmem:[#allocation133_spill] sm:$0xff]  ;;  %v16730_v18 = vld [vmem:[#allocation135_spill] sm:$0xff] }
 0x8f1   :  { %8453 = vmatprep.subr.bf16.mxu0 %v16725_v2  ;;  %5629 = vmatmul.mubr.f32.gmra.mrb[152].mxu0 %v4880_v28  ;;  %v4750_v12 = vmul.f32 %v16703_v14, %v4588_v52  ;;  %v4514_v59 = vsub.f32 %v16729_v60, %v14049_v56  ;;  %v4516_v33 = vsub.f32 %v16730_v18, %v14049_v56  ;;  %v5167_v8 = vld [vmem:[%s15442_s12 + $0x738] sm:$0xff]  ;;  %v16731_v28 = vld [vmem:[#allocation22_spill] sm:$0xff]  ;;  %v5168_v60 = vld [vmem:[%s15442_s12 + $0x740] sm:$0xff] }
 0x8f2   :  { %8485 = vmatprep.subr.bf16.mxu1 %v16727_v41  ;;  %5719 = vmatmul.mubr.f32.gmra.mrb[152].mxu1 %v4882_v45  ;;  %v4913_v40 = vadd.f32 %v16664_v43, %v4751_v62  ;;  %v4915_v49 = vadd.f32 %v16665_v22, %v4753_v48  ;;  %v4752_v16 = vmul.f32 %v16705_v46, %v4590_v20  ;;  %v16732_v45 = vld [vmem:[#allocation16_spill] sm:$0xff] }
 0x8f3   :  { %5633 = vmatprep.mubr.f32.mxu0 %v4897_v32  ;;  %5723 = vmatprep.mubr.f32.mxu1 %v4899_v26  ;;  %v16733_v36 = vpack.c.bf16 %v16731_v28, %v16732_v45  ;;  %v16736_v62 = vpack.c.bf16 %v16734_v21, %v16735_v27  ;;  %v4604_v48 = vmul.f32 %v16728_v39, %v4514_v59  ;;  %v5184_v20 = vld [vmem:[%s15442_s12 + $0x7c0] sm:$0xff]  ;;  %v5169_v59 = vld [vmem:[%s15442_s12 + $0x748] sm:$0xff]  ;;  %v5138_v45 = vld [vmem:[%s15442_s12 + $0x650] sm:$0xff] }
 0x8f4   :  { %v4606_v52 = vmul.f32 %v16728_v39, %v4516_v33  ;;  %v16737_v17 = vsub.f32 %v16702_v4, %v13589_v47  ;;  %v16738_v38 = vpack.c.bf16 %v14653_v1, %v14648_v6  ;;  %v16740_v25 = vpack.c.bf16 %v14669_v5, %v16739_v34  ;;  %v5170_v21 = vld [vmem:[%s15442_s12 + $0x750] sm:$0xff]  ;;  %v5141_v34 = vld [vmem:[%s15442_s12 + $0x668] sm:$0xff] }
 0x8f5   :  { %8455 = vmatpush3.bf16.msra.mxu0 %v16733_v36  ;;  %8487 = vmatpush3.bf16.msra.mxu1 %v16736_v62  ;;  %v4767_v32 = vmul.f32 %v16646_v7, %v4605_v44  ;;  %v4769_v26 = vmul.f32 %v16647_v29, %v4607_v13  ;;  %v4547_v2 = vmul.f32 %v14047_v37, %v4457_v53  ;;  %v5136_v7 = vld [vmem:[%s15442_s12 + $0x640] sm:$0xff]  ;;  %v16741_v29 = vld [vmem:[#allocation146_spill] sm:$0xff]  ;;  %v5139_v36 = vld [vmem:[%s15442_s12 + $0x658] sm:$0xff] }
 0x8f6   :  { %v4545_v9 = vmul.f32 %v14047_v37, %v16737_v17  ;;  %8457 = vmatprep.subr.bf16.mxu0 %v16738_v38  ;;  %8489 = vmatprep.subr.bf16.mxu1 %v16740_v25  ;;  %v8462_v4 = vpack.c.bf16 %v5135_v30, %v5134_v19  ;;  %v8494_v61 = vpack.c.bf16 %v5167_v8, %v5166_v3  ;;  %v16744_v53 = vld [vmem:[#allocation20_spill] sm:$0xff]  ;;  %v5154_v8 = vld [vmem:[%s15442_s12 + $0x6d0] sm:$0xff]  ;;  %v8624_v25 = vld [vmem:[%s15440_s10 + $0x8] sm:$0xff] }
 0x8f7   :  { %5634 = vmatmul.mubr.f32.gmra.mrb[154].mxu0 %v4896_v42  ;;  %5724 = vmatmul.mubr.f32.gmra.mrb[154].mxu1 %v4898_v54  ;;  %v8464_v41 = vpack.c.bf16 %v5153_v11, %v5152_v10  ;;  %v4912_v6 = vadd.f32 %v14486_v51, %v4750_v12  ;;  %v4914_v5 = vadd.f32 %v14543_v55, %v4752_v16  ;;  %v16745_v42 = vld [vmem:[#allocation21_spill] sm:$0xff]  ;;  %v16747_v30 = vld [vmem:[#allocation104_spill] sm:$0xff]  ;;  %v5155_v10 = vld [vmem:[%s15442_s12 + $0x6d8] sm:$0xff] }
 0x8f8   :  { %5638 = vmatprep.mubr.f32.mxu0 %v4913_v40  ;;  %5728 = vmatprep.mubr.f32.mxu1 %v4915_v49  ;;  %v8496_v1 = vpack.c.bf16 %v5185_v63, %v5184_v20  ;;  %v16743_v44 = vpack.c.bf16 %v16741_v29, %v16742_v57  ;;  %v16746_v54 = vpack.c.bf16 %v16744_v53, %v16745_v42  ;;  %v5137_v12 = vld [vmem:[%s15442_s12 + $0x648] sm:$0xff]  ;;  %v16751_v49 = vld [vmem:[#allocation98_spill] sm:$0xff]  ;;  %v5156_v20 = vld [vmem:[%s15442_s12 + $0x6e0] sm:$0xff] }
 0x8f9   :  { %v4766_v13 = vmul.f32 %v16703_v14, %v4604_v48  ;;  %v4768_v19 = vmul.f32 %v16705_v46, %v4606_v52  ;;  %v4707_v3 = vmul.f32 %v16747_v30, %v4545_v9  ;;  %v16748_v18 = vpack.c.bf16 %v14723_v24, %v14718_v58  ;;  %v16749_v14 = vld [vmem:[#allocation108_spill] sm:$0xff]  ;;  %v5186_v58 = vld [vmem:[%s15442_s12 + $0x7d0] sm:$0xff]  ;;  %v5171_v52 = vld [vmem:[%s15442_s12 + $0x758] sm:$0xff] }
 0x8fa   :  { %8459 = vmatpush3.bf16.msra.mxu0 %v16743_v44  ;;  %8491 = vmatpush3.bf16.msra.mxu1 %v16746_v54  ;;  %v16750_v46 = vpack.c.bf16 %v14740_v35, %v16749_v14  ;;  %v4929_v33 = vadd.f32 %v16664_v43, %v4767_v32  ;;  %v4931_v40 = vadd.f32 %v16665_v22, %v4769_v26  ;;  %v5187_v22 = vld [vmem:[%s15442_s12 + $0x7d8] sm:$0xff]  ;;  %v16752_v27 = vld [vmem:[#allocation102_spill] sm:$0xff]  ;;  %v5157_v63 = vld [vmem:[%s15442_s12 + $0x6e8] sm:$0xff] }
 0x8fb   :  { %8461 = vmatprep.subr.bf16.mxu0 %v16748_v18  ;;  %v4709_v16 = vmul.f32 %v16751_v49, %v4547_v2  ;;  %5639 = vmatmul.mubr.f32.gmra.mrb[156].mxu0 %v4912_v6  ;;  %v8466_v43 = vpack.c.bf16 %v5137_v12, %v5136_v7  ;;  %v8498_v24 = vpack.c.bf16 %v5169_v59, %v5168_v60  ;;  %v5188_v17 = vld [vmem:[%s15442_s12 + $0x7e0] sm:$0xff]  ;;  %v5189_v9 = vld [vmem:[%s15442_s12 + $0x7e8] sm:$0xff]  ;;  %v16756_v57 = vld [vmem:[#allocation126_spill] sm:$0xff] }
 0x8fc   :  { %8493 = vmatprep.subr.bf16.mxu1 %v16750_v46  ;;  %5729 = vmatmul.mubr.f32.gmra.mrb[156].mxu1 %v4914_v5  ;;  %v4928_v35 = vadd.f32 %v14486_v51, %v4766_v13  ;;  %v4930_v11 = vadd.f32 %v14543_v55, %v4768_v19  ;;  %v8468_v28 = vpack.c.bf16 %v5155_v10, %v5154_v8  ;;  %v16753_v51 = vld [vmem:[#allocation106_spill] sm:$0xff]  ;;  %v5140_v38 = vld [vmem:[%s15442_s12 + $0x660] sm:$0xff]  ;;  %v16754_v32 = vld [vmem:[#allocation9_spill] sm:$0xff] }
 0x8fd   :  { %5643 = vmatprep.mubr.f32.mxu0 %v4929_v33  ;;  %5733 = vmatprep.mubr.f32.mxu1 %v4931_v40  ;;  %v4869_v62 = vadd.f32 %v16752_v27, %v4707_v3  ;;  %v4871_v48 = vadd.f32 %v16753_v51, %v4709_v16  ;;  %v8500_v55 = vpack.c.bf16 %v5187_v22, %v5186_v58  ;;  %v5173_v6 = vld [vmem:[%s15442_s12 + $0x768] sm:$0xff]  ;;  %v5159_v42 = vld [vmem:[%s15442_s12 + $0x6f8] sm:$0xff]  ;;  %v5190_v54 = vld [vmem:[%s15442_s12 + $0x7f0] sm:$0xff] }
 0x8fe   :  { %8463 = vmatpush3.bf16.msra.mxu0 %v8462_v4  ;;  %8495 = vmatpush3.bf16.msra.mxu1 %v8494_v61  ;;  %v14999_v26 = vrot.slane %v8624_v25, %v16754_v32  ;;  %v8470_v2 = vpack.c.bf16 %v5139_v36, %v5138_v45  ;;  %v8502_v4 = vpack.c.bf16 %v5171_v52, %v5170_v21  ;;  %v16755_v7 = vld [vmem:[#allocation137_spill] sm:$0xff]  ;;  %v5191_v13 = vld [vmem:[%s15442_s12 + $0x7f8] sm:$0xff]  ;;  %v16758_v60 = vld [vmem:[#allocation164_spill] sm:$0xff] }
 0x8ff   :  { %8465 = vmatprep.subr.bf16.mxu0 %v8464_v41  ;;  %8497 = vmatprep.subr.bf16.mxu1 %v8496_v1  ;;  %v8472_v61 = vpack.c.bf16 %v5157_v63, %v5156_v20  ;;  %v5172_v41 = vld [vmem:[%s15442_s12 + $0x760] sm:$0xff]  ;;  %v8504_v5 = vpack.c.bf16 %v5189_v9, %v5188_v17  ;;  %v5158_v1 = vld [vmem:[%s15442_s12 + $0x6f0] sm:$0xff]  ;;  %v4454_v29 = vsub.f32 %v16755_v7, %v13589_v47  ;;  %v8625_v19 = vld [vmem:[%s15441_s11 + $0x8] sm:$0xff] }
 0x900   :  { %5644 = vmatmul.mubr.f32.gmra.mrb[158].mxu0 %v4928_v35  ;;  %5734 = vmatmul.mubr.f32.gmra.mrb[158].mxu1 %v4930_v11  ;;  %v4456_v44 = vsub.f32 %v16756_v57, %v13589_v47  ;;  %v8474_v53 = vpack.c.bf16 %v5141_v34, %v5140_v38  ;;  %v15027_v12 = vrot.slane %v8625_v19, %v16754_v32  ;;  %v16757_v47 = vld [vmem:[#allocation11_spill] sm:$0xff]  ;;  %v16759_v59 = vld [vmem:[#allocation49_spill] sm:$0xff]  ;;  %v5142_v46 = vld [vmem:[%s15442_s12 + $0x670] sm:$0xff] }
 0x901   :  { %5803 = vmatprep.mubr.f32.mxu0 %v4869_v62  ;;  %5893 = vmatprep.mubr.f32.mxu1 %v4871_v48  ;;  %v15030_v3 = vrot.slane %v8624_v25, %v16757_v47  ;;  %v4471_v18 = vsub.f32 %v16759_v59, %v16758_v60  ;;  %v8506_v14 = vpack.c.bf16 %v5173_v6, %v5172_v41  ;;  %v5143_v33 = vld [vmem:[%s15442_s12 + $0x678] sm:$0xff]  ;;  %v16760_v8 = vld [vmem:[#allocation121_spill] sm:$0xff]  ;;  %v16761_v22 = vld [vmem:[#allocation44_spill] sm:$0xff] }
 0x902   :  { %8467 = vmatpush3.bf16.msra.mxu0 %v8466_v43  ;;  %8499 = vmatpush3.bf16.msra.mxu1 %v8498_v24  ;;  %v4544_v40 = vmul.f32 %v14047_v37, %v4454_v29  ;;  %v4546_v16 = vmul.f32 %v14047_v37, %v4456_v44  ;;  %v4473_v10 = vsub.f32 %v16760_v8, %v16758_v60  ;;  %v16762_v24 = vld [vmem:[#allocation138_spill] sm:$0xff]  ;;  %v5175_v45 = vld [vmem:[%s15442_s12 + $0x778] sm:$0xff]  ;;  %v16763_v63 = vld [vmem:[#allocation45_spill] sm:$0xff] }
 0x903   :  { %8469 = vmatprep.subr.bf16.mxu0 %v8468_v28  ;;  %8501 = vmatprep.subr.bf16.mxu1 %v8500_v55  ;;  %v4561_v58 = vmul.f32 %v14074_v31, %v4471_v18  ;;  %v4470_v43 = vsub.f32 %v16761_v22, %v16758_v60  ;;  %v4472_v35 = vsub.f32 %v16762_v24, %v16758_v60  ;;  %v5174_v37 = vld [vmem:[%s15442_s12 + $0x770] sm:$0xff]  ;;  %v16764_v9 = vld [vmem:[#allocation15_spill] sm:$0xff] }
 0x904   :  { %v8476_v11 = vpack.c.bf16 %v5159_v42, %v5158_v1  ;;  %v8508_v28 = vpack.c.bf16 %v5191_v13, %v5190_v54  ;;  %v4563_v36 = vmul.f32 %v14074_v31, %v4473_v10  ;;  %v8478_v21 = vpack.c.bf16 %v5143_v33, %v5142_v46  ;;  %v16766_v1 = vld [vmem:[#allocation143_spill] sm:$0xff]  ;;  %v16767_v42 = vld [vmem:[#allocation130_spill] sm:$0xff]  ;;  %v16770_v10 = vld [vmem:[#allocation48_spill] sm:$0xff] }
 0x905   :  { %v15057_v62 = vrot.slane %v8625_v19, %v16757_v47  ;;  %v4560_v48 = vmul.f32 %v14074_v31, %v4470_v43  ;;  %v4562_v55 = vmul.f32 %v14074_v31, %v4472_v35  ;;  %v4706_v52 = vmul.f32 %v14999_v26, %v4544_v40  ;;  %v16768_v13 = vld [vmem:[#allocation34_spill] sm:$0xff]  ;;  %v16771_v43 = vld [vmem:[#allocation17_spill] sm:$0xff]  ;;  %v16772_v35 = vld [vmem:[#allocation19_spill] sm:$0xff] }
 0x906   :  { %8471 = vmatpush3.bf16.msra.mxu0 %v8470_v2  ;;  %8503 = vmatpush3.bf16.msra.mxu1 %v8502_v4  ;;  %v4708_v20 = vmul.f32 %v15030_v3, %v4546_v16  ;;  %v4487_v17 = vsub.f32 %v16763_v63, %v16700_v15  ;;  %v4489_v38 = vsub.f32 %v16764_v9, %v16700_v15  ;;  %v16765_v2 = vld [vmem:[#allocation47_spill] sm:$0xff]  ;;  %v16769_v16 = vld [vmem:[#allocation142_spill] sm:$0xff] }
 0x907   :  { %8473 = vmatprep.subr.bf16.mxu0 %v8472_v61  ;;  %8505 = vmatprep.subr.bf16.mxu1 %v8504_v5  ;;  %v8510_v34 = vpack.c.bf16 %v5175_v45, %v5174_v37  ;;  %v4723_v25 = vmul.f32 %v16747_v30, %v4561_v58  ;;  %v4486_v4 = vsub.f32 %v16765_v2, %v16700_v15  ;;  %v16774_v63 = vld [vmem:[#allocation14_spill] sm:$0xff] }
 0x908   :  { %v4725_v31 = vmul.f32 %v16751_v49, %v4563_v36  ;;  %v4577_v61 = vmul.f32 %v14098_v50, %v4487_v17  ;;  %v4579_v41 = vmul.f32 %v14098_v50, %v4489_v38  ;;  %v4722_v6 = vmul.f32 %v14999_v26, %v4560_v48 }
 0x909   :  { %v4724_v5 = vmul.f32 %v15030_v3, %v4562_v55  ;;  %v4488_v7 = vsub.f32 %v16766_v1, %v16700_v15  ;;  %v4868_v29 = vadd.f32 %v15027_v12, %v4706_v52  ;;  %v4870_v57 = vadd.f32 %v15057_v62, %v4708_v20  ;;  %v16773_v52 = vld [vmem:[#allocation140_spill] sm:$0xff] }
 0x90a   :  { %8475 = vmatpush3.bf16.msra.mxu0 %v8474_v53  ;;  %8507 = vmatpush3.bf16.msra.mxu1 %v8506_v14  ;;  %v4576_v44 = vmul.f32 %v14098_v50, %v4486_v4  ;;  %v4503_v54 = vsub.f32 %v16767_v42, %v14023_v0  ;;  %v4505_v19 = vsub.f32 %v16768_v13, %v14023_v0  ;;  %v5947_v42 = vld [vmem:[%s15444_s14 + $0x18] sm:$0xff] }
 0x90b   :  { %8477 = vmatprep.subr.bf16.mxu0 %v8476_v11  ;;  %8509 = vmatprep.subr.bf16.mxu1 %v8508_v28  ;;  %v4578_v53 = vmul.f32 %v14098_v50, %v4488_v7  ;;  %v4885_v60 = vadd.f32 %v16752_v27, %v4723_v25  ;;  %v4887_v15 = vadd.f32 %v16753_v51, %v4725_v31  ;;  %v5963_v13 = vld [vmem:[%s15444_s14 + $0x98] sm:$0xff] }
 0x90c   :  { %v4739_v59 = vmul.f32 %v16747_v30, %v4577_v61  ;;  %v4741_v18 = vmul.f32 %v16751_v49, %v4579_v41  ;;  %v4884_v14 = vadd.f32 %v15027_v12, %v4722_v6  ;;  %v4886_v46 = vadd.f32 %v15057_v62, %v4724_v5 }
 0x90d   :  { %v4593_v50 = vmul.f32 %v14132_v23, %v4503_v54  ;;  %v4595_v33 = vmul.f32 %v14132_v23, %v4505_v19  ;;  %v4738_v40 = vmul.f32 %v14999_v26, %v4576_v44  ;;  %v4502_v8 = vsub.f32 %v16769_v16, %v14023_v0 }
 0x90e   :  { %8479 = vmatpush3.bf16.msra.mxu0 %v8478_v21  ;;  %8511 = vmatpush3.bf16.msra.mxu1 %v8510_v34  ;;  %v4504_v58 = vsub.f32 %v16770_v10, %v14023_v0  ;;  %v4740_v22 = vmul.f32 %v15030_v3, %v4578_v53  ;;  %v4519_v24 = vsub.f32 %v16771_v43, %v14049_v56  ;;  %v5949_v43 = vld [vmem:[%s15444_s14 + $0x28] sm:$0xff] }
 0x90f   :  { %v4521_v11 = vsub.f32 %v16772_v35, %v14049_v56  ;;  %v4901_v28 = vadd.f32 %v16752_v27, %v4739_v59  ;;  %v4903_v37 = vadd.f32 %v16753_v51, %v4741_v18  ;;  %v4592_v45 = vmul.f32 %v14132_v23, %v4502_v8  ;;  %v5944_v59 = vld [vmem:[%s15444_s14] sm:$0xff]  ;;  %v5951_v35 = vld [vmem:[%s15444_s14 + $0x38] sm:$0xff] }
 0x910   :  { %v4594_v36 = vmul.f32 %v14132_v23, %v4504_v58  ;;  %v4755_v0 = vmul.f32 %v16747_v30, %v4593_v50  ;;  %v4757_v21 = vmul.f32 %v16751_v49, %v4595_v33  ;;  %v4609_v48 = vmul.f32 %v16728_v39, %v4519_v24  ;;  %v5960_v18 = vld [vmem:[%s15444_s14 + $0x80] sm:$0xff]  ;;  %v5965_v24 = vld [vmem:[%s15444_s14 + $0xa8] sm:$0xff] }
 0x911   :  { %5804 = vmatmul.mubr.f32.vlgmr.msra.gmra.mrb[160].mxu0 %v4868_v29  ;;  %5894 = vmatmul.mubr.f32.vlgmr.msra.gmra.mrb[160].mxu1 %v4870_v57  ;;  %v4611_v55 = vmul.f32 %v16728_v39, %v4521_v11  ;;  %v4518_v20 = vsub.f32 %v16773_v52, %v14049_v56  ;;  %v4520_v17 = vsub.f32 %v16774_v63, %v14049_v56  ;;  %v16775_v29 = vmov 0.0  }
 0x912   :  { %5808 = vmatprep.mubr.f32.mxu0 %v4885_v60  ;;  %5898 = vmatprep.mubr.f32.mxu1 %v4887_v15  ;;  %v4900_v23 = vadd.f32 %v15027_v12, %v4738_v40  ;;  %v4902_v9 = vadd.f32 %v15057_v62, %v4740_v22  ;;  %v4754_v38 = vmul.f32 %v14999_v26, %v4592_v45  ;;  %v5962_v40 = vld [vmem:[%s15444_s14 + $0x90] sm:$0xff] }
 0x913   :  { %v4756_v34 = vmul.f32 %v15030_v3, %v4594_v36  ;;  %v4608_v25 = vmul.f32 %v16728_v39, %v4518_v20  ;;  %v4610_v2 = vmul.f32 %v16728_v39, %v4520_v17  ;;  %v4917_v4 = vadd.f32 %v16752_v27, %v4755_v0  ;;  %v5967_v36 = vld [vmem:[%s15444_s14 + $0xb8] sm:$0xff] }
 0x914   :  { %v4919_v31 = vadd.f32 %v16753_v51, %v4757_v21  ;;  %v4771_v56 = vmul.f32 %v16747_v30, %v4609_v48  ;;  %v4773_v61 = vmul.f32 %v16751_v49, %v4611_v55  ;;  %v4916_v41 = vadd.f32 %v15027_v12, %v4754_v38 }
 0x915   :  { %5809 = vmatmul.mubr.f32.gmra.mrb[162].mxu0 %v4884_v14  ;;  %5899 = vmatmul.mubr.f32.gmra.mrb[162].mxu1 %v4886_v46  ;;  %v4918_v6 = vadd.f32 %v15057_v62, %v4756_v34  ;;  %v4770_v5 = vmul.f32 %v14999_v26, %v4608_v25  ;;  %v4772_v39 = vmul.f32 %v15030_v3, %v4610_v2  ;;  %v5946_v14 = vld [vmem:[%s15444_s14 + $0x10] sm:$0xff] }
 0x916   :  { %5813 = vmatprep.mubr.f32.mxu0 %v4901_v28  ;;  %5903 = vmatprep.mubr.f32.mxu1 %v4903_v37  ;;  %v4933_v1 = vadd.f32 %v16752_v27, %v4771_v56  ;;  %v4935_v7 = vadd.f32 %v16753_v51, %v4773_v61  ;;  %v7027_v27 = vld [vmem:[%s15443_s13] ss:$0 sm:$0xff]  ;;  %v8516_v60 = vpack.c.bf16 %v5963_v13, %v5947_v42 }
 0x917   :  { %v4932_v30 = vadd.f32 %v15027_v12, %v4770_v5  ;;  %v4934_v49 = vadd.f32 %v15057_v62, %v4772_v39  ;;  %v5945_v12 = vld [vmem:[%s15444_s14 + $0x8] sm:$0xff]  ;;  %v8514_v33 = vpack.c.bf16 %v5960_v18, %v5944_v59  ;;  %v8518_v10 = vpack.c.bf16 %v5962_v40, %v5946_v14 }
 0x918   :  { %v5961_v62 = vld [vmem:[%s15444_s14 + $0x88] sm:$0xff]  ;;  %8517 = vmatprep.subr.bf16.mxu1 %v8516_v60  ;;  %v8520_v45 = vpack.c.bf16 %v5965_v24, %v5949_v43  ;;  %v8524_v48 = vpack.c.bf16 %v5967_v36, %v5951_v35 }
 0x919   :  { %5814 = vmatmul.mubr.f32.gmra.mrb[164].mxu0 %v4900_v23  ;;  %5904 = vmatmul.mubr.f32.gmra.mrb[164].mxu1 %v4902_v9  ;;  %v8512_v54 = vpack.c.bf16 %v5961_v62, %v5945_v12 }
 0x91a   :  { %5818 = vmatprep.mubr.f32.mxu0 %v4917_v4  ;;  %5908 = vmatprep.mubr.f32.mxu1 %v4919_v31 }
 0x91b   :  { %8513 = vmatprep.subr.bf16.mxu0 %v8512_v54  ;;  %8519 = vmatpush1.bf16.msra.mxu1 %v8518_v10 }
 0x91c   :  { %8515 = vmatpush1.bf16.msra.mxu0 %v8514_v33  ;;  %8525 = vmatprep.subr.bf16.mxu1 %v8524_v48 }
 0x91d   :  { %5819 = vmatmul.mubr.f32.gmra.mrb[166].mxu0 %v4916_v41  ;;  %5909 = vmatmul.mubr.f32.gmra.mrb[166].mxu1 %v4918_v6 }
 0x91e   :  { %5823 = vmatprep.mubr.f32.mxu0 %v4933_v1  ;;  %5913 = vmatprep.mubr.f32.mxu1 %v4935_v7 }
 0x91f   :  { %8521 = vmatprep.subr.bf16.mxu0 %v8520_v45 }
 0x921   :  { %5824 = vmatmul.mubr.f32.gmra.mrb[168].mxu0 %v4932_v30  ;;  %5914 = vmatmul.mubr.f32.gmra.mrb[168].mxu1 %v4934_v49 }
 0x922   :  { %6139 = vmatprep.mubr.f32.mxu0 %v16775_v29  ;;  %6234 = vmatprep.mubr.f32.mxu1 %v16775_v29 }
 0x96d   :  { %v7496_v26 = vpop.f32.mrb[130].mxu0  ;;  %v7543_v3 = vpop.f32.mrb[130].mxu1 }
 0x96e   :  { %v7497_v51 = vpop.f32.mrb[131].mxu0  ;;  %v7544_v57 = vpop.f32.mrb[131].mxu1 }
 0x96f   :  { %v7498_v44 = vadd.f32 %v7497_v51, %v7496_v26  ;;  %v7545_v53 = vadd.f32 %v7544_v57, %v7543_v3 }
 0x971   :  { %v5266_v19 = vadd.f32 %v7498_v44, %v7027_v27 }
 0x973   :  { %v5356_v15 = vadd.f32 %v7545_v53, %v5266_v19 }
 0x975   :  { %v7499_v46 = vpop.f32.mrb[132].mxu0  ;;  %v7546_v50 = vpop.f32.mrb[132].mxu1 }
 0x976   :  { %v7500_v16 = vpop.f32.mrb[133].mxu0  ;;  %v7547_v8 = vpop.f32.mrb[133].mxu1 }
 0x977   :  { %v7501_v58 = vadd.f32 %v7500_v16, %v7499_v46  ;;  %v7548_v22 = vadd.f32 %v7547_v8, %v7546_v50 }
 0x979   :  { %v5271_v11 = vadd.f32 %v7501_v58, %v7027_v27 }
 0x97a   :  { %v7502_v28 = vpop.f32.mrb[134].mxu0 }
 0x97b   :  { %v7549_v37 = vpop.f32.mrb[134].mxu1  ;;  %v7503_v0 = vpop.f32.mrb[135].mxu0  ;;  %v5361_v55 = vadd.f32 %v7548_v22, %v5271_v11 }
 0x97c   :  { %v7550_v21 = vpop.f32.mrb[135].mxu1  ;;  %v7504_v52 = vadd.f32 %v7503_v0, %v7502_v28 }
 0x97d   :  { %v7551_v20 = vadd.f32 %v7550_v21, %v7549_v37 }
 0x97e   :  { %v5276_v63 = vadd.f32 %v7504_v52, %v7027_v27 }
 0x97f   :  { %v7505_v17 = vpop.f32.mrb[136].mxu0 }
 0x980   :  { %v7552_v23 = vpop.f32.mrb[136].mxu1  ;;  %v7506_v9 = vpop.f32.mrb[137].mxu0  ;;  %v5366_v38 = vadd.f32 %v7551_v20, %v5276_v63 }
 0x981   :  { %v7507_v34 = vadd.f32 %v7506_v9, %v7505_v17  ;;  %v7553_v25 = vpop.f32.mrb[137].mxu1 }
 0x982   :  { %v7554_v2 = vadd.f32 %v7553_v25, %v7552_v23 }
 0x983   :  { %v5281_v4 = vadd.f32 %v7507_v34, %v7027_v27 }
 0x984   :  { %v7508_v31 = vpop.f32.mrb[138].mxu0 }
 0x985   :  { %v7555_v56 = vpop.f32.mrb[138].mxu1  ;;  %v7509_v61 = vpop.f32.mrb[139].mxu0  ;;  %v5371_v41 = vadd.f32 %v7554_v2, %v5281_v4 }
 0x986   :  { %v7510_v6 = vadd.f32 %v7509_v61, %v7508_v31  ;;  %v7556_v5 = vpop.f32.mrb[139].mxu1 }
 0x987   :  { %v7557_v39 = vadd.f32 %v7556_v5, %v7555_v56 }
 0x988   :  { %v5286_v1 = vadd.f32 %v7510_v6, %v7027_v27 }
 0x98a   :  { %v5376_v7 = vadd.f32 %v7557_v39, %v5286_v1 }
 0x996   :  { %v7590_v30 = vpop.f32.mrb[140].mxu0  ;;  %v7637_v49 = vpop.f32.mrb[140].mxu1 }
 0x997   :  { %v7591_v26 = vpop.f32.mrb[141].mxu0  ;;  %v7638_v3 = vpop.f32.mrb[141].mxu1 }
 0x998   :  { %v7592_v51 = vadd.f32 %v7591_v26, %v7590_v30  ;;  %v7639_v57 = vadd.f32 %v7638_v3, %v7637_v49 }
 0x99a   :  { %v5446_v44 = vadd.f32 %v7592_v51, %v5356_v15  ;;  %v7593_v53 = vpop.f32.mrb[142].mxu0 }
 0x99b   :  { %v7640_v12 = vpop.f32.mrb[142].mxu1  ;;  %v7594_v62 = vpop.f32.mrb[143].mxu0 }
 0x99c   :  { %v7641_v42 = vpop.f32.mrb[143].mxu1  ;;  %v5536_v54 = vadd.f32 %v7639_v57, %v5446_v44  ;;  %v7595_v13 = vadd.f32 %v7594_v62, %v7593_v53 }
 0x99d   :  { %v7642_v19 = vadd.f32 %v7641_v42, %v7640_v12 }
 0x99e   :  { %v5451_v60 = vadd.f32 %v7595_v13, %v5361_v55  ;;  %v7596_v59 = vpop.f32.mrb[144].mxu0 }
 0x99f   :  { %v7643_v18 = vpop.f32.mrb[144].mxu1  ;;  %v7597_v14 = vpop.f32.mrb[145].mxu0 }
 0x9a0   :  { %v7644_v27 = vpop.f32.mrb[145].mxu1  ;;  %v5541_v46 = vadd.f32 %v7642_v19, %v5451_v60  ;;  %v7598_v50 = vadd.f32 %v7597_v14, %v7596_v59 }
 0x9a1   :  { %v7645_v33 = vadd.f32 %v7644_v27, %v7643_v18 }
 0x9a2   :  { %v5456_v40 = vadd.f32 %v7598_v50, %v5366_v38  ;;  %v7599_v16 = vpop.f32.mrb[146].mxu0 }
 0x9a3   :  { %v7600_v10 = vpop.f32.mrb[147].mxu0 }
 0x9a4   :  { %v7646_v8 = vpop.f32.mrb[146].mxu1  ;;  %v5546_v58 = vadd.f32 %v7645_v33, %v5456_v40  ;;  %v7601_v22 = vadd.f32 %v7600_v10, %v7599_v16 }
 0x9a5   :  { %v7647_v15 = vpop.f32.mrb[147].mxu1 }
 0x9a6   :  { %v7648_v43 = vadd.f32 %v7647_v15, %v7646_v8  ;;  %v5461_v24 = vadd.f32 %v7601_v22, %v5371_v41  ;;  %v7602_v35 = vpop.f32.mrb[148].mxu0 }
 0x9a7   :  { %v7603_v28 = vpop.f32.mrb[149].mxu0 }
 0x9a8   :  { %v7649_v11 = vpop.f32.mrb[148].mxu1  ;;  %v5551_v45 = vadd.f32 %v7648_v43, %v5461_v24  ;;  %v7604_v36 = vadd.f32 %v7603_v28, %v7602_v35 }
 0x9a9   :  { %v7650_v37 = vpop.f32.mrb[149].mxu1 }
 0x9aa   :  { %v7651_v0 = vadd.f32 %v7650_v37, %v7649_v11  ;;  %v5466_v21 = vadd.f32 %v7604_v36, %v5376_v7 }
 0x9ac   :  { %v5556_v48 = vadd.f32 %v7651_v0, %v5466_v21 }
 0x9c0   :  { %v7684_v55 = vpop.f32.mrb[150].mxu0 }
 0x9c1   :  { %v7731_v52 = vpop.f32.mrb[150].mxu1  ;;  %v7685_v20 = vpop.f32.mrb[151].mxu0 }
 0x9c2   :  { %v7732_v63 = vpop.f32.mrb[151].mxu1  ;;  %v7686_v17 = vadd.f32 %v7685_v20, %v7684_v55 }
 0x9c3   :  { %v7733_v23 = vadd.f32 %v7732_v63, %v7731_v52 }
 0x9c4   :  { %v5626_v9 = vadd.f32 %v7686_v17, %v5536_v54  ;;  %v7687_v38 = vpop.f32.mrb[152].mxu0 }
 0x9c5   :  { %v7734_v34 = vpop.f32.mrb[152].mxu1  ;;  %v7688_v25 = vpop.f32.mrb[153].mxu0 }
 0x9c6   :  { %v7735_v2 = vpop.f32.mrb[153].mxu1  ;;  %v5716_v4 = vadd.f32 %v7733_v23, %v5626_v9  ;;  %v7689_v31 = vadd.f32 %v7688_v25, %v7687_v38 }
 0x9c7   :  { %v7736_v56 = vadd.f32 %v7735_v2, %v7734_v34 }
 0x9c8   :  { %v5631_v61 = vadd.f32 %v7689_v31, %v5541_v46 }
 0x9ca   :  { %v7690_v41 = vpop.f32.mrb[154].mxu0  ;;  %v7737_v6 = vpop.f32.mrb[154].mxu1  ;;  %v5721_v1 = vadd.f32 %v7736_v56, %v5631_v61 }
 0x9cb   :  { %v7691_v5 = vpop.f32.mrb[155].mxu0  ;;  %v7738_v39 = vpop.f32.mrb[155].mxu1 }
 0x9cc   :  { %v7692_v7 = vadd.f32 %v7691_v5, %v7690_v41  ;;  %v7739_v30 = vadd.f32 %v7738_v39, %v7737_v6 }
 0x9ce   :  { %v5636_v49 = vadd.f32 %v7692_v7, %v5546_v58  ;;  %v7693_v26 = vpop.f32.mrb[156].mxu0  ;;  %v5948_v7 = vld [vmem:[%s15444_s14 + $0x20] sm:$0xff] }
 0x9cf   :  { %v7740_v3 = vpop.f32.mrb[156].mxu1  ;;  %v7694_v51 = vpop.f32.mrb[157].mxu0 }
 0x9d0   :  { %v7741_v57 = vpop.f32.mrb[157].mxu1  ;;  %v5726_v44 = vadd.f32 %v7739_v30, %v5636_v49  ;;  %v7695_v53 = vadd.f32 %v7694_v51, %v7693_v26  ;;  %v5964_v30 = vld [vmem:[%s15444_s14 + $0xa0] sm:$0xff]  ;;  %v5950_v51 = vld [vmem:[%s15444_s14 + $0x30] sm:$0xff] }
 0x9d1   :  { %v7742_v12 = vadd.f32 %v7741_v57, %v7740_v3  ;;  %v5966_v57 = vld [vmem:[%s15444_s14 + $0xb0] sm:$0xff] }
 0x9d2   :  { %v5641_v62 = vadd.f32 %v7695_v53, %v5551_v45 }
 0x9d3   :  { %v7696_v42 = vpop.f32.mrb[158].mxu0  ;;  %v7743_v54 = vpop.f32.mrb[158].mxu1 }
 0x9d4   :  { %v7697_v13 = vpop.f32.mrb[159].mxu0  ;;  %v7744_v19 = vpop.f32.mrb[159].mxu1  ;;  %v5731_v60 = vadd.f32 %v7742_v12, %v5641_v62  ;;  %v5969_v62 = vld [vmem:[%s15444_s14 + $0xc8] sm:$0xff] }
 0x9d5   :  { %v7698_v59 = vadd.f32 %v7697_v13, %v7696_v42  ;;  %v7745_v18 = vadd.f32 %v7744_v19, %v7743_v54  ;;  %v5955_v42 = vld [vmem:[%s15444_s14 + $0x58] sm:$0xff] }
 0x9d6   :  { %v5971_v54 = vld [vmem:[%s15444_s14 + $0xd8] sm:$0xff] }
 0x9d7   :  { %v5646_v14 = vadd.f32 %v7698_v59, %v5556_v48  ;;  %v8526_v59 = vpack.c.bf16 %v5966_v57, %v5950_v51 }
 0x9d9   :  { %v5736_v27 = vadd.f32 %v7745_v18, %v5646_v14 }
 0x9e4   :  { %v7778_v46 = vpop.f32.mrb[160].mxu0  ;;  %v7825_v50 = vpop.f32.mrb[160].mxu1 }
 0x9e5   :  { %v7779_v33 = vpop.f32.mrb[161].mxu0  ;;  %v7826_v40 = vpop.f32.mrb[161].mxu1 }
 0x9e6   :  { %v7780_v16 = vadd.f32 %v7779_v33, %v7778_v46  ;;  %v7827_v8 = vadd.f32 %v7826_v40, %v7825_v50  ;;  %v8532_v46 = vpack.c.bf16 %v5971_v54, %v5955_v42 }
 0x9e8   :  { %v5806_v10 = vadd.f32 %v7780_v16, %v5716_v4  ;;  %v7781_v15 = vpop.f32.mrb[162].mxu0  ;;  %v7828_v58 = vpop.f32.mrb[162].mxu1 }
 0x9e9   :  { %v7782_v22 = vpop.f32.mrb[163].mxu0  ;;  %v7829_v43 = vpop.f32.mrb[163].mxu1 }
 0x9ea   :  { %v5896_v24 = vadd.f32 %v7827_v8, %v5806_v10  ;;  %v7783_v35 = vadd.f32 %v7782_v22, %v7781_v15  ;;  %v7830_v11 = vadd.f32 %v7829_v43, %v7828_v58 }
 0x9ec   :  { %v5924_v28 = vmul.f32 0.70710677, %v5896_v24  ;;  %v5811_v37 = vadd.f32 %v7783_v35, %v5721_v1  ;;  %v7784_v45 = vpop.f32.mrb[164].mxu0  ;;  %v7831_v36 = vpop.f32.mrb[164].mxu1  ;;  %v5919_v53 = vmul.f32 0.5, %v5896_v24 }
 0x9ed   :  { %v7785_v0 = vpop.f32.mrb[165].mxu0  ;;  %v7832_v21 = vpop.f32.mrb[165].mxu1 }
 0x9ee   :  { %8612 = verf.f32 %v5924_v28  ;;  %v5901_v48 = vadd.f32 %v7830_v11, %v5811_v37  ;;  %v7786_v55 = vadd.f32 %v7785_v0, %v7784_v45  ;;  %v7833_v52 = vadd.f32 %v7832_v21, %v7831_v36  ;;  %v5952_v45 = vld [vmem:[%s15444_s14 + $0x40] sm:$0xff]  ;;  %v5954_v0 = vld [vmem:[%s15444_s14 + $0x50] sm:$0xff] }
 0x9ef   :  { %v5968_v36 = vld [vmem:[%s15444_s14 + $0xc0] sm:$0xff]  ;;  %v5970_v21 = vld [vmem:[%s15444_s14 + $0xd0] sm:$0xff] }
 0x9f0   :  { %v5925_v20 = vmul.f32 0.70710677, %v5901_v48  ;;  %v5816_v63 = vadd.f32 %v7786_v55, %v5726_v44  ;;  %v7787_v17 = vpop.f32.mrb[166].mxu0  ;;  %v7834_v23 = vpop.f32.mrb[166].mxu1  ;;  %v5953_v44 = vld [vmem:[%s15444_s14 + $0x48] sm:$0xff]  ;;  %v5920_v50 = vmul.f32 0.5, %v5901_v48 }
 0x9f1   :  { %v7788_v9 = vpop.f32.mrb[167].mxu0  ;;  %v7835_v38 = vpop.f32.mrb[167].mxu1  ;;  %v5957_v48 = vld [vmem:[%s15444_s14 + $0x68] sm:$0xff] }
 0x9f2   :  { %8614 = verf.f32 %v5925_v20  ;;  %v5906_v34 = vadd.f32 %v7833_v52, %v5816_v63  ;;  %v7789_v25 = vadd.f32 %v7788_v9, %v7787_v17  ;;  %v7836_v2 = vadd.f32 %v7835_v38, %v7834_v23  ;;  %v5973_v55 = vld [vmem:[%s15444_s14 + $0xe8] sm:$0xff]  ;;  %v5959_v52 = vld [vmem:[%s15444_s14 + $0x78] sm:$0xff]  ;;  %v5956_v38 = vld [vmem:[%s15444_s14 + $0x60] sm:$0xff] }
 0x9f3   :  { %v5975_v20 = vld [vmem:[%s15444_s14 + $0xf8] sm:$0xff]  ;;  %v8530_v63 = vpack.c.bf16 %v5968_v36, %v5952_v45  ;;  %v8534_v17 = vpack.c.bf16 %v5970_v21, %v5954_v0  ;;  %v8536_v23 = vpack.c.bf16 %v5973_v55, %v5957_v48 }
 0x9f4   :  { %v5926_v4 = vmul.f32 0.70710677, %v5906_v34  ;;  %v5821_v31 = vadd.f32 %v7789_v25, %v5731_v60  ;;  %v7790_v56 = vpop.f32.mrb[168].mxu0  ;;  %v7837_v61 = vpop.f32.mrb[168].mxu1  ;;  %v8522_v60 = vpack.c.bf16 %v5964_v30, %v5948_v7  ;;  %v5921_v8 = vmul.f32 0.5, %v5906_v34  ;;  %v5972_v34 = vld [vmem:[%s15444_s14 + $0xe0] sm:$0xff] }
 0x9f5   :  { %v7791_v41 = vpop.f32.mrb[169].mxu0  ;;  %v7838_v6 = vpop.f32.mrb[169].mxu1  ;;  %v8540_v9 = vpack.c.bf16 %v5975_v20, %v5959_v52  ;;  %v5958_v25 = vld [vmem:[%s15444_s14 + $0x70] sm:$0xff] }
 0x9f6   :  { %8616 = verf.f32 %v5926_v4  ;;  %v5911_v5 = vadd.f32 %v7836_v2, %v5821_v31  ;;  %v7792_v39 = vadd.f32 %v7791_v41, %v7790_v56  ;;  %v7839_v1 = vadd.f32 %v7838_v6, %v7837_v61  ;;  %v5974_v2 = vld [vmem:[%s15444_s14 + $0xf0] sm:$0xff]  ;;  %v15365_v56 = vld [vmem:[%s15445_s15] sm:$0xff]  ;;  %v16776_v61 = vld [vmem:[#allocation5_spill] sm:$0xff] }
 0x9f7   :  { %v8538_v4 = vpack.c.bf16 %v5972_v34, %v5956_v38  ;;  %v8542_v31 = vpack.c.bf16 %v5974_v2, %v5958_v25  ;;  %v5983_v41 = vrot.slane %v15365_v56, %v16776_v61  ;;  %v16777_v6 = vld [vmem:[#allocation7_spill] sm:$0xff]  ;;  %v5999_v21 = vrot.slane %v15365_v56, %v16754_v32  ;;  %v16780_v20 = vld [vmem:[#allocation10_spill] sm:$0xff] }
 0x9f8   :  { %v8613_v49 = vpop.eup %8612  ;;  %v5927_v26 = vmul.f32 0.70710677, %v5911_v5  ;;  %v5826_v3 = vadd.f32 %v7792_v39, %v5736_v27  ;;  %v8528_v27 = vpack.c.bf16 %v5969_v62, %v5953_v44  ;;  %v5922_v22 = vmul.f32 0.5, %v5911_v5  ;;  %v16778_v39 = vld [vmem:[#allocation6_spill] sm:$0xff] }
 0x9f9   :  { %v5934_v12 = vadd.f32 1.0, %v8613_v49  ;;  %v5991_v5 = vrot.slane %v15365_v56, %v16777_v6  ;;  %v6007_v48 = vrot.slane %v15365_v56, %v16757_v47 }
 0x9fa   :  { %8618 = verf.f32 %v5927_v26  ;;  %v5916_v13 = vadd.f32 %v7839_v1, %v5826_v3  ;;  %v16779_v1 = vld [vmem:[#allocation8_spill] sm:$0xff] }
 0x9fb   :  { %v15198_v19 = vmul.f32 %v5934_v12, %v5919_v53  ;;  %v5995_v7 = vrot.slane %v15365_v56, %v16779_v1 }
 0x9fc   :  { %v8615_v18 = vpop.eup %8614  ;;  %v5928_v14 = vmul.f32 0.70710677, %v5916_v13  ;;  %v5923_v11 = vmul.f32 0.5, %v5916_v13 }
 0x9fd   :  { %v5935_v33 = vadd.f32 1.0, %v8615_v18  ;;  %7028 = vmatmul.mubr.msk.f32.vlgmr.msra.gmra.mrb[170].mxu0 %vm175_vm0, %v15198_v19  ;;  %7033 = vmatmul.mubr.msk.f32.vlgmr.msra.gmra.mrb[170].mxu1 %vm175_vm0, %v15198_v19 }
 0x9fe   :  { %8620 = verf.f32 %v5928_v14  ;;  %6145 = vmatprep.mubr.f32.mxu0 %v16775_v29  ;;  %6240 = vmatprep.mubr.f32.mxu1 %v16775_v29 }
 0x9ff   :  { %v15206_v40 = vmul.f32 %v5935_v33, %v5920_v50  ;;  %8523 = vmatpush1.bf16.msra.mxu0 %v8522_v60  ;;  %8527 = vmatpush1.bf16.msra.mxu1 %v8526_v59 }
 0xa00   :  { %v8617_v16 = vpop.eup %8616  ;;  %8529 = vmatprep.subr.bf16.mxu0 %v8528_v27  ;;  %8533 = vmatprep.subr.bf16.mxu1 %v8532_v46 }
 0xa01   :  { %v5936_v10 = vadd.f32 1.0, %v8617_v16  ;;  %7029 = vmatmul.mubr.msk.f32.gmra.mrb[172].mxu0 %vm175_vm0, %v15206_v40  ;;  %7034 = vmatmul.mubr.msk.f32.gmra.mrb[172].mxu1 %vm175_vm0, %v15206_v40 }
 0xa02   :  { %6151 = vmatprep.mubr.f32.mxu0 %v16775_v29  ;;  %6246 = vmatprep.mubr.f32.mxu1 %v16775_v29 }
 0xa03   :  { %v15214_v15 = vmul.f32 %v5936_v10, %v5921_v8 }
 0xa04   :  { %v8619_v58 = vpop.eup %8618 }
 0xa05   :  { %v5937_v43 = vadd.f32 1.0, %v8619_v58  ;;  %7030 = vmatmul.mubr.msk.f32.gmra.mrb[174].mxu0 %vm175_vm0, %v15214_v15  ;;  %7035 = vmatmul.mubr.msk.f32.gmra.mrb[174].mxu1 %vm175_vm0, %v15214_v15 }
 0xa06   :  { %6157 = vmatprep.mubr.f32.mxu0 %v16775_v29  ;;  %6252 = vmatprep.mubr.f32.mxu1 %v16775_v29 }
 0xa07   :  { %v15222_v24 = vmul.f32 %v5937_v43, %v5922_v22 }
 0xa08   :  { %v8621_v35 = vpop.eup %8620 }
 0xa09   :  { %v5938_v28 = vadd.f32 1.0, %v8621_v35  ;;  %7031 = vmatmul.mubr.msk.f32.gmra.mrb[176].mxu0 %vm175_vm0, %v15222_v24  ;;  %7036 = vmatmul.mubr.msk.f32.gmra.mrb[176].mxu1 %vm175_vm0, %v15222_v24 }
 0xa0a   :  { %6163 = vmatprep.mubr.f32.mxu0 %v16775_v29  ;;  %6258 = vmatprep.mubr.f32.mxu1 %v16775_v29 }
 0xa0b   :  { %v15230_v37 = vmul.f32 %v5938_v28, %v5923_v11 }
 0xa0d   :  { %7032 = vmatmul.mubr.msk.f32.gmra.mrb[178].mxu0 %vm175_vm0, %v15230_v37  ;;  %7037 = vmatmul.mubr.msk.f32.gmra.mrb[178].mxu1 %vm175_vm0, %v15230_v37 }
 0xa0e   :  { %6329 = vmatprep.mubr.f32.mxu0 %v16775_v29  ;;  %6424 = vmatprep.mubr.f32.mxu1 %v16775_v29 }
 0xa11   :  { %7038 = vmatmul.mubr.msk.f32.vlgmr.msra.gmra.mrb[180].mxu0 %vm175_vm0, %v15198_v19  ;;  %7043 = vmatmul.mubr.msk.f32.vlgmr.msra.gmra.mrb[180].mxu1 %vm175_vm0, %v15198_v19 }
 0xa12   :  { %6335 = vmatprep.mubr.f32.mxu0 %v16775_v29  ;;  %6430 = vmatprep.mubr.f32.mxu1 %v16775_v29 }
 0xa13   :  { %8531 = vmatpush1.bf16.msra.mxu0 %v8530_v63  ;;  %8535 = vmatpush1.bf16.msra.mxu1 %v8534_v17  ;;  %v15381_v63 = vrot.slane %v15365_v56, %v16780_v20  ;;  %v16781_v17 = vld [vmem:[#allocation12_spill] sm:$0xff] }
 0xa14   :  { %8537 = vmatprep.subr.bf16.mxu0 %v8536_v23  ;;  %8541 = vmatprep.subr.bf16.mxu1 %v8540_v9  ;;  %v15385_v23 = vrot.slane %v15365_v56, %v16781_v17 }
 0xa15   :  { %7039 = vmatmul.mubr.msk.f32.gmra.mrb[182].mxu0 %vm175_vm0, %v15206_v40  ;;  %7044 = vmatmul.mubr.msk.f32.gmra.mrb[182].mxu1 %vm175_vm0, %v15206_v40 }
 0xa16   :  { %6341 = vmatprep.mubr.f32.mxu0 %v16775_v29  ;;  %6436 = vmatprep.mubr.f32.mxu1 %v16775_v29 }
 0xa19   :  { %7040 = vmatmul.mubr.msk.f32.gmra.mrb[184].mxu0 %vm175_vm0, %v15214_v15  ;;  %7045 = vmatmul.mubr.msk.f32.gmra.mrb[184].mxu1 %vm175_vm0, %v15214_v15 }
 0xa1a   :  { %6347 = vmatprep.mubr.f32.mxu0 %v16775_v29  ;;  %6442 = vmatprep.mubr.f32.mxu1 %v16775_v29 }
 0xa1d   :  { %7041 = vmatmul.mubr.msk.f32.gmra.mrb[186].mxu0 %vm175_vm0, %v15222_v24  ;;  %7046 = vmatmul.mubr.msk.f32.gmra.mrb[186].mxu1 %vm175_vm0, %v15222_v24 }
 0xa1e   :  { %6353 = vmatprep.mubr.f32.mxu0 %v16775_v29  ;;  %6448 = vmatprep.mubr.f32.mxu1 %v16775_v29 }
 0xa21   :  { %7042 = vmatmul.mubr.msk.f32.gmra.mrb[188].mxu0 %vm175_vm0, %v15230_v37  ;;  %7047 = vmatmul.mubr.msk.f32.gmra.mrb[188].mxu1 %vm175_vm0, %v15230_v37 }
 0xa22   :  { %6519 = vmatprep.mubr.f32.mxu0 %v16775_v29  ;;  %6614 = vmatprep.mubr.f32.mxu1 %v16775_v29 }
 0xa25   :  { %7048 = vmatmul.mubr.msk.f32.vlgmr.msra.gmra.mrb[190].mxu0 %vm175_vm0, %v15198_v19  ;;  %7053 = vmatmul.mubr.msk.f32.vlgmr.msra.gmra.mrb[190].mxu1 %vm175_vm0, %v15198_v19 }
 0xa26   :  { %6525 = vmatprep.mubr.f32.mxu0 %v16775_v29  ;;  %6620 = vmatprep.mubr.f32.mxu1 %v16775_v29 }
 0xa27   :  { %8539 = vmatpush1.bf16.msra.mxu0 %v8538_v4  ;;  %8543 = vmatpush1.bf16.msra.mxu1 %v8542_v31 }
 0xa29   :  { %7049 = vmatmul.mubr.msk.f32.gmra.mrb[192].mxu0 %vm175_vm0, %v15206_v40  ;;  %7054 = vmatmul.mubr.msk.f32.gmra.mrb[192].mxu1 %vm175_vm0, %v15206_v40 }
 0xa2a   :  { %6531 = vmatprep.mubr.f32.mxu0 %v16775_v29  ;;  %6626 = vmatprep.mubr.f32.mxu1 %v16775_v29 }
 0xa2d   :  { %7050 = vmatmul.mubr.msk.f32.gmra.mrb[194].mxu0 %vm175_vm0, %v15214_v15  ;;  %7055 = vmatmul.mubr.msk.f32.gmra.mrb[194].mxu1 %vm175_vm0, %v15214_v15 }
 0xa2e   :  { %6537 = vmatprep.mubr.f32.mxu0 %v16775_v29  ;;  %6632 = vmatprep.mubr.f32.mxu1 %v16775_v29 }
 0xa31   :  { %7051 = vmatmul.mubr.msk.f32.gmra.mrb[196].mxu0 %vm175_vm0, %v15222_v24  ;;  %7056 = vmatmul.mubr.msk.f32.gmra.mrb[196].mxu1 %vm175_vm0, %v15222_v24 }
 0xa32   :  { %6543 = vmatprep.mubr.f32.mxu0 %v16775_v29  ;;  %6638 = vmatprep.mubr.f32.mxu1 %v16775_v29 }
 0xa35   :  { %7052 = vmatmul.mubr.msk.f32.gmra.mrb[198].mxu0 %vm175_vm0, %v15230_v37  ;;  %7057 = vmatmul.mubr.msk.f32.gmra.mrb[198].mxu1 %vm175_vm0, %v15230_v37 }
 0xa36   :  { %6709 = vmatprep.mubr.f32.mxu0 %v16775_v29  ;;  %6804 = vmatprep.mubr.f32.mxu1 %v16775_v29 }
 0xa39   :  { %7058 = vmatmul.mubr.msk.f32.vlgmr.msra.gmra.mrb[200].mxu0 %vm175_vm0, %v15198_v19  ;;  %7063 = vmatmul.mubr.msk.f32.vlgmr.msra.gmra.mrb[200].mxu1 %vm175_vm0, %v15198_v19 }
 0xa3a   :  { %6715 = vmatprep.mubr.f32.mxu0 %v16775_v29  ;;  %6810 = vmatprep.mubr.f32.mxu1 %v16775_v29 }
 0xa3d   :  { %7059 = vmatmul.mubr.msk.f32.gmra.mrb[202].mxu0 %vm175_vm0, %v15206_v40  ;;  %7064 = vmatmul.mubr.msk.f32.gmra.mrb[202].mxu1 %vm175_vm0, %v15206_v40 }
 0xa3e   :  { %6721 = vmatprep.mubr.f32.mxu0 %v16775_v29  ;;  %6816 = vmatprep.mubr.f32.mxu1 %v16775_v29 }
 0xa41   :  { %7060 = vmatmul.mubr.msk.f32.gmra.mrb[204].mxu0 %vm175_vm0, %v15214_v15  ;;  %7065 = vmatmul.mubr.msk.f32.gmra.mrb[204].mxu1 %vm175_vm0, %v15214_v15 }
 0xa42   :  { %6727 = vmatprep.mubr.f32.mxu0 %v16775_v29  ;;  %6822 = vmatprep.mubr.f32.mxu1 %v16775_v29 }
 0xa45   :  { %7061 = vmatmul.mubr.msk.f32.gmra.mrb[206].mxu0 %vm175_vm0, %v15222_v24  ;;  %7066 = vmatmul.mubr.msk.f32.gmra.mrb[206].mxu1 %vm175_vm0, %v15222_v24 }
 0xa46   :  { %6733 = vmatprep.mubr.f32.mxu0 %v16775_v29  ;;  %6828 = vmatprep.mubr.f32.mxu1 %v16775_v29  ;;  %v5987_v29 = vrot.slane %v15365_v56, %v16778_v39 }
 0xa49   :  { %7062 = vmatmul.mubr.msk.f32.gmra.mrb[208].mxu0 %vm175_vm0, %v15230_v37  ;;  %7067 = vmatmul.mubr.msk.f32.gmra.mrb[208].mxu1 %vm175_vm0, %v15230_v37 }
 0xad0   :  { %v6141_v30 = vpop.f32.mrb[170].mxu0  ;;  %v6236_v49 = vpop.f32.mrb[170].mxu1 }
 0xad1   :  { %v6142_v26 = vadd.f32 %v6141_v30, %v5983_v41  ;;  %v6237_v3 = vadd.f32 %v6236_v49, %v5991_v5  ;;  %v6143_v51 = vpop.f32.mrb[171].mxu0  ;;  %v6238_v57 = vpop.f32.mrb[171].mxu1 }
 0xad2   :  { %v6144_v44 = vadd.f32 %v6143_v51, %v5987_v29  ;;  %v6239_v53 = vadd.f32 %v6238_v57, %v5995_v7 }
 0xad3   :  { %6835 = vst [vmem:[#allocation2] sm:$0xff] %v6142_v26  ;;  %6837 = vst [vmem:[#allocation2 + $0x10] sm:$0xff] %v6237_v3 }
 0xad4   :  { %6836 = vst [vmem:[#allocation2 + $0x8] sm:$0xff] %v6144_v44  ;;  %6838 = vst [vmem:[#allocation2 + $0x18] sm:$0xff] %v6239_v53  ;;  %v6147_v12 = vpop.f32.mrb[172].mxu0  ;;  %v6242_v62 = vpop.f32.mrb[172].mxu1 }
 0xad5   :  { %v6148_v42 = vadd.f32 %v6147_v12, %v5983_v41  ;;  %v6243_v54 = vadd.f32 %v6242_v62, %v5991_v5  ;;  %v6149_v13 = vpop.f32.mrb[173].mxu0  ;;  %v6244_v19 = vpop.f32.mrb[173].mxu1 }
 0xad6   :  { %v6150_v60 = vadd.f32 %v6149_v13, %v5987_v29  ;;  %v6245_v59 = vadd.f32 %v6244_v19, %v5995_v7 }
 0xad7   :  { %6851 = vst [vmem:[#allocation2 + $0x80] sm:$0xff] %v6148_v42  ;;  %6853 = vst [vmem:[#allocation2 + $0x90] sm:$0xff] %v6243_v54 }
 0xad8   :  { %6852 = vst [vmem:[#allocation2 + $0x88] sm:$0xff] %v6150_v60  ;;  %6854 = vst [vmem:[#allocation2 + $0x98] sm:$0xff] %v6245_v59  ;;  %v6153_v18 = vpop.f32.mrb[174].mxu0  ;;  %v6248_v14 = vpop.f32.mrb[174].mxu1 }
 0xad9   :  { %v6154_v27 = vadd.f32 %v6153_v18, %v5983_v41  ;;  %v6249_v46 = vadd.f32 %v6248_v14, %v5991_v5  ;;  %v6155_v50 = vpop.f32.mrb[175].mxu0  ;;  %v6250_v33 = vpop.f32.mrb[175].mxu1 }
 0xada   :  { %v6156_v40 = vadd.f32 %v6155_v50, %v5987_v29  ;;  %v6251_v16 = vadd.f32 %v6250_v33, %v5995_v7  ;;  %v15398_v50 = vld [vmem:[%s15445_s15 + $0x8] sm:$0xff]  ;;  %s8655_s15 = smov [#allocation2]  }
 0xadb   :  { %6867 = vst [vmem:[#allocation2 + $0x100] sm:$0xff] %v6154_v27  ;;  %6869 = vst [vmem:[#allocation2 + $0x110] sm:$0xff] %v6249_v46  ;;  %s6920_s30 = sshll.u32 %s8655_s15, 4  ;;  %s6921_s30 = int_to_ptr.vmem [resolvable:$true] %s6920_s30 }
 0xadc   :  { %6868 = vst [vmem:[#allocation2 + $0x108] sm:$0xff] %v6156_v40  ;;  %6870 = vst [vmem:[#allocation2 + $0x118] sm:$0xff] %v6251_v16  ;;  %v6159_v8 = vpop.f32.mrb[176].mxu0  ;;  %v6254_v10 = vpop.f32.mrb[176].mxu1  ;;  %s8626_s0 = scalar_lea.vmem %s6921_s30, 10240  ;;  %p8631_p1 = scmp.lt.s32.totalorder %s6921_s30, %s6921_s30 }
 0xadd   :  { %v6160_v15 = vadd.f32 %v6159_v8, %v5983_v41  ;;  %v6255_v58 = vadd.f32 %v6254_v10, %v5991_v5  ;;  %v6161_v22 = vpop.f32.mrb[177].mxu0  ;;  %v6256_v43 = vpop.f32.mrb[177].mxu1  ;;  %p8627_p0 = scmp.ne.s32.totalorder %s6921_s30, %s8626_s0  ;;  %p8632_p2 = scmp.lt.s32.totalorder %s8626_s0, %s8626_s0 }
 0xade   :  { %v6162_v24 = vadd.f32 %v6161_v22, %v5987_v29  ;;  %v6257_v35 = vadd.f32 %v6256_v43, %v5995_v7  ;;  %v6023_v22 = vrot.slane %v15398_v50, %v16777_v6 }
 0xadf   :  { %6883 = vst [vmem:[#allocation2 + $0x180] sm:$0xff] %v6160_v15  ;;  %6885 = vst [vmem:[#allocation2 + $0x190] sm:$0xff] %v6255_v58  ;;  %v6015_v58 = vrot.slane %v15398_v50, %v16776_v61  ;;  %p8633_p3 = por %p8632_p2, %p8631_p1 }
 0xae0   :  { %6884 = vst [vmem:[#allocation2 + $0x188] sm:$0xff] %v6162_v24  ;;  %6886 = vst [vmem:[#allocation2 + $0x198] sm:$0xff] %v6257_v35  ;;  %v6165_v11 = vpop.f32.mrb[178].mxu0  ;;  %v6260_v28 = vpop.f32.mrb[178].mxu1  ;;  %v6019_v35 = vrot.slane %v15398_v50, %v16778_v39 }
 0xae1   :  { %v6166_v37 = vadd.f32 %v6165_v11, %v5983_v41  ;;  %v6261_v45 = vadd.f32 %v6260_v28, %v5991_v5  ;;  %v6167_v36 = vpop.f32.mrb[179].mxu0  ;;  %v6262_v0 = vpop.f32.mrb[179].mxu1  ;;  %v6027_v11 = vrot.slane %v15398_v50, %v16779_v1  ;;  %p8634_p4 = pnand %p8633_p3, %p8627_p0 }
 0xae2   :  { %v6168_v55 = vadd.f32 %v6167_v36, %v5987_v29  ;;  %v6263_v52 = vadd.f32 %v6262_v0, %v5995_v7 }
 0xae3   :  { %6899 = vst [vmem:[#allocation2 + $0x200] sm:$0xf] %v6166_v37  ;;  %6901 = vst [vmem:[#allocation2 + $0x210] sm:$0xf] %v6261_v45 }
 0xae4   :  { %6900 = vst [vmem:[#allocation2 + $0x208] sm:$0xf] %v6168_v55  ;;  %6902 = vst [vmem:[#allocation2 + $0x218] sm:$0xf] %v6263_v52  ;;  %v6331_v9 = vpop.f32.mrb[180].mxu0  ;;  %v6426_v38 = vpop.f32.mrb[180].mxu1 }
 0xae5   :  { %v6332_v34 = vadd.f32 %v6331_v9, %v5999_v21  ;;  %v6427_v25 = vadd.f32 %v6426_v38, %v6007_v48  ;;  %v6333_v2 = vpop.f32.mrb[181].mxu0  ;;  %v6428_v4 = vpop.f32.mrb[181].mxu1 }
 0xae6   :  { %v6334_v31 = vadd.f32 %v6333_v2, %v15381_v63  ;;  %v6429_v41 = vadd.f32 %v6428_v4, %v15385_v23 }
 0xae7   :  { %6839 = vst [vmem:[#allocation2 + $0x20] sm:$0xff] %v6332_v34  ;;  %6841 = vst [vmem:[#allocation2 + $0x30] sm:$0xff] %v6427_v25 }
 0xae8   :  { %6840 = vst [vmem:[#allocation2 + $0x28] sm:$0xff] %v6334_v31  ;;  %6842 = vst [vmem:[#allocation2 + $0x38] sm:$0xff] %v6429_v41  ;;  %v6337_v56 = vpop.f32.mrb[182].mxu0  ;;  %v6432_v5 = vpop.f32.mrb[182].mxu1 }
 0xae9   :  { %v6338_v29 = vadd.f32 %v6337_v56, %v5999_v21  ;;  %v6433_v7 = vadd.f32 %v6432_v5, %v6007_v48  ;;  %v6339_v30 = vpop.f32.mrb[183].mxu0  ;;  %v6434_v49 = vpop.f32.mrb[183].mxu1 }
 0xaea   :  { %v6340_v26 = vadd.f32 %v6339_v30, %v15381_v63  ;;  %v6435_v3 = vadd.f32 %v6434_v49, %v15385_v23 }
 0xaeb   :  { %6855 = vst [vmem:[#allocation2 + $0xa0] sm:$0xff] %v6338_v29  ;;  %6857 = vst [vmem:[#allocation2 + $0xb0] sm:$0xff] %v6433_v7 }
 0xaec   :  { %6856 = vst [vmem:[#allocation2 + $0xa8] sm:$0xff] %v6340_v26  ;;  %6858 = vst [vmem:[#allocation2 + $0xb8] sm:$0xff] %v6435_v3  ;;  %v6343_v51 = vpop.f32.mrb[184].mxu0  ;;  %v6438_v57 = vpop.f32.mrb[184].mxu1 }
 0xaed   :  { %v6344_v44 = vadd.f32 %v6343_v51, %v5999_v21  ;;  %v6439_v53 = vadd.f32 %v6438_v57, %v6007_v48  ;;  %v6345_v12 = vpop.f32.mrb[185].mxu0  ;;  %v6440_v62 = vpop.f32.mrb[185].mxu1 }
 0xaee   :  { %v6346_v42 = vadd.f32 %v6345_v12, %v15381_v63  ;;  %v6441_v54 = vadd.f32 %v6440_v62, %v15385_v23 }
 0xaef   :  { %6871 = vst [vmem:[#allocation2 + $0x120] sm:$0xff] %v6344_v44  ;;  %6873 = vst [vmem:[#allocation2 + $0x130] sm:$0xff] %v6439_v53 }
 0xaf0   :  { %6872 = vst [vmem:[#allocation2 + $0x128] sm:$0xff] %v6346_v42  ;;  %6874 = vst [vmem:[#allocation2 + $0x138] sm:$0xff] %v6441_v54  ;;  %v6349_v13 = vpop.f32.mrb[186].mxu0  ;;  %v6444_v19 = vpop.f32.mrb[186].mxu1  ;;  %v6031_v54 = vrot.slane %v15398_v50, %v16754_v32 }
 0xaf1   :  { %v6350_v60 = vadd.f32 %v6349_v13, %v5999_v21  ;;  %v6445_v59 = vadd.f32 %v6444_v19, %v6007_v48  ;;  %v6351_v18 = vpop.f32.mrb[187].mxu0  ;;  %v6446_v14 = vpop.f32.mrb[187].mxu1  ;;  %v6039_v13 = vrot.slane %v15398_v50, %v16757_v47 }
 0xaf2   :  { %v6352_v27 = vadd.f32 %v6351_v18, %v15381_v63  ;;  %v6447_v46 = vadd.f32 %v6446_v14, %v15385_v23  ;;  %v6043_v18 = vrot.slane %v15398_v50, %v16781_v17 }
 0xaf3   :  { %6887 = vst [vmem:[#allocation2 + $0x1a0] sm:$0xff] %v6350_v60  ;;  %6889 = vst [vmem:[#allocation2 + $0x1b0] sm:$0xff] %v6445_v59  ;;  %v6035_v59 = vrot.slane %v15398_v50, %v16780_v20 }
 0xaf4   :  { %6888 = vst [vmem:[#allocation2 + $0x1a8] sm:$0xff] %v6352_v27  ;;  %6890 = vst [vmem:[#allocation2 + $0x1b8] sm:$0xff] %v6447_v46  ;;  %v6355_v33 = vpop.f32.mrb[188].mxu0  ;;  %v6450_v40 = vpop.f32.mrb[188].mxu1 }
 0xaf5   :  { %v6356_v16 = vadd.f32 %v6355_v33, %v5999_v21  ;;  %v6451_v8 = vadd.f32 %v6450_v40, %v6007_v48  ;;  %v6357_v10 = vpop.f32.mrb[189].mxu0  ;;  %v6452_v15 = vpop.f32.mrb[189].mxu1 }
 0xaf6   :  { %v6358_v43 = vadd.f32 %v6357_v10, %v15381_v63  ;;  %v6453_v24 = vadd.f32 %v6452_v15, %v15385_v23 }
 0xaf7   :  { %6903 = vst [vmem:[#allocation2 + $0x220] sm:$0xf] %v6356_v16  ;;  %6905 = vst [vmem:[#allocation2 + $0x230] sm:$0xf] %v6451_v8 }
 0xaf8   :  { %6904 = vst [vmem:[#allocation2 + $0x228] sm:$0xf] %v6358_v43  ;;  %6906 = vst [vmem:[#allocation2 + $0x238] sm:$0xf] %v6453_v24  ;;  %v6521_v28 = vpop.f32.mrb[190].mxu0  ;;  %v6616_v37 = vpop.f32.mrb[190].mxu1 }
 0xaf9   :  { %v6522_v61 = vadd.f32 %v6521_v28, %v6015_v58  ;;  %v6617_v45 = vadd.f32 %v6616_v37, %v6023_v22  ;;  %v6523_v36 = vpop.f32.mrb[191].mxu0  ;;  %v6618_v6 = vpop.f32.mrb[191].mxu1 }
 0xafa   :  { %v6524_v0 = vadd.f32 %v6523_v36, %v6019_v35  ;;  %v6619_v21 = vadd.f32 %v6618_v6, %v6027_v11 }
 0xafb   :  { %6843 = vst [vmem:[#allocation2 + $0x40] sm:$0xff] %v6522_v61  ;;  %6845 = vst [vmem:[#allocation2 + $0x50] sm:$0xff] %v6617_v45 }
 0xafc   :  { %6844 = vst [vmem:[#allocation2 + $0x48] sm:$0xff] %v6524_v0  ;;  %6846 = vst [vmem:[#allocation2 + $0x58] sm:$0xff] %v6619_v21  ;;  %v6527_v39 = vpop.f32.mrb[192].mxu0  ;;  %v6622_v48 = vpop.f32.mrb[192].mxu1 }
 0xafd   :  { %v6528_v55 = vadd.f32 %v6527_v39, %v6015_v58  ;;  %v6623_v1 = vadd.f32 %v6622_v48, %v6023_v22  ;;  %v6529_v52 = vpop.f32.mrb[193].mxu0  ;;  %v6624_v63 = vpop.f32.mrb[193].mxu1 }
 0xafe   :  { %v6530_v23 = vadd.f32 %v6529_v52, %v6019_v35  ;;  %v6625_v9 = vadd.f32 %v6624_v63, %v6027_v11 }
 0xaff   :  { %6859 = vst [vmem:[#allocation2 + $0xc0] sm:$0xff] %v6528_v55  ;;  %6861 = vst [vmem:[#allocation2 + $0xd0] sm:$0xff] %v6623_v1 }
 0xb00   :  { %6860 = vst [vmem:[#allocation2 + $0xc8] sm:$0xff] %v6530_v23  ;;  %6862 = vst [vmem:[#allocation2 + $0xd8] sm:$0xff] %v6625_v9  ;;  %v6533_v38 = vpop.f32.mrb[194].mxu0  ;;  %v6628_v34 = vpop.f32.mrb[194].mxu1 }
 0xb01   :  { %v6534_v25 = vadd.f32 %v6533_v38, %v6015_v58  ;;  %v6629_v2 = vadd.f32 %v6628_v34, %v6023_v22  ;;  %v6535_v4 = vpop.f32.mrb[195].mxu0  ;;  %v6630_v31 = vpop.f32.mrb[195].mxu1 }
 0xb02   :  { %v6536_v41 = vadd.f32 %v6535_v4, %v6019_v35  ;;  %v6631_v56 = vadd.f32 %v6630_v31, %v6027_v11 }
 0xb03   :  { %6875 = vst [vmem:[#allocation2 + $0x140] sm:$0xff] %v6534_v25  ;;  %6877 = vst [vmem:[#allocation2 + $0x150] sm:$0xff] %v6629_v2 }
 0xb04   :  { %6876 = vst [vmem:[#allocation2 + $0x148] sm:$0xff] %v6536_v41  ;;  %6878 = vst [vmem:[#allocation2 + $0x158] sm:$0xff] %v6631_v56  ;;  %v6539_v5 = vpop.f32.mrb[196].mxu0  ;;  %v6634_v29 = vpop.f32.mrb[196].mxu1 }
 0xb05   :  { %v6540_v7 = vadd.f32 %v6539_v5, %v6015_v58  ;;  %v6635_v30 = vadd.f32 %v6634_v29, %v6023_v22  ;;  %v6541_v49 = vpop.f32.mrb[197].mxu0  ;;  %v6636_v26 = vpop.f32.mrb[197].mxu1 }
 0xb06   :  { %v6542_v3 = vadd.f32 %v6541_v49, %v6019_v35  ;;  %v6637_v51 = vadd.f32 %v6636_v26, %v6027_v11 }
 0xb07   :  { %6891 = vst [vmem:[#allocation2 + $0x1c0] sm:$0xff] %v6540_v7  ;;  %6893 = vst [vmem:[#allocation2 + $0x1d0] sm:$0xff] %v6635_v30 }
 0xb08   :  { %6892 = vst [vmem:[#allocation2 + $0x1c8] sm:$0xff] %v6542_v3  ;;  %6894 = vst [vmem:[#allocation2 + $0x1d8] sm:$0xff] %v6637_v51  ;;  %v6545_v57 = vpop.f32.mrb[198].mxu0  ;;  %v6640_v44 = vpop.f32.mrb[198].mxu1 }
 0xb09   :  { %v6546_v53 = vadd.f32 %v6545_v57, %v6015_v58  ;;  %v6641_v12 = vadd.f32 %v6640_v44, %v6023_v22  ;;  %v6547_v62 = vpop.f32.mrb[199].mxu0  ;;  %v6642_v42 = vpop.f32.mrb[199].mxu1 }
 0xb0a   :  { %v6548_v19 = vadd.f32 %v6547_v62, %v6019_v35  ;;  %v6643_v60 = vadd.f32 %v6642_v42, %v6027_v11 }
 0xb0b   :  { %6907 = vst [vmem:[#allocation2 + $0x240] sm:$0xf] %v6546_v53  ;;  %6909 = vst [vmem:[#allocation2 + $0x250] sm:$0xf] %v6641_v12 }
 0xb0c   :  { %6908 = vst [vmem:[#allocation2 + $0x248] sm:$0xf] %v6548_v19  ;;  %6910 = vst [vmem:[#allocation2 + $0x258] sm:$0xf] %v6643_v60  ;;  %v6711_v14 = vpop.f32.mrb[200].mxu0  ;;  %v6806_v27 = vpop.f32.mrb[200].mxu1 }
 0xb0d   :  { %v6712_v46 = vadd.f32 %v6711_v14, %v6031_v54  ;;  %v6807_v33 = vadd.f32 %v6806_v27, %v6039_v13  ;;  %v6713_v32 = vpop.f32.mrb[201].mxu0  ;;  %v6808_v40 = vpop.f32.mrb[201].mxu1 }
 0xb0e   :  { %v6714_v16 = vadd.f32 %v6713_v32, %v6035_v59  ;;  %v6809_v47 = vadd.f32 %v6808_v40, %v6043_v18 }
 0xb0f   :  { %6847 = vst [vmem:[#allocation2 + $0x60] sm:$0xff] %v6712_v46  ;;  %6849 = vst [vmem:[#allocation2 + $0x70] sm:$0xff] %v6807_v33 }
 0xb10   :  { %6848 = vst [vmem:[#allocation2 + $0x68] sm:$0xff] %v6714_v16  ;;  %6850 = vst [vmem:[#allocation2 + $0x78] sm:$0xff] %v6809_v47  ;;  %v6717_v20 = vpop.f32.mrb[202].mxu0  ;;  %v6812_v8 = vpop.f32.mrb[202].mxu1 }
 0xb11   :  { %v6718_v10 = vadd.f32 %v6717_v20, %v6031_v54  ;;  %v6813_v17 = vadd.f32 %v6812_v8, %v6039_v13  ;;  %v6719_v50 = vpop.f32.mrb[203].mxu0  ;;  %v6814_v15 = vpop.f32.mrb[203].mxu1 }
 0xb12   :  { %v6720_v58 = vadd.f32 %v6719_v50, %v6035_v59  ;;  %v6815_v22 = vadd.f32 %v6814_v15, %v6043_v18 }
 0xb13   :  { %6863 = vst [vmem:[#allocation2 + $0xe0] sm:$0xff] %v6718_v10  ;;  %6865 = vst [vmem:[#allocation2 + $0xf0] sm:$0xff] %v6813_v17 }
 0xb14   :  { %6864 = vst [vmem:[#allocation2 + $0xe8] sm:$0xff] %v6720_v58  ;;  %6866 = vst [vmem:[#allocation2 + $0xf8] sm:$0xff] %v6815_v22  ;;  %v6723_v43 = vpop.f32.mrb[204].mxu0  ;;  %v6818_v24 = vpop.f32.mrb[204].mxu1 }
 0xb15   :  { %v6724_v35 = vadd.f32 %v6723_v43, %v6031_v54  ;;  %v6819_v11 = vadd.f32 %v6818_v24, %v6039_v13  ;;  %v6725_v28 = vpop.f32.mrb[205].mxu0  ;;  %v6820_v37 = vpop.f32.mrb[205].mxu1 }
 0xb16   :  { %v6726_v61 = vadd.f32 %v6725_v28, %v6035_v59  ;;  %v6821_v45 = vadd.f32 %v6820_v37, %v6043_v18 }
 0xb17   :  { %6879 = vst [vmem:[#allocation2 + $0x160] sm:$0xff] %v6724_v35  ;;  %6881 = vst [vmem:[#allocation2 + $0x170] sm:$0xff] %v6819_v11 }
 0xb18   :  { %6880 = vst [vmem:[#allocation2 + $0x168] sm:$0xff] %v6726_v61  ;;  %6882 = vst [vmem:[#allocation2 + $0x178] sm:$0xff] %v6821_v45  ;;  %v6729_v36 = vpop.f32.mrb[206].mxu0  ;;  %v6824_v6 = vpop.f32.mrb[206].mxu1 }
 0xb19   :  { %v6730_v0 = vadd.f32 %v6729_v36, %v6031_v54  ;;  %v6825_v21 = vadd.f32 %v6824_v6, %v6039_v13  ;;  %v6731_v39 = vpop.f32.mrb[207].mxu0  ;;  %v6826_v48 = vpop.f32.mrb[207].mxu1 }
 0xb1a   :  { %v6732_v55 = vadd.f32 %v6731_v39, %v6035_v59  ;;  %v6827_v1 = vadd.f32 %v6826_v48, %v6043_v18 }
 0xb1b   :  { %6895 = vst [vmem:[#allocation2 + $0x1e0] sm:$0xff] %v6730_v0  ;;  %6897 = vst [vmem:[#allocation2 + $0x1f0] sm:$0xff] %v6825_v21 }
 0xb1c   :  { %6896 = vst [vmem:[#allocation2 + $0x1e8] sm:$0xff] %v6732_v55  ;;  %6898 = vst [vmem:[#allocation2 + $0x1f8] sm:$0xff] %v6827_v1  ;;  %v6735_v52 = vpop.f32.mrb[208].mxu0  ;;  %v6830_v63 = vpop.f32.mrb[208].mxu1 }
 0xb1d   :  { %v6736_v23 = vadd.f32 %v6735_v52, %v6031_v54  ;;  %v6831_v9 = vadd.f32 %v6830_v63, %v6039_v13  ;;  %v6737_v38 = vpop.f32.mrb[209].mxu0  ;;  %v6832_v34 = vpop.f32.mrb[209].mxu1 }
 0xb1e   :  { %v6738_v25 = vadd.f32 %v6737_v38, %v6035_v59  ;;  %v6833_v2 = vadd.f32 %v6832_v34, %v6043_v18 }
 0xb1f   :  { %6911 = vst [vmem:[#allocation2 + $0x260] sm:$0xf] %v6736_v23  ;;  %6913 = vst [vmem:[#allocation2 + $0x270] sm:$0xf] %v6831_v9 }
 0xb20   :  { %6912 = vst [vmem:[#allocation2 + $0x268] sm:$0xf] %v6738_v25  ;;  %6914 = vst [vmem:[#allocation2 + $0x278] sm:$0xf] %v6833_v2 }
 0xb21   :  { %8637 = shalt.err (!%p8634_p4)
}
 0xb22   :  { %s8638_s9 = scalar_lea.hbm %s15446_s16, 10240 }
 0xb23   :  { %p8639_p5 = scmp.ne.s32.totalorder %s15446_s16, %s8638_s9  ;;  %p8642_p6 = scmp.lt.u32.totalorder %s8638_s9, %s15446_s16 }
 0xb25   :  { %p8644_p7 = pnand %p8642_p6, %p8639_p5 }
 0xb27   :  { %8647 = shalt.err (!%p8644_p7)
}
 0xb28   :  { %s8656_s28 = smov 2048   ;;  %s8657_s21 = smov 128  }
 0xb29   :  { %6926 = dma.vmem_to_hbm [thread:$0]  %s6921_s30, 10240, %s15446_s16, [#allocation3], %s8656_s28, %s8656_s28, %s8657_s21  }
 0xb2a   :  { %8648 = dma.done.wait [#allocation3], 10240  }
 0xb2b   :  { %8649 = vsyncadd [#allocation3], 4294957056 }
 0xb2c   :  { %6930 = vsyncpa [#allocation3], 1 }

</bundles_post_ra>
